<compile_context>
chip_gen: v5e
topology: v5e:2x2
jax: 0.10.0
libtpu: 0.0.40
codegen_flags: <defaults>
</compile_context>

<pallas_src>
import jax
import jax.numpy as jnp
import numpy as np
from jax.experimental import pallas as pl
from jax.experimental.pallas import tpu as pltpu

B, H, N, K = 2, 32, 128, 8          # batch, latent size, #points, max #neighbors
KN = K * N
KN3 = 3 * KN
ARAP_WEIGHT = 0.5


# ----------------------------------------------------------------------------
# Fused kernel: (prefolded) decoder + ARAP residual + mean + analytic code.grad
# ----------------------------------------------------------------------------
def arap_fused_kernel(code_ref, a_ref, at_ref, d_ref, mean_ref, grad_ref):
    # diff[b, c*KN + k*N + n] = sqrt(weff[k,n]) *
    #        ((rec[b,c,n]-rec[b,c,j]) - (xyz1[b,c,n]-xyz1[b,c,j]))
    diff = (jnp.dot(code_ref[...], a_ref[...],
                    preferred_element_type=jnp.float32,
                    precision=jax.lax.Precision.HIGHEST)
            - d_ref[...])                                          # (B, 3KN)

    inv = 1.0 / KN                                                 # torch full-K divisor
    # meanEnergy[b] = (1/KN) * sum_{c,k,n} diff^2
    mean_ref[...] = jnp.sum(diff * diff, axis=1, keepdims=True) * inv          # (B, 1)
    # d(meanEnergy[b])/d(code[b,:]) = (2/KN) * diff @ A'^T
    grad_ref[...] = jnp.dot(diff, at_ref[...],
                            preferred_element_type=jnp.float32,
                            precision=jax.lax.Precision.HIGHEST) * (2.0 * inv)  # (B, H)


def arap_energy_forward(code, a_fold, a_fold_t, d_fold):
    mean2d, code_grad = pl.pallas_call(
        arap_fused_kernel,
        out_shape=(
            jax.ShapeDtypeStruct((B, 1), jnp.float32),             # meanEnergy
            jax.ShapeDtypeStruct((B, H), jnp.float32),             # code.grad
        ),
        in_specs=[pl.BlockSpec(memory_space=pltpu.MemorySpace.VMEM)] * 4,
        out_specs=(
            pl.BlockSpec(memory_space=pltpu.MemorySpace.VMEM),
            pl.BlockSpec(memory_space=pltpu.MemorySpace.VMEM),
        ),
    )(code, a_fold, a_fold_t, d_fold)
    return mean2d[:, 0], code_grad


# ----------------------------------------------------------------------------
# Host-side static prefold (once per geometry / decoder, outside the hot path)
# ----------------------------------------------------------------------------
def prefold_static(w_dec, b_dec, xyz1, weight_matrix, mask_nk, nbr_idx, arap_weight):
    wd = np.asarray(w_dec, np.float64)                     # (H, 3N)
    bd = np.asarray(b_dec, np.float64).reshape(3 * N)      # (3N,)
    xz = np.asarray(xyz1, np.float64)                      # (B, 3, N)
    w_nk = np.asarray(weight_matrix, np.float64)           # (N, K)
    m_nk = np.asarray(mask_nk, np.float64)                 # (N, K)

    weff_kn = (arap_weight * w_nk * m_nk).T                # (K, N)
    sqw = np.sqrt(weff_kn).reshape(1, KN)                  # flat index k*N+n

    a_cols, d_cols = [], []
    for c in range(3):
        wc = wd[:, c * N:(c + 1) * N]                      # (H, N)
        bc = bd[c * N:(c + 1) * N]                         # (N,)
        xc = xz[:, c, :]                                   # (B, N)
        # edge differences (vertex i minus neighbor j), laid out (K, N) -> k*N+n
        a_c = np.transpose(wc[:, :, None] - wc[:, nbr_idx], (0, 2, 1)).reshape(H, KN)
        b_c = (bc[:, None] - bc[nbr_idx]).T.reshape(KN)
        x_c = np.transpose(xc[:, :, None] - xc[:, nbr_idx], (0, 2, 1)).reshape(B, KN)
        a_cols.append(a_c * sqw)
        d_cols.append((x_c - b_c[None, :]) * sqw)

    a_fold = np.concatenate(a_cols, axis=1).astype(np.float32)    # (H, 3KN)
    d_fold = np.concatenate(d_cols, axis=1).astype(np.float32)    # (B, 3KN)
    a_fold_t = np.ascontiguousarray(a_fold.T)                     # (3KN, H)
    return jnp.asarray(a_fold), jnp.asarray(a_fold_t), jnp.asarray(d_fold)


if __name__ == "__main__":
    key = jax.random.PRNGKey(0)
    k1, k2, k3, k4, k5 = jax.random.split(key, 5)

    # synthetic parameters matching the module's __init__ shapes
    w_dec = jax.random.normal(k1, (H, 3 * N), jnp.float32) * 0.1   # decoder.decoder1 weight
    b_dec = jax.random.normal(k2, (1, 3 * N), jnp.float32) * 0.01  # decoder.decoder1 bias
    xyz1 = jax.random.normal(k3, (B, 3, N), jnp.float32)
    code = jax.random.normal(k4, (B, H), jnp.float32)
    weight_matrix = jax.random.uniform(k5, (N, K), jnp.float32, 0.1, 1.0)

    nbr_idx_np = ((np.arange(N)[:, None] + np.arange(1, K + 1)[None, :]) % N).astype(np.int32)
    num_neighbors = 5 + (np.arange(N) % 4)                         # <= K
    # accnumNeighbors is a CSR offset table for the flattened CUDA op; not
    # needed for the dense (K, N) formulation used here.
    mask_np = (np.arange(K)[None, :] < num_neighbors[:, None]).astype(np.float32)   # (N, K)

    # ---------- static prefold (decoder weights + geometry + edge weights) ----------
    a_fold, a_fold_t, d_fold = prefold_static(
        w_dec, b_dec, xyz1, weight_matrix, mask_np, nbr_idx_np, ARAP_WEIGHT)

    # ---------- fused Pallas forward: meanEnergy and code.grad ----------
    mean_e, code_grad = arap_energy_forward(code, a_fold, a_fold_t, d_fold)
    jax.block_until_ready((mean_e, code_grad))

    # ---------- independent numpy float64 reference (exact gather formulation) -----
    wd64 = np.asarray(w_dec, np.float64)
    bd64 = np.asarray(b_dec, np.float64)
    xz64 = np.asarray(xyz1, np.float64)
    weff_nk64 = ARAP_WEIGHT * np.asarray(weight_matrix, np.float64) * mask_np.astype(np.float64)

    def ref_np(code_np):
        c64 = np.asarray(code_np, np.float64)
        rec = (c64 @ wd64 + bd64).reshape(B, 3, N)
        rec_j = rec[:, :, nbr_idx_np]                              # (B,3,N,K)
        x_j = xz64[:, :, nbr_idx_np]
        d = (rec[:, :, :, None] - rec_j) - (xz64[:, :, :, None] - x_j)    # (B,3,N,K)
        e = weff_nk64[None] * np.sum(d * d, axis=1)                # (B,N,K)
        mean = e.reshape(B, -1).sum(axis=1) / KN                   # == mean(mean(E,2),1)
        # analytic gradient wrt rec, then chain through the linear decoder
        t = (2.0 / KN) * weff_nk64[None, None] * d                 # (B,3,N,K)
        g_rec = t.sum(axis=3)                                      # + at vertex i
        np.add.at(g_rec, (slice(None), slice(None), nbr_idx_np), -t)   # - at neighbor j
        grad = g_rec.reshape(B, 3 * N) @ wd64.T                    # (B, H)
        return mean, grad

    ref_mean, ref_grad = ref_np(np.asarray(code))

    assert mean_e.shape == (B,) and code_grad.shape == (B, H)
    # Tight tolerances: the i-j cancellation is prefolded exactly on the host and
    # the in-kernel dots run at Precision.HIGHEST (fp32 MXU passes).
    assert np.allclose(np.asarray(mean_e), ref_mean, rtol=2e-3, atol=2e-6), (mean_e, ref_mean)
    assert np.allclose(np.asarray(code_grad), ref_grad, rtol=2e-3, atol=2e-6), (code_grad, ref_grad)

    print("KERNEL_OK")
</pallas_src>

<mosaic_0001>
module attributes {stable_mosaic.version = 11 : i64} {
  func.func @arap_fused_kernel(%arg0: memref<2x32xf32, #tpu.memory_space<vmem>>, %arg1: memref<32x3072xf32, #tpu.memory_space<vmem>>, %arg2: memref<3072x32xf32, #tpu.memory_space<vmem>>, %arg3: memref<2x3072xf32, #tpu.memory_space<vmem>>, %arg4: memref<2x1xf32, #tpu.memory_space<vmem>>, %arg5: memref<2x32xf32, #tpu.memory_space<vmem>>) attributes {dimension_semantics = [], scalar_prefetch = 0 : i64, scratch_operands = 0 : i64, tpu.core_type = #tpu.core_type<tc>} {
    %c0 = arith.constant 0 : index
    %c0_0 = arith.constant 0 : index
    %0 = vector.load %arg0[%c0, %c0_0] : memref<2x32xf32, #tpu.memory_space<vmem>>, vector<2x32xf32>
    %c0_1 = arith.constant 0 : index
    %c0_2 = arith.constant 0 : index
    %1 = vector.load %arg1[%c0_1, %c0_2] : memref<32x3072xf32, #tpu.memory_space<vmem>>, vector<32x3072xf32>
    %cst = arith.constant dense<0.000000e+00> : vector<2x3072xf32>
    %2 = tpu.matmul %0, %1, %cst {dimension_numbers = #tpu.dot_dimension_numbers<[1], [0], [0], [1], [0, 0, 1, 1], [], []>, precision = #tpu.contract_precision<fp32>} : vector<2x32xf32>, vector<32x3072xf32>, vector<2x3072xf32> -> vector<2x3072xf32>
    %c0_3 = arith.constant 0 : index
    %c0_4 = arith.constant 0 : index
    %3 = vector.load %arg3[%c0_3, %c0_4] : memref<2x3072xf32, #tpu.memory_space<vmem>>, vector<2x3072xf32>
    %4 = arith.subf %2, %3 : vector<2x3072xf32>
    %5 = arith.mulf %4, %4 : vector<2x3072xf32>
    %cst_5 = arith.constant dense<0.000000e+00> : vector<2xf32>
    %6 = vector.multi_reduction <add>, %5, %cst_5 [1] : vector<2x3072xf32> to vector<2xf32>
    %7 = vector.shape_cast %6 : vector<2xf32> to vector<2x1xf32>
    %cst_6 = arith.constant 9.765625E-4 : f32
    %8 = vector.broadcast %cst_6 : f32 to vector<2x1xf32>
    %9 = arith.mulf %7, %8 : vector<2x1xf32>
    %c0_7 = arith.constant 0 : index
    %c0_8 = arith.constant 0 : index
    %10 = vector.load %arg4[%c0_7, %c0_8] : memref<2x1xf32, #tpu.memory_space<vmem>>, vector<2x1xf32>
    tpu.vector_store %arg4[%c0_7, %c0_8], %9 {strides = array<i32>} : memref<2x1xf32, #tpu.memory_space<vmem>>, vector<2x1xf32>,
    %c0_9 = arith.constant 0 : index
    %c0_10 = arith.constant 0 : index
    %11 = vector.load %arg2[%c0_9, %c0_10] : memref<3072x32xf32, #tpu.memory_space<vmem>>, vector<3072x32xf32>
    %cst_11 = arith.constant dense<0.000000e+00> : vector<2x32xf32>
    %12 = tpu.matmul %4, %11, %cst_11 {dimension_numbers = #tpu.dot_dimension_numbers<[1], [0], [0], [1], [0, 0, 1, 1], [], []>, precision = #tpu.contract_precision<fp32>} : vector<2x3072xf32>, vector<3072x32xf32>, vector<2x32xf32> -> vector<2x32xf32>
    %cst_12 = arith.constant 0.001953125 : f32
    %13 = vector.broadcast %cst_12 : f32 to vector<2x32xf32>
    %14 = arith.mulf %12, %13 : vector<2x32xf32>
    %c0_13 = arith.constant 0 : index
    %c0_14 = arith.constant 0 : index
    %15 = vector.load %arg5[%c0_13, %c0_14] : memref<2x32xf32, #tpu.memory_space<vmem>>, vector<2x32xf32>
    tpu.vector_store %arg5[%c0_13, %c0_14], %14 {strides = array<i32>} : memref<2x32xf32, #tpu.memory_space<vmem>>, vector<2x32xf32>,
    return
  }
}

</mosaic_0001>

<bundles_post_ra>
// kernel: tpu_custom_call.1
= control target key start
LH: loop header
LB: loop body
LE: loop exit
PB: predicated region body
PF: predicated region fallthrough
CT: control target
= control target key end

     0   :  { %vm117_vm0 = vcmask 261120   ;;  %s22878_s0 = inlined_call_operand.vmem [shape: f32[2,32], index: 0, kind: input, shape index: {}]   ;;  %s22879_s1 = inlined_call_operand.vmem [shape: f32[32,3072], index: 1, kind: input, shape index: {}]   ;;  %s22880_s2 = inlined_call_operand.vmem [shape: f32[3072,32], index: 2, kind: input, shape index: {}]   ;;  %s22881_s3 = inlined_call_operand.vmem [shape: f32[2,3072], index: 3, kind: input, shape index: {}]   ;;  %s22882_s4 = inlined_call_operand.vmem [shape: f32[2,1], index: 4, kind: output, shape index: {0}]   ;;  %s22883_s5 = inlined_call_operand.hbm [shape: f32[2,32], index: 5, kind: output, shape index: {1}]  }
   0x1   :  { %v93_v0 = vld [vmem:[%s22879_s1 + $0x240] sm:$0xff]  ;;  %v94_v10 = vld [vmem:[%s22879_s1 + $0x248] sm:$0xff] }
   0x2   :  { %v69_v1 = vld [vmem:[%s22879_s1 + $0x180] sm:$0xff]  ;;  %v13387_v3 = vand.u32 4294901760, %v93_v0  ;;  %v70_v11 = vld [vmem:[%s22879_s1 + $0x188] sm:$0xff]  ;;  %v13420_v18 = vand.u32 4294901760, %v94_v10 }
   0x3   :  { %v45_v2 = vld [vmem:[%s22879_s1 + $0xc0] sm:$0xff]  ;;  %v13389_v4 = vand.u32 4294901760, %v69_v1  ;;  %v46_v12 = vld [vmem:[%s22879_s1 + $0xc8] sm:$0xff]  ;;  %v13422_v19 = vand.u32 4294901760, %v70_v11 }
   0x4   :  { %v13391_v5 = vand.u32 4294901760, %v45_v2  ;;  %v21_v6 = vld [vmem:[%s22879_s1] sm:$0xff]  ;;  %234 = vmatpush.msra.mxu3 %v13387_v3  ;;  %134 = vmatpush.msra.mxu0 %v13387_v3  ;;  %v163_v13 = vsub.f32 %v93_v0, %v13387_v3  ;;  %v13424_v20 = vand.u32 4294901760, %v46_v12  ;;  %v13432_v25 = vsub.f32 %v94_v10, %v13420_v18 }
   0x5   :  { %v20_v7 = vld [vmem:[%s22878_s0] sm:$0x3]  ;;  %v13399_v8 = vand.u32 4294901760, %v21_v6  ;;  %v169_v14 = vsub.f32 %v69_v1, %v13389_v4  ;;  %v13435_v26 = vsub.f32 %v70_v11, %v13422_v19 }
   0x6   :  { %v119_v9 = vsel %vm117_vm0, %v20_v7, 0  ;;  %v175_v15 = vsub.f32 %v45_v2, %v13391_v5  ;;  %205 = vmatpush.msra.mxu2 %v163_v13  ;;  %236 = vmatpush.msra.mxu3 %v13389_v4  ;;  %v164_v22 = vand.u32 4294901760, %v163_v13  ;;  %v13438_v27 = vsub.f32 %v46_v12, %v13424_v20 }
   0x7   :  { %v13415_v16 = vand.u32 4294901760, %v119_v9  ;;  %v13418_v17 = vsub.f32 %v21_v6, %v13399_v8  ;;  %v170_v23 = vand.u32 4294901760, %v169_v14  ;;  %136 = vmatpush.msra.mxu0 %v13389_v4 }
   0x8   :  { %v176_v24 = vand.u32 4294901760, %v175_v15 }
   0x9   :  { %v13428_v21 = vsub.f32 %v119_v9, %v13415_v16  ;;  %v182_v28 = vand.u32 4294901760, %v13418_v17 }
   0xa   :  { %11 = vsyncpa [#allocation3], 0  ;;  %208 = vmatpush.msra.mxu2 %v169_v14  ;;  %238 = vmatpush.msra.mxu3 %v13391_v5  ;;  %v165_v30 = vsub.f32 %v163_v13, %v164_v22  ;;  %v171_v31 = vsub.f32 %v169_v14, %v170_v23  ;;  %v177_v32 = vsub.f32 %v175_v15, %v176_v24  ;;  %v349_v33 = vand.u32 4294901760, %v13432_v25  ;;  %v22_v36 = vld [vmem:[%s22879_s1 + $0x8] sm:$0xff]  ;;  %v95_v54 = vld [vmem:[%s22879_s1 + $0x250] sm:$0xff] }
   0xb   :  { %v13443_v29 = vand.u32 4294901760, %v13428_v21  ;;  %138 = vmatpush.msra.mxu0 %v13391_v5  ;;  %v355_v34 = vand.u32 4294901760, %v13435_v26  ;;  %v361_v35 = vand.u32 4294901760, %v13438_v27  ;;  %v183_v40 = vsub.f32 %v13418_v17, %v182_v28  ;;  %v96_v56 = vld [vmem:[%s22879_s1 + $0x258] sm:$0xff]  ;;  %v71_v57 = vld [vmem:[%s22879_s1 + $0x190] sm:$0xff] }
   0xc   :  { %211 = vmatpush.msra.mxu2 %v175_v15  ;;  %240 = vmatpush.msra.mxu3 %v13399_v8  ;;  %v166_v37 = vand.u32 4294901760, %v165_v30  ;;  %v172_v39 = vand.u32 4294901760, %v171_v31  ;;  %v350_v41 = vsub.f32 %v13432_v25, %v349_v33  ;;  %v178_v45 = vand.u32 4294901760, %v177_v32  ;;  %v47_v59 = vld [vmem:[%s22879_s1 + $0xd0] sm:$0xff]  ;;  %v72_v61 = vld [vmem:[%s22879_s1 + $0x198] sm:$0xff] }
   0xd   :  { %v144_v38 = vsub.f32 %v13428_v21, %v13443_v29  ;;  %244 = vmatmul.f32.vlgmr.msra.gmra.mxu3 %v13443_v29  ;;  %140 = vmatpush.msra.mxu0 %v13399_v8  ;;  %v356_v42 = vsub.f32 %v13435_v26, %v355_v34  ;;  %v362_v43 = vsub.f32 %v13438_v27, %v361_v35  ;;  %v13468_v46 = vand.u32 4294901760, %v22_v36  ;;  %v23_v63 = vld [vmem:[%s22879_s1 + $0x10] sm:$0xff]  ;;  %v48_v0 = vld [vmem:[%s22879_s1 + $0xd8] sm:$0xff] }
   0xe   :  { %167 = vmatpush.msra.mxu1 %v166_v37  ;;  %214 = vmatpush.msra.mxu2 %v13418_v17  ;;  %v351_v47 = vand.u32 4294901760, %v350_v41  ;;  %v184_v49 = vand.u32 4294901760, %v183_v40  ;;  %v13493_v58 = vand.u32 4294901760, %v95_v54  ;;  %v13500_v60 = vand.u32 4294901760, %v96_v56  ;;  %v24_v6 = vld [vmem:[%s22879_s1 + $0x18] sm:$0xff] }
   0xf   :  { %v13466_v44 = vand.u32 4294901760, %v144_v38  ;;  %217 = vmatmul.f32.vlgmr.msra.gmra.mxu2 %v13428_v21  ;;  %263 = vmatpush.msrb.mxu0 %v164_v22  ;;  %v357_v48 = vand.u32 4294901760, %v356_v42  ;;  %v13473_v50 = vsub.f32 %v22_v36, %v13468_v46  ;;  %v363_v51 = vand.u32 4294901760, %v362_v43  ;;  %v97_v42 = vld [vmem:[%s22879_s1 + $0x260] sm:$0xff]  ;;  %v98_v43 = vld [vmem:[%s22879_s1 + $0x268] sm:$0xff] }
  0x10   :  { %173 = vmatpush.msra.mxu1 %v172_v39  ;;  %352 = vmatpush.msrb.mxu3 %v351_v47  ;;  %v13507_v62 = vand.u32 4294901760, %v71_v57  ;;  %v13519_v1 = vsub.f32 %v95_v54, %v13493_v58  ;;  %v13521_v2 = vand.u32 4294901760, %v47_v59  ;;  %v13539_v7 = vand.u32 4294901760, %v23_v63  ;;  %v49_v47 = vld [vmem:[%s22879_s1 + $0xe0] sm:$0xff] }
  0x11   :  { %146 = vmatmul.f32.vlgmr.msra.gmra.mxu0 %v13466_v44  ;;  %319 = vmatpush.msrb.mxu2 %v13420_v18  ;;  %v367_v52 = vand.u32 4294901760, %v13473_v50  ;;  %v13541_v9 = vand.u32 4294901760, %v48_v0  ;;  %v13555_v12 = vand.u32 4294901760, %v24_v6  ;;  %v13659_v54 = vand.u32 4294901760, %v49_v47 }
  0x12   :  { %179 = vmatpush.msra.mxu1 %v178_v45  ;;  %267 = vmatpush.msrb.mxu0 %v170_v23  ;;  %v13549_v10 = vsub.f32 %v47_v59, %v13521_v2  ;;  %v13562_v14 = vsub.f32 %v23_v63, %v13539_v7  ;;  %v73_v45 = vld [vmem:[%s22879_s1 + $0x1a0] sm:$0xff]  ;;  %vm4676_vm1 = vcmask 1041408   ;;  %vm4727_vm2 = vcmask 1024  }
  0x13   :  { %358 = vmatpush.msrb.mxu3 %v357_v48  ;;  %321 = vmatpush.msrb.mxu2 %v13422_v19  ;;  %v368_v53 = vsub.f32 %v13473_v50, %v367_v52  ;;  %v13566_v17 = vsub.f32 %v48_v0, %v13541_v9  ;;  %v13636_v48 = vand.u32 4294901760, %v98_v43  ;;  %vm13298_vm3 = vcmask 254976  }
  0x14   :  { %185 = vmatpush.msra.mxu1 %v184_v49  ;;  %271 = vmatpush.msrb.mxu0 %v176_v24  ;;  %v546_v23 = vand.u32 4294901760, %v13549_v10  ;;  %v13576_v24 = vsub.f32 %v24_v6, %v13555_v12  ;;  %v74_v49 = vld [vmem:[%s22879_s1 + $0x1a8] sm:$0xff] }
  0x15   :  { %364 = vmatpush.msrb.mxu3 %v363_v51  ;;  %323 = vmatpush.msrb.mxu2 %v13424_v20  ;;  %v369_v55 = vand.u32 4294901760, %v368_v53  ;;  %v25_v51 = vld [vmem:[%s22879_s1 + $0x20] sm:$0xff] }
  0x16   :  { %187 = vmatmul.f32.vlgmr.msra.gmra.mxu1 %v13415_v16  ;;  %275 = vmatpush.msrb.mxu0 %v182_v28  ;;  %v737_v31 = vand.u32 4294901760, %v13576_v24  ;;  %v13677_v59 = vand.u32 4294901760, %v25_v51 }
  0x17   :  { %294 = vmatpush.msrb.mxu1 %v13387_v3  ;;  %325 = vmatpush.msrb.mxu2 %v13468_v46  ;;  %v13523_v3 = vand.u32 4294901760, %v72_v61 }
  0x18   :  { %370 = vmatpush.msrb.mxu3 %v369_v55  ;;  %331 = vmatmul.f32.vlgmr.msrb.gmra.mxu2 %v13466_v44  ;;  %v738_v38 = vsub.f32 %v13576_v24, %v737_v31  ;;  %v13661_v55 = vand.u32 4294901760, %v74_v49 }
  0x19   :  { %277 = vmatmul.f32.vlgmr.msrb.gmra.mxu0 %v13415_v16  ;;  %372 = vmatmul.f32.vlgmr.msrb.gmra.mxu3 %v13415_v16  ;;  %v13553_v11 = vsub.f32 %v72_v61, %v13523_v3 }
  0x1a   :  { %479 = vmatpush.msra.mxu3 %v13420_v18  ;;  %296 = vmatpush.msrb.mxu1 %v13389_v4  ;;  %v13529_v4 = vsub.f32 %v96_v56, %v13500_v60  ;;  %v739_v41 = vand.u32 4294901760, %v738_v38  ;;  %v13667_v56 = vsub.f32 %v98_v43, %v13636_v48  ;;  %v13691_v0 = vsub.f32 %v74_v49, %v13661_v55  ;;  %v27_v38 = vld [vmem:[%s22879_s1 + $0x30] sm:$0xff] }
  0x1b   :  { %390 = vmatpush.msra.mxu0 %v13432_v25  ;;  %448 = vmatpush.msra.mxu2 %v349_v33 }
  0x1c   :  { %481 = vmatpush.msra.mxu3 %v13422_v19  ;;  %298 = vmatpush.msrb.mxu1 %v13391_v5  ;;  %v13537_v5 = vsub.f32 %v71_v57, %v13507_v62  ;;  %v719_v13 = vand.u32 4294901760, %v13529_v4  ;;  %v26_v57 = vld [vmem:[%s22879_s1 + $0x28] sm:$0xff] }
  0x1d   :  { %393 = vmatpush.msra.mxu0 %v13435_v26  ;;  %452 = vmatpush.msra.mxu2 %v355_v34  ;;  %v731_v26 = vand.u32 4294901760, %v13566_v17 }
  0x1e   :  { %483 = vmatpush.msra.mxu3 %v13424_v20  ;;  %300 = vmatpush.msrb.mxu1 %v13399_v8  ;;  %v534_v8 = vand.u32 4294901760, %v13519_v1  ;;  %v540_v15 = vand.u32 4294901760, %v13537_v5  ;;  %v720_v25 = vsub.f32 %v13529_v4, %v719_v13 }
  0x1f   :  { %396 = vmatpush.msra.mxu0 %v13438_v27  ;;  %456 = vmatpush.msra.mxu2 %v361_v35  ;;  %v552_v27 = vand.u32 4294901760, %v13562_v14  ;;  %v732_v34 = vsub.f32 %v13566_v17, %v731_v26 }
  0x20   :  { %485 = vmatpush.msra.mxu3 %v13468_v46  ;;  %302 = vmatmul.f32.vlgmr.msrb.gmra.mxu1 %v13415_v16  ;;  %v535_v22 = vsub.f32 %v13519_v1, %v534_v8  ;;  %v721_v32 = vand.u32 4294901760, %v720_v25 }
  0x21   :  { %487 = vmatmul.f32.vlgmr.msra.gmra.mxu3 %v13415_v16  ;;  %399 = vmatpush.msra.mxu0 %v13473_v50  ;;  %v553_v35 = vsub.f32 %v13562_v14, %v552_v27  ;;  %v733_v39 = vand.u32 4294901760, %v732_v34  ;;  %v13643_v50 = vand.u32 4294901760, %v73_v45  ;;  %v51_v34 = vld [vmem:[%s22879_s1 + $0xf0] sm:$0xff] }
  0x22   :  { %419 = vmatpush.msra.mxu1 %v13420_v18  ;;  %460 = vmatpush.msra.mxu2 %v367_v52  ;;  %v725_v18 = vand.u32 4294901760, %v13553_v11  ;;  %v536_v28 = vand.u32 4294901760, %v535_v22  ;;  %v50_v52 = vld [vmem:[%s22879_s1 + $0xe8] sm:$0xff] }
  0x23   :  { %604 = vmatpush.msrb.mxu3 %v13493_v58  ;;  %402 = vmatmul.f32.vlgmr.msra.gmra.mxu0 %v13428_v21  ;;  %v554_v40 = vand.u32 4294901760, %v553_v35  ;;  %v13679_v61 = vand.u32 4294901760, %v50_v52 }
  0x24   :  { %462 = vmatmul.f32.vlgmr.msra.gmra.mxu2 %v13415_v16  ;;  %421 = vmatpush.msra.mxu1 %v13422_v19  ;;  %v541_v19 = vsub.f32 %v13537_v5, %v540_v15  ;;  %v726_v30 = vsub.f32 %v13553_v11, %v725_v18 }
  0x25   :  { %504 = vmatpush.msrb.mxu0 %v13493_v58  ;;  %575 = vmatpush.msrb.mxu2 %v13519_v1  ;;  %v13693_v1 = vand.u32 4294901760, %v26_v57 }
  0x26   :  { %606 = vmatpush.msrb.mxu3 %v13507_v62  ;;  %423 = vmatpush.msra.mxu1 %v13424_v20  ;;  %v547_v20 = vsub.f32 %v13549_v10, %v546_v23  ;;  %v542_v33 = vand.u32 4294901760, %v541_v19  ;;  %v727_v36 = vand.u32 4294901760, %v726_v30 }
  0x27   :  { %506 = vmatpush.msrb.mxu0 %v13507_v62  ;;  %578 = vmatpush.msrb.mxu2 %v13537_v5  ;;  %v13706_v5 = vsub.f32 %v50_v52, %v13679_v61 }
  0x28   :  { %608 = vmatpush.msrb.mxu3 %v13521_v2  ;;  %425 = vmatpush.msra.mxu1 %v13468_v46  ;;  %v548_v37 = vand.u32 4294901760, %v547_v20  ;;  %v13629_v46 = vand.u32 4294901760, %v97_v42  ;;  %v99_v20 = vld [vmem:[%s22879_s1 + $0x270] sm:$0xff] }
  0x29   :  { %508 = vmatpush.msrb.mxu0 %v13521_v2  ;;  %581 = vmatpush.msrb.mxu2 %v13549_v10 }
  0x2a   :  { %610 = vmatpush.msrb.mxu3 %v13539_v7  ;;  %429 = vmatmul.f32.vlgmr.msra.gmra.mxu1 %v13443_v29  ;;  %v13657_v53 = vsub.f32 %v97_v42, %v13629_v46 }
  0x2b   :  { %614 = vmatmul.f32.vlgmr.msrb.gmra.mxu3 %v13443_v29  ;;  %510 = vmatpush.msrb.mxu0 %v13539_v7 }
  0x2c   :  { %537 = vmatpush.msrb.mxu1 %v536_v28  ;;  %584 = vmatpush.msrb.mxu2 %v13562_v14  ;;  %v904_v63 = vand.u32 4294901760, %v13657_v53 }
  0x2d   :  { %722 = vmatpush.msra.mxu3 %v721_v32  ;;  %516 = vmatmul.f32.vlgmr.msrb.gmra.mxu0 %v13466_v44  ;;  %v75_v32 = vld [vmem:[%s22879_s1 + $0x1b0] sm:$0xff] }
  0x2e   :  { %587 = vmatmul.f32.vlgmr.msrb.gmra.mxu2 %v13428_v21  ;;  %543 = vmatpush.msrb.mxu1 %v542_v33  ;;  %v13769_v33 = vand.u32 4294901760, %v99_v20 }
  0x2f   :  { %633 = vmatpush.msra.mxu0 %v534_v8  ;;  %689 = vmatpush.msra.mxu2 %v13500_v60  ;;  %v13716_v8 = vsub.f32 %v26_v57, %v13693_v1 }
  0x30   :  { %728 = vmatpush.msra.mxu3 %v727_v36  ;;  %549 = vmatpush.msrb.mxu1 %v548_v37  ;;  %v76_v36 = vld [vmem:[%s22879_s1 + $0x1b8] sm:$0xff]  ;;  %v13783_v37 = vand.u32 4294901760, %v75_v32 }
  0x31   :  { %637 = vmatpush.msra.mxu0 %v540_v15  ;;  %691 = vmatpush.msra.mxu2 %v13523_v3  ;;  %v1107_v22 = vand.u32 4294901760, %v13716_v8  ;;  %v13801_v42 = vand.u32 4294901760, %v76_v36 }
  0x32   :  { %734 = vmatpush.msra.mxu3 %v733_v39  ;;  %555 = vmatpush.msrb.mxu1 %v554_v40  ;;  %v52_v39 = vld [vmem:[%s22879_s1 + $0xf8] sm:$0xff]  ;;  %v13797_v40 = vsub.f32 %v99_v20, %v13769_v33 }
  0x33   :  { %641 = vmatpush.msra.mxu0 %v546_v23  ;;  %693 = vmatpush.msra.mxu2 %v13541_v9  ;;  %v13819_v49 = vand.u32 4294901760, %v52_v39  ;;  %v13831_v52 = vsub.f32 %v76_v36, %v13801_v42 }
  0x34   :  { %740 = vmatpush.msra.mxu3 %v739_v41  ;;  %557 = vmatmul.f32.vlgmr.msrb.gmra.mxu1 %v13415_v16  ;;  %v13799_v41 = vand.u32 4294901760, %v51_v34 }
  0x35   :  { %742 = vmatmul.f32.vlgmr.msra.gmra.mxu3 %v13415_v16  ;;  %645 = vmatpush.msra.mxu0 %v552_v27 }
  0x36   :  { %664 = vmatpush.msra.mxu1 %v13493_v58  ;;  %695 = vmatpush.msra.mxu2 %v13555_v12  ;;  %v13675_v58 = vsub.f32 %v73_v45, %v13643_v50  ;;  %v28_v45 = vld [vmem:[%s22879_s1 + $0x38] sm:$0xff] }
  0x37   :  { %849 = vmatpush.msrb.mxu3 %v13500_v60  ;;  %647 = vmatmul.f32.vlgmr.msra.gmra.mxu0 %v13415_v16 }
  0x38   :  { %701 = vmatmul.f32.vlgmr.msra.gmra.mxu2 %v13466_v44  ;;  %666 = vmatpush.msra.mxu1 %v13507_v62  ;;  %v13687_v62 = vsub.f32 %v49_v47, %v13659_v54  ;;  %v910_v6 = vand.u32 4294901760, %v13675_v58  ;;  %v13817_v47 = vand.u32 4294901760, %v27_v38 }
  0x39   :  { %760 = vmatpush.msrb.mxu0 %v13529_v4  ;;  %818 = vmatpush.msrb.mxu2 %v719_v13  ;;  %v13702_v4 = vsub.f32 %v25_v51, %v13677_v59  ;;  %v1101_v13 = vand.u32 4294901760, %v13706_v5  ;;  %v1274_v51 = vand.u32 4294901760, %v13797_v40 }
  0x3a   :  { %851 = vmatpush.msrb.mxu3 %v13523_v3  ;;  %668 = vmatpush.msra.mxu1 %v13521_v2  ;;  %v1089_v2 = vand.u32 4294901760, %v13667_v56  ;;  %v916_v10 = vand.u32 4294901760, %v13687_v62 }
  0x3b   :  { %763 = vmatpush.msrb.mxu0 %v13553_v11  ;;  %822 = vmatpush.msrb.mxu2 %v725_v18  ;;  %v922_v14 = vand.u32 4294901760, %v13702_v4 }
  0x3c   :  { %853 = vmatpush.msrb.mxu3 %v13541_v9  ;;  %670 = vmatpush.msra.mxu1 %v13539_v7  ;;  %v1095_v7 = vand.u32 4294901760, %v13691_v0  ;;  %v1090_v11 = vsub.f32 %v13667_v56, %v1089_v2 }
  0x3d   :  { %766 = vmatpush.msrb.mxu0 %v13566_v17  ;;  %826 = vmatpush.msrb.mxu2 %v731_v26  ;;  %v1108_v26 = vsub.f32 %v13716_v8, %v1107_v22 }
  0x3e   :  { %855 = vmatpush.msrb.mxu3 %v13555_v12  ;;  %672 = vmatmul.f32.vlgmr.msra.gmra.mxu1 %v13415_v16  ;;  %v1096_v17 = vsub.f32 %v13691_v0, %v1095_v7  ;;  %v1091_v18 = vand.u32 4294901760, %v1090_v11 }
  0x3f   :  { %857 = vmatmul.f32.vlgmr.msrb.gmra.mxu3 %v13415_v16  ;;  %769 = vmatpush.msrb.mxu0 %v13576_v24  ;;  %v923_v24 = vsub.f32 %v13702_v4, %v922_v14  ;;  %v1109_v30 = vand.u32 4294901760, %v1108_v26  ;;  %v29_v26 = vld [vmem:[%s22879_s1 + $0x40] sm:$0xff] }
  0x40   :  { %789 = vmatpush.msrb.mxu1 %v13500_v60  ;;  %830 = vmatpush.msrb.mxu2 %v737_v31  ;;  %v905_v60 = vsub.f32 %v13657_v53, %v904_v63  ;;  %v1097_v25 = vand.u32 4294901760, %v1096_v17  ;;  %v100_v31 = vld [vmem:[%s22879_s1 + $0x278] sm:$0xff] }
  0x41   :  { %974 = vmatpush.msra.mxu3 %v13629_v46  ;;  %772 = vmatmul.f32.vlgmr.msrb.gmra.mxu0 %v13428_v21  ;;  %v924_v28 = vand.u32 4294901760, %v923_v24  ;;  %v13776_v35 = vand.u32 4294901760, %v100_v31 }
  0x42   :  { %832 = vmatmul.f32.vlgmr.msrb.gmra.mxu2 %v13415_v16  ;;  %791 = vmatpush.msrb.mxu1 %v13523_v3  ;;  %v911_v3 = vsub.f32 %v13675_v58, %v910_v6  ;;  %v906_v15 = vand.u32 4294901760, %v905_v60 }
  0x43   :  { %874 = vmatpush.msra.mxu0 %v13629_v46  ;;  %945 = vmatpush.msra.mxu2 %v13657_v53  ;;  %v13807_v43 = vsub.f32 %v100_v31, %v13776_v35  ;;  %v13833_v53 = vand.u32 4294901760, %v28_v45 }
  0x44   :  { %976 = vmatpush.msra.mxu3 %v13643_v50  ;;  %793 = vmatpush.msrb.mxu1 %v13541_v9  ;;  %v917_v9 = vsub.f32 %v13687_v62, %v916_v10  ;;  %v912_v23 = vand.u32 4294901760, %v911_v3 }
  0x45   :  { %876 = vmatpush.msra.mxu0 %v13643_v50  ;;  %948 = vmatpush.msra.mxu2 %v13675_v58  ;;  %v13846_v58 = vsub.f32 %v52_v39, %v13819_v49 }
  0x46   :  { %978 = vmatpush.msra.mxu3 %v13659_v54  ;;  %795 = vmatpush.msrb.mxu1 %v13555_v12  ;;  %v1102_v12 = vsub.f32 %v13706_v5, %v1101_v13  ;;  %v918_v19 = vand.u32 4294901760, %v917_v9  ;;  %v101_v9 = vld [vmem:[%s22879_s1 + $0x280] sm:$0xff] }
  0x47   :  { %878 = vmatpush.msra.mxu0 %v13659_v54  ;;  %951 = vmatpush.msra.mxu2 %v13687_v62 }
  0x48   :  { %980 = vmatpush.msra.mxu3 %v13677_v59  ;;  %799 = vmatmul.f32.vlgmr.msrb.gmra.mxu1 %v13443_v29  ;;  %v1103_v27 = vand.u32 4294901760, %v1102_v12  ;;  %v53_v12 = vld [vmem:[%s22879_s1 + $0x100] sm:$0xff] }
  0x49   :  { %984 = vmatmul.f32.vlgmr.msra.gmra.mxu3 %v13443_v29  ;;  %880 = vmatpush.msra.mxu0 %v13677_v59 }
  0x4a   :  { %907 = vmatpush.msra.mxu1 %v906_v15  ;;  %954 = vmatpush.msra.mxu2 %v13702_v4 }
  0x4b   :  { %1092 = vmatpush.msrb.mxu3 %v1091_v18  ;;  %886 = vmatmul.f32.vlgmr.msra.gmra.mxu0 %v13466_v44  ;;  %v77_v18 = vld [vmem:[%s22879_s1 + $0x1c0] sm:$0xff] }
  0x4c   :  { %957 = vmatmul.f32.vlgmr.msra.gmra.mxu2 %v13428_v21  ;;  %913 = vmatpush.msra.mxu1 %v912_v23  ;;  %v13909_v23 = vand.u32 4294901760, %v101_v9 }
  0x4d   :  { %1003 = vmatpush.msrb.mxu0 %v904_v63  ;;  %1059 = vmatpush.msrb.mxu2 %v13636_v48  ;;  %v13856_v63 = vsub.f32 %v28_v45, %v13833_v53 }
  0x4e   :  { %1098 = vmatpush.msrb.mxu3 %v1097_v25  ;;  %919 = vmatpush.msra.mxu1 %v918_v19  ;;  %v78_v25 = vld [vmem:[%s22879_s1 + $0x1c8] sm:$0xff]  ;;  %v13923_v19 = vand.u32 4294901760, %v77_v18 }
  0x4f   :  { %1007 = vmatpush.msrb.mxu0 %v910_v6  ;;  %1061 = vmatpush.msrb.mxu2 %v13661_v55  ;;  %v1477_v60 = vand.u32 4294901760, %v13856_v63  ;;  %v13941_v20 = vand.u32 4294901760, %v78_v25 }
  0x50   :  { %1104 = vmatpush.msrb.mxu3 %v1103_v27  ;;  %925 = vmatpush.msra.mxu1 %v924_v28  ;;  %v54_v27 = vld [vmem:[%s22879_s1 + $0x108] sm:$0xff]  ;;  %v13937_v28 = vsub.f32 %v101_v9, %v13909_v23 }
  0x51   :  { %1011 = vmatpush.msrb.mxu0 %v916_v10  ;;  %1063 = vmatpush.msrb.mxu2 %v13679_v61  ;;  %v13959_v36 = vand.u32 4294901760, %v54_v27  ;;  %v13971_v39 = vsub.f32 %v78_v25, %v13941_v20 }
  0x52   :  { %1110 = vmatpush.msrb.mxu3 %v1109_v30  ;;  %927 = vmatmul.f32.vlgmr.msra.gmra.mxu1 %v13415_v16  ;;  %v13939_v30 = vand.u32 4294901760, %v53_v12 }
  0x53   :  { %1112 = vmatmul.f32.vlgmr.msrb.gmra.mxu3 %v13415_v16  ;;  %1015 = vmatpush.msrb.mxu0 %v922_v14 }
  0x54   :  { %1034 = vmatpush.msrb.mxu1 %v13629_v46  ;;  %1065 = vmatpush.msrb.mxu2 %v13693_v1  ;;  %v13815_v46 = vsub.f32 %v75_v32, %v13783_v37  ;;  %v30_v32 = vld [vmem:[%s22879_s1 + $0x48] sm:$0xff] }
  0x55   :  { %1219 = vmatpush.msra.mxu3 %v13636_v48  ;;  %1017 = vmatmul.f32.vlgmr.msrb.gmra.mxu0 %v13415_v16 }
  0x56   :  { %1071 = vmatmul.f32.vlgmr.msrb.gmra.mxu2 %v13466_v44  ;;  %1036 = vmatpush.msrb.mxu1 %v13643_v50  ;;  %v13827_v50 = vsub.f32 %v51_v34, %v13799_v41  ;;  %v1280_v57 = vand.u32 4294901760, %v13815_v46  ;;  %v13957_v34 = vand.u32 4294901760, %v29_v26 }
  0x57   :  { %1130 = vmatpush.msra.mxu0 %v13667_v56  ;;  %1188 = vmatpush.msra.mxu2 %v1089_v2  ;;  %v13842_v56 = vsub.f32 %v27_v38, %v13817_v47  ;;  %v1471_v2 = vand.u32 4294901760, %v13846_v58  ;;  %v1644_v38 = vand.u32 4294901760, %v13937_v28 }
  0x58   :  { %1221 = vmatpush.msra.mxu3 %v13661_v55  ;;  %1038 = vmatpush.msrb.mxu1 %v13659_v54  ;;  %v1459_v54 = vand.u32 4294901760, %v13807_v43  ;;  %v1286_v62 = vand.u32 4294901760, %v13827_v50 }
  0x59   :  { %1133 = vmatpush.msra.mxu0 %v13691_v0  ;;  %1192 = vmatpush.msra.mxu2 %v1095_v7  ;;  %v1292_v4 = vand.u32 4294901760, %v13842_v56 }
  0x5a   :  { %1223 = vmatpush.msra.mxu3 %v13679_v61  ;;  %1040 = vmatpush.msrb.mxu1 %v13677_v59  ;;  %v1465_v59 = vand.u32 4294901760, %v13831_v52  ;;  %v1460_v0 = vsub.f32 %v13807_v43, %v1459_v54 }
  0x5b   :  { %1136 = vmatpush.msra.mxu0 %v13706_v5  ;;  %1196 = vmatpush.msra.mxu2 %v1101_v13  ;;  %v1478_v13 = vsub.f32 %v13856_v63, %v1477_v60 }
  0x5c   :  { %1225 = vmatpush.msra.mxu3 %v13693_v1  ;;  %1042 = vmatmul.f32.vlgmr.msrb.gmra.mxu1 %v13415_v16  ;;  %v1466_v5 = vsub.f32 %v13831_v52, %v1465_v59  ;;  %v1461_v7 = vand.u32 4294901760, %v1460_v0 }
  0x5d   :  { %1227 = vmatmul.f32.vlgmr.msra.gmra.mxu3 %v13415_v16  ;;  %1139 = vmatpush.msra.mxu0 %v13716_v8  ;;  %v1293_v8 = vsub.f32 %v13842_v56, %v1292_v4  ;;  %v1479_v17 = vand.u32 4294901760, %v1478_v13 }
  0x5e   :  { %1159 = vmatpush.msra.mxu1 %v13636_v48  ;;  %1200 = vmatpush.msra.mxu2 %v1107_v22  ;;  %v1275_v48 = vsub.f32 %v13797_v40, %v1274_v51  ;;  %v1467_v11 = vand.u32 4294901760, %v1466_v5  ;;  %v102_v22 = vld [vmem:[%s22879_s1 + $0x288] sm:$0xff] }
  0x5f   :  { %1344 = vmatpush.msrb.mxu3 %v13769_v33  ;;  %1142 = vmatmul.f32.vlgmr.msra.gmra.mxu0 %v13428_v21  ;;  %v1294_v15 = vand.u32 4294901760, %v1293_v8  ;;  %v13916_v24 = vand.u32 4294901760, %v102_v22 }
  0x60   :  { %1202 = vmatmul.f32.vlgmr.msra.gmra.mxu2 %v13415_v16  ;;  %1161 = vmatpush.msra.mxu1 %v13661_v55  ;;  %v1281_v55 = vsub.f32 %v13815_v46, %v1280_v57  ;;  %v1276_v6 = vand.u32 4294901760, %v1275_v48 }
  0x61   :  { %1244 = vmatpush.msrb.mxu0 %v13769_v33  ;;  %1315 = vmatpush.msrb.mxu2 %v13797_v40  ;;  %v13947_v31 = vsub.f32 %v102_v22, %v13916_v24  ;;  %v13973_v40 = vand.u32 4294901760, %v30_v32 }
  0x62   :  { %1346 = vmatpush.msrb.mxu3 %v13783_v37  ;;  %1163 = vmatpush.msra.mxu1 %v13679_v61  ;;  %v1287_v61 = vsub.f32 %v13827_v50, %v1286_v62  ;;  %v1282_v10 = vand.u32 4294901760, %v1281_v55 }
  0x63   :  { %1246 = vmatpush.msrb.mxu0 %v13783_v37  ;;  %1318 = vmatpush.msrb.mxu2 %v13815_v46  ;;  %v13986_v46 = vsub.f32 %v54_v27, %v13959_v36 }
  0x64   :  { %1348 = vmatpush.msrb.mxu3 %v13799_v41  ;;  %1165 = vmatpush.msra.mxu1 %v13693_v1  ;;  %v1472_v1 = vsub.f32 %v13846_v58, %v1471_v2  ;;  %v1288_v3 = vand.u32 4294901760, %v1287_v61  ;;  %v103_v61 = vld [vmem:[%s22879_s1 + $0x290] sm:$0xff] }
  0x65   :  { %1248 = vmatpush.msrb.mxu0 %v13799_v41  ;;  %1321 = vmatpush.msrb.mxu2 %v13827_v50 }
  0x66   :  { %1350 = vmatpush.msrb.mxu3 %v13817_v47  ;;  %1169 = vmatmul.f32.vlgmr.msra.gmra.mxu1 %v13443_v29  ;;  %v1473_v14 = vand.u32 4294901760, %v1472_v1  ;;  %v55_v1 = vld [vmem:[%s22879_s1 + $0x110] sm:$0xff] }
  0x67   :  { %1354 = vmatmul.f32.vlgmr.msrb.gmra.mxu3 %v13443_v29  ;;  %1250 = vmatpush.msrb.mxu0 %v13817_v47  ;;  %v14081_v9 = vand.u32 4294901760, %v55_v1 }
  0x68   :  { %1277 = vmatpush.msrb.mxu1 %v1276_v6  ;;  %1324 = vmatpush.msrb.mxu2 %v13842_v56 }
  0x69   :  { %1462 = vmatpush.msra.mxu3 %v1461_v7  ;;  %1256 = vmatmul.f32.vlgmr.msrb.gmra.mxu0 %v13466_v44  ;;  %v79_v7 = vld [vmem:[%s22879_s1 + $0x1d0] sm:$0xff] }
  0x6a   :  { %1327 = vmatmul.f32.vlgmr.msrb.gmra.mxu2 %v13428_v21  ;;  %1283 = vmatpush.msrb.mxu1 %v1282_v10  ;;  %v14049_v10 = vand.u32 4294901760, %v103_v61  ;;  %v14065_v13 = vand.u32 4294901760, %v79_v7 }
  0x6b   :  { %1373 = vmatpush.msra.mxu0 %v1274_v51  ;;  %1429 = vmatpush.msra.mxu2 %v13776_v35  ;;  %v13996_v51 = vsub.f32 %v30_v32, %v13973_v40 }
  0x6c   :  { %1468 = vmatpush.msra.mxu3 %v1467_v11  ;;  %1289 = vmatpush.msrb.mxu1 %v1288_v3  ;;  %v80_v11 = vld [vmem:[%s22879_s1 + $0x1d8] sm:$0xff]  ;;  %v14099_v25 = vsub.f32 %v79_v7, %v14065_v13 }
  0x6d   :  { %1377 = vmatpush.msra.mxu0 %v1280_v57  ;;  %1431 = vmatpush.msra.mxu2 %v13801_v42  ;;  %v1847_v48 = vand.u32 4294901760, %v13996_v51  ;;  %v14083_v22 = vand.u32 4294901760, %v80_v11 }
  0x6e   :  { %1474 = vmatpush.msra.mxu3 %v1473_v14  ;;  %1295 = vmatpush.msrb.mxu1 %v1294_v15  ;;  %v31_v14 = vld [vmem:[%s22879_s1 + $0x50] sm:$0xff]  ;;  %v56_v15 = vld [vmem:[%s22879_s1 + $0x118] sm:$0xff] }
  0x6f   :  { %1381 = vmatpush.msra.mxu0 %v1286_v62  ;;  %1433 = vmatpush.msra.mxu2 %v13819_v49 }
  0x70   :  { %1480 = vmatpush.msra.mxu3 %v1479_v17  ;;  %1297 = vmatmul.f32.vlgmr.msrb.gmra.mxu1 %v13415_v16  ;;  %v14079_v17 = vsub.f32 %v103_v61, %v14049_v10  ;;  %v105_v61 = vld [vmem:[%s22879_s1 + $0x2a0] sm:$0xff] }
  0x71   :  { %1482 = vmatmul.f32.vlgmr.msra.gmra.mxu3 %v13415_v16  ;;  %1385 = vmatpush.msra.mxu0 %v1292_v4 }
  0x72   :  { %1404 = vmatpush.msra.mxu1 %v13769_v33  ;;  %1435 = vmatpush.msra.mxu2 %v13833_v53  ;;  %v13955_v33 = vsub.f32 %v77_v18, %v13923_v19 }
  0x73   :  { %1589 = vmatpush.msrb.mxu3 %v13776_v35  ;;  %1387 = vmatmul.f32.vlgmr.msra.gmra.mxu0 %v13415_v16 }
  0x74   :  { %1441 = vmatmul.f32.vlgmr.msra.gmra.mxu2 %v13466_v44  ;;  %1406 = vmatpush.msra.mxu1 %v13783_v37  ;;  %v13967_v37 = vsub.f32 %v53_v12, %v13939_v30  ;;  %v1650_v45 = vand.u32 4294901760, %v13955_v33  ;;  %v32_v12 = vld [vmem:[%s22879_s1 + $0x58] sm:$0xff] }
  0x75   :  { %1500 = vmatpush.msrb.mxu0 %v13807_v43  ;;  %1558 = vmatpush.msrb.mxu2 %v1459_v54  ;;  %v13982_v43 = vsub.f32 %v29_v26, %v13957_v34  ;;  %v1841_v54 = vand.u32 4294901760, %v13986_v46  ;;  %v14103_v26 = vand.u32 4294901760, %v56_v15  ;;  %v14119_v32 = vand.u32 4294901760, %v32_v12 }
  0x76   :  { %1591 = vmatpush.msrb.mxu3 %v13801_v42  ;;  %1408 = vmatpush.msra.mxu1 %v13799_v41  ;;  %v1829_v41 = vand.u32 4294901760, %v13947_v31  ;;  %v1656_v50 = vand.u32 4294901760, %v13967_v37 }
  0x77   :  { %1503 = vmatpush.msrb.mxu0 %v13831_v52  ;;  %1562 = vmatpush.msrb.mxu2 %v1465_v59  ;;  %v1662_v56 = vand.u32 4294901760, %v13982_v43 }
  0x78   :  { %1593 = vmatpush.msrb.mxu3 %v13819_v49  ;;  %1410 = vmatpush.msra.mxu1 %v13817_v47  ;;  %v1835_v47 = vand.u32 4294901760, %v13971_v39  ;;  %v1830_v52 = vsub.f32 %v13947_v31, %v1829_v41 }
  0x79   :  { %1506 = vmatpush.msrb.mxu0 %v13846_v58  ;;  %1566 = vmatpush.msrb.mxu2 %v1471_v2  ;;  %v1848_v2 = vsub.f32 %v13996_v51, %v1847_v48 }
  0x7a   :  { %1595 = vmatpush.msrb.mxu3 %v13833_v53  ;;  %1412 = vmatmul.f32.vlgmr.msra.gmra.mxu1 %v13415_v16  ;;  %v1836_v58 = vsub.f32 %v13971_v39, %v1835_v47  ;;  %v1831_v59 = vand.u32 4294901760, %v1830_v52 }
  0x7b   :  { %1597 = vmatmul.f32.vlgmr.msrb.gmra.mxu3 %v13415_v16  ;;  %1509 = vmatpush.msrb.mxu0 %v13856_v63  ;;  %v1663_v63 = vsub.f32 %v13982_v43, %v1662_v56  ;;  %v1849_v5 = vand.u32 4294901760, %v1848_v2 }
  0x7c   :  { %1529 = vmatpush.msrb.mxu1 %v13776_v35  ;;  %1570 = vmatpush.msrb.mxu2 %v1477_v60  ;;  %v1645_v35 = vsub.f32 %v13937_v28, %v1644_v38  ;;  %v1837_v0 = vand.u32 4294901760, %v1836_v58  ;;  %v104_v60 = vld [vmem:[%s22879_s1 + $0x298] sm:$0xff] }
  0x7d   :  { %1714 = vmatpush.msra.mxu3 %v13909_v23  ;;  %1512 = vmatmul.f32.vlgmr.msrb.gmra.mxu0 %v13428_v21  ;;  %v1664_v6 = vand.u32 4294901760, %v1663_v63  ;;  %v14056_v8 = vand.u32 4294901760, %v104_v60 }
  0x7e   :  { %1572 = vmatmul.f32.vlgmr.msrb.gmra.mxu2 %v13415_v16  ;;  %1531 = vmatpush.msrb.mxu1 %v13801_v42  ;;  %v1651_v42 = vsub.f32 %v13955_v33, %v1650_v45  ;;  %v1646_v57 = vand.u32 4294901760, %v1645_v35  ;;  %v14151_v35 = vsub.f32 %v32_v12, %v14119_v32 }
  0x7f   :  { %1614 = vmatpush.msra.mxu0 %v13909_v23  ;;  %1685 = vmatpush.msra.mxu2 %v13937_v28  ;;  %v14113_v28 = vsub.f32 %v55_v1, %v14081_v9  ;;  %v81_v1 = vld [vmem:[%s22879_s1 + $0x1e0] sm:$0xff] }
  0x80   :  { %1716 = vmatpush.msra.mxu3 %v13923_v19  ;;  %1533 = vmatpush.msrb.mxu1 %v13819_v49  ;;  %v1657_v49 = vsub.f32 %v13967_v37, %v1656_v50  ;;  %v1652_v62 = vand.u32 4294901760, %v1651_v42 }
  0x81   :  { %1616 = vmatpush.msra.mxu0 %v13923_v19  ;;  %1688 = vmatpush.msra.mxu2 %v13955_v33 }
  0x82   :  { %1718 = vmatpush.msra.mxu3 %v13939_v30  ;;  %1535 = vmatpush.msrb.mxu1 %v13833_v53  ;;  %v1842_v53 = vsub.f32 %v13986_v46, %v1841_v54  ;;  %v1658_v55 = vand.u32 4294901760, %v1657_v49 }
  0x83   :  { %1618 = vmatpush.msra.mxu0 %v13939_v30  ;;  %1691 = vmatpush.msra.mxu2 %v13967_v37 }
  0x84   :  { %1720 = vmatpush.msra.mxu3 %v13957_v34  ;;  %1539 = vmatmul.f32.vlgmr.msrb.gmra.mxu1 %v13443_v29  ;;  %v1843_v4 = vand.u32 4294901760, %v1842_v53 }
  0x85   :  { %1724 = vmatmul.f32.vlgmr.msra.gmra.mxu3 %v13443_v29  ;;  %1620 = vmatpush.msra.mxu0 %v13957_v34 }
  0x86   :  { %1647 = vmatpush.msra.mxu1 %v1646_v57  ;;  %1694 = vmatpush.msra.mxu2 %v13982_v43 }
  0x87   :  { %1832 = vmatpush.msrb.mxu3 %v1831_v59  ;;  %1626 = vmatmul.f32.vlgmr.msra.gmra.mxu0 %v13466_v44 }
  0x88   :  { %1697 = vmatmul.f32.vlgmr.msra.gmra.mxu2 %v13428_v21  ;;  %1653 = vmatpush.msra.mxu1 %v1652_v62 }
  0x89   :  { %1743 = vmatpush.msrb.mxu0 %v1644_v38  ;;  %1799 = vmatpush.msrb.mxu2 %v13916_v24 }
  0x8a   :  { %1838 = vmatpush.msrb.mxu3 %v1837_v0  ;;  %1659 = vmatpush.msra.mxu1 %v1658_v55 }
  0x8b   :  { %1747 = vmatpush.msrb.mxu0 %v1650_v45  ;;  %1801 = vmatpush.msrb.mxu2 %v13941_v20 }
  0x8c   :  { %1844 = vmatpush.msrb.mxu3 %v1843_v4  ;;  %1665 = vmatpush.msra.mxu1 %v1664_v6 }
  0x8d   :  { %1751 = vmatpush.msrb.mxu0 %v1656_v50  ;;  %1803 = vmatpush.msrb.mxu2 %v13959_v36 }
  0x8e   :  { %1850 = vmatpush.msrb.mxu3 %v1849_v5  ;;  %1667 = vmatmul.f32.vlgmr.msra.gmra.mxu1 %v13415_v16  ;;  %v14061_v3 = vpop.f32.mrf.mxu0 }
  0x8f   :  { %1852 = vmatmul.f32.vlgmr.msrb.gmra.mxu3 %v13415_v16  ;;  %1755 = vmatpush.msrb.mxu0 %v1662_v56  ;;  %v2217_v56 = vand.u32 4294901760, %v14151_v35 }
  0x90   :  { %1774 = vmatpush.msrb.mxu1 %v13909_v23  ;;  %1805 = vmatpush.msrb.mxu2 %v13973_v40  ;;  %v14091_v23 = vsub.f32 %v104_v60, %v14056_v8  ;;  %v14121_v33 = vpop.f32.mrf.mxu3  ;;  %v106_v60 = vld [vmem:[%s22879_s1 + $0x2a8] sm:$0xff] }
  0x91   :  { %1959 = vmatpush.msra.mxu3 %v13916_v24  ;;  %1757 = vmatmul.f32.vlgmr.msrb.gmra.mxu0 %v13415_v16  ;;  %v2218_v63 = vsub.f32 %v14151_v35, %v2217_v56 }
  0x92   :  { %1811 = vmatmul.f32.vlgmr.msrb.gmra.mxu2 %v13466_v44  ;;  %1776 = vmatpush.msrb.mxu1 %v13923_v19  ;;  %v14101_v19 = vand.u32 4294901760, %v31_v14  ;;  %v14105_v27 = vpop.f32.mrf.mxu2  ;;  %v2199_v37 = vand.u32 4294901760, %v14091_v23 }
  0x93   :  { %1870 = vmatpush.msra.mxu0 %v13947_v31  ;;  %1928 = vmatpush.msra.mxu2 %v1829_v41  ;;  %v14085_v18 = vpop.f32.mrf.mxu1  ;;  %v14117_v31 = vsub.f32 %v80_v11, %v14083_v22  ;;  %v14137_v41 = vsub.f32 %v56_v15, %v14103_v26  ;;  %v2219_v4 = vand.u32 4294901760, %v2218_v63  ;;  %v14220_v11 = vand.u32 4294901760, %v105_v61 }
  0x94   :  { %1961 = vmatpush.msra.mxu3 %v13941_v20  ;;  %1778 = vmatpush.msrb.mxu1 %v13939_v30  ;;  %v2014_v30 = vand.u32 4294901760, %v14079_v17  ;;  %v14133_v38 = vsub.f32 %v31_v14, %v14101_v19  ;;  %v57_v14 = vld [vmem:[%s22879_s1 + $0x120] sm:$0xff]  ;;  %v14227_v15 = vand.u32 4294901760, %v106_v60 }
  0x95   :  { %1873 = vmatpush.msra.mxu0 %v13971_v39  ;;  %1932 = vmatpush.msra.mxu2 %v1835_v47  ;;  %v2020_v39 = vand.u32 4294901760, %v14099_v25  ;;  %v2205_v45 = vand.u32 4294901760, %v14117_v31  ;;  %v2200_v47 = vsub.f32 %v14091_v23, %v2199_v37  ;;  %v2211_v50 = vand.u32 4294901760, %v14137_v41 }
  0x96   :  { %1963 = vmatpush.msra.mxu3 %v13959_v36  ;;  %1780 = vmatpush.msrb.mxu1 %v13957_v34  ;;  %v4561_v34 = vld [vmem:[%s22881_s3] sm:$0xff]  ;;  %v14141_v43 = vpop.f32.mrf.mxu0 }
  0x97   :  { %1876 = vmatpush.msra.mxu0 %v13986_v46  ;;  %1936 = vmatpush.msra.mxu2 %v1841_v54  ;;  %4573 = vst [vmem:[#allocation1] ss:$4 sm:$0xff] %v4561_v34  ;;  %v2026_v46 = vand.u32 4294901760, %v14113_v28  ;;  %v2201_v58 = vand.u32 4294901760, %v2200_v47  ;;  %v2212_v49 = vsub.f32 %v14137_v41, %v2211_v50 }
  0x98   :  { %1965 = vmatpush.msra.mxu3 %v13973_v40  ;;  %1782 = vmatmul.f32.vlgmr.msrb.gmra.mxu1 %v13415_v16 }
  0x99   :  { %1967 = vmatmul.f32.vlgmr.msra.gmra.mxu3 %v13415_v16  ;;  %1879 = vmatpush.msra.mxu0 %v13996_v51  ;;  %v2032_v51 = vand.u32 4294901760, %v14133_v38  ;;  %v2027_v54 = vsub.f32 %v14113_v28, %v2026_v46  ;;  %v2213_v55 = vand.u32 4294901760, %v2212_v49 }
  0x9a   :  { %1899 = vmatpush.msra.mxu1 %v13916_v24  ;;  %1940 = vmatpush.msra.mxu2 %v1847_v48  ;;  %v2015_v24 = vsub.f32 %v14079_v17, %v2014_v30 }
  0x9b   :  { %2084 = vmatpush.msrb.mxu3 %v14049_v10  ;;  %1882 = vmatmul.f32.vlgmr.msra.gmra.mxu0 %v13428_v21  ;;  %v14174_v57 = vpop.f32.mrf.mxu2  ;;  %v2033_v48 = vsub.f32 %v14133_v38, %v2032_v51  ;;  %v2028_v53 = vand.u32 4294901760, %v2027_v54 }
  0x9c   :  { %1942 = vmatmul.f32.vlgmr.msra.gmra.mxu2 %v13415_v16  ;;  %1901 = vmatpush.msra.mxu1 %v13941_v20  ;;  %v2021_v20 = vsub.f32 %v14099_v25, %v2020_v39  ;;  %v2016_v42 = vand.u32 4294901760, %v2015_v24  ;;  %v14184_v59 = vpop.f32.mrf.mxu3 }
  0x9d   :  { %1984 = vmatpush.msrb.mxu0 %v14049_v10  ;;  %2055 = vmatpush.msrb.mxu2 %v14079_v17  ;;  %v14163_v52 = vpop.f32.mrf.mxu1  ;;  %v2034_v2 = vand.u32 4294901760, %v2033_v48  ;;  %v82_v17 = vld [vmem:[%s22879_s1 + $0x1e8] sm:$0xff] }
  0x9e   :  { %2086 = vmatpush.msrb.mxu3 %v14065_v13  ;;  %1903 = vmatpush.msra.mxu1 %v13959_v36  ;;  %v2206_v36 = vsub.f32 %v14117_v31, %v2205_v45  ;;  %v14254_v34 = vand.u32 4294901760, %v82_v17 }
  0x9f   :  { %1986 = vmatpush.msrb.mxu0 %v14065_v13  ;;  %2058 = vmatpush.msrb.mxu2 %v14099_v25  ;;  %v33_v25 = vld [vmem:[%s22879_s1 + $0x60] sm:$0xff] }
  0xa0   :  { %2088 = vmatpush.msrb.mxu3 %v14081_v9  ;;  %1905 = vmatpush.msra.mxu1 %v13973_v40  ;;  %v2022_v40 = vand.u32 4294901760, %v2021_v20  ;;  %v2207_v62 = vand.u32 4294901760, %v2206_v36  ;;  %v14193_v0 = vpop.f32.mrf.mxu0 }
  0xa1   :  { %1988 = vmatpush.msrb.mxu0 %v14081_v9  ;;  %2061 = vmatpush.msrb.mxu2 %v14113_v28  ;;  %v58_v28 = vld [vmem:[%s22879_s1 + $0x128] sm:$0xff] }
  0xa2   :  { %2090 = vmatpush.msrb.mxu3 %v14101_v19  ;;  %1909 = vmatmul.f32.vlgmr.msra.gmra.mxu1 %v13443_v29  ;;  %v14274_v24 = vand.u32 4294901760, %v58_v28 }
  0xa3   :  { %2094 = vmatmul.f32.vlgmr.msrb.gmra.mxu3 %v13443_v29  ;;  %1990 = vmatpush.msrb.mxu0 %v14101_v19 }
  0xa4   :  { %2017 = vmatpush.msrb.mxu1 %v2016_v42  ;;  %2064 = vmatpush.msrb.mxu2 %v14133_v38  ;;  %v14212_v7 = vpop.f32.mrf.mxu3  ;;  %v14305_v42 = vsub.f32 %v58_v28, %v14274_v24  ;;  %v14361_v28 = vld.sshfl [vmem:[#allocation1] sm:$0xff pattern:$0x73625140] }
  0xa5   :  { %2202 = vmatpush.msra.mxu3 %v2201_v58  ;;  %1996 = vmatmul.f32.vlgmr.msrb.gmra.mxu0 %v13466_v44  ;;  %23292 = vst [vmem:[#allocation5_spill] sm:$0xff] %v14361_v28 }
  0xa6   :  { %2067 = vmatmul.f32.vlgmr.msrb.gmra.mxu2 %v13428_v21  ;;  %2023 = vmatpush.msrb.mxu1 %v2022_v40  ;;  %v2581_v40 = vand.u32 4294901760, %v14305_v42 }
  0xa7   :  { %2113 = vmatpush.msra.mxu0 %v2014_v30  ;;  %2169 = vmatpush.msra.mxu2 %v14056_v8  ;;  %v14199_v6 = vpop.f32.mrf.mxu1  ;;  %v14202_v5 = vpop.f32.mrf.mxu2  ;;  %v14252_v30 = vand.u32 4294901760, %v57_v14 }
  0xa8   :  { %2208 = vmatpush.msra.mxu3 %v2207_v62  ;;  %2029 = vmatpush.msrb.mxu1 %v2028_v53 }
  0xa9   :  { %2117 = vmatpush.msra.mxu0 %v2020_v39  ;;  %2171 = vmatpush.msra.mxu2 %v14083_v22  ;;  %v14272_v39 = vand.u32 4294901760, %v33_v25 }
  0xaa   :  { %2214 = vmatpush.msra.mxu3 %v2213_v55  ;;  %2035 = vmatpush.msrb.mxu1 %v2034_v2  ;;  %v14232_v12 = vpop.f32.mrf.mxu0 }
  0xab   :  { %2121 = vmatpush.msra.mxu0 %v2026_v46  ;;  %2173 = vmatpush.msra.mxu2 %v14103_v26  ;;  %v14288_v46 = vsub.f32 %v82_v17, %v14254_v34 }
  0xac   :  { %2220 = vmatpush.msra.mxu3 %v2219_v4  ;;  %2037 = vmatmul.f32.vlgmr.msrb.gmra.mxu1 %v13415_v16  ;;  %v2582_v4 = vsub.f32 %v14305_v42, %v2581_v40 }
  0xad   :  { %2222 = vmatmul.f32.vlgmr.msra.gmra.mxu3 %v13415_v16  ;;  %2125 = vmatpush.msra.mxu0 %v2032_v51 }
  0xae   :  { %2144 = vmatpush.msra.mxu1 %v14049_v10  ;;  %2175 = vmatpush.msra.mxu2 %v14119_v32  ;;  %v14236_v10 = vand.u32 4294901760, %v81_v1  ;;  %v14292_v20 = vpop.f32.mrf.mxu3 }
  0xaf   :  { %2329 = vmatpush.msrb.mxu3 %v14056_v8  ;;  %2127 = vmatmul.f32.vlgmr.msra.gmra.mxu0 %v13415_v16 }
  0xb0   :  { %2181 = vmatmul.f32.vlgmr.msra.gmra.mxu2 %v13466_v44  ;;  %2146 = vmatpush.msra.mxu1 %v14065_v13  ;;  %v14250_v13 = vsub.f32 %v105_v61, %v14220_v11  ;;  %v14270_v38 = vsub.f32 %v81_v1, %v14236_v10 }
  0xb1   :  { %2240 = vmatpush.msrb.mxu0 %v14091_v23  ;;  %2298 = vmatpush.msrb.mxu2 %v2199_v37  ;;  %v14256_v23 = vpop.f32.mrf.mxu1  ;;  %v14262_v37 = vsub.f32 %v106_v60, %v14227_v15 }
  0xb2   :  { %2331 = vmatpush.msrb.mxu3 %v14083_v22  ;;  %2148 = vmatpush.msra.mxu1 %v14081_v9  ;;  %v34_v9 = vld [vmem:[%s22879_s1 + $0x68] sm:$0xff]  ;;  %v2390_v51 = vand.u32 4294901760, %v14270_v38 }
  0xb3   :  { %2243 = vmatpush.msrb.mxu0 %v14117_v31  ;;  %2302 = vmatpush.msrb.mxu2 %v2205_v45  ;;  %v14276_v31 = vpop.f32.mrf.mxu2  ;;  %v2384_v45 = vand.u32 4294901760, %v14250_v13  ;;  %v14290_v47 = vand.u32 4294901760, %v34_v9 }
  0xb4   :  { %2333 = vmatpush.msrb.mxu3 %v14103_v26  ;;  %2150 = vmatpush.msra.mxu1 %v14101_v19  ;;  %v14284_v19 = vsub.f32 %v57_v14, %v14252_v30  ;;  %v14309_v36 = vpop.f32.mrf.mxu0 }
  0xb5   :  { %2246 = vmatpush.msrb.mxu0 %v14137_v41  ;;  %2306 = vmatpush.msrb.mxu2 %v2211_v50  ;;  %v2569_v41 = vand.u32 4294901760, %v14262_v37  ;;  %v14301_v50 = vsub.f32 %v33_v25, %v14272_v39 }
  0xb6   :  { %2335 = vmatpush.msrb.mxu3 %v14119_v32  ;;  %2152 = vmatmul.f32.vlgmr.msra.gmra.mxu1 %v13415_v16  ;;  %v2396_v54 = vand.u32 4294901760, %v14284_v19 }
  0xb7   :  { %2337 = vmatmul.f32.vlgmr.msrb.gmra.mxu3 %v13415_v16  ;;  %2249 = vmatpush.msrb.mxu0 %v14151_v35  ;;  %v2575_v35 = vand.u32 4294901760, %v14288_v46  ;;  %v2570_v58 = vsub.f32 %v14262_v37, %v2569_v41  ;;  %v2402_v49 = vand.u32 4294901760, %v14301_v50 }
  0xb8   :  { %2269 = vmatpush.msrb.mxu1 %v14056_v8  ;;  %2310 = vmatpush.msrb.mxu2 %v2217_v56  ;;  %v2385_v8 = vsub.f32 %v14250_v13, %v2384_v45  ;;  %v14317_v56 = vsub.f32 %v34_v9, %v14290_v47  ;;  %v2397_v53 = vsub.f32 %v14284_v19, %v2396_v54  ;;  %v14350_v60 = vpop.f32.mrf.mxu3 }
  0xb9   :  { %2454 = vmatpush.msra.mxu3 %v14220_v11  ;;  %2252 = vmatmul.f32.vlgmr.msrb.gmra.mxu0 %v13428_v21  ;;  %v2571_v2 = vand.u32 4294901760, %v2570_v58  ;;  %v2403_v61 = vsub.f32 %v14301_v50, %v2402_v49  ;;  %v4563_v58 = vld [vmem:[%s22881_s3 + $0x10] sm:$0xff] }
  0xba   :  { %2312 = vmatmul.f32.vlgmr.msrb.gmra.mxu2 %v13415_v16  ;;  %2271 = vmatpush.msrb.mxu1 %v14083_v22  ;;  %v2391_v22 = vsub.f32 %v14270_v38, %v2390_v51  ;;  %v2386_v62 = vand.u32 4294901760, %v2385_v8  ;;  %v2587_v63 = vand.u32 4294901760, %v14317_v56  ;;  %v2398_v14 = vand.u32 4294901760, %v2397_v53 }
  0xbb   :  { %2354 = vmatpush.msra.mxu0 %v14220_v11  ;;  %2425 = vmatpush.msra.mxu2 %v14250_v13  ;;  %v14329_v48 = vpop.f32.mrf.mxu1  ;;  %v14340_v55 = vpop.f32.mrf.mxu2  ;;  %v2583_v13 = vand.u32 4294901760, %v2582_v4  ;;  %v2404_v9 = vand.u32 4294901760, %v2403_v61  ;;  %v35_v61 = vld [vmem:[%s22879_s1 + $0x70] sm:$0xff] }
  0xbc   :  { %2456 = vmatpush.msra.mxu3 %v14236_v10  ;;  %2273 = vmatpush.msrb.mxu1 %v14103_v26  ;;  %v2576_v26 = vsub.f32 %v14288_v46, %v2575_v35  ;;  %v2588_v17 = vsub.f32 %v14317_v56, %v2587_v63 }
  0xbd   :  { %2356 = vmatpush.msra.mxu0 %v14236_v10  ;;  %2428 = vmatpush.msra.mxu2 %v14270_v38  ;;  %v14365_v38 = vld.sshfl [vmem:[#allocation1 + $0x8] sm:$0xff pattern:$0x73625140] }
  0xbe   :  { %2458 = vmatpush.msra.mxu3 %v14252_v30  ;;  %2275 = vmatpush.msrb.mxu1 %v14119_v32  ;;  %v2392_v32 = vand.u32 4294901760, %v2391_v22  ;;  %v2577_v1 = vand.u32 4294901760, %v2576_v26  ;;  %v14359_v25 = vpop.f32.mrf.mxu0  ;;  %23293 = vst [vmem:[#allocation6_spill] sm:$0xff] %v14365_v38  ;;  %v14374_v22 = vld.sshfl [vmem:[#allocation1 + $0x18] sm:$0xff pattern:$0x73625140] }
  0xbf   :  { %2358 = vmatpush.msra.mxu0 %v14252_v30  ;;  %2431 = vmatpush.msra.mxu2 %v14284_v19  ;;  %v14367_v19 = vld.sshfl [vmem:[#allocation1 + $0x10] sm:$0xff pattern:$0x73625140]  ;;  %23295 = vst [vmem:[#allocation8_spill] sm:$0xff] %v14374_v22 }
  0xc0   :  { %2460 = vmatpush.msra.mxu3 %v14272_v39  ;;  %2279 = vmatmul.f32.vlgmr.msrb.gmra.mxu1 %v13443_v29  ;;  %23294 = vst [vmem:[#allocation7_spill] sm:$0xff] %v14367_v19 }
  0xc1   :  { %2464 = vmatmul.f32.vlgmr.msra.gmra.mxu3 %v13443_v29  ;;  %2360 = vmatpush.msra.mxu0 %v14272_v39  ;;  %4584 = vst [vmem:[#allocation1] ss:$4 sm:$0xff] %v4563_v58 }
  0xc2   :  { %2387 = vmatpush.msra.mxu1 %v2386_v62  ;;  %2434 = vmatpush.msra.mxu2 %v14301_v50  ;;  %v2589_v50 = vand.u32 4294901760, %v2588_v17  ;;  %v107_v62 = vld [vmem:[%s22879_s1 + $0x2b0] sm:$0xff]  ;;  %v14387_v26 = vpop.f32.mrf.mxu3 }
  0xc3   :  { %2572 = vmatpush.msrb.mxu3 %v2571_v2  ;;  %2366 = vmatmul.f32.vlgmr.msra.gmra.mxu0 %v13466_v44  ;;  %23296 = vst [vmem:[#allocation9_spill] sm:$0xff] %v14387_v26  ;;  %v14395_v53 = vand.u32 4294901760, %v107_v62  ;;  %v59_v2 = vld [vmem:[%s22879_s1 + $0x130] sm:$0xff] }
  0xc4   :  { %2437 = vmatmul.f32.vlgmr.msra.gmra.mxu2 %v13428_v21  ;;  %2393 = vmatpush.msra.mxu1 %v2392_v32 }
  0xc5   :  { %2483 = vmatpush.msrb.mxu0 %v2384_v45  ;;  %2539 = vmatpush.msrb.mxu2 %v14227_v15  ;;  %v14369_v8 = vpop.f32.mrf.mxu1  ;;  %v14377_v45 = vpop.f32.mrf.mxu2 }
  0xc6   :  { %2578 = vmatpush.msrb.mxu3 %v2577_v1  ;;  %2399 = vmatpush.msra.mxu1 %v2398_v14  ;;  %v60_v1 = vld [vmem:[%s22879_s1 + $0x138] sm:$0xff]  ;;  %v14427_v14 = vand.u32 4294901760, %v59_v2 }
  0xc7   :  { %2487 = vmatpush.msrb.mxu0 %v2390_v51  ;;  %2541 = vmatpush.msrb.mxu2 %v14254_v34  ;;  %v108_v51 = vld [vmem:[%s22879_s1 + $0x2b8] sm:$0xff] }
  0xc8   :  { %2584 = vmatpush.msrb.mxu3 %v2583_v13  ;;  %2405 = vmatpush.msra.mxu1 %v2404_v9  ;;  %v14402_v32 = vand.u32 4294901760, %v108_v51  ;;  %v14407_v4 = vpop.f32.mrf.mxu0  ;;  %v14447_v9 = vand.u32 4294901760, %v35_v61 }
  0xc9   :  { %2491 = vmatpush.msrb.mxu0 %v2396_v54  ;;  %2543 = vmatpush.msrb.mxu2 %v14274_v24  ;;  %v83_v54 = vld [vmem:[%s22879_s1 + $0x1f0] sm:$0xff] }
  0xca   :  { %2590 = vmatpush.msrb.mxu3 %v2589_v50  ;;  %2407 = vmatmul.f32.vlgmr.msra.gmra.mxu1 %v13415_v16  ;;  %v14449_v50 = vand.u32 4294901760, %v60_v1 }
  0xcb   :  { %2592 = vmatmul.f32.vlgmr.msrb.gmra.mxu3 %v13415_v16  ;;  %2495 = vmatpush.msrb.mxu0 %v2402_v49  ;;  %v84_v49 = vld [vmem:[%s22879_s1 + $0x1f8] sm:$0xff] }
  0xcc   :  { %2514 = vmatpush.msrb.mxu1 %v14220_v11  ;;  %2545 = vmatpush.msrb.mxu2 %v14290_v47  ;;  %v14411_v11 = vand.u32 4294901760, %v83_v54  ;;  %v14429_v17 = vand.u32 4294901760, %v84_v49 }
  0xcd   :  { %2699 = vmatpush.msra.mxu3 %v14227_v15  ;;  %2497 = vmatmul.f32.vlgmr.msrb.gmra.mxu0 %v13415_v16 }
  0xce   :  { %2551 = vmatmul.f32.vlgmr.msrb.gmra.mxu2 %v13466_v44  ;;  %2516 = vmatpush.msrb.mxu1 %v14236_v10  ;;  %v14425_v10 = vsub.f32 %v107_v62, %v14395_v53  ;;  %v14445_v13 = vsub.f32 %v83_v54, %v14411_v11  ;;  %v14463_v58 = vsub.f32 %v84_v49, %v14429_v17 }
  0xcf   :  { %2610 = vmatpush.msra.mxu0 %v14262_v37  ;;  %2668 = vmatpush.msra.mxu2 %v2569_v41  ;;  %v14431_v37 = vpop.f32.mrf.mxu1  ;;  %v14437_v41 = vsub.f32 %v108_v51, %v14402_v32  ;;  %v14467_v51 = vpop.f32.mrf.mxu3  ;;  %v14479_v54 = vsub.f32 %v35_v61, %v14447_v9  ;;  %v14483_v49 = vsub.f32 %v60_v1, %v14449_v50 }
  0xd0   :  { %2701 = vmatpush.msra.mxu3 %v14254_v34  ;;  %2518 = vmatpush.msrb.mxu1 %v14252_v30  ;;  %v36_v30 = vld [vmem:[%s22879_s1 + $0x78] sm:$0xff]  ;;  %v23300_v22 = vand.u32 4294901760, %v14463_v58 }
  0xd1   :  { %2613 = vmatpush.msra.mxu0 %v14288_v46  ;;  %2672 = vmatpush.msra.mxu2 %v2575_v35  ;;  %v14451_v46 = vpop.f32.mrf.mxu2  ;;  %v14465_v62 = vand.u32 4294901760, %v36_v30 }
  0xd2   :  { %2703 = vmatpush.msra.mxu3 %v14274_v24  ;;  %2520 = vmatpush.msrb.mxu1 %v14272_v39  ;;  %v14459_v39 = vsub.f32 %v59_v2, %v14427_v14  ;;  %v2760_v2 = vand.u32 4294901760, %v14445_v13  ;;  %v14487_v35 = vpop.f32.mrf.mxu0 }
  0xd3   :  { %2616 = vmatpush.msra.mxu0 %v14305_v42  ;;  %2676 = vmatpush.msra.mxu2 %v2581_v40  ;;  %v4562_v42 = vld [vmem:[%s22881_s3 + $0x8] sm:$0xff]  ;;  %v22884_v40 = vand.u32 4294901760, %v14437_v41  ;;  %23297 = vst [vmem:[#allocation10_spill] sm:$0xff] %v14487_v35  ;;  %v14497_v1 = vsub.f32 %v36_v30, %v14465_v62 }
  0xd4   :  { %2705 = vmatpush.msra.mxu3 %v14290_v47  ;;  %2522 = vmatmul.f32.vlgmr.msrb.gmra.mxu1 %v13415_v16  ;;  %4575 = vst [vmem:[#allocation1 + $0x20] ss:$4 sm:$0xff] %v4562_v42  ;;  %v2766_v61 = vand.u32 4294901760, %v14459_v39 }
  0xd5   :  { %2707 = vmatmul.f32.vlgmr.msra.gmra.mxu3 %v13415_v16  ;;  %2619 = vmatpush.msra.mxu0 %v14317_v56  ;;  %v2940_v42 = vsub.f32 %v14437_v41, %v22884_v40 }
  0xd6   :  { %2639 = vmatpush.msra.mxu1 %v14227_v15  ;;  %2680 = vmatpush.msra.mxu2 %v2587_v63  ;;  %v23298_v15 = vand.u32 4294901760, %v14425_v10  ;;  %v2772_v63 = vand.u32 4294901760, %v14479_v54  ;;  %v2767_v35 = vsub.f32 %v14459_v39, %v2766_v61 }
  0xd7   :  { %2824 = vmatpush.msrb.mxu3 %v14395_v53  ;;  %2622 = vmatmul.f32.vlgmr.msra.gmra.mxu0 %v13428_v21  ;;  %v14530_v19 = vpop.f32.mrf.mxu3 }
  0xd8   :  { %2682 = vmatmul.f32.vlgmr.msra.gmra.mxu2 %v13415_v16  ;;  %2641 = vmatpush.msra.mxu1 %v14254_v34  ;;  %v2755_v56 = vsub.f32 %v14425_v10, %v23298_v15  ;;  %v2761_v34 = vsub.f32 %v14445_v13, %v2760_v2  ;;  %v2957_v15 = vand.u32 4294901760, %v14497_v1 }
  0xd9   :  { %2724 = vmatpush.msrb.mxu0 %v14395_v53  ;;  %2795 = vmatpush.msrb.mxu2 %v14425_v10  ;;  %v14509_v30 = vpop.f32.mrf.mxu1  ;;  %v14520_v26 = vpop.f32.mrf.mxu2 }
  0xda   :  { %2826 = vmatpush.msrb.mxu3 %v14411_v11  ;;  %2643 = vmatpush.msra.mxu1 %v14274_v24  ;;  %23299 = vst [vmem:[#allocation11_spill] sm:$0xff] %v14509_v30  ;;  %v2756_v40 = vand.u32 4294901760, %v2755_v56  ;;  %v2946_v24 = vsub.f32 %v14463_v58, %v23300_v22  ;;  %v23301_v56 = vand.u32 4294901760, %v14483_v49  ;;  %v2773_v30 = vsub.f32 %v14479_v54, %v2772_v63 }
  0xdb   :  { %2726 = vmatpush.msrb.mxu0 %v14411_v11  ;;  %2798 = vmatpush.msrb.mxu2 %v14445_v13  ;;  %v2941_v13 = vand.u32 4294901760, %v2940_v42  ;;  %v2768_v42 = vand.u32 4294901760, %v2767_v35 }
  0xdc   :  { %2828 = vmatpush.msrb.mxu3 %v14427_v14  ;;  %2645 = vmatpush.msra.mxu1 %v14290_v47  ;;  %v2762_v47 = vand.u32 4294901760, %v2761_v34  ;;  %v2952_v22 = vsub.f32 %v14483_v49, %v23301_v56  ;;  %v2958_v34 = vsub.f32 %v14497_v1, %v2957_v15  ;;  %v14539_v56 = vpop.f32.mrf.mxu0  ;;  %v2774_v38 = vand.u32 4294901760, %v2773_v30 }
  0xdd   :  { %2728 = vmatpush.msrb.mxu0 %v14427_v14  ;;  %2801 = vmatpush.msrb.mxu2 %v14459_v39  ;;  %v2947_v39 = vand.u32 4294901760, %v2946_v24 }
  0xde   :  { %2830 = vmatpush.msrb.mxu3 %v14447_v9  ;;  %2649 = vmatmul.f32.vlgmr.msra.gmra.mxu1 %v13443_v29  ;;  %v2953_v28 = vand.u32 4294901760, %v2952_v22  ;;  %v2959_v35 = vand.u32 4294901760, %v2958_v34  ;;  %v37_v22 = vld [vmem:[%s22879_s1 + $0x80] sm:$0xff] }
  0xdf   :  { %2834 = vmatmul.f32.vlgmr.msrb.gmra.mxu3 %v13443_v29  ;;  %2730 = vmatpush.msrb.mxu0 %v14447_v9 }
  0xe0   :  { %2757 = vmatpush.msrb.mxu1 %v2756_v40  ;;  %2804 = vmatpush.msrb.mxu2 %v14479_v54  ;;  %v23302_v40 = vand.u32 4294901760, %v14425_v10  ;;  %v109_v10 = vld [vmem:[%s22879_s1 + $0x2c0] sm:$0xff]  ;;  %v14558_v30 = vpop.f32.mrf.mxu3 }
  0xe1   :  { %2942 = vmatpush.msra.mxu3 %v2941_v13  ;;  %2736 = vmatmul.f32.vlgmr.msrb.gmra.mxu0 %v13466_v44  ;;  %v189_v13 = vadd.f32 %v14085_v18, %v14061_v3  ;;  %v559_v18 = vadd.f32 %v14256_v23, %v14232_v12 }
  0xe2   :  { %2807 = vmatmul.f32.vlgmr.msrb.gmra.mxu2 %v13428_v21  ;;  %2763 = vmatpush.msrb.mxu1 %v2762_v47 }
  0xe3   :  { %2853 = vmatpush.msra.mxu0 %v23302_v40  ;;  %2909 = vmatpush.msra.mxu2 %v14402_v32  ;;  %v14545_v54 = vpop.f32.mrf.mxu1  ;;  %v14548_v24 = vpop.f32.mrf.mxu2  ;;  %v219_v34 = vadd.f32 %v14105_v27, %v189_v13  ;;  %v23304_v40 = vand.u32 4294901760, %v14463_v58  ;;  %v23305_v13 = vand.u32 4294901760, %v14483_v49 }
  0xe4   :  { %2948 = vmatpush.msra.mxu3 %v2947_v39  ;;  %2769 = vmatpush.msrb.mxu1 %v2768_v42  ;;  %v62_v39 = vld [vmem:[%s22879_s1 + $0x148] sm:$0xff] }
  0xe5   :  { %2857 = vmatpush.msra.mxu0 %v2760_v2  ;;  %2911 = vmatpush.msra.mxu2 %v14429_v17  ;;  %v110_v2 = vld [vmem:[%s22879_s1 + $0x2c8] sm:$0xff] }
  0xe6   :  { %2954 = vmatpush.msra.mxu3 %v2953_v28  ;;  %2775 = vmatpush.msrb.mxu1 %v2774_v38  ;;  %v85_v28 = vld [vmem:[%s22879_s1 + $0x200] sm:$0xff]  ;;  %v374_v38 = vadd.f32 %v14184_v59, %v14174_v57  ;;  %v14577_v47 = vand.u32 4294901760, %v110_v2  ;;  %v86_v57 = vld [vmem:[%s22879_s1 + $0x208] sm:$0xff]  ;;  %v14582_v59 = vpop.f32.mrf.mxu0 }
  0xe7   :  { %2861 = vmatpush.msra.mxu0 %v2766_v61  ;;  %2913 = vmatpush.msra.mxu2 %v14449_v50  ;;  %v14568_v61 = vand.u32 4294901760, %v109_v10  ;;  %v14586_v3 = vand.u32 4294901760, %v85_v28 }
  0xe8   :  { %2960 = vmatpush.msra.mxu3 %v2959_v35  ;;  %2777 = vmatmul.f32.vlgmr.msrb.gmra.mxu1 %v13415_v16 }
  0xe9   :  { %2962 = vmatmul.f32.vlgmr.msra.gmra.mxu3 %v13415_v16  ;;  %2865 = vmatpush.msra.mxu0 %v2772_v63  ;;  %v61_v63 = vld [vmem:[%s22879_s1 + $0x140] sm:$0xff]  ;;  %v14603_v12 = vsub.f32 %v109_v10, %v14568_v61  ;;  %v14625_v27 = vsub.f32 %v85_v28, %v14586_v3  ;;  %v14627_v10 = vand.u32 4294901760, %v37_v22 }
  0xea   :  { %2884 = vmatpush.msra.mxu1 %v14395_v53  ;;  %2915 = vmatpush.msra.mxu2 %v14465_v62  ;;  %v23303_v53 = vand.u32 4294901760, %v14437_v41  ;;  %v14605_v23 = vand.u32 4294901760, %v61_v63 }
  0xeb   :  { %3069 = vmatpush.msrb.mxu3 %v14402_v32  ;;  %2867 = vmatmul.f32.vlgmr.msra.gmra.mxu0 %v13415_v16 }
  0xec   :  { %2921 = vmatmul.f32.vlgmr.msra.gmra.mxu2 %v13466_v44  ;;  %2886 = vmatpush.msra.mxu1 %v14411_v11  ;;  %v404_v11 = vadd.f32 %v14193_v0, %v374_v38  ;;  %v14616_v0 = vsub.f32 %v110_v2, %v14577_v47  ;;  %v589_v2 = vadd.f32 %v14276_v31, %v559_v18  ;;  %v14648_v31 = vpop.f32.mrf.mxu3 }
  0xed   :  { %2980 = vmatpush.msrb.mxu0 %v14437_v41  ;;  %3038 = vmatpush.msrb.mxu2 %v23303_v53  ;;  %v14607_v41 = vand.u32 4294901760, %v86_v57  ;;  %v14609_v42 = vpop.f32.mrf.mxu1  ;;  %v14631_v38 = vpop.f32.mrf.mxu2  ;;  %v246_v18 = vadd.f32 %v14121_v33, %v219_v34  ;;  %v3130_v33 = vand.u32 4294901760, %v14625_v27  ;;  %v929_v34 = vadd.f32 %v14431_v37, %v14407_v4 }
  0xee   :  { %3071 = vmatpush.msrb.mxu3 %v14429_v17  ;;  %2888 = vmatpush.msra.mxu1 %v14427_v14  ;;  %v38_v14 = vld [vmem:[%s22879_s1 + $0x88] sm:$0xff]  ;;  %v431_v35 = vadd.f32 %v14199_v6, %v404_v11  ;;  %v14640_v6 = vsub.f32 %v61_v63, %v14605_v23  ;;  %v3309_v63 = vand.u32 4294901760, %v14616_v0 }
  0xef   :  { %2983 = vmatpush.msrb.mxu0 %v14463_v58  ;;  %3042 = vmatpush.msrb.mxu2 %v23304_v40  ;;  %v14629_v58 = vand.u32 4294901760, %v62_v39  ;;  %v14644_v28 = vsub.f32 %v86_v57, %v14607_v41  ;;  %v14646_v53 = vand.u32 4294901760, %v38_v14  ;;  %v14661_v57 = vsub.f32 %v37_v22, %v14627_v10 }
  0xf0   :  { %3073 = vmatpush.msrb.mxu3 %v14449_v50  ;;  %2890 = vmatpush.msra.mxu1 %v14447_v9  ;;  %v3124_v9 = vand.u32 4294901760, %v14603_v12  ;;  %v464_v11 = vadd.f32 %v14202_v5, %v431_v35  ;;  %v14672_v5 = vpop.f32.mrf.mxu0  ;;  %v279_v37 = vadd.f32 %v14141_v43, %v246_v18  ;;  %v3131_v43 = vsub.f32 %v14625_v27, %v3130_v33 }
  0xf1   :  { %2986 = vmatpush.msrb.mxu0 %v14483_v49  ;;  %3046 = vmatpush.msrb.mxu2 %v23305_v13  ;;  %v744_v49 = vadd.f32 %v14350_v60, %v14340_v55  ;;  %v14665_v55 = vsub.f32 %v62_v39, %v14629_v58  ;;  %v616_v60 = vadd.f32 %v14292_v20, %v589_v2  ;;  %v3136_v20 = vand.u32 4294901760, %v14640_v6 }
  0xf2   :  { %3075 = vmatpush.msrb.mxu3 %v14465_v62  ;;  %2892 = vmatmul.f32.vlgmr.msra.gmra.mxu1 %v13415_v16  ;;  %v14682_v4 = vsub.f32 %v38_v14, %v14646_v53  ;;  %v489_v22 = vadd.f32 %v14212_v7, %v464_v11  ;;  %v3142_v39 = vand.u32 4294901760, %v14661_v57  ;;  %v959_v7 = vadd.f32 %v14451_v46, %v929_v34 }
  0xf3   :  { %3077 = vmatmul.f32.vlgmr.msrb.gmra.mxu3 %v13415_v16  ;;  %2989 = vmatpush.msrb.mxu0 %v14497_v1  ;;  %v3315_v1 = vand.u32 4294901760, %v14644_v28  ;;  %v649_v14 = vadd.f32 %v14309_v36, %v616_v60  ;;  %v3137_v36 = vsub.f32 %v14640_v6, %v3136_v20  ;;  %v304_v13 = vadd.f32 %v14163_v52, %v279_v37  ;;  %v23306_v37 = vld [vmem:[#allocation6_spill] sm:$0xff] }
  0xf4   :  { %3009 = vmatpush.msrb.mxu1 %v14402_v32  ;;  %3050 = vmatpush.msrb.mxu2 %v2957_v15  ;;  %v3125_v32 = vsub.f32 %v14603_v12, %v3124_v9  ;;  %v774_v15 = vadd.f32 %v14359_v25, %v744_v49  ;;  %v3321_v25 = vand.u32 4294901760, %v14665_v55  ;;  %v1114_v18 = vadd.f32 %v14530_v19, %v14520_v26  ;;  %v1483_v26 = vpop.f32.mrf.mxu3 }
  0xf5   :  { %3194 = vmatpush.msra.mxu3 %v14568_v61  ;;  %2992 = vmatmul.f32.vlgmr.msrb.gmra.mxu0 %v13428_v21  ;;  %v3316_v2 = vsub.f32 %v14644_v28, %v3315_v1  ;;  %v3132_v49 = vand.u32 4294901760, %v3131_v43  ;;  %v3143_v52 = vsub.f32 %v14661_v57, %v3142_v39  ;;  %v1299_v19 = vadd.f32 %v14609_v42, %v14582_v59  ;;  %v23307_v59 = vld [vmem:[#allocation5_spill] sm:$0xff] }
  0xf6   :  { %3052 = vmatmul.f32.vlgmr.msrb.gmra.mxu2 %v13415_v16  ;;  %3011 = vmatpush.msrb.mxu1 %v14429_v17  ;;  %v3310_v17 = vsub.f32 %v14616_v0, %v3309_v63  ;;  %v801_v35 = vadd.f32 %v14369_v8, %v774_v15  ;;  %v3327_v8 = vand.u32 4294901760, %v14682_v4  ;;  %v3322_v11 = vsub.f32 %v14665_v55, %v3321_v25 }
  0xf7   :  { %3094 = vmatpush.msra.mxu0 %v14568_v61  ;;  %3165 = vmatpush.msra.mxu2 %v14603_v12  ;;  %v14699_v40 = vpop.f32.mrf.mxu1  ;;  %v1442_v46 = vpop.f32.mrf.mxu2  ;;  %v674_v60 = vadd.f32 %v14329_v48, %v649_v14  ;;  %v14736_v15 = vsub.f32 %v489_v22, %v23306_v37  ;;  %v3138_v43 = vand.u32 4294901760, %v3137_v36  ;;  %v3144_v14 = vand.u32 4294901760, %v3143_v52  ;;  %v23310_v36 = vld [vmem:[#allocation9_spill] sm:$0xff]  ;;  %v23311_v37 = vld [vmem:[#allocation10_spill] sm:$0xff] }
  0xf8   :  { %3196 = vmatpush.msra.mxu3 %v14586_v3  ;;  %3013 = vmatpush.msrb.mxu1 %v14449_v50  ;;  %v3126_v50 = vand.u32 4294901760, %v3125_v32  ;;  %v834_v34 = vadd.f32 %v14377_v45, %v801_v35  ;;  %v986_v32 = vadd.f32 %v14467_v51, %v959_v7  ;;  %v3328_v48 = vsub.f32 %v14682_v4, %v3327_v8  ;;  %v112_v12 = vld [vmem:[%s22879_s1 + $0x2d8] sm:$0xff] }
  0xf9   :  { %3096 = vmatpush.msra.mxu0 %v14586_v3  ;;  %3168 = vmatpush.msra.mxu2 %v14625_v27  ;;  %v14743_v45 = vsub.f32 %v304_v13, %v23307_v59  ;;  %v1144_v51 = vadd.f32 %v14539_v56, %v1114_v18  ;;  %v3323_v22 = vand.u32 4294901760, %v3322_v11  ;;  %v1329_v35 = vadd.f32 %v14631_v38, %v1299_v19  ;;  %v4580_v56 = vld.sshfl [vmem:[#allocation1 + $0x20] sm:$0xff pattern:$0x73625140] }
  0xfa   :  { %3198 = vmatpush.msra.mxu3 %v14605_v23  ;;  %3015 = vmatpush.msrb.mxu1 %v14465_v62  ;;  %v3311_v62 = vand.u32 4294901760, %v3310_v17  ;;  %v3317_v17 = vand.u32 4294901760, %v3316_v2  ;;  %v1513_v42 = vpop.f32.mrf.mxu0  ;;  %v1484_v7 = vadd.f32 %v1483_v26, %v1442_v46  ;;  %v859_v13 = vadd.f32 %v23310_v36, %v834_v34  ;;  %v14757_v18 = vld.sshfl [vmem:[#allocation1 + $0x28] sm:$0xff pattern:$0x73625140] }
  0xfb   :  { %3098 = vmatpush.msra.mxu0 %v14605_v23  ;;  %3171 = vmatpush.msra.mxu2 %v14640_v6  ;;  %v1019_v59 = vadd.f32 %v23311_v37, %v986_v32  ;;  %v1171_v38 = vadd.f32 %v14545_v54, %v1144_v51  ;;  %v3329_v46 = vand.u32 4294901760, %v3328_v48  ;;  %v14773_v52 = vld.sshfl [vmem:[#allocation1 + $0x38] sm:$0xff pattern:$0x73625140]  ;;  %v4652_v54 = vmul.f32 %v14743_v45, %v14743_v45  ;;  %v23312_v34 = vld [vmem:[#allocation8_spill] sm:$0xff] }
  0xfc   :  { %3200 = vmatpush.msra.mxu3 %v14627_v10  ;;  %3019 = vmatmul.f32.vlgmr.msrb.gmra.mxu1 %v13443_v29  ;;  %v1356_v27 = vadd.f32 %v14648_v31, %v1329_v35  ;;  %v1514_v19 = vadd.f32 %v1513_v42, %v1484_v7  ;;  %v14784_v32 = vsub.f32 %v859_v13, %v23312_v34  ;;  %v14793_v51 = vand.u32 4294901760, %v112_v12  ;;  %v64_v13 = vld [vmem:[%s22879_s1 + $0x158] sm:$0xff] }
  0xfd   :  { %3204 = vmatmul.f32.vlgmr.msra.gmra.mxu3 %v13443_v29  ;;  %3100 = vmatpush.msra.mxu0 %v14627_v10  ;;  %v1204_v48 = vadd.f32 %v14548_v24, %v1171_v38 }
  0xfe   :  { %3127 = vmatpush.msra.mxu1 %v3126_v50  ;;  %3174 = vmatpush.msra.mxu2 %v14661_v57  ;;  %v23308_v50 = vld [vmem:[#allocation7_spill] sm:$0xff]  ;;  %23313 = vst [vmem:[#allocation5_spill] sm:$0xff] %v14784_v32  ;;  %v1389_v24 = vadd.f32 %v14672_v5, %v1356_v27  ;;  %v4655_v57 = vmul.f32 %v14784_v32, %v14784_v32 }
  0xff   :  { %3312 = vmatpush.msrb.mxu3 %v3311_v62  ;;  %3106 = vmatmul.f32.vlgmr.msra.gmra.mxu0 %v13466_v44  ;;  %v14750_v2 = vsub.f32 %v674_v60, %v23308_v50  ;;  %v4653_v62 = vmul.f32 %v14736_v15, %v14736_v15  ;;  %v1229_v50 = vadd.f32 %v14558_v30, %v1204_v48  ;;  %v63_v30 = vld [vmem:[%s22879_s1 + $0x150] sm:$0xff] }
 0x100   :  { %3177 = vmatmul.f32.vlgmr.msra.gmra.mxu2 %v13428_v21  ;;  %3133 = vmatpush.msra.mxu1 %v3132_v49  ;;  %v14762_v49 = vld.sshfl [vmem:[#allocation1 + $0x30] sm:$0xff pattern:$0x73625140]  ;;  %v14821_v36 = vsub.f32 %v112_v12, %v14793_v51  ;;  %v1414_v38 = vadd.f32 %v14699_v40, %v1389_v24  ;;  %v14854_v40 = vand.u32 4294901760, %v64_v13 }
 0x101   :  { %23309 = vst [vmem:[#allocation6_spill] sm:$0xff] %v14750_v2  ;;  %3223 = vmatpush.msrb.mxu0 %v3124_v9  ;;  %3279 = vmatpush.msrb.mxu2 %v14577_v47  ;;  %v1540_v11 = vpop.f32.mrf.mxu1  ;;  %v4564_v9 = vld [vmem:[%s22881_s3 + $0x18] sm:$0xff]  ;;  %v1573_v26 = vpop.f32.mrf.mxu2  ;;  %v4654_v60 = vmul.f32 %v14750_v2, %v14750_v2  ;;  %v4678_v31 = vsel %vm4676_vm1, %v4653_v62, 0.0 }
 0x102   :  { %3318 = vmatpush.msrb.mxu3 %v3317_v17  ;;  %3139 = vmatpush.msra.mxu1 %v3138_v43  ;;  %4585 = vst [vmem:[#allocation1 + $0x20] ss:$4 sm:$0xff] %v4564_v9  ;;  %v23314_v17 = vld [vmem:[#allocation11_spill] sm:$0xff]  ;;  %v1541_v42 = vadd.f32 %v1540_v11, %v1514_v19  ;;  %v14857_v9 = vsub.f32 %v1229_v50, %v14757_v18  ;;  %v3679_v27 = vand.u32 4294901760, %v14821_v36 }
 0x103   :  { %3227 = vmatpush.msrb.mxu0 %v3130_v33  ;;  %3281 = vmatpush.msrb.mxu2 %v14607_v41  ;;  %v111_v33 = vld [vmem:[%s22879_s1 + $0x2d0] sm:$0xff]  ;;  %v1044_v43 = vadd.f32 %v23314_v17, %v1019_v59  ;;  %v4680_v7 = vsel %vm4676_vm1, %v4654_v60, 0.0  ;;  %v14886_v17 = vsub.f32 %v64_v13, %v14854_v40 }
 0x104   :  { %3324 = vmatpush.msrb.mxu3 %v3323_v22  ;;  %3145 = vmatpush.msra.mxu1 %v3144_v14  ;;  %v1598_v22 = vpop.f32.mrf.mxu3  ;;  %v14798_v6 = vand.u32 4294901760, %v111_v33  ;;  %v88_v14 = vld [vmem:[%s22879_s1 + $0x218] sm:$0xff]  ;;  %v1627_v5 = vpop.f32.mrf.mxu0  ;;  %v1574_v37 = vadd.f32 %v1573_v26, %v1541_v42  ;;  %23316 = vst [vmem:[#allocation9_spill] sm:$0xff] %v14857_v9 }
 0x105   :  { %3231 = vmatpush.msrb.mxu0 %v3136_v20  ;;  %3283 = vmatpush.msrb.mxu2 %v14629_v58  ;;  %v4677_v20 = vsel %vm4676_vm1, %v4652_v54, 0.0  ;;  %v14861_v54 = vand.u32 4294901760, %v63_v30 }
 0x106   :  { %3330 = vmatpush.msrb.mxu3 %v3329_v46  ;;  %3147 = vmatmul.f32.vlgmr.msra.gmra.mxu1 %v13415_v16  ;;  %v4679_v35 = vadd.f32 %v4678_v31, %v4677_v20  ;;  %v14830_v59 = vsub.f32 %v111_v33, %v14798_v6  ;;  %v4682_v46 = vsel %vm4676_vm1, %v4655_v57, 0.0 }
 0x107   :  { %3332 = vmatmul.f32.vlgmr.msrb.gmra.mxu3 %v13415_v16  ;;  %3235 = vmatpush.msrb.mxu0 %v3142_v39  ;;  %v14810_v39 = vsub.f32 %v1044_v43, %v4580_v56  ;;  %v14895_v48 = vsub.f32 %v63_v30, %v14861_v54 }
 0x108   :  { %3254 = vmatpush.msrb.mxu1 %v14568_v61  ;;  %3285 = vmatpush.msrb.mxu2 %v14646_v53  ;;  %v87_v61 = vld [vmem:[%s22879_s1 + $0x210] sm:$0xff]  ;;  %v4681_v56 = vadd.f32 %v4680_v7, %v4679_v35  ;;  %v3494_v33 = vand.u32 4294901760, %v14830_v59  ;;  %v3691_v7 = vand.u32 4294901760, %v14886_v17 }
 0x109   :  { %23315 = vst [vmem:[#allocation7_spill] sm:$0xff] %v14810_v39  ;;  %3439 = vmatpush.msra.mxu3 %v14577_v47  ;;  %3237 = vmatmul.f32.vlgmr.msrb.gmra.mxu0 %v13415_v16  ;;  %v14839_v62 = vand.u32 4294901760, %v87_v61  ;;  %v4656_v11 = vmul.f32 %v14810_v39, %v14810_v39 }
 0x10a   :  { %3291 = vmatmul.f32.vlgmr.msrb.gmra.mxu2 %v13466_v44  ;;  %3256 = vmatpush.msrb.mxu1 %v14586_v3  ;;  %v14835_v3 = vand.u32 4294901760, %v88_v14  ;;  %v4683_v34 = vadd.f32 %v4682_v46, %v4681_v56 }
 0x10b   :  { %3350 = vmatpush.msra.mxu0 %v14616_v0  ;;  %3408 = vmatpush.msra.mxu2 %v3309_v63  ;;  %v40_v0 = vld [vmem:[%s22879_s1 + $0x98] sm:$0xff]  ;;  %v1668_v63 = vpop.f32.mrf.mxu1  ;;  %v14879_v60 = vsub.f32 %v87_v61, %v14839_v62  ;;  %v4684_v31 = vsel %vm4676_vm1, %v4656_v11, 0.0 }
 0x10c   :  { %3441 = vmatpush.msra.mxu3 %v14607_v41  ;;  %3258 = vmatpush.msrb.mxu1 %v14605_v23  ;;  %v39_v23 = vld [vmem:[%s22879_s1 + $0x90] sm:$0xff]  ;;  %v1669_v12 = vadd.f32 %v1668_v63, %v1627_v5  ;;  %v14869_v18 = vsub.f32 %v88_v14, %v14835_v3  ;;  %v14871_v19 = vand.u32 4294901760, %v40_v0  ;;  %v4685_v57 = vadd.f32 %v4684_v31, %v4683_v34 }
 0x10d   :  { %3353 = vmatpush.msra.mxu0 %v14644_v28  ;;  %3412 = vmatpush.msra.mxu2 %v3315_v1  ;;  %v1599_v28 = vadd.f32 %v1598_v22, %v1574_v37  ;;  %v1698_v1 = vpop.f32.mrf.mxu2  ;;  %v3680_v22 = vsub.f32 %v14821_v36, %v3679_v27  ;;  %v3500_v14 = vand.u32 4294901760, %v14879_v60 }
 0x10e   :  { %3443 = vmatpush.msra.mxu3 %v14629_v58  ;;  %3260 = vmatpush.msrb.mxu1 %v14627_v10  ;;  %v1699_v26 = vadd.f32 %v1698_v1, %v1669_v12  ;;  %v14876_v10 = vsub.f32 %v1414_v38, %v14762_v49  ;;  %v4657_v49 = vmul.f32 %v14857_v9, %v14857_v9  ;;  %v1758_v20 = vpop.f32.mrf.mxu0  ;;  %v4586_v38 = vld.sshfl [vmem:[#allocation1] sm:$0xff pattern:$0x73625140] }
 0x10f   :  { %3356 = vmatpush.msra.mxu0 %v14665_v55  ;;  %3416 = vmatpush.msra.mxu2 %v3321_v25  ;;  %v14881_v55 = vand.u32 4294901760, %v39_v23  ;;  %v1725_v25 = vpop.f32.mrf.mxu3  ;;  %v14898_v42 = vsub.f32 %v1599_v28, %v14773_v52  ;;  %v3681_v50 = vand.u32 4294901760, %v3680_v22 }
 0x110   :  { %3445 = vmatpush.msra.mxu3 %v14646_v53  ;;  %3262 = vmatmul.f32.vlgmr.msrb.gmra.mxu1 %v13415_v16  ;;  %23317 = vst [vmem:[#allocation10_spill] sm:$0xff] %v14876_v10  ;;  %v1726_v43 = vadd.f32 %v1725_v25, %v1699_v26  ;;  %v4658_v52 = vmul.f32 %v14876_v10, %v14876_v10  ;;  %v4686_v61 = vsel %vm4676_vm1, %v4657_v49, 0.0 }
 0x111   :  { %3447 = vmatmul.f32.vlgmr.msra.gmra.mxu3 %v13415_v16  ;;  %3359 = vmatpush.msra.mxu0 %v14682_v4  ;;  %23318 = vst [vmem:[#allocation8_spill] sm:$0xff] %v14898_v42  ;;  %v3685_v4 = vand.u32 4294901760, %v14869_v18  ;;  %v14917_v24 = vsub.f32 %v39_v23, %v14881_v55  ;;  %v4659_v5 = vmul.f32 %v14898_v42, %v14898_v42 }
 0x112   :  { %3379 = vmatpush.msra.mxu1 %v14577_v47  ;;  %3420 = vmatpush.msra.mxu2 %v3327_v8  ;;  %v3495_v47 = vsub.f32 %v14830_v59, %v3494_v33  ;;  %v14910_v8 = vsub.f32 %v40_v0, %v14871_v19  ;;  %v1759_v35 = vadd.f32 %v1758_v20, %v1726_v43 }
 0x113   :  { %3564 = vmatpush.msrb.mxu3 %v14798_v6  ;;  %3362 = vmatmul.f32.vlgmr.msra.gmra.mxu0 %v13428_v21  ;;  %v3686_v37 = vsub.f32 %v14869_v18, %v3685_v4  ;;  %v3501_v0 = vsub.f32 %v14879_v60, %v3500_v14  ;;  %v3512_v63 = vand.u32 4294901760, %v14917_v24  ;;  %v4687_v11 = vadd.f32 %v4686_v61, %v4685_v57 }
 0x114   :  { %3422 = vmatmul.f32.vlgmr.msra.gmra.mxu2 %v13415_v16  ;;  %3381 = vmatpush.msra.mxu1 %v14607_v41  ;;  %v3506_v41 = vand.u32 4294901760, %v14895_v48  ;;  %v3496_v13 = vand.u32 4294901760, %v3495_v47  ;;  %v3697_v30 = vand.u32 4294901760, %v14910_v8  ;;  %v3692_v23 = vsub.f32 %v14886_v17, %v3691_v7 }
 0x115   :  { %3464 = vmatpush.msrb.mxu0 %v14798_v6  ;;  %3535 = vmatpush.msrb.mxu2 %v14830_v59  ;;  %v1783_v56 = vpop.f32.mrf.mxu1  ;;  %v4690_v12 = vsel %vm4676_vm1, %v4659_v5, 0.0  ;;  %v1812_v1 = vpop.f32.mrf.mxu2  ;;  %v3687_v25 = vand.u32 4294901760, %v3686_v37  ;;  %v3502_v43 = vand.u32 4294901760, %v3501_v0  ;;  %v3513_v31 = vsub.f32 %v14917_v24, %v3512_v63  ;;  %v114_v59 = vld [vmem:[%s22879_s1 + $0x2e8] sm:$0xff]  ;;  %v113_v5 = vld [vmem:[%s22879_s1 + $0x2e0] sm:$0xff] }
 0x116   :  { %3566 = vmatpush.msrb.mxu3 %v14839_v62  ;;  %3383 = vmatpush.msra.mxu1 %v14629_v58  ;;  %v4688_v58 = vsel %vm4676_vm1, %v4658_v52, 0.0  ;;  %v1784_v46 = vadd.f32 %v1783_v56, %v1759_v35  ;;  %v3698_v34 = vsub.f32 %v14910_v8, %v3697_v30  ;;  %v90_v37 = vld [vmem:[%s22879_s1 + $0x228] sm:$0xff] }
 0x117   :  { %3466 = vmatpush.msrb.mxu0 %v14839_v62  ;;  %3538 = vmatpush.msrb.mxu2 %v14879_v60  ;;  %v1853_v26 = vpop.f32.mrf.mxu3  ;;  %v4689_v60 = vadd.f32 %v4688_v58, %v4687_v11  ;;  %v14992_v0 = vand.u32 4294901760, %v90_v37  ;;  %v4587_v11 = vld.sshfl [vmem:[#allocation1 + $0x8] sm:$0xff pattern:$0x73625140] }
 0x118   :  { %3568 = vmatpush.msrb.mxu3 %v14861_v54  ;;  %3385 = vmatpush.msra.mxu1 %v14646_v53  ;;  %v3507_v53 = vsub.f32 %v14895_v48, %v3506_v41  ;;  %v14949_v28 = vsub.f32 %v1784_v46, %v4586_v38  ;;  %v1854_v47 = vadd.f32 %v1853_v26, %v1812_v1  ;;  %v1883_v35 = vpop.f32.mrf.mxu0  ;;  %v3699_v57 = vand.u32 4294901760, %v3698_v34  ;;  %v89_v38 = vld [vmem:[%s22879_s1 + $0x220] sm:$0xff] }
 0x119   :  { %3468 = vmatpush.msrb.mxu0 %v14861_v54  ;;  %3541 = vmatpush.msrb.mxu2 %v14895_v48  ;;  %v3693_v48 = vand.u32 4294901760, %v3692_v23  ;;  %v4691_v22 = vadd.f32 %v4690_v12, %v4689_v60  ;;  %v15011_v1 = vand.u32 4294901760, %v89_v38  ;;  %v41_v60 = vld [vmem:[%s22879_s1 + $0xa0] sm:$0xff] }
 0x11a   :  { %3570 = vmatpush.msrb.mxu3 %v14881_v55  ;;  %3389 = vmatmul.f32.vlgmr.msra.gmra.mxu1 %v13443_v29  ;;  %23319 = vst [vmem:[#allocation11_spill] sm:$0xff] %v14949_v28  ;;  %v4660_v49 = vmul.f32 %v14949_v28, %v14949_v28  ;;  %v3508_v20 = vand.u32 4294901760, %v3507_v53 }
 0x11b   :  { %3574 = vmatmul.f32.vlgmr.msrb.gmra.mxu3 %v13443_v29  ;;  %3470 = vmatpush.msrb.mxu0 %v14881_v55 }
 0x11c   :  { %3682 = vmatpush.msra.mxu3 %v3681_v50  ;;  %3497 = vmatpush.msrb.mxu1 %v3496_v13  ;;  %v4692_v52 = vsel %vm4676_vm1, %v4660_v49, 0.0  ;;  %v14977_v13 = vand.u32 4294901760, %v114_v59 }
 0x11d   :  { %3544 = vmatpush.msrb.mxu2 %v14917_v24  ;;  %3476 = vmatmul.f32.vlgmr.msrb.gmra.mxu0 %v13466_v44  ;;  %v14966_v61 = vadd.f32 %v4692_v52, %v4691_v22  ;;  %v3514_v24 = vand.u32 4294901760, %v3513_v31 }
 0x11e   :  { %3547 = vmatmul.f32.vlgmr.msrb.gmra.mxu2 %v13428_v21  ;;  %3593 = vmatpush.msra.mxu0 %v3494_v33  ;;  %v1884_v33 = vadd.f32 %v1883_v35, %v1854_v47  ;;  %v15004_v23 = vsub.f32 %v114_v59, %v14977_v13 }
 0x11f   :  { %3649 = vmatpush.msra.mxu2 %v14793_v51  ;;  %3688 = vmatpush.msra.mxu3 %v3687_v25  ;;  %v1910_v50 = vpop.f32.mrf.mxu1  ;;  %v1943_v56 = vpop.f32.mrf.mxu2  ;;  %v15031_v25 = vsub.f32 %v90_v37, %v14992_v0 }
 0x120   :  { %3503 = vmatpush.msrb.mxu1 %v3502_v43  ;;  %3597 = vmatpush.msra.mxu0 %v3500_v14  ;;  %v1911_v14 = vadd.f32 %v1910_v50, %v1884_v33  ;;  %v1968_v46 = vpop.f32.mrf.mxu3  ;;  %v4049_v43 = vand.u32 4294901760, %v15004_v23 }
 0x121   :  { %3651 = vmatpush.msra.mxu2 %v14835_v3  ;;  %3694 = vmatpush.msra.mxu3 %v3693_v48  ;;  %v4055_v47 = vand.u32 4294901760, %v15031_v25 }
 0x122   :  { %3509 = vmatpush.msrb.mxu1 %v3508_v20  ;;  %3601 = vmatpush.msra.mxu0 %v3506_v41  ;;  %v14983_v41 = vand.u32 4294901760, %v113_v5  ;;  %v1944_v58 = vadd.f32 %v1943_v56, %v1911_v14  ;;  %v1997_v34 = vpop.f32.mrf.mxu0  ;;  %v4050_v52 = vsub.f32 %v15004_v23, %v4049_v43 }
 0x123   :  { %3653 = vmatpush.msra.mxu2 %v14854_v40  ;;  %3700 = vmatpush.msra.mxu3 %v3699_v57  ;;  %v4056_v33 = vsub.f32 %v15031_v25, %v4055_v47 }
 0x124   :  { %3515 = vmatpush.msrb.mxu1 %v3514_v24  ;;  %3605 = vmatpush.msra.mxu0 %v3512_v63  ;;  %v66_v63 = vld [vmem:[%s22879_s1 + $0x168] sm:$0xff]  ;;  %v1969_v53 = vadd.f32 %v1968_v46, %v1944_v58  ;;  %v15009_v12 = vsub.f32 %v113_v5, %v14983_v41  ;;  %v4051_v14 = vand.u32 4294901760, %v4050_v52  ;;  %v116_v52 = vld [vmem:[%s22879_s1 + $0x2f8] sm:$0xff] }
 0x125   :  { %3809 = vmatpush.msrb.mxu3 %v14793_v51  ;;  %3517 = vmatmul.f32.vlgmr.msrb.gmra.mxu1 %v13415_v16 }
 0x126   :  { %3624 = vmatpush.msra.mxu1 %v14798_v6  ;;  %3655 = vmatpush.msra.mxu2 %v14871_v19  ;;  %v65_v6 = vld [vmem:[%s22879_s1 + $0x160] sm:$0xff]  ;;  %v15020_v26 = vsub.f32 %v1969_v53, %v4587_v11  ;;  %v3864_v31 = vand.u32 4294901760, %v15009_v12  ;;  %v4057_v11 = vand.u32 4294901760, %v4056_v33  ;;  %v92_v33 = vld [vmem:[%s22879_s1 + $0x238] sm:$0xff] }
 0x127   :  { %3702 = vmatmul.f32.vlgmr.msra.gmra.mxu3 %v13415_v16  ;;  %3720 = vmatpush.msrb.mxu0 %v14821_v36  ;;  %v15015_v36 = vand.u32 4294901760, %v66_v63 }
 0x128   :  { %3778 = vmatpush.msrb.mxu2 %v3679_v27  ;;  %3811 = vmatpush.msrb.mxu3 %v14835_v3  ;;  %v42_v27 = vld [vmem:[%s22879_s1 + $0xa8] sm:$0xff]  ;;  %23320 = vst [vmem:[#allocation12_spill] sm:$0xff] %v15020_v26  ;;  %v2095_v59 = vpop.f32.mrf.mxu3 }
 0x129   :  { %3607 = vmatmul.f32.vlgmr.msra.gmra.mxu0 %v13415_v16  ;;  %3626 = vmatpush.msra.mxu1 %v14839_v62  ;;  %v15025_v62 = vand.u32 4294901760, %v65_v6  ;;  %v15045_v49 = vand.u32 4294901760, %v42_v27  ;;  %v15052_v48 = vsub.f32 %v66_v63, %v15015_v36  ;;  %v2068_v35 = vpop.f32.mrf.mxu2 }
 0x12a   :  { %3661 = vmatmul.f32.vlgmr.msra.gmra.mxu2 %v13466_v44  ;;  %3723 = vmatpush.msrb.mxu0 %v14869_v18  ;;  %v4661_v18 = vmul.f32 %v15020_v26, %v15020_v26 }
 0x12b   :  { %3782 = vmatpush.msrb.mxu2 %v3685_v4  ;;  %3813 = vmatpush.msrb.mxu3 %v14854_v40  ;;  %v15042_v4 = vsub.f32 %v89_v38, %v15011_v1  ;;  %v15058_v22 = vsub.f32 %v65_v6, %v15025_v62  ;;  %v4061_v24 = vand.u32 4294901760, %v15052_v48 }
 0x12c   :  { %3628 = vmatpush.msra.mxu1 %v14861_v54  ;;  %3726 = vmatpush.msrb.mxu0 %v14886_v17  ;;  %v15049_v54 = vand.u32 4294901760, %v41_v60  ;;  %v4694_v17 = vsel %vm4676_vm1, %v4661_v18, 0.0  ;;  %v2128_v38 = vpop.f32.mrf.mxu0 }
 0x12d   :  { %3786 = vmatpush.msrb.mxu2 %v3691_v7  ;;  %3815 = vmatpush.msrb.mxu3 %v14871_v19  ;;  %v2038_v7 = vpop.f32.mrf.mxu1  ;;  %v3870_v57 = vand.u32 4294901760, %v15042_v4  ;;  %v3876_v5 = vand.u32 4294901760, %v15058_v22  ;;  %v4062_v58 = vsub.f32 %v15052_v48, %v4061_v24 }
 0x12e   :  { %3630 = vmatpush.msra.mxu1 %v14881_v55  ;;  %3729 = vmatpush.msrb.mxu0 %v14910_v8  ;;  %v15062_v55 = vadd.f32 %v4694_v17, %v14966_v61  ;;  %v2039_v20 = vadd.f32 %v2038_v7, %v1997_v34  ;;  %v15075_v61 = vsub.f32 %v42_v27, %v15045_v49  ;;  %v4588_v27 = vld.sshfl [vmem:[#allocation1 + $0x10] sm:$0xff pattern:$0x73625140] }
 0x12f   :  { %3934 = vmatpush.msra.mxu3 %v14983_v41  ;;  %3790 = vmatpush.msrb.mxu2 %v3697_v30  ;;  %v15080_v30 = vsub.f32 %v41_v60, %v15049_v54  ;;  %v3877_v6 = vsub.f32 %v15058_v22, %v3876_v5  ;;  %v4063_v60 = vand.u32 4294901760, %v4062_v58 }
 0x130   :  { %3749 = vmatpush.msrb.mxu1 %v14793_v51  ;;  %3817 = vmatmul.f32.vlgmr.msrb.gmra.mxu3 %v13415_v16  ;;  %v3865_v51 = vsub.f32 %v15009_v12, %v3864_v31  ;;  %v2069_v8 = vadd.f32 %v2068_v35, %v2039_v20  ;;  %v4067_v56 = vand.u32 4294901760, %v15075_v61  ;;  %v2223_v7 = vpop.f32.mrf.mxu3 }
 0x131   :  { %3632 = vmatmul.f32.vlgmr.msra.gmra.mxu1 %v13415_v16  ;;  %3834 = vmatpush.msra.mxu0 %v14983_v41  ;;  %v3882_v63 = vand.u32 4294901760, %v15080_v30 }
 0x132   :  { %3905 = vmatpush.msra.mxu2 %v15009_v12  ;;  %3936 = vmatpush.msra.mxu3 %v15011_v1  ;;  %v2096_v50 = vadd.f32 %v2095_v59, %v2069_v8  ;;  %v3866_v37 = vand.u32 4294901760, %v3865_v51  ;;  %v4068_v53 = vsub.f32 %v15075_v61, %v4067_v56  ;;  %v115_v51 = vld [vmem:[%s22879_s1 + $0x2f0] sm:$0xff]  ;;  %v15133_v59 = vand.u32 4294901760, %v116_v52 }
 0x133   :  { %3751 = vmatpush.msrb.mxu1 %v14835_v3  ;;  %3732 = vmatmul.f32.vlgmr.msrb.gmra.mxu0 %v13428_v21  ;;  %v3871_v3 = vsub.f32 %v15042_v4, %v3870_v57  ;;  %v3883_v34 = vsub.f32 %v15080_v30, %v3882_v63  ;;  %v2182_v17 = vpop.f32.mrf.mxu2 }
 0x134   :  { %3792 = vmatmul.f32.vlgmr.msrb.gmra.mxu2 %v13415_v16  ;;  %3836 = vmatpush.msra.mxu0 %v15011_v1  ;;  %v2129_v46 = vadd.f32 %v2128_v38, %v2096_v50  ;;  %v2224_v35 = vadd.f32 %v2223_v7, %v2182_v17  ;;  %v91_v50 = vld [vmem:[%s22879_s1 + $0x230] sm:$0xff] }
 0x135   :  { %3908 = vmatpush.msra.mxu2 %v15042_v4  ;;  %3938 = vmatpush.msra.mxu3 %v15025_v62  ;;  %v2153_v12 = vpop.f32.mrf.mxu1  ;;  %v15159_v58 = vand.u32 4294901760, %v91_v50 }
 0x136   :  { %3753 = vmatpush.msrb.mxu1 %v14854_v40  ;;  %3838 = vmatpush.msra.mxu0 %v15025_v62  ;;  %v3872_v40 = vand.u32 4294901760, %v3871_v3  ;;  %v2154_v18 = vadd.f32 %v2153_v12, %v2129_v46  ;;  %v2253_v8 = vpop.f32.mrf.mxu0  ;;  %v15155_v3 = vand.u32 4294901760, %v92_v33  ;;  %v4589_v46 = vld.sshfl [vmem:[#allocation1 + $0x18] sm:$0xff pattern:$0x73625140]  ;;  %v43_v12 = vld [vmem:[%s22879_s1 + $0xb0] sm:$0xff] }
 0x137   :  { %3911 = vmatpush.msra.mxu2 %v15058_v22  ;;  %3940 = vmatpush.msra.mxu3 %v15049_v54  ;;  %v4069_v22 = vand.u32 4294901760, %v4068_v53 }
 0x138   :  { %3755 = vmatpush.msrb.mxu1 %v14871_v19  ;;  %3840 = vmatpush.msra.mxu0 %v15049_v54  ;;  %v3878_v19 = vand.u32 4294901760, %v3877_v6  ;;  %v15114_v4 = vsub.f32 %v2154_v18, %v4588_v27  ;;  %v44_v6 = vld [vmem:[%s22879_s1 + $0xb8] sm:$0xff] }
 0x139   :  { %4052 = vmatpush.msrb.mxu3 %v4051_v14  ;;  %3914 = vmatpush.msra.mxu2 %v15080_v30  ;;  %v68_v14 = vld [vmem:[%s22879_s1 + $0x178] sm:$0xff]  ;;  %v15196_v18 = vand.u32 4294901760, %v44_v6 }
 0x13a   :  { %3867 = vmatpush.msra.mxu1 %v3866_v37  ;;  %3963 = vmatpush.msrb.mxu0 %v3864_v31  ;;  %23321 = vst [vmem:[#allocation13_spill] sm:$0xff] %v15114_v4  ;;  %v3884_v31 = vand.u32 4294901760, %v3883_v34  ;;  %v4662_v20 = vmul.f32 %v15114_v4, %v15114_v4  ;;  %v2338_v27 = vpop.f32.mrf.mxu3 }
 0x13b   :  { %4019 = vmatpush.msrb.mxu2 %v14977_v13  ;;  %4058 = vmatpush.msrb.mxu3 %v4057_v11 }
 0x13c   :  { %3759 = vmatmul.f32.vlgmr.msrb.gmra.mxu1 %v13443_v29  ;;  %3944 = vmatmul.f32.vlgmr.msra.gmra.mxu3 %v13443_v29 }
 0x13d   :  { %3873 = vmatpush.msra.mxu1 %v3872_v40  ;;  %3967 = vmatpush.msrb.mxu0 %v3870_v57  ;;  %v4696_v57 = vsel %vm4676_vm1, %v4662_v20, 0.0  ;;  %v2280_v37 = vpop.f32.mrf.mxu1 }
 0x13e   :  { %4021 = vmatpush.msrb.mxu2 %v14992_v0  ;;  %4064 = vmatpush.msrb.mxu3 %v4063_v60  ;;  %v15130_v30 = vadd.f32 %v4696_v57, %v15062_v55  ;;  %v2254_v55 = vadd.f32 %v2253_v8, %v2224_v35  ;;  %v15188_v60 = vsub.f32 %v92_v33, %v15155_v3 }
 0x13f   :  { %3846 = vmatmul.f32.vlgmr.msra.gmra.mxu0 %v13466_v44  ;;  %3879 = vmatpush.msra.mxu1 %v3878_v19 }
 0x140   :  { %3917 = vmatmul.f32.vlgmr.msra.gmra.mxu2 %v13428_v21  ;;  %3971 = vmatpush.msrb.mxu0 %v3876_v5  ;;  %v15139_v5 = vand.u32 4294901760, %v115_v51  ;;  %v2281_v38 = vadd.f32 %v2280_v37, %v2254_v55  ;;  %v2367_v19 = vpop.f32.mrf.mxu0 }
 0x141   :  { %4023 = vmatpush.msrb.mxu2 %v15015_v36  ;;  %4070 = vmatpush.msrb.mxu3 %v4069_v22 }
 0x142   :  { %3885 = vmatpush.msra.mxu1 %v3884_v31  ;;  %3975 = vmatpush.msrb.mxu0 %v3882_v63  ;;  %v15162_v63 = vsub.f32 %v116_v52, %v15133_v59  ;;  %v15170_v11 = vsub.f32 %v115_v51, %v15139_v5  ;;  %v15227_v52 = vsub.f32 %v44_v6, %v15196_v18 }
 0x143   :  { %4179 = vmatpush.msra.mxu3 %v14977_v13  ;;  %4025 = vmatpush.msrb.mxu2 %v15045_v49 }
 0x144   :  { %3994 = vmatpush.msrb.mxu1 %v14983_v41  ;;  %4090 = vmatpush.msra.mxu0 %v15004_v23  ;;  %v67_v41 = vld [vmem:[%s22879_s1 + $0x170] sm:$0xff]  ;;  %v2313_v23 = vpop.f32.mrf.mxu2  ;;  %v4234_v17 = vand.u32 4294901760, %v15170_v11  ;;  %s13309_s1 = sshll.u32 %s22883_s5, 4  ;;  %s13310_s1 = int_to_ptr.hbm [resolvable:$true] %s13309_s1 }
 0x145   :  { %4148 = vmatpush.msra.mxu2 %v4049_v43  ;;  %4181 = vmatpush.msra.mxu3 %v14992_v0  ;;  %v4565_v43 = vld [vmem:[%s22881_s3 + $0x20] sm:$0xff]  ;;  %v2314_v40 = vadd.f32 %v2313_v23, %v2281_v38  ;;  %v15180_v53 = vand.u32 4294901760, %v67_v41 }
 0x146   :  { %3996 = vmatpush.msrb.mxu1 %v15011_v1  ;;  %4072 = vmatmul.f32.vlgmr.msrb.gmra.mxu3 %v13415_v16  ;;  %v15172_v1 = vand.u32 4294901760, %v68_v14  ;;  %4594 = vst [vmem:[#allocation1] ss:$4 sm:$0xff] %v4565_v43 }
 0x147   :  { %3887 = vmatmul.f32.vlgmr.msra.gmra.mxu1 %v13415_v16  ;;  %4093 = vmatpush.msra.mxu0 %v15031_v25  ;;  %v2339_v34 = vadd.f32 %v2338_v27, %v2314_v40  ;;  %v15193_v25 = vsub.f32 %v91_v50, %v15159_v58  ;;  %v15212_v31 = vsub.f32 %v67_v41, %v15180_v53  ;;  %v2408_v51 = vpop.f32.mrf.mxu1  ;;  %v2465_v41 = vpop.f32.mrf.mxu3 }
 0x148   :  { %4152 = vmatpush.msra.mxu2 %v4055_v47  ;;  %4183 = vmatpush.msra.mxu3 %v15015_v36  ;;  %v4419_v47 = vand.u32 4294901760, %v15162_v63  ;;  %v15205_v7 = vsub.f32 %v68_v14, %v15172_v1  ;;  %v2409_v33 = vadd.f32 %v2408_v51, %v2367_v19 }
 0x149   :  { %3998 = vmatpush.msrb.mxu1 %v15025_v62  ;;  %3977 = vmatmul.f32.vlgmr.msrb.gmra.mxu0 %v13415_v16  ;;  %v15201_v62 = vand.u32 4294901760, %v43_v12  ;;  %v15207_v22 = vsub.f32 %v2339_v34, %v4589_v46  ;;  %v4240_v20 = vand.u32 4294901760, %v15193_v25  ;;  %v4246_v57 = vand.u32 4294901760, %v15212_v31 }
 0x14a   :  { %4031 = vmatmul.f32.vlgmr.msrb.gmra.mxu2 %v13466_v44  ;;  %4096 = vmatpush.msra.mxu0 %v15052_v48  ;;  %v4425_v48 = vand.u32 4294901760, %v15188_v60  ;;  %v2498_v6 = vpop.f32.mrf.mxu0 }
 0x14b   :  { %4156 = vmatpush.msra.mxu2 %v4061_v24  ;;  %4185 = vmatpush.msra.mxu3 %v15045_v49  ;;  %23322 = vst [vmem:[#allocation14_spill] sm:$0xff] %v15207_v22  ;;  %v4663_v24 = vmul.f32 %v15207_v22, %v15207_v22  ;;  %v4241_v14 = vsub.f32 %v15193_v25, %v4240_v20 }
 0x14c   :  { %4000 = vmatpush.msrb.mxu1 %v15049_v54  ;;  %4099 = vmatpush.msra.mxu0 %v15075_v61  ;;  %v4420_v54 = vsub.f32 %v15162_v63, %v4419_v47  ;;  %v15233_v61 = vsub.f32 %v43_v12, %v15201_v62  ;;  %v4426_v50 = vsub.f32 %v15188_v60, %v4425_v48  ;;  %v2438_v55 = vpop.f32.mrf.mxu2 }
 0x14d   :  { %4304 = vmatpush.msrb.mxu3 %v15139_v5  ;;  %4160 = vmatpush.msra.mxu2 %v4067_v56  ;;  %v4431_v56 = vand.u32 4294901760, %v15205_v7  ;;  %v4698_v35 = vsel %vm4676_vm1, %v4663_v24, 0.0  ;;  %v2439_v37 = vadd.f32 %v2438_v55, %v2409_v33  ;;  %v4247_v46 = vsub.f32 %v15212_v31, %v4246_v57  ;;  %v4743_v55 = vld [vmem:[%s22880_s2 + $0x70] sm:$0xff] }
 0x14e   :  { %4119 = vmatpush.msra.mxu1 %v14977_v13  ;;  %4204 = vmatpush.msrb.mxu0 %v15139_v5  ;;  %v4235_v13 = vsub.f32 %v15170_v11, %v4234_v17  ;;  %v15241_v8 = vadd.f32 %v4698_v35, %v15130_v30  ;;  %v4437_v30 = vand.u32 4294901760, %v15227_v52  ;;  %v4252_v43 = vand.u32 4294901760, %v15233_v61 }
 0x14f   :  { %4275 = vmatpush.msrb.mxu2 %v15170_v11  ;;  %4306 = vmatpush.msrb.mxu3 %v15159_v58  ;;  %v4432_v23 = vsub.f32 %v15205_v7, %v4431_v56  ;;  %v2466_v11 = vadd.f32 %v2465_v41, %v2439_v37  ;;  %v4242_v40 = vand.u32 4294901760, %v4241_v14 }
 0x150   :  { %4121 = vmatpush.msra.mxu1 %v14992_v0  ;;  %4206 = vmatpush.msrb.mxu0 %v15159_v58  ;;  %v4421_v0 = vand.u32 4294901760, %v4420_v54  ;;  %v4236_v38 = vand.u32 4294901760, %v4235_v13  ;;  %v4438_v12 = vsub.f32 %v15227_v52, %v4437_v30 }
 0x151   :  { %4278 = vmatpush.msrb.mxu2 %v15193_v25  ;;  %4308 = vmatpush.msrb.mxu3 %v15180_v53  ;;  %v2499_v27 = vadd.f32 %v2498_v6, %v2466_v11  ;;  %v4433_v34 = vand.u32 4294901760, %v4432_v23  ;;  %v4253_v25 = vsub.f32 %v15233_v61, %v4252_v43  ;;  %v2523_v19 = vpop.f32.mrf.mxu1 }
 0x152   :  { %4002 = vmatmul.f32.vlgmr.msrb.gmra.mxu1 %v13415_v16  ;;  %4187 = vmatmul.f32.vlgmr.msra.gmra.mxu3 %v13415_v16  ;;  %v4439_v24 = vand.u32 4294901760, %v4438_v12 }
 0x153   :  { %4123 = vmatpush.msra.mxu1 %v15015_v36  ;;  %4208 = vmatpush.msrb.mxu0 %v15180_v53  ;;  %v4427_v36 = vand.u32 4294901760, %v4426_v50  ;;  %v2524_v54 = vadd.f32 %v2523_v19, %v2499_v27  ;;  %v4254_v13 = vand.u32 4294901760, %v4253_v25  ;;  %v4737_v19 = vld [vmem:[%s22880_s2 + $0x40] sm:$0xff] }
 0x154   :  { %4281 = vmatpush.msrb.mxu2 %v15212_v31  ;;  %4310 = vmatpush.msrb.mxu3 %v15201_v62  ;;  %v4590_v31 = vld.sshfl [vmem:[#allocation1 + $0x20] sm:$0xff pattern:$0x73625140]  ;;  %v2623_v50 = vpop.f32.mrf.mxu0 }
 0x155   :  { %4102 = vmatmul.f32.vlgmr.msra.gmra.mxu0 %v13428_v21  ;;  %4125 = vmatpush.msra.mxu1 %v15045_v49  ;;  %v4248_v49 = vand.u32 4294901760, %v4247_v46  ;;  %v15273_v35 = vsub.f32 %v2524_v54, %v4590_v31 }
 0x156   :  { %4162 = vmatmul.f32.vlgmr.msra.gmra.mxu2 %v13415_v16  ;;  %4422 = vmatpush.msra.mxu3 %v4421_v0  ;;  %v4742_v0 = vld [vmem:[%s22880_s2 + $0x68] sm:$0xff] }
 0x157   :  { %4210 = vmatpush.msrb.mxu0 %v15201_v62  ;;  %4237 = vmatpush.msrb.mxu1 %v4236_v38  ;;  %23323 = vst [vmem:[#allocation15_spill] sm:$0xff] %v15273_v35  ;;  %v4664_v33 = vmul.f32 %v15273_v35, %v15273_v35  ;;  %v15300_v38 = vand.u32 4294901760, %v4743_v55  ;;  %v15305_v46 = vand.u32 4294901760, %v4742_v0 }
 0x158   :  { %4284 = vmatpush.msrb.mxu2 %v15233_v61  ;;  %4428 = vmatpush.msra.mxu3 %v4427_v36  ;;  %v2593_v61 = vpop.f32.mrf.mxu3  ;;  %v4740_v36 = vld [vmem:[%s22880_s2 + $0x58] sm:$0xff] }
 0x159   :  { %4333 = vmatpush.msra.mxu0 %v4234_v17  ;;  %4243 = vmatpush.msrb.mxu1 %v4242_v40  ;;  %v2552_v17 = vpop.f32.mrf.mxu2  ;;  %v4700_v14 = vsel %vm4676_vm1, %v4664_v33, 0.0  ;;  %v4591_v40 = vld.sshfl [vmem:[#allocation1 + $0x28] sm:$0xff pattern:$0x73625140] }
 0x15a   :  { %4389 = vmatpush.msra.mxu2 %v15133_v59  ;;  %4434 = vmatpush.msra.mxu3 %v4433_v34  ;;  %v2594_v51 = vadd.f32 %v2593_v61, %v2552_v17  ;;  %v15296_v37 = vadd.f32 %v4700_v14, %v15241_v8 }
 0x15b   :  { %4337 = vmatpush.msra.mxu0 %v4240_v20  ;;  %4249 = vmatpush.msrb.mxu1 %v4248_v49  ;;  %v4744_v20 = vld [vmem:[%s22880_s2 + $0x78] sm:$0xff]  ;;  %v2650_v23 = vpop.f32.mrf.mxu1 }
 0x15c   :  { %4391 = vmatpush.msra.mxu2 %v15155_v3  ;;  %4314 = vmatmul.f32.vlgmr.msrb.gmra.mxu3 %v13443_v29  ;;  %v2624_v41 = vadd.f32 %v2623_v50, %v2594_v51 }
 0x15d   :  { %4129 = vmatmul.f32.vlgmr.msra.gmra.mxu1 %v13443_v29  ;;  %4341 = vmatpush.msra.mxu0 %v4246_v57  ;;  %v15288_v57 = vand.u32 4294901760, %v4744_v20 }
 0x15e   :  { %4393 = vmatpush.msra.mxu2 %v15172_v1  ;;  %4440 = vmatpush.msra.mxu3 %v4439_v24  ;;  %v2651_v8 = vadd.f32 %v2650_v23, %v2624_v41  ;;  %v2737_v12 = vpop.f32.mrf.mxu0 }
 0x15f   :  { %4255 = vmatpush.msrb.mxu1 %v4254_v13  ;;  %4216 = vmatmul.f32.vlgmr.msrb.gmra.mxu0 %v13466_v44 }
 0x160   :  { %4549 = vmatpush.msrb.mxu3 %v15133_v59  ;;  %4287 = vmatmul.f32.vlgmr.msrb.gmra.mxu2 %v13428_v21  ;;  %v2708_v6 = vpop.f32.mrf.mxu3 }
 0x161   :  { %4345 = vmatpush.msra.mxu0 %v4252_v43  ;;  %4364 = vmatpush.msra.mxu1 %v15139_v5  ;;  %v4741_v5 = vld [vmem:[%s22880_s2 + $0x60] sm:$0xff]  ;;  %v15313_v43 = vsub.f32 %v4744_v20, %v15288_v57  ;;  %v2683_v11 = vpop.f32.mrf.mxu2  ;;  %v15378_v20 = vand.u32 4294901760, %v4737_v19 }
 0x162   :  { %4395 = vmatpush.msra.mxu2 %v15196_v18  ;;  %4551 = vmatpush.msrb.mxu3 %v15155_v3 }
 0x163   :  { %4460 = vmatpush.msrb.mxu0 %v15162_v63  ;;  %4366 = vmatpush.msra.mxu1 %v15159_v58  ;;  %v2684_v63 = vadd.f32 %v2683_v11, %v2651_v8  ;;  %v15323_v58 = vand.u32 4294901760, %v4741_v5  ;;  %v22892_v27 = vand.u32 4294901760, %v15313_v43  ;;  %v4735_v11 = vld [vmem:[%s22880_s2 + $0x30] sm:$0xff] }
 0x164   :  { %4518 = vmatpush.msrb.mxu2 %v4419_v47  ;;  %4553 = vmatpush.msrb.mxu3 %v15172_v1  ;;  %v15321_v47 = vsub.f32 %v4743_v55, %v15300_v38 }
 0x165   :  { %4463 = vmatpush.msrb.mxu0 %v15188_v60  ;;  %4368 = vmatpush.msra.mxu1 %v15180_v53  ;;  %v15332_v53 = vsub.f32 %v4742_v0, %v15305_v46  ;;  %v4739_v60 = vld [vmem:[%s22880_s2 + $0x50] sm:$0xff]  ;;  %v15352_v25 = vsub.f32 %v4741_v5, %v15323_v58  ;;  %v2778_v31 = vpop.f32.mrf.mxu1  ;;  %v5157_v13 = vsub.f32 %v15313_v43, %v22892_v27 }
 0x166   :  { %4522 = vmatpush.msrb.mxu2 %v4425_v48  ;;  %4555 = vmatpush.msrb.mxu3 %v15196_v18  ;;  %v2709_v48 = vadd.f32 %v2708_v6, %v2684_v63  ;;  %v22891_v49 = vand.u32 4294901760, %v15321_v47  ;;  %v2779_v54 = vadd.f32 %v2778_v31, %v2737_v12  ;;  %v4734_v63 = vld [vmem:[%s22880_s2 + $0x28] sm:$0xff] }
 0x167   :  { %4466 = vmatpush.msrb.mxu0 %v15205_v7  ;;  %4257 = vmatmul.f32.vlgmr.msrb.gmra.mxu1 %v13415_v16  ;;  %v15342_v7 = vand.u32 4294901760, %v4740_v36  ;;  %v22890_v24 = vand.u32 4294901760, %v15332_v53  ;;  %v22889_v0 = vand.u32 4294901760, %v15352_v25  ;;  %v5158_v5 = vand.u32 4294901760, %v5157_v13 }
 0x168   :  { %4526 = vmatpush.msrb.mxu2 %v4431_v56  ;;  %4442 = vmatmul.f32.vlgmr.msra.gmra.mxu3 %v13415_v16  ;;  %v4738_v56 = vld [vmem:[%s22880_s2 + $0x48] sm:$0xff]  ;;  %v15347_v34 = vsub.f32 %v2709_v48, %v4591_v40  ;;  %v5163_v50 = vsub.f32 %v15321_v47, %v22891_v49  ;;  %v2868_v23 = vpop.f32.mrf.mxu0  ;;  %v15435_v31 = vand.u32 4294901760, %v4734_v63  ;;  %v4592_v13 = vld.sshfl [vmem:[#allocation1 + $0x30] sm:$0xff pattern:$0x73625140] }
 0x169   :  { %4370 = vmatpush.msra.mxu1 %v15201_v62  ;;  %5310 = vmatpush.msra.mxu3 %v15288_v57  ;;  %v15355_v62 = vand.u32 4294901760, %v4739_v60  ;;  %v15371_v17 = vand.u32 4294901760, %v4738_v56  ;;  %v15376_v61 = vsub.f32 %v4740_v36, %v15342_v7  ;;  %v5175_v12 = vsub.f32 %v15352_v25, %v22889_v0  ;;  %v4758_v49 = vld [vmem:[%s22880_s2 + $0xe8] sm:$0xff] }
 0x16a   :  { %23324 = vst [vmem:[#allocation16_spill] sm:$0xff] %v15347_v34  ;;  %4469 = vmatpush.msrb.mxu0 %v15227_v52  ;;  %4530 = vmatpush.msrb.mxu2 %v4437_v30  ;;  %v2808_v52 = vpop.f32.mrf.mxu2  ;;  %v2835_v30 = vpop.f32.mrf.mxu3  ;;  %v5164_v40 = vand.u32 4294901760, %v5163_v50  ;;  %v4760_v50 = vld [vmem:[%s22880_s2 + $0xf8] sm:$0xff] }
 0x16b   :  { %4489 = vmatpush.msrb.mxu1 %v15133_v59  ;;  %4347 = vmatmul.f32.vlgmr.msra.gmra.mxu0 %v13415_v16  ;;  %v4665_v59 = vmul.f32 %v15347_v34, %v15347_v34  ;;  %v2809_v33 = vadd.f32 %v2808_v52, %v2779_v54  ;;  %v15390_v55 = vsub.f32 %v4739_v60, %v15355_v62  ;;  %v22888_v6 = vand.u32 4294901760, %v15376_v61 }
 0x16c   :  { %4401 = vmatmul.f32.vlgmr.msra.gmra.mxu2 %v13466_v44  ;;  %5114 = vmatpush.msra.mxu0 %v15288_v57  ;;  %v4736_v44 = vld [vmem:[%s22880_s2 + $0x38] sm:$0xff]  ;;  %v15404_v8 = vsub.f32 %v4738_v56, %v15371_v17  ;;  %v15428_v56 = vand.u32 4294901760, %v4735_v11 }
 0x16d   :  { %5257 = vmatpush.msra.mxu2 %v15313_v43  ;;  %5312 = vmatpush.msra.mxu3 %v15300_v38  ;;  %v4702_v51 = vsel %vm4676_vm1, %v4665_v59, 0.0  ;;  %v2836_v41 = vadd.f32 %v2835_v30, %v2809_v33  ;;  %v22885_v60 = vand.u32 4294901760, %v15390_v55  ;;  %v4733_v59 = vld [vmem:[%s22880_s2 + $0x20] sm:$0xff]  ;;  %v5181_v52 = vsub.f32 %v15376_v61, %v22888_v6 }
 0x16e   :  { %4491 = vmatpush.msrb.mxu1 %v15155_v3  ;;  %5116 = vmatpush.msra.mxu0 %v15300_v38  ;;  %v15394_v14 = vadd.f32 %v4702_v51, %v15296_v37  ;;  %v5169_v3 = vsub.f32 %v15332_v53, %v22890_v24  ;;  %v15406_v37 = vand.u32 4294901760, %v4736_v44  ;;  %v5176_v51 = vand.u32 4294901760, %v5175_v12 }
 0x16f   :  { %5260 = vmatpush.msra.mxu2 %v15321_v47  ;;  %5314 = vmatpush.msra.mxu3 %v15305_v46  ;;  %v2869_v36 = vadd.f32 %v2868_v23, %v2836_v41  ;;  %v2893_v54 = vpop.f32.mrf.mxu1  ;;  %v5187_v33 = vsub.f32 %v15390_v55, %v22885_v60  ;;  %v15456_v23 = vsub.f32 %v4735_v11, %v15428_v56 }
 0x170   :  { %4493 = vmatpush.msrb.mxu1 %v15172_v1  ;;  %5118 = vmatpush.msra.mxu0 %v15305_v46  ;;  %v15415_v1 = vsub.f32 %v4737_v19, %v15378_v20  ;;  %v5170_v48 = vand.u32 4294901760, %v5169_v3  ;;  %v22886_v19 = vand.u32 4294901760, %v15404_v8 }
 0x171   :  { %5263 = vmatpush.msra.mxu2 %v15332_v53  ;;  %5316 = vmatpush.msra.mxu3 %v15323_v58  ;;  %v22900_v6 = vand.u32 4294901760, %v15456_v23 }
 0x172   :  { %4495 = vmatpush.msrb.mxu1 %v15196_v18  ;;  %5120 = vmatpush.msra.mxu0 %v15323_v58  ;;  %v15432_v18 = vsub.f32 %v4736_v44, %v15406_v37  ;;  %v22887_v30 = vand.u32 4294901760, %v15415_v1  ;;  %v2894_v44 = vadd.f32 %v2893_v54, %v2869_v36  ;;  %v2922_v3 = vpop.f32.mrf.mxu2  ;;  %v2963_v41 = vpop.f32.mrf.mxu3  ;;  %v4732_v36 = vld [vmem:[%s22880_s2 + $0x18] sm:$0xff]  ;;  %v15470_v54 = vsub.f32 %v4734_v63, %v15435_v31 }
 0x173   :  { %4372 = vmatmul.f32.vlgmr.msra.gmra.mxu1 %v13415_v16  ;;  %5266 = vmatpush.msra.mxu2 %v15352_v25  ;;  %v2964_v12 = vadd.f32 %v2963_v41, %v2922_v3  ;;  %v2993_v60 = vpop.f32.mrf.mxu0  ;;  %v15485_v63 = vand.u32 4294901760, %v14743_v45  ;;  %v5188_v41 = vand.u32 4294901760, %v5187_v33 }
 0x174   :  { %5159 = vmatpush.msra.mxu1 %v5158_v5  ;;  %5318 = vmatpush.msra.mxu3 %v15342_v7  ;;  %v15458_v5 = vand.u32 4294901760, %v4733_v59  ;;  %v22893_v11 = vand.u32 4294901760, %v15432_v18 }
 0x175   :  { %5122 = vmatpush.msra.mxu0 %v15342_v7  ;;  %5269 = vmatpush.msra.mxu2 %v15376_v61  ;;  %v2994_v0 = vadd.f32 %v2993_v60, %v2964_v12  ;;  %v4730_v60 = vld [vmem:[%s22880_s2 + $0x8] sm:$0xff]  ;;  %v15550_v35 = vsub.f32 %v14743_v45, %v15485_v63 }
 0x176   :  { %5165 = vmatpush.msra.mxu1 %v5164_v40  ;;  %5320 = vmatpush.msra.mxu3 %v15355_v62  ;;  %23325 = vst [vmem:[#allocation17_spill] sm:$0xff] %v15458_v5  ;;  %v15463_v40 = vsub.f32 %v2894_v44, %v4592_v13  ;;  %v5182_v13 = vand.u32 4294901760, %v5181_v52  ;;  %v15478_v44 = vsub.f32 %v15415_v1, %v22887_v30  ;;  %v4759_v52 = vld [vmem:[%s22880_s2 + $0xf0] sm:$0xff]  ;;  %v15557_v22 = vand.u32 4294901760, %v4730_v60 }
 0x177   :  { %4472 = vmatmul.f32.vlgmr.msrb.gmra.mxu0 %v13428_v21  ;;  %4532 = vmatmul.f32.vlgmr.msrb.gmra.mxu2 %v13415_v16  ;;  %v5193_v21 = vsub.f32 %v15404_v8, %v22886_v19  ;;  %v15489_v19 = vand.u32 4294901760, %v4732_v36  ;;  %v15496_v30 = vsub.f32 %v4733_v59, %v15458_v5  ;;  %v4593_v59 = vld.sshfl [vmem:[#allocation1 + $0x38] sm:$0xff pattern:$0x73625140] }
 0x178   :  { %23326 = vst [vmem:[#allocation18_spill] sm:$0xff] %v15463_v40  ;;  %5124 = vmatpush.msra.mxu0 %v15355_v62  ;;  %5171 = vmatpush.msra.mxu1 %v5170_v48  ;;  %v15480_v48 = vand.u32 4294901760, %v4760_v50  ;;  %v4666_v3 = vmul.f32 %v15463_v40, %v15463_v40  ;;  %v15546_v40 = vand.u32 4294901760, %v4758_v49 }
 0x179   :  { %5272 = vmatpush.msra.mxu2 %v15390_v55  ;;  %5322 = vmatpush.msra.mxu3 %v15371_v17  ;;  %23327 = vst [vmem:[#allocation19_spill] sm:$0xff] %v15489_v19  ;;  %v5194_v24 = vand.u32 4294901760, %v5193_v21  ;;  %v15523_v21 = vand.u32 4294901760, %v4759_v52  ;;  %v23333_v26 = vand.u32 4294901760, %v15496_v30 }
 0x17a   :  { %4557 = vmatmul.f32.vlgmr.msrb.gmra.mxu3 %v13415_v16  ;;  %5126 = vmatpush.msra.mxu0 %v15371_v17  ;;  %v4731_v16 = vld [vmem:[%s22880_s2 + $0x10] sm:$0xff]  ;;  %v4704_v33 = vsel %vm4676_vm1, %v4666_v3, 0.0  ;;  %v3020_v3 = vpop.f32.mrf.mxu1  ;;  %v15521_v12 = vsub.f32 %v4760_v50, %v15480_v48  ;;  %v4566_v50 = vld [vmem:[%s22881_s3 + $0x28] sm:$0xff]  ;;  %23331 = vst [vmem:[#allocation22_spill] sm:$0xff] %v15557_v22  ;;  %v3078_v4 = vpop.f32.mrf.mxu3 }
 0x17b   :  { %5177 = vmatpush.msra.mxu1 %v5176_v51  ;;  %5275 = vmatpush.msra.mxu2 %v15404_v8  ;;  %v5205_v51 = vsub.f32 %v15432_v18, %v22893_v11  ;;  %v15513_v27 = vadd.f32 %v4704_v33, %v15394_v14  ;;  %v3021_v11 = vadd.f32 %v3020_v3, %v2994_v0  ;;  %v3053_v33 = vpop.f32.mrf.mxu2  ;;  %v4729_v3 = vld [vmem:[%s22880_s2] sm:$0xff] }
 0x17c   :  { %5324 = vmatpush.msra.mxu3 %v15378_v20  ;;  %4499 = vmatmul.f32.vlgmr.msrb.gmra.mxu1 %v13443_v29  ;;  %v5200_v29 = vand.u32 4294901760, %v15478_v44  ;;  %23328 = vst [vmem:[#allocation20_spill] sm:$0xff] %v15521_v12  ;;  %v15528_v14 = vsub.f32 %v4732_v36, %v15489_v19  ;;  %v4757_v44 = vld [vmem:[%s22880_s2 + $0xe0] sm:$0xff]  ;;  %v5211_v0 = vsub.f32 %v15456_v23, %v22900_v6  ;;  %v23330_v6 = vand.u32 4294901760, %v15470_v54 }
 0x17d   :  { %5128 = vmatpush.msra.mxu0 %v15378_v20  ;;  %5183 = vmatpush.msra.mxu1 %v5182_v13  ;;  %v15530_v13 = vand.u32 4294901760, %v4731_v16  ;;  %v3054_v34 = vadd.f32 %v3053_v33, %v3021_v11  ;;  %4595 = vst [vmem:[#allocation1 + $0x20] ss:$4 sm:$0xff] %v4566_v50  ;;  %v15562_v45 = vsub.f32 %v4759_v52, %v15523_v21  ;;  %v15564_v33 = vand.u32 4294901760, %v4757_v44 }
 0x17e   :  { %5278 = vmatpush.msra.mxu2 %v15415_v1  ;;  %5326 = vmatpush.msra.mxu3 %v15406_v37  ;;  %v5217_v36 = vsub.f32 %v15470_v54, %v23330_v6  ;;  %v5212_v52 = vand.u32 4294901760, %v5211_v0  ;;  %v5223_v28 = vsub.f32 %v15496_v30, %v23333_v26  ;;  %v5147_v0 = vand.u32 4294901760, %v15550_v35 }
 0x17f   :  { %23329 = vst [vmem:[#allocation21_spill] sm:$0xff] %v15530_v13  ;;  %5130 = vmatpush.msra.mxu0 %v15406_v37  ;;  %5189 = vmatpush.msra.mxu1 %v5188_v41  ;;  %v5206_v41 = vand.u32 4294901760, %v5205_v51  ;;  %v4756_v51 = vld [vmem:[%s22880_s2 + $0xd8] sm:$0xff]  ;;  %v3079_v50 = vadd.f32 %v3078_v4, %v3054_v34  ;;  %v15572_v6 = vsub.f32 %v4731_v16, %v15530_v13  ;;  %v4755_v34 = vld [vmem:[%s22880_s2 + $0xd0] sm:$0xff]  ;;  %v23338_v10 = vand.u32 4294901760, %v15528_v14 }
 0x180   :  { %5281 = vmatpush.msra.mxu2 %v15432_v18  ;;  %5328 = vmatpush.msra.mxu3 %v15428_v56  ;;  %23332 = vst [vmem:[#allocation23_spill] sm:$0xff] %v15562_v45  ;;  %v15582_v4 = vsub.f32 %v4758_v49, %v15546_v40  ;;  %v5218_v11 = vand.u32 4294901760, %v5217_v36  ;;  %v15595_v26 = vand.u32 4294901760, %v4756_v51  ;;  %v4754_v49 = vld [vmem:[%s22880_s2 + $0xc8] sm:$0xff]  ;;  %v15619_v36 = vand.u32 4294901760, %v4755_v34 }
 0x181   :  { %5132 = vmatpush.msra.mxu0 %v15428_v56  ;;  %5195 = vmatpush.msra.mxu1 %v5194_v24  ;;  %v15574_v24 = vand.u32 4294901760, %v4729_v3  ;;  %v15587_v16 = vsub.f32 %v3079_v50, %v4593_v59  ;;  %v23336_v59 = vand.u32 4294901760, %v15521_v12  ;;  %v15626_v32 = vand.u32 4294901760, %v4754_v49 }
 0x182   :  { %5284 = vmatpush.msra.mxu2 %v15456_v23  ;;  %5330 = vmatpush.msra.mxu3 %v15435_v31  ;;  %23334 = vst [vmem:[#allocation24_spill] sm:$0xff] %v15582_v4 }
 0x183   :  { %5134 = vmatpush.msra.mxu0 %v15435_v31  ;;  %5201 = vmatpush.msra.mxu1 %v5200_v29  ;;  %23335 = vst [vmem:[#allocation25_spill] sm:$0xff] %v15587_v16  ;;  %v15592_v29 = vsub.f32 %v4730_v60, %v15557_v22  ;;  %v5498_v50 = vsub.f32 %v15521_v12, %v23336_v59 }
 0x184   :  { %5287 = vmatpush.msra.mxu2 %v15470_v54  ;;  %5332 = vmatpush.msra.mxu3 %v15458_v5  ;;  %v15606_v60 = vsub.f32 %v4757_v44, %v15564_v33  ;;  %v4667_v42 = vmul.f32 %v15587_v16, %v15587_v16  ;;  %v15616_v9 = vsub.f32 %v4729_v3, %v15574_v24  ;;  %v4753_v44 = vld [vmem:[%s22880_s2 + $0xc0] sm:$0xff]  ;;  %v5224_v16 = vand.u32 4294901760, %v5223_v28  ;;  %v15629_v3 = vpop.f32.mrf.mxu0 }
 0x185   :  { %5136 = vmatpush.msra.mxu0 %v15458_v5  ;;  %5207 = vmatpush.msra.mxu1 %v5206_v41  ;;  %v5229_v41 = vsub.f32 %v15528_v14, %v23338_v10  ;;  %23339 = vst [vmem:[#allocation27_spill] sm:$0xff] %v15629_v3  ;;  %v5148_v59 = vsub.f32 %v15550_v35, %v5147_v0  ;;  %v23343_v3 = vand.u32 4294901760, %v15582_v4  ;;  %v15692_v5 = vpop.f32.mrf.mxu3 }
 0x186   :  { %23337 = vst [vmem:[#allocation26_spill] sm:$0xff] %v15606_v60  ;;  %5290 = vmatpush.msra.mxu2 %v15496_v30  ;;  %5334 = vmatpush.msra.mxu3 %v15489_v19  ;;  %v4706_v10 = vsel %vm4676_vm1, %v4667_v42, 0.0  ;;  %v15636_v12 = vsub.f32 %v4756_v51, %v15595_v26  ;;  %v5499_v42 = vand.u32 4294901760, %v5498_v50  ;;  %v4752_v51 = vld [vmem:[%s22880_s2 + $0xb8] sm:$0xff] }
 0x187   :  { %5138 = vmatpush.msra.mxu0 %v15489_v19  ;;  %5213 = vmatpush.msra.mxu1 %v5212_v52  ;;  %v15639_v28 = vadd.f32 %v4706_v10, %v15513_v27  ;;  %v23341_v52 = vand.u32 4294901760, %v15562_v45  ;;  %v15646_v19 = vand.u32 4294901760, %v4753_v44  ;;  %v5230_v27 = vand.u32 4294901760, %v5229_v41  ;;  %v4751_v41 = vld [vmem:[%s22880_s2 + $0xb0] sm:$0xff]  ;;  %23348 = vst [vmem:[#allocation31_spill] sm:$0xff] %v15692_v5 }
 0x188   :  { %5293 = vmatpush.msra.mxu2 %v15528_v14  ;;  %5336 = vmatpush.msra.mxu3 %v15530_v13  ;;  %v5510_v2 = vsub.f32 %v15582_v4, %v23343_v3  ;;  %v15676_v10 = vand.u32 4294901760, %v4752_v51  ;;  %v15678_v3 = vpop.f32.mrf.mxu1 }
 0x189   :  { %23340 = vst [vmem:[#allocation28_spill] sm:$0xff] %v15639_v28  ;;  %5140 = vmatpush.msra.mxu0 %v15530_v13  ;;  %5219 = vmatpush.msra.mxu1 %v5218_v11  ;;  %v5504_v39 = vsub.f32 %v15562_v45, %v23341_v52  ;;  %v23342_v11 = vand.u32 4294901760, %v15572_v6  ;;  %v15658_v52 = vsub.f32 %v4755_v34, %v15619_v36  ;;  %v23344_v34 = vand.u32 4294901760, %v15592_v29 }
 0x18a   :  { %5296 = vmatpush.msra.mxu2 %v15572_v6  ;;  %5338 = vmatpush.msra.mxu3 %v15557_v22  ;;  %v15665_v28 = vsub.f32 %v4754_v49, %v15626_v32  ;;  %23345 = vst [vmem:[#allocation29_spill] sm:$0xff] %v15678_v3  ;;  %v5149_v49 = vand.u32 4294901760, %v5148_v59  ;;  %v15685_v13 = vsub.f32 %v4753_v44, %v15646_v19  ;;  %v15698_v3 = vand.u32 4294901760, %v4751_v41 }
 0x18b   :  { %v5235_v50 = vsub.f32 %v15572_v6, %v23342_v11  ;;  %5142 = vmatpush.msra.mxu0 %v15557_v22  ;;  %5225 = vmatpush.msra.mxu1 %v5224_v16  ;;  %v5241_v11 = vsub.f32 %v15592_v29, %v23344_v34  ;;  %v5505_v4 = vand.u32 4294901760, %v5504_v39  ;;  %v23346_v22 = vand.u32 4294901760, %v15606_v60  ;;  %v4750_v34 = vld [vmem:[%s22880_s2 + $0xa8] sm:$0xff]  ;;  %v15690_v16 = vpop.f32.mrf.mxu2 }
 0x18c   :  { %5299 = vmatpush.msra.mxu2 %v15592_v29  ;;  %5340 = vmatpush.msra.mxu3 %v15574_v24  ;;  %23347 = vst [vmem:[#allocation30_spill] sm:$0xff] %v15690_v16  ;;  %v23349_v39 = vand.u32 4294901760, %v15616_v9  ;;  %v5511_v44 = vand.u32 4294901760, %v5510_v2  ;;  %v15712_v5 = vsub.f32 %v4752_v51, %v15676_v10  ;;  %v15714_v2 = vand.u32 4294901760, %v4750_v34 }
 0x18d   :  { %5344 = vmatmul.f32.vlgmr.msra.gmra.mxu3 %v5147_v0  ;;  %5144 = vmatpush.msra.mxu0 %v15574_v24  ;;  %v5516_v45 = vsub.f32 %v15606_v60, %v23346_v22  ;;  %v5236_v0 = vand.u32 4294901760, %v5235_v50  ;;  %v5242_v50 = vand.u32 4294901760, %v5241_v11  ;;  %v23353_v11 = vand.u32 4294901760, %v15321_v47  ;;  %v4747_v47 = vld [vmem:[%s22880_s2 + $0x90] sm:$0xff] }
 0x18e   :  { %5500 = vmatpush.msrb.mxu3 %v5499_v42  ;;  %5231 = vmatpush.msra.mxu1 %v5230_v27  ;;  %v5247_v59 = vsub.f32 %v15616_v9, %v23349_v39  ;;  %v4749_v42 = vld [vmem:[%s22880_s2 + $0xa0] sm:$0xff]  ;;  %v23350_v27 = vand.u32 4294901760, %v15313_v43  ;;  %v23351_v39 = vand.u32 4294901760, %v15636_v12  ;;  %v15721_v43 = vpop.f32.mrf.mxu0  ;;  %v23355_v60 = vand.u32 4294901760, %v15665_v28 }
 0x18f   :  { %5302 = vmatpush.msra.mxu2 %v15616_v9  ;;  %5150 = vmatmul.f32.vlgmr.msra.gmra.mxu0 %v5149_v49  ;;  %v5517_v49 = vand.u32 4294901760, %v5516_v45  ;;  %23352 = vst [vmem:[#allocation32_spill] sm:$0xff] %v15721_v43  ;;  %v15731_v45 = vand.u32 4294901760, %v4749_v42  ;;  %v23362_v16 = vand.u32 4294901760, %v15376_v61  ;;  %v23364_v61 = vand.u32 4294901760, %v15390_v55 }
 0x190   :  { %5305 = vmatmul.f32.vlgmr.msra.gmra.mxu2 %v15550_v35  ;;  %5351 = vmatpush.msrb.mxu0 %v23350_v27  ;;  %v5522_v22 = vsub.f32 %v15636_v12, %v23351_v39  ;;  %v4748_v35 = vld [vmem:[%s22880_s2 + $0x98] sm:$0xff]  ;;  %v5248_v51 = vand.u32 4294901760, %v5247_v59  ;;  %v23354_v27 = vand.u32 4294901760, %v15658_v52  ;;  %v23356_v59 = vand.u32 4294901760, %v15332_v53  ;;  %v4746_v53 = vld [vmem:[%s22880_s2 + $0x88] sm:$0xff] }
 0x191   :  { %5455 = vmatpush.msrb.mxu2 %v15480_v48  ;;  %5506 = vmatpush.msrb.mxu3 %v5505_v4  ;;  %v15729_v4 = vsub.f32 %v4751_v41, %v15698_v3  ;;  %v15746_v43 = vand.u32 4294901760, %v4748_v35  ;;  %v15761_v41 = vand.u32 4294901760, %v4747_v47  ;;  %v23366_v55 = vand.u32 4294901760, %v15404_v8 }
 0x192   :  { %5237 = vmatpush.msra.mxu1 %v5236_v0  ;;  %5355 = vmatpush.msrb.mxu0 %v23353_v11  ;;  %v5528_v39 = vsub.f32 %v15658_v52, %v23354_v27  ;;  %v5534_v0 = vsub.f32 %v15665_v28, %v23355_v60  ;;  %v5523_v11 = vand.u32 4294901760, %v5522_v22  ;;  %v15744_v27 = vsub.f32 %v4750_v34, %v15714_v2 }
 0x193   :  { %5457 = vmatpush.msrb.mxu2 %v15523_v21  ;;  %5512 = vmatpush.msrb.mxu3 %v5511_v44  ;;  %v23357_v60 = vand.u32 4294901760, %v15685_v13  ;;  %v23358_v22 = vand.u32 4294901760, %v15352_v25  ;;  %v4745_v25 = vld [vmem:[%s22880_s2 + $0x80] sm:$0xff]  ;;  %v15825_v8 = vand.u32 4294901760, %v14736_v15 }
 0x194   :  { %5243 = vmatpush.msra.mxu1 %v5242_v50  ;;  %5359 = vmatpush.msrb.mxu0 %v23356_v59  ;;  %v5529_v50 = vand.u32 4294901760, %v5528_v39  ;;  %v15759_v59 = vsub.f32 %v4749_v42, %v15731_v45  ;;  %v15772_v39 = vpop.f32.mrf.mxu3  ;;  %v23361_v42 = vand.u32 4294901760, %v15712_v5  ;;  %v15795_v34 = vand.u32 4294901760, %v4745_v25 }
 0x195   :  { %5459 = vmatpush.msrb.mxu2 %v15546_v40  ;;  %5518 = vmatpush.msrb.mxu3 %v5517_v49  ;;  %v5540_v44 = vsub.f32 %v15685_v13, %v23357_v60  ;;  %v15763_v49 = vpop.f32.mrf.mxu1  ;;  %v5535_v60 = vand.u32 4294901760, %v5534_v0  ;;  %23360 = vst [vmem:[#allocation34_spill] sm:$0xff] %v15772_v39  ;;  %v15782_v0 = vand.u32 4294901760, %v4746_v53 }
 0x196   :  { %5249 = vmatpush.msra.mxu1 %v5248_v51  ;;  %5363 = vmatpush.msrb.mxu0 %v23358_v22  ;;  %23359 = vst [vmem:[#allocation33_spill] sm:$0xff] %v15763_v49  ;;  %v15770_v51 = vpop.f32.mrf.mxu2  ;;  %v5546_v22 = vsub.f32 %v15712_v5, %v23361_v42  ;;  %v15780_v49 = vsub.f32 %v4748_v35, %v15746_v43  ;;  %v5563_v42 = vand.u32 4294901760, %v15759_v59 }
 0x197   :  { %5251 = vmatmul.f32.vlgmr.msra.gmra.mxu1 %v15485_v63  ;;  %5461 = vmatpush.msrb.mxu2 %v15564_v33  ;;  %v5541_v39 = vand.u32 4294901760, %v5540_v44  ;;  %v15793_v35 = vsub.f32 %v4747_v47, %v15761_v41  ;;  %v23365_v44 = vand.u32 4294901760, %v15744_v27 }
 0x198   :  { %5418 = vmatpush.msrb.mxu1 %v15288_v57  ;;  %5524 = vmatpush.msrb.mxu3 %v5523_v11  ;;  %v23363_v57 = vand.u32 4294901760, %v15729_v4  ;;  %v5569_v47 = vand.u32 4294901760, %v15780_v49 }
 0x199   :  { %5367 = vmatpush.msrb.mxu0 %v23362_v16  ;;  %5463 = vmatpush.msrb.mxu2 %v15595_v26  ;;  %v15800_v16 = vpop.f32.mrf.mxu0 }
 0x19a   :  { %5420 = vmatpush.msrb.mxu1 %v15300_v38  ;;  %5530 = vmatpush.msrb.mxu3 %v5529_v50  ;;  %v5552_v11 = vsub.f32 %v15729_v4, %v23363_v57  ;;  %v5547_v38 = vand.u32 4294901760, %v5546_v22  ;;  %v5558_v50 = vsub.f32 %v15744_v27, %v23365_v44  ;;  %v15808_v57 = vsub.f32 %v4746_v53, %v15782_v0 }
 0x19b   :  { %5371 = vmatpush.msrb.mxu0 %v23364_v61  ;;  %5465 = vmatpush.msrb.mxu2 %v15619_v36  ;;  %v5575_v22 = vand.u32 4294901760, %v15793_v35  ;;  %v15819_v61 = vsub.f32 %v4745_v25, %v15795_v34  ;;  %v23367_v53 = vand.u32 4294901760, %v15415_v1  ;;  %v23368_v1 = vand.u32 4294901760, %v15432_v18 }
 0x19c   :  { %5422 = vmatpush.msrb.mxu1 %v15305_v46  ;;  %5536 = vmatpush.msrb.mxu3 %v5535_v60  ;;  %v5553_v46 = vand.u32 4294901760, %v5552_v11  ;;  %v5564_v60 = vsub.f32 %v15759_v59, %v5563_v42  ;;  %v5581_v11 = vand.u32 4294901760, %v15808_v57  ;;  %v15851_v18 = vsub.f32 %v14736_v15, %v15825_v8 }
 0x19d   :  { %5375 = vmatpush.msrb.mxu0 %v23366_v55  ;;  %5467 = vmatpush.msrb.mxu2 %v15626_v32  ;;  %v15832_v25 = vpop.f32.mrf.mxu1  ;;  %v15839_v55 = vpop.f32.mrf.mxu3 }
 0x19e   :  { %5424 = vmatpush.msrb.mxu1 %v15323_v58  ;;  %5542 = vmatpush.msrb.mxu3 %v5541_v39  ;;  %v5559_v58 = vand.u32 4294901760, %v5558_v50  ;;  %v5570_v39 = vsub.f32 %v15780_v49, %v5569_v47  ;;  %v15837_v44 = vpop.f32.mrf.mxu2  ;;  %v5587_v50 = vand.u32 4294901760, %v15819_v61 }
 0x19f   :  { %5379 = vmatpush.msrb.mxu0 %v23367_v53  ;;  %5469 = vmatpush.msrb.mxu2 %v15646_v19  ;;  %v23369_v53 = vand.u32 4294901760, %v15456_v23 }
 0x1a0   :  { %5426 = vmatpush.msrb.mxu1 %v15342_v7  ;;  %5548 = vmatpush.msrb.mxu3 %v5547_v38  ;;  %v5565_v7 = vand.u32 4294901760, %v5564_v60  ;;  %v5576_v38 = vsub.f32 %v15793_v35, %v5575_v22  ;;  %v23370_v60 = vand.u32 4294901760, %v15470_v54  ;;  %v5488_v54 = vand.u32 4294901760, %v15851_v18 }
 0x1a1   :  { %5383 = vmatpush.msrb.mxu0 %v23368_v1  ;;  %5471 = vmatpush.msrb.mxu2 %v15676_v10  ;;  %v15860_v23 = vpop.f32.mrf.mxu0  ;;  %v23372_v1 = vand.u32 4294901760, %v15528_v14  ;;  %v23374_v14 = vand.u32 4294901760, %v15592_v29  ;;  %v23378_v29 = vld [vmem:[#allocation20_spill] sm:$0xff] }
 0x1a2   :  { %5428 = vmatpush.msrb.mxu1 %v15355_v62  ;;  %5554 = vmatpush.msrb.mxu3 %v5553_v46  ;;  %v5571_v62 = vand.u32 4294901760, %v5570_v39  ;;  %v5582_v46 = vsub.f32 %v15808_v57, %v5581_v11  ;;  %v5577_v15 = vand.u32 4294901760, %v5576_v38 }
 0x1a3   :  { %5387 = vmatpush.msrb.mxu0 %v23369_v53  ;;  %5473 = vmatpush.msrb.mxu2 %v15698_v3  ;;  %v23376_v53 = vand.u32 4294901760, %v15616_v9  ;;  %v23380_v9 = vld [vmem:[#allocation21_spill] sm:$0xff] }
 0x1a4   :  { %5430 = vmatpush.msrb.mxu1 %v15371_v17  ;;  %5560 = vmatpush.msrb.mxu3 %v5559_v58  ;;  %v5588_v17 = vsub.f32 %v15819_v61, %v5587_v50  ;;  %v23371_v58 = vand.u32 4294901760, %v15496_v30  ;;  %v5583_v39 = vand.u32 4294901760, %v5582_v46  ;;  %v23373_v30 = vand.u32 4294901760, %v15572_v6  ;;  %v23375_v6 = vld [vmem:[#allocation17_spill] sm:$0xff] }
 0x1a5   :  { %5391 = vmatpush.msrb.mxu0 %v23370_v60  ;;  %5475 = vmatpush.msrb.mxu2 %v15714_v2  ;;  %v23379_v60 = vand.u32 4294901760, %v23378_v29 }
 0x1a6   :  { %5432 = vmatpush.msrb.mxu1 %v15378_v20  ;;  %5566 = vmatpush.msrb.mxu3 %v5565_v7  ;;  %v5589_v20 = vand.u32 4294901760, %v5588_v17  ;;  %v15875_v7 = vpop.f32.mrf.mxu1  ;;  %v15880_v38 = vpop.f32.mrf.mxu2 }
 0x1a7   :  { %5395 = vmatpush.msrb.mxu0 %v23371_v58  ;;  %5477 = vmatpush.msrb.mxu2 %v15731_v45 }
 0x1a8   :  { %5434 = vmatpush.msrb.mxu1 %v15406_v37  ;;  %5572 = vmatpush.msrb.mxu3 %v5571_v62  ;;  %v15882_v37 = vpop.f32.mrf.mxu3 }
 0x1a9   :  { %5399 = vmatpush.msrb.mxu0 %v23372_v1  ;;  %5479 = vmatpush.msrb.mxu2 %v15746_v43  ;;  %v15895_v62 = vpop.f32.mrf.mxu0 }
 0x1aa   :  { %5436 = vmatpush.msrb.mxu1 %v15428_v56  ;;  %5578 = vmatpush.msrb.mxu3 %v5577_v15  ;;  %v5489_v56 = vsub.f32 %v15851_v18, %v5488_v54  ;;  %v23381_v15 = vld [vmem:[#allocation23_spill] sm:$0xff] }
 0x1ab   :  { %5403 = vmatpush.msrb.mxu0 %v23373_v30  ;;  %5481 = vmatpush.msrb.mxu2 %v15761_v41  ;;  %v23382_v58 = vand.u32 4294901760, %v23381_v15  ;;  %v23384_v30 = vld [vmem:[#allocation24_spill] sm:$0xff] }
 0x1ac   :  { %5438 = vmatpush.msrb.mxu1 %v15435_v31  ;;  %5584 = vmatpush.msrb.mxu3 %v5583_v39  ;;  %v23377_v31 = vld [vmem:[#allocation19_spill] sm:$0xff]  ;;  %v5490_v46 = vand.u32 4294901760, %v5489_v56  ;;  %v23385_v56 = vand.u32 4294901760, %v23384_v30 }
 0x1ad   :  { %5407 = vmatpush.msrb.mxu0 %v23374_v14  ;;  %5483 = vmatpush.msrb.mxu2 %v15782_v0  ;;  %v23386_v14 = vld [vmem:[#allocation26_spill] sm:$0xff] }
 0x1ae   :  { %5440 = vmatpush.msrb.mxu1 %v23375_v6  ;;  %5590 = vmatpush.msrb.mxu3 %v5589_v20  ;;  %v15907_v17 = vpop.f32.mrf.mxu1  ;;  %v15912_v39 = vpop.f32.mrf.mxu2  ;;  %v23383_v20 = vld [vmem:[#allocation22_spill] sm:$0xff]  ;;  %v23387_v6 = vand.u32 4294901760, %v23386_v14 }
 0x1af   :  { %5592 = vmatmul.f32.vlgmr.msrb.gmra.mxu3 %v15825_v8  ;;  %5411 = vmatpush.msrb.mxu0 %v23376_v53 }
 0x1b0   :  { %5759 = vmatpush.msra.mxu3 %v15480_v48  ;;  %5442 = vmatpush.msrb.mxu1 %v23377_v31  ;;  %v15914_v1 = vpop.f32.mrf.mxu3  ;;  %v23388_v31 = vand.u32 4294901760, %v15636_v12 }
 0x1b1   :  { %5485 = vmatpush.msrb.mxu2 %v15795_v34  ;;  %5413 = vmatmul.f32.vlgmr.msrb.gmra.mxu0 %v15485_v63  ;;  %v15926_v53 = vpop.f32.mrf.mxu0 }
 0x1b2   :  { %5491 = vmatmul.f32.vlgmr.msrb.gmra.mxu2 %v5490_v46  ;;  %5598 = vmatpush.msra.mxu0 %v23378_v29  ;;  %v23396_v46 = vld [vmem:[#allocation29_spill] sm:$0xff] }
 0x1b3   :  { %5692 = vmatpush.msra.mxu2 %v23379_v60  ;;  %5761 = vmatpush.msra.mxu3 %v15523_v21 }
 0x1b4   :  { %5444 = vmatpush.msrb.mxu1 %v23380_v9  ;;  %5601 = vmatpush.msra.mxu0 %v23381_v15  ;;  %v23398_v15 = vld [vmem:[#allocation30_spill] sm:$0xff] }
 0x1b5   :  { %5696 = vmatpush.msra.mxu2 %v23382_v58  ;;  %5763 = vmatpush.msra.mxu3 %v15546_v40 }
 0x1b6   :  { %5446 = vmatpush.msrb.mxu1 %v23383_v20  ;;  %5604 = vmatpush.msra.mxu0 %v23384_v30  ;;  %v23400_v30 = vld [vmem:[#allocation6_spill] sm:$0xff] }
 0x1b7   :  { %5700 = vmatpush.msra.mxu2 %v23385_v56  ;;  %5765 = vmatpush.msra.mxu3 %v15564_v33  ;;  %v16029_v56 = vand.u32 4294901760, %v23400_v30 }
 0x1b8   :  { %5448 = vmatpush.msrb.mxu1 %v15574_v24  ;;  %5607 = vmatpush.msra.mxu0 %v23386_v14  ;;  %v15945_v24 = vpop.f32.mrf.mxu2 }
 0x1b9   :  { %5450 = vmatmul.f32.vlgmr.msrb.gmra.mxu1 %v15485_v63  ;;  %5704 = vmatpush.msra.mxu2 %v23387_v6  ;;  %v23389_v63 = vand.u32 4294901760, %v15658_v52 }
 0x1ba   :  { %5651 = vmatpush.msra.mxu1 %v15480_v48  ;;  %5767 = vmatpush.msra.mxu3 %v15595_v26  ;;  %v15940_v48 = vpop.f32.mrf.mxu1 }
 0x1bb   :  { %5610 = vmatpush.msra.mxu0 %v15636_v12  ;;  %5708 = vmatpush.msra.mxu2 %v23388_v31  ;;  %v23390_v12 = vand.u32 4294901760, %v15665_v28 }
 0x1bc   :  { %5653 = vmatpush.msra.mxu1 %v15523_v21  ;;  %5769 = vmatpush.msra.mxu3 %v15619_v36  ;;  %v15947_v21 = vpop.f32.mrf.mxu3 }
 0x1bd   :  { %5613 = vmatpush.msra.mxu0 %v15658_v52  ;;  %5712 = vmatpush.msra.mxu2 %v23389_v63  ;;  %v15959_v52 = vpop.f32.mrf.mxu0 }
 0x1be   :  { %5655 = vmatpush.msra.mxu1 %v15546_v40  ;;  %5771 = vmatpush.msra.mxu3 %v15626_v32  ;;  %v23391_v40 = vand.u32 4294901760, %v15685_v13 }
 0x1bf   :  { %5616 = vmatpush.msra.mxu0 %v15665_v28  ;;  %5716 = vmatpush.msra.mxu2 %v23390_v12  ;;  %v23392_v28 = vand.u32 4294901760, %v15712_v5 }
 0x1c0   :  { %5657 = vmatpush.msra.mxu1 %v15564_v33  ;;  %5773 = vmatpush.msra.mxu3 %v15646_v19  ;;  %v4776_v33 = vld [vmem:[%s22880_s2 + $0x178] sm:$0xff] }
 0x1c1   :  { %5619 = vmatpush.msra.mxu0 %v15685_v13  ;;  %5720 = vmatpush.msra.mxu2 %v23391_v40  ;;  %v23393_v13 = vand.u32 4294901760, %v15729_v4 }
 0x1c2   :  { %5659 = vmatpush.msra.mxu1 %v15595_v26  ;;  %5775 = vmatpush.msra.mxu3 %v15676_v10  ;;  %v4775_v26 = vld [vmem:[%s22880_s2 + $0x170] sm:$0xff] }
 0x1c3   :  { %5622 = vmatpush.msra.mxu0 %v15712_v5  ;;  %5724 = vmatpush.msra.mxu2 %v23392_v28  ;;  %v23394_v5 = vand.u32 4294901760, %v15744_v27  ;;  %v15991_v60 = vpop.f32.mrf.mxu2  ;;  %v15997_v9 = vand.u32 4294901760, %v4775_v26  ;;  %v16065_v28 = vsub.f32 %v23400_v30, %v16029_v56 }
 0x1c4   :  { %5661 = vmatpush.msra.mxu1 %v15619_v36  ;;  %5777 = vmatpush.msra.mxu3 %v15698_v3  ;;  %v15979_v36 = vand.u32 4294901760, %v4776_v33 }
 0x1c5   :  { %5625 = vmatpush.msra.mxu0 %v15729_v4  ;;  %5728 = vmatpush.msra.mxu2 %v23393_v13  ;;  %v15981_v4 = vpop.f32.mrf.mxu1 }
 0x1c6   :  { %5663 = vmatpush.msra.mxu1 %v15626_v32  ;;  %5779 = vmatpush.msra.mxu3 %v15714_v2  ;;  %v23395_v32 = vld [vmem:[#allocation27_spill] sm:$0xff] }
 0x1c7   :  { %5628 = vmatpush.msra.mxu0 %v15744_v27  ;;  %5732 = vmatpush.msra.mxu2 %v23394_v5  ;;  %v3149_v29 = vadd.f32 %v23396_v46, %v23395_v32  ;;  %v4774_v27 = vld [vmem:[%s22880_s2 + $0x168] sm:$0xff] }
 0x1c8   :  { %5665 = vmatpush.msra.mxu1 %v15646_v19  ;;  %5781 = vmatpush.msra.mxu3 %v15731_v45  ;;  %v15993_v19 = vpop.f32.mrf.mxu3  ;;  %v23406_v32 = vld [vmem:[#allocation32_spill] sm:$0xff] }
 0x1c9   :  { %5631 = vmatpush.msra.mxu0 %v15759_v59  ;;  %5736 = vmatpush.msra.mxu2 %v5563_v42  ;;  %v4773_v59 = vld [vmem:[%s22880_s2 + $0x160] sm:$0xff]  ;;  %v16008_v42 = vsub.f32 %v4776_v33, %v15979_v36  ;;  %v3179_v58 = vadd.f32 %v23398_v15, %v3149_v29 }
 0x1ca   :  { %5667 = vmatpush.msra.mxu1 %v15676_v10  ;;  %5783 = vmatpush.msra.mxu3 %v15746_v43  ;;  %v16010_v10 = vand.u32 4294901760, %v4774_v27  ;;  %v16026_v20 = vand.u32 4294901760, %v4773_v59  ;;  %v4769_v33 = vld [vmem:[%s22880_s2 + $0x140] sm:$0xff] }
 0x1cb   :  { %5634 = vmatpush.msra.mxu0 %v15780_v49  ;;  %5740 = vmatpush.msra.mxu2 %v5569_v47  ;;  %v4772_v49 = vld [vmem:[%s22880_s2 + $0x158] sm:$0xff]  ;;  %v16019_v47 = vpop.f32.mrf.mxu0  ;;  %v22939_v6 = vand.u32 4294901760, %v16008_v42  ;;  %v16105_v15 = vand.u32 4294901760, %v4769_v33 }
 0x1cc   :  { %5669 = vmatpush.msra.mxu1 %v15698_v3  ;;  %5785 = vmatpush.msra.mxu3 %v15761_v41  ;;  %23397 = vst [vmem:[#allocation17_spill] sm:$0xff] %v16010_v10  ;;  %v16024_v3 = vsub.f32 %v4775_v26, %v15997_v9  ;;  %v16042_v14 = vsub.f32 %v4774_v27, %v16010_v10  ;;  %v16045_v31 = vand.u32 4294901760, %v4772_v49 }
 0x1cd   :  { %5637 = vmatpush.msra.mxu0 %v15793_v35  ;;  %5744 = vmatpush.msra.mxu2 %v5575_v22  ;;  %23399 = vst [vmem:[#allocation19_spill] sm:$0xff] %v16026_v20  ;;  %v23401_v35 = vld [vmem:[#allocation34_spill] sm:$0xff]  ;;  %v16076_v5 = vpop.f32.mrf.mxu2 }
 0x1ce   :  { %5671 = vmatpush.msra.mxu1 %v15714_v2  ;;  %5787 = vmatpush.msra.mxu3 %v15782_v0  ;;  %v3334_v22 = vadd.f32 %v23401_v35, %v15770_v51  ;;  %v4771_v2 = vld [vmem:[%s22880_s2 + $0x150] sm:$0xff]  ;;  %23402 = vst [vmem:[#allocation20_spill] sm:$0xff] %v16045_v31  ;;  %v4770_v51 = vld [vmem:[%s22880_s2 + $0x148] sm:$0xff]  ;;  %v22937_v63 = vand.u32 4294901760, %v16024_v3  ;;  %v22940_v35 = vand.u32 4294901760, %v16065_v28 }
 0x1cf   :  { %5640 = vmatpush.msra.mxu0 %v15808_v57  ;;  %5748 = vmatpush.msra.mxu2 %v5581_v11  ;;  %v23403_v57 = vld [vmem:[#allocation31_spill] sm:$0xff]  ;;  %v16059_v12 = vand.u32 4294901760, %v4771_v2  ;;  %v16061_v40 = vpop.f32.mrf.mxu1  ;;  %23408 = vst [vmem:[#allocation24_spill] sm:$0xff] %v16105_v15 }
 0x1d0   :  { %5673 = vmatpush.msra.mxu1 %v15731_v45  ;;  %5789 = vmatpush.msra.mxu3 %v15795_v34  ;;  %v3206_v11 = vadd.f32 %v23403_v57, %v3179_v58  ;;  %v16056_v45 = vsub.f32 %v4773_v59, %v16026_v20  ;;  %v3364_v13 = vadd.f32 %v15800_v16, %v3334_v22  ;;  %v16078_v26 = vpop.f32.mrf.mxu3  ;;  %v4767_v58 = vld [vmem:[%s22880_s2 + $0x130] sm:$0xff] }
 0x1d1   :  { %5791 = vmatmul.f32.vlgmr.msra.gmra.mxu3 %v15825_v8  ;;  %5643 = vmatpush.msra.mxu0 %v15819_v61  ;;  %23404 = vst [vmem:[#allocation21_spill] sm:$0xff] %v16059_v12  ;;  %v5839_v16 = vsub.f32 %v16008_v42, %v22939_v6  ;;  %v16086_v61 = vsub.f32 %v4772_v49, %v16045_v31  ;;  %v23411_v57 = vld [vmem:[#allocation33_spill] sm:$0xff] }
 0x1d2   :  { %5992 = vmatpush.msrb.mxu3 %v15979_v36  ;;  %5675 = vmatpush.msra.mxu1 %v15746_v43  ;;  %v16071_v43 = vand.u32 4294901760, %v4770_v51  ;;  %v3239_v46 = vadd.f32 %v23406_v32, %v3206_v11  ;;  %v3391_v29 = vadd.f32 %v15832_v25, %v3364_v13  ;;  %v5845_v27 = vsub.f32 %v16024_v3, %v22937_v63  ;;  %v4766_v13 = vld [vmem:[%s22880_s2 + $0x128] sm:$0xff] }
 0x1d3   :  { %5752 = vmatpush.msra.mxu2 %v5587_v50  ;;  %5646 = vmatmul.f32.vlgmr.msra.gmra.mxu0 %v15851_v18  ;;  %v22936_v50 = vand.u32 4294901760, %v16042_v14  ;;  %v16102_v59 = vsub.f32 %v4771_v2, %v16059_v12  ;;  %v22935_v25 = vand.u32 4294901760, %v16056_v45  ;;  %v16117_v30 = vpop.f32.mrf.mxu0  ;;  %v5840_v22 = vand.u32 4294901760, %v5839_v16  ;;  %v4596_v16 = vld.sshfl [vmem:[#allocation1] sm:$0xff pattern:$0x73625140] }
 0x1d4   :  { %23405 = vst [vmem:[#allocation23_spill] sm:$0xff] %v16071_v43  ;;  %5754 = vmatmul.f32.vlgmr.msra.gmra.mxu2 %v15825_v8  ;;  %5796 = vmatpush.msrb.mxu0 %v15979_v36  ;;  %v4768_v8 = vld [vmem:[%s22880_s2 + $0x138] sm:$0xff]  ;;  %v16115_v49 = vsub.f32 %v4770_v51, %v16071_v43  ;;  %v3264_v51 = vadd.f32 %v23411_v57, %v3239_v46  ;;  %v5846_v32 = vand.u32 4294901760, %v5845_v27  ;;  %v4765_v27 = vld [vmem:[%s22880_s2 + $0x120] sm:$0xff] }
 0x1d5   :  { %5939 = vmatpush.msrb.mxu2 %v16008_v42  ;;  %5994 = vmatpush.msrb.mxu3 %v15997_v9  ;;  %23407 = vst [vmem:[#allocation22_spill] sm:$0xff] %v16102_v59  ;;  %v16126_v2 = vand.u32 4294901760, %v4768_v8  ;;  %v3424_v11 = vadd.f32 %v15837_v44, %v3391_v29  ;;  %v5857_v44 = vsub.f32 %v16056_v45, %v22935_v25  ;;  %v22942_v29 = vand.u32 4294901760, %v16102_v59 }
 0x1d6   :  { %5677 = vmatpush.msra.mxu1 %v15761_v41  ;;  %5798 = vmatpush.msrb.mxu0 %v15997_v9  ;;  %v3519_v41 = vadd.f32 %v15875_v7, %v15860_v23  ;;  %23409 = vst [vmem:[#allocation26_spill] sm:$0xff] %v16115_v49  ;;  %v5851_v23 = vsub.f32 %v16042_v14, %v22936_v50  ;;  %v22938_v7 = vand.u32 4294901760, %v16086_v61  ;;  %v4792_v50 = vld [vmem:[%s22880_s2 + $0x1f8] sm:$0xff] }
 0x1d7   :  { %5942 = vmatpush.msrb.mxu2 %v16024_v3  ;;  %5996 = vmatpush.msrb.mxu3 %v16010_v10  ;;  %23410 = vst [vmem:[#allocation27_spill] sm:$0xff] %v16126_v2  ;;  %v16143_v46 = vsub.f32 %v4769_v33, %v16105_v15  ;;  %v16157_v33 = vsub.f32 %v16065_v28, %v22940_v35  ;;  %v4597_v35 = vld.sshfl [vmem:[#allocation1 + $0x8] sm:$0xff pattern:$0x73625140] }
 0x1d8   :  { %5679 = vmatpush.msra.mxu1 %v15782_v0  ;;  %5800 = vmatpush.msrb.mxu0 %v16010_v10  ;;  %v16132_v0 = vand.u32 4294901760, %v4767_v58  ;;  %v3549_v57 = vadd.f32 %v15880_v38, %v3519_v41  ;;  %v5852_v38 = vand.u32 4294901760, %v5851_v23  ;;  %v5863_v18 = vsub.f32 %v16086_v61, %v22938_v7  ;;  %v16186_v6 = vpop.f32.mrf.mxu3 }
 0x1d9   :  { %5945 = vmatpush.msrb.mxu2 %v16042_v14  ;;  %5998 = vmatpush.msrb.mxu3 %v16026_v20  ;;  %23413 = vst [vmem:[#allocation30_spill] sm:$0xff] %v16143_v46  ;;  %v16166_v41 = vand.u32 4294901760, %v4766_v13  ;;  %v16173_v63 = vsub.f32 %v3264_v51, %v4596_v16  ;;  %v16184_v7 = vpop.f32.mrf.mxu2  ;;  %v5869_v51 = vsub.f32 %v16102_v59, %v22942_v29  ;;  %v4791_v29 = vld [vmem:[%s22880_s2 + $0x1f0] sm:$0xff] }
 0x1da   :  { %23412 = vst [vmem:[#allocation29_spill] sm:$0xff] %v16132_v0  ;;  %5681 = vmatpush.msra.mxu1 %v15795_v34  ;;  %5802 = vmatpush.msrb.mxu0 %v16026_v20  ;;  %v16168_v25 = vpop.f32.mrf.mxu1  ;;  %v16179_v23 = vsub.f32 %v4767_v58, %v16132_v0  ;;  %v3576_v16 = vadd.f32 %v15882_v37, %v3549_v57  ;;  %v5864_v37 = vand.u32 4294901760, %v5863_v18 }
 0x1db   :  { %5685 = vmatmul.f32.vlgmr.msra.gmra.mxu1 %v5488_v54  ;;  %5948 = vmatpush.msrb.mxu2 %v16056_v45  ;;  %v16164_v54 = vsub.f32 %v4768_v8, %v16126_v2  ;;  %23415 = vst [vmem:[#allocation34_spill] sm:$0xff] %v16166_v41  ;;  %v4764_v8 = vld [vmem:[%s22880_s2 + $0x118] sm:$0xff]  ;;  %v3704_v34 = vadd.f32 %v15914_v1, %v15912_v39 }
 0x1dc   :  { %5841 = vmatpush.msrb.mxu1 %v5840_v22  ;;  %6000 = vmatpush.msrb.mxu3 %v16045_v31  ;;  %23416 = vst [vmem:[#allocation31_spill] sm:$0xff] %v16173_v63  ;;  %v3449_v22 = vadd.f32 %v15839_v55, %v3424_v11  ;;  %v5858_v55 = vand.u32 4294901760, %v5857_v44  ;;  %v16193_v11 = vand.u32 4294901760, %v4765_v27  ;;  %v16210_v39 = vsub.f32 %v4766_v13, %v16166_v41  ;;  %v4763_v13 = vld [vmem:[%s22880_s2 + $0x110] sm:$0xff]  ;;  %v16227_v18 = vpop.f32.mrf.mxu0 }
 0x1dd   :  { %23414 = vst [vmem:[#allocation6_spill] sm:$0xff] %v16164_v54  ;;  %5804 = vmatpush.msrb.mxu0 %v16045_v31  ;;  %5951 = vmatpush.msrb.mxu2 %v16086_v61  ;;  %v16203_v31 = vand.u32 4294901760, %v4792_v50  ;;  %v16213_v57 = vand.u32 4294901760, %v4764_v8  ;;  %v3609_v20 = vadd.f32 %v15895_v62, %v3576_v16  ;;  %v23426_v1 = vand.u32 4294901760, %v16164_v54 }
 0x1de   :  { %23417 = vst [vmem:[#allocation32_spill] sm:$0xff] %v16179_v23  ;;  %5847 = vmatpush.msrb.mxu1 %v5846_v32  ;;  %6002 = vmatpush.msrb.mxu3 %v16059_v12  ;;  %v23419_v32 = vand.u32 4294901760, %v16115_v49  ;;  %v16219_v58 = vsub.f32 %v3449_v22, %v4597_v35  ;;  %v23423_v35 = vand.u32 4294901760, %v16143_v46 }
 0x1df   :  { %23418 = vst [vmem:[#allocation33_spill] sm:$0xff] %v16193_v11  ;;  %5806 = vmatpush.msrb.mxu0 %v16059_v12  ;;  %5954 = vmatpush.msrb.mxu2 %v16102_v59  ;;  %v4790_v12 = vld [vmem:[%s22880_s2 + $0x1e8] sm:$0xff]  ;;  %v5887_v62 = vsub.f32 %v16164_v54, %v23426_v1  ;;  %v3889_v59 = vadd.f32 %v15981_v4, %v15959_v52 }
 0x1e0   :  { %v5875_v44 = vsub.f32 %v16115_v49, %v23419_v32  ;;  %5853 = vmatpush.msrb.mxu1 %v5852_v38  ;;  %6004 = vmatpush.msrb.mxu3 %v16071_v43  ;;  %23420 = vst [vmem:[#allocation35_spill] sm:$0xff] %v16210_v39  ;;  %v16217_v32 = vmul.f32 %v16173_v63, %v16173_v63  ;;  %v5870_v63 = vand.u32 4294901760, %v5869_v51  ;;  %v16237_v38 = vand.u32 4294901760, %v4791_v29 }
 0x1e1   :  { %23421 = vst [vmem:[#allocation36_spill] sm:$0xff] %v16213_v57  ;;  %5808 = vmatpush.msrb.mxu0 %v16071_v43  ;;  %5957 = vmatpush.msrb.mxu2 %v16115_v49  ;;  %v5881_v22 = vsub.f32 %v16143_v46, %v23423_v35  ;;  %v16235_v43 = vsub.f32 %v4765_v27, %v16193_v11  ;;  %v4762_v27 = vld [vmem:[%s22880_s2 + $0x108] sm:$0xff] }
 0x1e2   :  { %23422 = vst [vmem:[#allocation37_spill] sm:$0xff] %v16219_v58  ;;  %5859 = vmatpush.msrb.mxu1 %v5858_v55  ;;  %6006 = vmatpush.msrb.mxu3 %v16105_v15  ;;  %v3734_v55 = vadd.f32 %v15926_v53, %v3704_v34  ;;  %v5876_v51 = vand.u32 4294901760, %v5875_v44  ;;  %v16250_v35 = vsub.f32 %v4792_v50, %v16203_v31  ;;  %v16259_v34 = vand.u32 4294901760, %v4763_v13  ;;  %v4761_v44 = vld [vmem:[%s22880_s2 + $0x100] sm:$0xff] }
 0x1e3   :  { %23424 = vst [vmem:[#allocation38_spill] sm:$0xff] %v16235_v43  ;;  %5810 = vmatpush.msrb.mxu0 %v16105_v15  ;;  %5960 = vmatpush.msrb.mxu2 %v16143_v46  ;;  %v16257_v53 = vsub.f32 %v4764_v8, %v16213_v57  ;;  %v4789_v50 = vld [vmem:[%s22880_s2 + $0x1e0] sm:$0xff]  ;;  %v23429_v8 = vand.u32 4294901760, %v16179_v23  ;;  %v16278_v15 = vand.u32 4294901760, %v4790_v12  ;;  %v5882_v46 = vand.u32 4294901760, %v5881_v22 }
 0x1e4   :  { %23425 = vst [vmem:[#allocation39_spill] sm:$0xff] %v16250_v35  ;;  %5865 = vmatpush.msrb.mxu1 %v5864_v37  ;;  %6008 = vmatpush.msrb.mxu3 %v16126_v2  ;;  %v16270_v37 = vmul.f32 %v16219_v58, %v16219_v58  ;;  %v3761_v1 = vadd.f32 %v15940_v48, %v3734_v55  ;;  %v16281_v49 = vand.u32 4294901760, %v4762_v27  ;;  %v16284_v10 = vpop.f32.mrf.mxu1  ;;  %v16301_v58 = vand.u32 4294901760, %v4789_v50 }
 0x1e5   :  { %23427 = vst [vmem:[#allocation40_spill] sm:$0xff] %v16257_v53  ;;  %5812 = vmatpush.msrb.mxu0 %v16126_v2  ;;  %5963 = vmatpush.msrb.mxu2 %v16164_v54  ;;  %v5893_v16 = vsub.f32 %v16179_v23, %v23429_v8  ;;  %v16287_v48 = vsub.f32 %v4791_v29, %v16237_v38  ;;  %v16297_v8 = vpop.f32.mrf.mxu2  ;;  %v16299_v2 = vpop.f32.mrf.mxu3  ;;  %v4788_v29 = vld [vmem:[%s22880_s2 + $0x1d8] sm:$0xff] }
 0x1e6   :  { %23428 = vst [vmem:[#allocation41_spill] sm:$0xff] %v16259_v34  ;;  %5871 = vmatpush.msrb.mxu1 %v5870_v63  ;;  %6010 = vmatpush.msrb.mxu3 %v16132_v0  ;;  %v16290_v55 = vadd.f32 %v15907_v17, %v3609_v20  ;;  %v16294_v63 = vand.u32 4294901760, %v4761_v44  ;;  %v5888_v17 = vand.u32 4294901760, %v5887_v62  ;;  %v23433_v20 = vand.u32 4294901760, %v16210_v39 }
 0x1e7   :  { %23430 = vst [vmem:[#allocation42_spill] sm:$0xff] %v16281_v49  ;;  %5814 = vmatpush.msrb.mxu0 %v16132_v0  ;;  %5966 = vmatpush.msrb.mxu2 %v16179_v23  ;;  %v16311_v22 = vsub.f32 %v4763_v13, %v16259_v34  ;;  %v16315_v54 = vadd.f32 %v15945_v24, %v3761_v1  ;;  %v4787_v13 = vld [vmem:[%s22880_s2 + $0x1d0] sm:$0xff]  ;;  %v23436_v24 = vand.u32 4294901760, %v16235_v43 }
 0x1e8   :  { %23431 = vst [vmem:[#allocation43_spill] sm:$0xff] %v16287_v48  ;;  %5877 = vmatpush.msrb.mxu1 %v5876_v51  ;;  %6012 = vmatpush.msrb.mxu3 %v16166_v41  ;;  %v5899_v0 = vsub.f32 %v16210_v39, %v23433_v20  ;;  %v5894_v51 = vand.u32 4294901760, %v5893_v16  ;;  %v16322_v62 = vsub.f32 %v4790_v12, %v16278_v15  ;;  %v16335_v16 = vand.u32 4294901760, %v4788_v29  ;;  %v4786_v12 = vld [vmem:[%s22880_s2 + $0x1c8] sm:$0xff]  ;;  %v16352_v4 = vpop.f32.mrf.mxu0 }
 0x1e9   :  { %23432 = vst [vmem:[#allocation44_spill] sm:$0xff] %v16294_v63  ;;  %5816 = vmatpush.msrb.mxu0 %v16166_v41  ;;  %5969 = vmatpush.msrb.mxu2 %v16210_v39  ;;  %v5905_v1 = vsub.f32 %v16235_v43, %v23436_v24  ;;  %v16332_v52 = vsub.f32 %v4762_v27, %v16281_v49  ;;  %v23438_v20 = vand.u32 4294901760, %v16250_v35  ;;  %v16362_v39 = vand.u32 4294901760, %v4787_v13 }
 0x1ea   :  { %23434 = vst [vmem:[#allocation45_spill] sm:$0xff] %v16311_v22  ;;  %5883 = vmatpush.msrb.mxu1 %v5882_v46  ;;  %6014 = vmatpush.msrb.mxu3 %v16193_v11  ;;  %v16342_v46 = vsel %vm4676_vm1, %v16217_v32, 0.0  ;;  %v16350_v24 = vsub.f32 %v4761_v44, %v16294_v63  ;;  %v16355_v23 = vsub.f32 %v4789_v50, %v16301_v58  ;;  %v5900_v32 = vand.u32 4294901760, %v5899_v0  ;;  %v4785_v44 = vld [vmem:[%s22880_s2 + $0x1c0] sm:$0xff] }
 0x1eb   :  { %23435 = vst [vmem:[#allocation46_spill] sm:$0xff] %v16322_v62  ;;  %5818 = vmatpush.msrb.mxu0 %v16193_v11  ;;  %5972 = vmatpush.msrb.mxu2 %v16235_v43  ;;  %v6180_v27 = vsub.f32 %v16250_v35, %v23438_v20  ;;  %v23440_v11 = vand.u32 4294901760, %v16257_v53  ;;  %v3919_v20 = vadd.f32 %v15991_v60, %v3889_v59  ;;  %v23441_v43 = vand.u32 4294901760, %v16287_v48 }
 0x1ec   :  { %23437 = vst [vmem:[#allocation47_spill] sm:$0xff] %v16332_v52  ;;  %5889 = vmatpush.msrb.mxu1 %v5888_v17  ;;  %6016 = vmatpush.msrb.mxu3 %v16213_v57  ;;  %v4074_v50 = vadd.f32 %v16078_v26, %v16076_v5  ;;  %v5906_v17 = vand.u32 4294901760, %v5905_v1  ;;  %v16381_v5 = vsub.f32 %v4788_v29, %v16335_v16  ;;  %v4784_v26 = vld [vmem:[%s22880_s2 + $0x1b8] sm:$0xff]  ;;  %v16390_v0 = vand.u32 4294901760, %v4785_v44  ;;  %v4783_v1 = vld [vmem:[%s22880_s2 + $0x1b0] sm:$0xff] }
 0x1ed   :  { %23439 = vst [vmem:[#allocation48_spill] sm:$0xff] %v16355_v23  ;;  %v5911_v41 = vsub.f32 %v16257_v53, %v23440_v11  ;;  %5820 = vmatpush.msrb.mxu0 %v16213_v57  ;;  %5975 = vmatpush.msrb.mxu2 %v16257_v53  ;;  %v16373_v11 = vand.u32 4294901760, %v4786_v12  ;;  %v6186_v35 = vsub.f32 %v16287_v48, %v23441_v43  ;;  %v6181_v59 = vand.u32 4294901760, %v6180_v27 }
 0x1ee   :  { %5895 = vmatpush.msrb.mxu1 %v5894_v51  ;;  %6018 = vmatpush.msrb.mxu3 %v16259_v34  ;;  %v4259_v43 = vadd.f32 %v16284_v10, %v16227_v18  ;;  %v23442_v60 = vand.u32 4294901760, %v16311_v22  ;;  %v16401_v27 = vsub.f32 %v4787_v13, %v16362_v39  ;;  %v23443_v10 = vand.u32 4294901760, %v16322_v62 }
 0x1ef   :  { %5822 = vmatpush.msrb.mxu0 %v16259_v34  ;;  %5978 = vmatpush.msrb.mxu2 %v16311_v22  ;;  %v5912_v29 = vand.u32 4294901760, %v5911_v41  ;;  %v4402_v18 = vpop.f32.mrf.mxu2  ;;  %v16413_v51 = vsub.f32 %v4786_v12, %v16373_v11  ;;  %v16415_v13 = vand.u32 4294901760, %v4784_v26  ;;  %v4104_v57 = vadd.f32 %v16117_v30, %v4074_v50 }
 0x1f0   :  { %5901 = vmatpush.msrb.mxu1 %v5900_v32  ;;  %6020 = vmatpush.msrb.mxu3 %v16281_v49  ;;  %v5917_v48 = vsub.f32 %v16311_v22, %v23442_v60  ;;  %v16398_v34 = vpop.f32.mrf.mxu1  ;;  %v3946_v32 = vadd.f32 %v15993_v19, %v3919_v20  ;;  %v6192_v41 = vsub.f32 %v16322_v62, %v23443_v10  ;;  %v4443_v60 = vpop.f32.mrf.mxu3  ;;  %v6187_v19 = vand.u32 4294901760, %v6186_v35 }
 0x1f1   :  { %5824 = vmatpush.msrb.mxu0 %v16281_v49  ;;  %5981 = vmatpush.msrb.mxu2 %v16332_v52  ;;  %v23444_v20 = vand.u32 4294901760, %v16332_v52  ;;  %v23445_v10 = vand.u32 4294901760, %v16065_v28  ;;  %v23446_v12 = vand.u32 4294901760, %v16355_v23  ;;  %v23447_v30 = vand.u32 4294901760, %v16350_v24 }
 0x1f2   :  { %5907 = vmatpush.msrb.mxu1 %v5906_v17  ;;  %6022 = vmatpush.msrb.mxu3 %v16294_v63  ;;  %v16435_v35 = vsub.f32 %v4785_v44, %v16390_v0  ;;  %v16437_v17 = vand.u32 4294901760, %v4783_v1  ;;  %v5918_v22 = vand.u32 4294901760, %v5917_v48  ;;  %v23448_v44 = vand.u32 4294901760, %v16157_v33  ;;  %v4781_v48 = vld [vmem:[%s22880_s2 + $0x1a0] sm:$0xff] }
 0x1f3   :  { %v5923_v49 = vsub.f32 %v16332_v52, %v23444_v20  ;;  %6026 = vmatmul.f32.vlgmr.msrb.gmra.mxu3 %v23445_v10  ;;  %5826 = vmatpush.msrb.mxu0 %v16294_v63  ;;  %v6198_v62 = vsub.f32 %v16355_v23, %v23446_v12  ;;  %v16432_v50 = vsub.f32 %v16350_v24, %v23447_v30  ;;  %v4782_v20 = vld [vmem:[%s22880_s2 + $0x1a8] sm:$0xff]  ;;  %v6209_v12 = vand.u32 4294901760, %v16401_v27 }
 0x1f4   :  { %6182 = vmatpush.msra.mxu3 %v6181_v59  ;;  %5913 = vmatpush.msrb.mxu1 %v5912_v29  ;;  %v4289_v10 = vadd.f32 %v16297_v8, %v4259_v43  ;;  %v4444_v23 = vadd.f32 %v4443_v60, %v4402_v18  ;;  %v4131_v30 = vadd.f32 %v16168_v25, %v4104_v57  ;;  %v6193_v63 = vand.u32 4294901760, %v6192_v41  ;;  %v4473_v53 = vpop.f32.mrf.mxu0 }
 0x1f5   :  { %5984 = vmatpush.msrb.mxu2 %v16350_v24  ;;  %5832 = vmatmul.f32.vlgmr.msrb.gmra.mxu0 %v23448_v44  ;;  %v6215_v52 = vand.u32 4294901760, %v16413_v51  ;;  %v16450_v59 = vsub.f32 %v4784_v26, %v16415_v13  ;;  %v3979_v8 = vadd.f32 %v16019_v47, %v3946_v32  ;;  %v23449_v25 = vand.u32 4294901760, %v16008_v42  ;;  %v4780_v42 = vld [vmem:[%s22880_s2 + $0x198] sm:$0xff] }
 0x1f6   :  { %5987 = vmatmul.f32.vlgmr.msrb.gmra.mxu2 %v16065_v28  ;;  %v5924_v33 = vand.u32 4294901760, %v5923_v49  ;;  %v23450_v57 = vand.u32 4294901760, %v16381_v5  ;;  %v16462_v29 = vand.u32 4294901760, %v4782_v20  ;;  %6188 = vmatpush.msra.mxu3 %v6187_v19  ;;  %v6199_v26 = vand.u32 4294901760, %v6198_v62 }
 0x1f7   :  { %6033 = vmatpush.msra.mxu0 %v23449_v25  ;;  %6137 = vmatpush.msra.mxu2 %v16203_v31  ;;  %v5930_v41 = vand.u32 4294901760, %v16432_v50  ;;  %v6221_v47 = vand.u32 4294901760, %v16435_v35  ;;  %v16468_v28 = vsub.f32 %v4783_v1, %v16437_v17  ;;  %v4598_v49 = vld.sshfl [vmem:[#allocation1 + $0x10] sm:$0xff pattern:$0x73625140]  ;;  %v4316_v32 = vadd.f32 %v16299_v2, %v4289_v10 }
 0x1f8   :  { %v6204_v43 = vsub.f32 %v16381_v5, %v23450_v57  ;;  %5919 = vmatpush.msrb.mxu1 %v5918_v22  ;;  %v23451_v18 = vand.u32 4294901760, %v16024_v3  ;;  %v6210_v62 = vsub.f32 %v16401_v27, %v6209_v12  ;;  %v4474_v60 = vadd.f32 %v4473_v53, %v4444_v23  ;;  %6194 = vmatpush.msra.mxu3 %v6193_v63  ;;  %v4779_v23 = vld [vmem:[%s22880_s2 + $0x190] sm:$0xff]  ;;  %v4599_v53 = vld.sshfl [vmem:[#allocation1 + $0x18] sm:$0xff pattern:$0x73625140] }
 0x1f9   :  { %v16479_v19 = vand.u32 4294901760, %v4781_v48  ;;  %v3819_v1 = vadd.f32 %v15947_v21, %v16315_v54  ;;  %v4164_v50 = vadd.f32 %v16184_v7, %v4131_v30  ;;  %6139 = vmatpush.msra.mxu2 %v16237_v38  ;;  %v6216_v3 = vsub.f32 %v16413_v51, %v6215_v52  ;;  %v4500_v22 = vpop.f32.mrf.mxu1  ;;  %v4600_v57 = vld.sshfl [vmem:[#allocation1 + $0x20] sm:$0xff pattern:$0x73625140] }
 0x1fa   :  { %6037 = vmatpush.msra.mxu0 %v23451_v18  ;;  %v6227_v2 = vand.u32 4294901760, %v16450_v59  ;;  %5925 = vmatpush.msrb.mxu1 %v5924_v33  ;;  %v23452_v21 = vand.u32 4294901760, %v16042_v14  ;;  %v6205_v7 = vand.u32 4294901760, %v6204_v43  ;;  %v4501_v54 = vadd.f32 %v4500_v22, %v4474_v60  ;;  %v4533_v33 = vpop.f32.mrf.mxu2 }
 0x1fb   :  { %v16495_v63 = vsub.f32 %v4782_v20, %v16462_v29  ;;  %v16497_v10 = vand.u32 4294901760, %v4780_v42  ;;  %v16500_v30 = vsub.f32 %v16290_v55, %v4598_v49  ;;  %v4004_v44 = vadd.f32 %v16061_v40, %v3979_v8  ;;  %6141 = vmatpush.msra.mxu2 %v16278_v15  ;;  %6200 = vmatpush.msra.mxu3 %v6199_v26  ;;  %v4778_v20 = vld [vmem:[%s22880_s2 + $0x188] sm:$0xff] }
 0x1fc   :  { %6041 = vmatpush.msra.mxu0 %v23452_v21  ;;  %v6222_v14 = vsub.f32 %v16435_v35, %v6221_v47  ;;  %v22980_v25 = vand.u32 4294901760, %v16468_v28  ;;  %v4349_v55 = vadd.f32 %v16352_v4, %v4316_v32  ;;  %5931 = vmatpush.msrb.mxu1 %v5930_v41  ;;  %v23454_v40 = vand.u32 4294901760, %v16056_v45  ;;  %v4777_v4 = vld [vmem:[%s22880_s2 + $0x180] sm:$0xff] }
 0x1fd   :  { %23453 = vst [vmem:[#allocation49_spill] sm:$0xff] %v16500_v30  ;;  %v6211_v8 = vand.u32 4294901760, %v6210_v62  ;;  %v16515_v43 = vsub.f32 %v4781_v48, %v16479_v19  ;;  %v16517_v26 = vand.u32 4294901760, %v4779_v23  ;;  %v16519_v49 = vsub.f32 %v3819_v1, %v4599_v53  ;;  %5933 = vmatmul.f32.vlgmr.msrb.gmra.mxu1 %v16029_v56  ;;  %6143 = vmatpush.msra.mxu2 %v16301_v58  ;;  %v4601_v48 = vld.sshfl [vmem:[#allocation1 + $0x28] sm:$0xff pattern:$0x73625140]  ;;  %v4558_v53 = vpop.f32.mrf.mxu3 }
 0x1fe   :  { %6045 = vmatpush.msra.mxu0 %v23454_v40  ;;  %v4189_v18 = vadd.f32 %v16186_v6, %v4164_v50  ;;  %v6217_v60 = vand.u32 4294901760, %v6216_v3  ;;  %v6228_v45 = vsub.f32 %v16450_v59, %v6227_v2  ;;  %6100 = vmatpush.msra.mxu1 %v15979_v36  ;;  %v4534_v41 = vadd.f32 %v4533_v33, %v4501_v54  ;;  %v4602_v33 = vld.sshfl [vmem:[#allocation1 + $0x30] sm:$0xff pattern:$0x73625140] }
 0x1ff   :  { %23455 = vst [vmem:[#allocation50_spill] sm:$0xff] %v16519_v49  ;;  %6206 = vmatpush.msra.mxu3 %v6205_v7  ;;  %v22978_v6 = vand.u32 4294901760, %v16495_v63  ;;  %v16533_v32 = vsub.f32 %v4780_v42, %v16497_v10  ;;  %v16535_v62 = vand.u32 4294901760, %v4778_v20  ;;  %v4670_v1 = vmul.f32 %v16500_v30, %v16500_v30  ;;  %6145 = vmatpush.msra.mxu2 %v16335_v16 }
 0x200   :  { %v16539_v50 = vsub.f32 %v4004_v44, %v4600_v57  ;;  %v23457_v3 = vand.u32 4294901760, %v16086_v61  ;;  %v6223_v36 = vand.u32 4294901760, %v6222_v14  ;;  %v6234_v22 = vsub.f32 %v16468_v28, %v22980_v25  ;;  %6102 = vmatpush.msra.mxu1 %v15997_v9  ;;  %v23474_v25 = vld [vmem:[#allocation21_spill] sm:$0xff] }
 0x201   :  { %v4374_v42 = vadd.f32 %v16398_v34, %v4349_v55  ;;  %6212 = vmatpush.msra.mxu3 %v6211_v8  ;;  %v22979_v21 = vand.u32 4294901760, %v16515_v43  ;;  %v16551_v7 = vsub.f32 %v4779_v23, %v16517_v26  ;;  %v16553_v61 = vand.u32 4294901760, %v4777_v4  ;;  %v23459_v34 = vld [vmem:[#allocation22_spill] sm:$0xff]  ;;  %6147 = vmatpush.msra.mxu2 %v16362_v39  ;;  %v23461_v55 = vld [vmem:[#allocation17_spill] sm:$0xff] }
 0x202   :  { %23456 = vst [vmem:[#allocation51_spill] sm:$0xff] %v16539_v50  ;;  %6049 = vmatpush.msra.mxu0 %v23457_v3  ;;  %v4710_v54 = vsel %vm4676_vm1, %v16270_v37, 0.0  ;;  %v4671_v44 = vmul.f32 %v16519_v49, %v16519_v49  ;;  %v16559_v14 = vsub.f32 %v4189_v18, %v4601_v48  ;;  %v23460_v57 = vand.u32 4294901760, %v23459_v34  ;;  %6104 = vmatpush.msra.mxu1 %v23461_v55  ;;  %v23462_v18 = vld [vmem:[#allocation28_spill] sm:$0xff]  ;;  %v23463_v34 = vld [vmem:[#allocation26_spill] sm:$0xff]  ;;  %v23466_v55 = vld [vmem:[#allocation19_spill] sm:$0xff] }
 0x203   :  { %v6229_v9 = vand.u32 4294901760, %v6228_v45  ;;  %6218 = vmatpush.msra.mxu3 %v6217_v60  ;;  %v6240_v23 = vsub.f32 %v16495_v63, %v22978_v6  ;;  %v4559_v37 = vadd.f32 %v4558_v53, %v4534_v41  ;;  %v6251_v40 = vand.u32 4294901760, %v16533_v32  ;;  %6149 = vmatpush.msra.mxu2 %v16373_v11  ;;  %v4603_v41 = vld.sshfl [vmem:[#allocation1 + $0x38] sm:$0xff pattern:$0x73625140] }
 0x204   :  { %23458 = vst [vmem:[#allocation52_spill] sm:$0xff] %v16559_v14  ;;  %6053 = vmatpush.msra.mxu0 %v23460_v57  ;;  %v16570_v8 = vsub.f32 %v4778_v20, %v16535_v62  ;;  %v4709_v48 = vadd.f32 %v16342_v46, %v23462_v18  ;;  %v4712_v3 = vsel %vm4676_vm1, %v4670_v1, 0.0  ;;  %v4672_v45 = vmul.f32 %v16539_v50, %v16539_v50  ;;  %v23467_v18 = vld [vmem:[#allocation5_spill] sm:$0xff] }
 0x205   :  { %v23464_v60 = vand.u32 4294901760, %v23463_v34  ;;  %v6235_v57 = vand.u32 4294901760, %v6234_v22  ;;  %v16580_v53 = vsub.f32 %v4374_v42, %v4602_v33  ;;  %6106 = vmatpush.msra.mxu1 %v23466_v55  ;;  %6224 = vmatpush.msra.mxu3 %v6223_v36  ;;  %v6246_v46 = vsub.f32 %v16515_v43, %v22979_v21  ;;  %v23468_v22 = vld [vmem:[#allocation30_spill] sm:$0xff]  ;;  %v23470_v33 = vld [vmem:[#allocation20_spill] sm:$0xff] }
 0x206   :  { %v22981_v20 = vand.u32 4294901760, %v16551_v7  ;;  %v16588_v1 = vsub.f32 %v4777_v4, %v16553_v61  ;;  %v16591_v34 = vand.u32 4294901760, %v23467_v18  ;;  %v23469_v6 = vand.u32 4294901760, %v23468_v22  ;;  %6151 = vmatpush.msra.mxu2 %v16390_v0 }
 0x207   :  { %6057 = vmatpush.msra.mxu0 %v23464_v60  ;;  %23465 = vst [vmem:[#allocation22_spill] sm:$0xff] %v16580_v53  ;;  %v4711_v60 = vadd.f32 %v4710_v54, %v4709_v48  ;;  %v4673_v36 = vmul.f32 %v16559_v14, %v16559_v14  ;;  %v4714_v42 = vsel %vm4676_vm1, %v4671_v44, 0.0  ;;  %6108 = vmatpush.msra.mxu1 %v23470_v33  ;;  %v6241_v55 = vand.u32 4294901760, %v6240_v23 }
 0x208   :  { %6230 = vmatpush.msra.mxu3 %v6229_v9  ;;  %v16600_v4 = vsub.f32 %v4559_v37, %v4603_v41  ;;  %v6252_v54 = vsub.f32 %v16533_v32, %v6251_v40  ;;  %v6263_v48 = vand.u32 4294901760, %v16570_v8  ;;  %6153 = vmatpush.msra.mxu2 %v16415_v13  ;;  %v4716_v44 = vsel %vm4676_vm1, %v4672_v45, 0.0  ;;  %v23477_v45 = vld [vmem:[#allocation23_spill] sm:$0xff] }
 0x209   :  { %6061 = vmatpush.msra.mxu0 %v23469_v6  ;;  %v23472_v6 = vld [vmem:[#allocation6_spill] sm:$0xff]  ;;  %v4713_v21 = vadd.f32 %v4712_v3, %v4711_v60  ;;  %6110 = vmatpush.msra.mxu1 %v23474_v25  ;;  %v6247_v9 = vand.u32 4294901760, %v6246_v46  ;;  %v6258_v23 = vsub.f32 %v16551_v7, %v22981_v20  ;;  %v6269_v37 = vand.u32 4294901760, %v16588_v1  ;;  %v23475_v3 = vld [vmem:[#allocation32_spill] sm:$0xff] }
 0x20a   :  { %23471 = vst [vmem:[#allocation17_spill] sm:$0xff] %v16600_v4  ;;  %v23473_v22 = vand.u32 4294901760, %v23472_v6  ;;  %6236 = vmatpush.msra.mxu3 %v6235_v57  ;;  %v4674_v41 = vmul.f32 %v16580_v53, %v16580_v53  ;;  %v16619_v33 = vsub.f32 %v23467_v18, %v16591_v34  ;;  %v23476_v60 = vand.u32 4294901760, %v23475_v3  ;;  %6155 = vmatpush.msra.mxu2 %v16437_v17 }
 0x20b   :  { %v4715_v25 = vadd.f32 %v4714_v42, %v4713_v21  ;;  %6112 = vmatpush.msra.mxu1 %v23477_v45  ;;  %v6253_v57 = vand.u32 4294901760, %v6252_v54  ;;  %v6264_v46 = vsub.f32 %v16570_v8, %v6263_v48  ;;  %v4675_v6 = vmul.f32 %v16600_v4, %v16600_v4  ;;  %v23480_v21 = vld [vmem:[#allocation24_spill] sm:$0xff] }
 0x20c   :  { %6065 = vmatpush.msra.mxu0 %v23473_v22  ;;  %6242 = vmatpush.msra.mxu3 %v6241_v55  ;;  %v4718_v18 = vsel %vm4676_vm1, %v4673_v36, 0.0  ;;  %v23478_v22 = vld [vmem:[#allocation35_spill] sm:$0xff]  ;;  %v6259_v42 = vand.u32 4294901760, %v6258_v23  ;;  %v6270_v55 = vsub.f32 %v16588_v1, %v6269_v37  ;;  %v4720_v54 = vsel %vm4676_vm1, %v4674_v41, 0.0  ;;  %v23484_v23 = vld [vmem:[#allocation40_spill] sm:$0xff] }
 0x20d   :  { %v23479_v20 = vand.u32 4294901760, %v23478_v22  ;;  %6157 = vmatpush.msra.mxu2 %v16462_v29  ;;  %v4717_v3 = vadd.f32 %v4716_v44, %v4715_v25  ;;  %6114 = vmatpush.msra.mxu1 %v23480_v21  ;;  %v23483_v22 = vld [vmem:[#allocation27_spill] sm:$0xff]  ;;  %v6265_v44 = vand.u32 4294901760, %v6264_v46  ;;  %v23485_v25 = vand.u32 4294901760, %v23484_v23  ;;  %v23486_v21 = vld [vmem:[#allocation29_spill] sm:$0xff] }
 0x20e   :  { %6069 = vmatpush.msra.mxu0 %v23476_v60  ;;  %6248 = vmatpush.msra.mxu3 %v6247_v9  ;;  %v23481_v60 = vld [vmem:[#allocation38_spill] sm:$0xff]  ;;  %v4722_v9 = vsel %vm4676_vm1, %v4675_v6, 0.0  ;;  %v23490_v6 = vld [vmem:[#allocation47_spill] sm:$0xff]  ;;  %v23497_v23 = vld [vmem:[#allocation41_spill] sm:$0xff] }
 0x20f   :  { %v23482_v45 = vand.u32 4294901760, %v23481_v60  ;;  %6159 = vmatpush.msra.mxu2 %v16479_v19  ;;  %v4719_v36 = vadd.f32 %v4718_v18, %v4717_v3  ;;  %6116 = vmatpush.msra.mxu1 %v23483_v22  ;;  %v6271_v60 = vand.u32 4294901760, %v6270_v55  ;;  %v23491_v22 = vand.u32 4294901760, %v23490_v6 }
 0x210   :  { %6073 = vmatpush.msra.mxu0 %v23479_v20  ;;  %v6170_v20 = vand.u32 4294901760, %v16619_v33  ;;  %6254 = vmatpush.msra.mxu3 %v6253_v57  ;;  %v23489_v57 = vld [vmem:[#allocation34_spill] sm:$0xff]  ;;  %v23493_v55 = vand.u32 4294901760, %v16350_v24 }
 0x211   :  { %6161 = vmatpush.msra.mxu2 %v16497_v10  ;;  %v4721_v41 = vadd.f32 %v4720_v54, %v4719_v36  ;;  %6118 = vmatpush.msra.mxu1 %v23486_v21  ;;  %v23494_v36 = vld [vmem:[#allocation36_spill] sm:$0xff]  ;;  %v23501_v21 = vld [vmem:[#allocation46_spill] sm:$0xff] }
 0x212   :  { %6077 = vmatpush.msra.mxu0 %v23482_v45  ;;  %6260 = vmatpush.msra.mxu3 %v6259_v42  ;;  %v23487_v45 = vld [vmem:[#allocation45_spill] sm:$0xff]  ;;  %v6171_v46 = vsub.f32 %v16619_v33, %v6170_v20 }
 0x213   :  { %v23488_v18 = vand.u32 4294901760, %v23487_v45  ;;  %6163 = vmatpush.msra.mxu2 %v16517_v26  ;;  %v4723_v3 = vadd.f32 %v4722_v9, %v4721_v41  ;;  %6120 = vmatpush.msra.mxu1 %v23489_v57  ;;  %v23492_v42 = vld [vmem:[#allocation33_spill] sm:$0xff]  ;;  %v23500_v41 = vld [vmem:[#allocation42_spill] sm:$0xff]  ;;  %v23503_v45 = vld [vmem:[#allocation44_spill] sm:$0xff]  ;;  %v23506_v57 = vand.u32 4294901760, %v16381_v5 }
 0x214   :  { %6081 = vmatpush.msra.mxu0 %v23485_v25  ;;  %6266 = vmatpush.msra.mxu3 %v6265_v44  ;;  %v6172_v54 = vand.u32 4294901760, %v6171_v46  ;;  %v23495_v44 = vld [vmem:[#allocation39_spill] sm:$0xff]  ;;  %v4799_v46 = vld [vmem:[%s22880_s2 + $0x230] sm:$0xff] }
 0x215   :  { %6165 = vmatpush.msra.mxu2 %v16535_v62  ;;  %6122 = vmatpush.msra.mxu1 %v23492_v42  ;;  %v23496_v9 = vand.u32 4294901760, %v23495_v44  ;;  %v23498_v25 = vld [vmem:[#allocation43_spill] sm:$0xff] }
 0x216   :  { %6085 = vmatpush.msra.mxu0 %v23488_v18  ;;  %6272 = vmatpush.msra.mxu3 %v6271_v60  ;;  %v23499_v24 = vand.u32 4294901760, %v23498_v25  ;;  %v23502_v60 = vand.u32 4294901760, %v23501_v21  ;;  %v23504_v18 = vld [vmem:[#allocation48_spill] sm:$0xff] }
 0x217   :  { %4724 = vadd.xlane.f32.xlu0 %v4723_v3  ;;  %6274 = vmatmul.f32.vlgmr.msra.gmra.mxu3 %v16591_v34  ;;  %v23505_v3 = vand.u32 4294901760, %v23504_v18 }
 0x218   :  { %6089 = vmatpush.msra.mxu0 %v23491_v22  ;;  %6441 = vmatpush.msrb.mxu3 %v16203_v31 }
 0x219   :  { %6124 = vmatpush.msra.mxu1 %v23494_v36  ;;  %6167 = vmatpush.msra.mxu2 %v16553_v61 }
 0x21a   :  { %6093 = vmatpush.msra.mxu0 %v23493_v55  ;;  %6173 = vmatmul.f32.vlgmr.msra.gmra.mxu2 %v6172_v54 }
 0x21b   :  { %6095 = vmatmul.f32.vlgmr.msra.gmra.mxu0 %v16029_v56  ;;  %6374 = vmatpush.msrb.mxu2 %v23496_v9  ;;  %v16856_v9 = vand.u32 4294901760, %v4799_v46 }
 0x21c   :  { %6280 = vmatpush.msrb.mxu0 %v23495_v44  ;;  %6443 = vmatpush.msrb.mxu3 %v16237_v38 }
 0x21d   :  { %6126 = vmatpush.msra.mxu1 %v23497_v23  ;;  %6378 = vmatpush.msrb.mxu2 %v23499_v24 }
 0x21e   :  { %6283 = vmatpush.msrb.mxu0 %v23498_v25  ;;  %6445 = vmatpush.msrb.mxu3 %v16278_v15 }
 0x21f   :  { %6128 = vmatpush.msra.mxu1 %v23500_v41  ;;  %6382 = vmatpush.msrb.mxu2 %v23502_v60  ;;  %v4796_v41 = vld [vmem:[%s22880_s2 + $0x218] sm:$0xff] }
 0x220   :  { %6286 = vmatpush.msrb.mxu0 %v23501_v21  ;;  %6447 = vmatpush.msrb.mxu3 %v16301_v58 }
 0x221   :  { %6130 = vmatpush.msra.mxu1 %v23503_v45  ;;  %6386 = vmatpush.msrb.mxu2 %v23505_v3 }
 0x222   :  { %6132 = vmatmul.f32.vlgmr.msra.gmra.mxu1 %v16029_v56  ;;  %6289 = vmatpush.msrb.mxu0 %v23504_v18  ;;  %v4808_v56 = vld [vmem:[%s22880_s2 + $0x278] sm:$0xff]  ;;  %v16885_v18 = vsub.f32 %v4799_v46, %v16856_v9 }
 0x223   :  { %6333 = vmatpush.msrb.mxu1 %v16203_v31  ;;  %6449 = vmatpush.msrb.mxu3 %v16335_v16  ;;  %v23507_v31 = vand.u32 4294901760, %v16468_v28 }
 0x224   :  { %6292 = vmatpush.msrb.mxu0 %v16381_v5  ;;  %6390 = vmatpush.msrb.mxu2 %v23506_v57  ;;  %v4824_v57 = vld [vmem:[%s22880_s2 + $0x2f8] sm:$0xff] }
 0x225   :  { %6335 = vmatpush.msrb.mxu1 %v16237_v38  ;;  %6451 = vmatpush.msrb.mxu3 %v16362_v39  ;;  %v4806_v38 = vld [vmem:[%s22880_s2 + $0x268] sm:$0xff] }
 0x226   :  { %6295 = vmatpush.msrb.mxu0 %v16401_v27  ;;  %6394 = vmatpush.msrb.mxu2 %v6209_v12  ;;  %v16751_v5 = vand.u32 4294901760, %v4806_v38  ;;  %v23510_v27 = vand.u32 4294901760, %v16551_v7 }
 0x227   :  { %6337 = vmatpush.msrb.mxu1 %v16278_v15  ;;  %6453 = vmatpush.msrb.mxu3 %v16373_v11  ;;  %v4807_v15 = vld [vmem:[%s22880_s2 + $0x270] sm:$0xff] }
 0x228   :  { %6298 = vmatpush.msrb.mxu0 %v16413_v51  ;;  %6398 = vmatpush.msrb.mxu2 %v6215_v52  ;;  %v23509_v52 = vand.u32 4294901760, %v16515_v43  ;;  %v4804_v51 = vld [vmem:[%s22880_s2 + $0x258] sm:$0xff]  ;;  %v16775_v12 = vsub.f32 %v4806_v38, %v16751_v5 }
 0x229   :  { %6339 = vmatpush.msrb.mxu1 %v16301_v58  ;;  %6455 = vmatpush.msrb.mxu3 %v16390_v0  ;;  %v23508_v58 = vand.u32 4294901760, %v16495_v63 }
 0x22a   :  { %6301 = vmatpush.msrb.mxu0 %v16435_v35  ;;  %6402 = vmatpush.msrb.mxu2 %v6221_v47  ;;  %v4802_v47 = vld [vmem:[%s22880_s2 + $0x248] sm:$0xff] }
 0x22b   :  { %6341 = vmatpush.msrb.mxu1 %v16335_v16  ;;  %6457 = vmatpush.msrb.mxu3 %v16415_v13  ;;  %v16738_v16 = vand.u32 4294901760, %v4807_v15 }
 0x22c   :  { %6304 = vmatpush.msrb.mxu0 %v16450_v59  ;;  %6406 = vmatpush.msrb.mxu2 %v6227_v2 }
 0x22d   :  { %6343 = vmatpush.msrb.mxu1 %v16362_v39  ;;  %6459 = vmatpush.msrb.mxu3 %v16437_v17  ;;  %v16728_v39 = vand.u32 4294901760, %v4808_v56 }
 0x22e   :  { %6307 = vmatpush.msrb.mxu0 %v16468_v28  ;;  %6410 = vmatpush.msrb.mxu2 %v23507_v31  ;;  %v16895_v31 = vand.u32 4294901760, %v4796_v41 }
 0x22f   :  { %6345 = vmatpush.msrb.mxu1 %v16373_v11  ;;  %6461 = vmatpush.msrb.mxu3 %v16462_v29  ;;  %v16749_v11 = vsub.f32 %v4808_v56, %v16728_v39 }
 0x230   :  { %6310 = vmatpush.msrb.mxu0 %v16495_v63  ;;  %6414 = vmatpush.msrb.mxu2 %v23508_v58  ;;  %v4801_v63 = vld [vmem:[%s22880_s2 + $0x240] sm:$0xff]  ;;  %23511 = vst [vmem:[#allocation28_spill] sm:$0xff] %v16895_v31  ;;  %v16931_v46 = vsub.f32 %v4796_v41, %v16895_v31 }
 0x231   :  { %6347 = vmatpush.msrb.mxu1 %v16390_v0  ;;  %6463 = vmatpush.msrb.mxu3 %v16479_v19  ;;  %v4805_v0 = vld [vmem:[%s22880_s2 + $0x260] sm:$0xff]  ;;  %v22993_v59 = vand.u32 4294901760, %v16749_v11 }
 0x232   :  { %6313 = vmatpush.msrb.mxu0 %v16515_v43  ;;  %6418 = vmatpush.msrb.mxu2 %v23509_v52  ;;  %v16764_v35 = vand.u32 4294901760, %v4805_v0  ;;  %v4823_v52 = vld [vmem:[%s22880_s2 + $0x2f0] sm:$0xff] }
 0x233   :  { %6349 = vmatpush.msrb.mxu1 %v16415_v13  ;;  %6465 = vmatpush.msrb.mxu3 %v16497_v10  ;;  %v16762_v13 = vsub.f32 %v4807_v15, %v16738_v16 }
 0x234   :  { %6316 = vmatpush.msrb.mxu0 %v16533_v32  ;;  %6422 = vmatpush.msrb.mxu2 %v6251_v40  ;;  %v16788_v28 = vsub.f32 %v4805_v0, %v16764_v35  ;;  %v22991_v32 = vand.u32 4294901760, %v16775_v12  ;;  %v4800_v40 = vld [vmem:[%s22880_s2 + $0x238] sm:$0xff] }
 0x235   :  { %6351 = vmatpush.msrb.mxu1 %v16437_v17  ;;  %6467 = vmatpush.msrb.mxu3 %v16517_v26  ;;  %v4803_v17 = vld [vmem:[%s22880_s2 + $0x250] sm:$0xff] }
 0x236   :  { %6319 = vmatpush.msrb.mxu0 %v16551_v7  ;;  %6426 = vmatpush.msrb.mxu2 %v23510_v27  ;;  %v16791_v2 = vand.u32 4294901760, %v4803_v17  ;;  %v16808_v7 = vand.u32 4294901760, %v4802_v47  ;;  %v6533_v6 = vsub.f32 %v16775_v12, %v22991_v32  ;;  %v16915_v27 = vand.u32 4294901760, %v4824_v57 }
 0x237   :  { %6353 = vmatpush.msrb.mxu1 %v16462_v29  ;;  %6469 = vmatpush.msrb.mxu3 %v16535_v62  ;;  %v16778_v29 = vand.u32 4294901760, %v4804_v51 }
 0x238   :  { %6322 = vmatpush.msrb.mxu0 %v16570_v8  ;;  %6430 = vmatpush.msrb.mxu2 %v6263_v48  ;;  %v16815_v8 = vand.u32 4294901760, %v4801_v63  ;;  %v22989_v48 = vand.u32 4294901760, %v16788_v28  ;;  %v16839_v22 = vsub.f32 %v4802_v47, %v16808_v7  ;;  %v6534_v25 = vand.u32 4294901760, %v6533_v6 }
 0x239   :  { %6355 = vmatpush.msrb.mxu1 %v16479_v19  ;;  %6471 = vmatpush.msrb.mxu3 %v16553_v61  ;;  %v22992_v19 = vand.u32 4294901760, %v16762_v13  ;;  %v16805_v43 = vsub.f32 %v4804_v51, %v16778_v29  ;;  %v4795_v51 = vld [vmem:[%s22880_s2 + $0x210] sm:$0xff]  ;;  %v16936_v6 = vand.u32 4294901760, %v4823_v52  ;;  %v16951_v41 = vsub.f32 %v4824_v57, %v16915_v27 }
 0x23a   :  { %6325 = vmatpush.msrb.mxu0 %v16588_v1  ;;  %6473 = vmatmul.f32.vlgmr.msrb.gmra.mxu3 %v16591_v34  ;;  %v16845_v55 = vsub.f32 %v4801_v63, %v16815_v8  ;;  %v6539_v36 = vsub.f32 %v16788_v28, %v22989_v48  ;;  %v22984_v63 = vand.u32 4294901760, %v16885_v18  ;;  %v4819_v48 = vld [vmem:[%s22880_s2 + $0x2d0] sm:$0xff] }
 0x23b   :  { %6357 = vmatpush.msrb.mxu1 %v16497_v10  ;;  %6674 = vmatpush.msra.mxu3 %v16728_v39  ;;  %v6521_v10 = vsub.f32 %v16749_v11, %v22993_v59  ;;  %v6527_v1 = vsub.f32 %v16762_v13, %v22992_v19  ;;  %v22988_v42 = vand.u32 4294901760, %v16805_v43  ;;  %23514 = vst [vmem:[#allocation19_spill] sm:$0xff] %v16951_v41 }
 0x23c   :  { %6434 = vmatpush.msrb.mxu2 %v6269_v37  ;;  %6328 = vmatmul.f32.vlgmr.msrb.gmra.mxu0 %v16619_v33  ;;  %v16828_v37 = vand.u32 4294901760, %v4800_v40  ;;  %v22985_v33 = vand.u32 4294901760, %v16839_v22  ;;  %v22983_v21 = vand.u32 4294901760, %v16845_v55  ;;  %v6540_v60 = vand.u32 4294901760, %v6539_v36 }
 0x23d   :  { %6436 = vmatmul.f32.vlgmr.msrb.gmra.mxu2 %v16591_v34  ;;  %6478 = vmatpush.msra.mxu0 %v16728_v39  ;;  %v16823_v34 = vsub.f32 %v4803_v17, %v16791_v2  ;;  %v6528_v54 = vand.u32 4294901760, %v6527_v1  ;;  %v6545_v24 = vsub.f32 %v16805_v43, %v22988_v42  ;;  %v16942_v36 = vand.u32 4294901760, %v4795_v51 }
 0x23e   :  { %6621 = vmatpush.msra.mxu2 %v16749_v11  ;;  %6676 = vmatpush.msra.mxu3 %v16738_v16  ;;  %v16862_v23 = vsub.f32 %v4800_v40, %v16828_v37  ;;  %v6557_v58 = vsub.f32 %v16839_v22, %v22985_v33  ;;  %v6563_v0 = vsub.f32 %v16845_v55, %v22983_v21 }
 0x23f   :  { %6359 = vmatpush.msrb.mxu1 %v16517_v26  ;;  %6480 = vmatpush.msra.mxu0 %v16738_v16  ;;  %v6522_v26 = vand.u32 4294901760, %v6521_v10  ;;  %v22986_v44 = vand.u32 4294901760, %v16823_v34  ;;  %v6546_v15 = vand.u32 4294901760, %v6545_v24  ;;  %v23512_v10 = vld [vmem:[#allocation7_spill] sm:$0xff]  ;;  %23513 = vst [vmem:[#allocation26_spill] sm:$0xff] %v16942_v36  ;;  %v16973_v21 = vsub.f32 %v4823_v52, %v16936_v6 }
 0x240   :  { %6624 = vmatpush.msra.mxu2 %v16762_v13  ;;  %6678 = vmatpush.msra.mxu3 %v16751_v5  ;;  %v22982_v56 = vand.u32 4294901760, %v16862_v23  ;;  %v16923_v40 = vand.u32 4294901760, %v23512_v10  ;;  %v4793_v24 = vld [vmem:[%s22880_s2 + $0x200] sm:$0xff] }
 0x241   :  { %6361 = vmatpush.msrb.mxu1 %v16535_v62  ;;  %6482 = vmatpush.msra.mxu0 %v16751_v5  ;;  %v4798_v62 = vld [vmem:[%s22880_s2 + $0x228] sm:$0xff]  ;;  %v6551_v45 = vsub.f32 %v16823_v34, %v22986_v44  ;;  %23516 = vst [vmem:[#allocation30_spill] sm:$0xff] %v16973_v21  ;;  %v16982_v33 = vand.u32 4294901760, %v4793_v24  ;;  %v23519_v14 = vand.u32 4294901760, %v16973_v21 }
 0x242   :  { %6627 = vmatpush.msra.mxu2 %v16775_v12  ;;  %6680 = vmatpush.msra.mxu3 %v16764_v35  ;;  %v6569_v1 = vsub.f32 %v16862_v23, %v22982_v56  ;;  %v16967_v57 = vsub.f32 %v23512_v10, %v16923_v40  ;;  %v22994_v56 = vand.u32 4294901760, %v16931_v46  ;;  %v16980_v10 = vsub.f32 %v4795_v51, %v16942_v36 }
 0x243   :  { %6363 = vmatpush.msrb.mxu1 %v16553_v61  ;;  %6484 = vmatpush.msra.mxu0 %v16764_v35  ;;  %v4797_v61 = vld [vmem:[%s22880_s2 + $0x220] sm:$0xff]  ;;  %v6552_v17 = vand.u32 4294901760, %v6551_v45  ;;  %v6575_v45 = vsub.f32 %v16885_v18, %v22984_v63  ;;  %v17019_v19 = vsub.f32 %v4793_v24, %v16982_v33 }
 0x244   :  { %6367 = vmatmul.f32.vlgmr.msrb.gmra.mxu1 %v6170_v20  ;;  %6630 = vmatpush.msra.mxu2 %v16788_v28  ;;  %v16872_v20 = vand.u32 4294901760, %v4798_v62  ;;  %v16887_v3 = vand.u32 4294901760, %v4797_v61 }
 0x245   :  { %6523 = vmatpush.msra.mxu1 %v6522_v26  ;;  %6682 = vmatpush.msra.mxu3 %v16778_v29  ;;  %v4794_v26 = vld [vmem:[%s22880_s2 + $0x208] sm:$0xff] }
 0x246   :  { %6486 = vmatpush.msra.mxu0 %v16778_v29  ;;  %6633 = vmatpush.msra.mxu2 %v16805_v43  ;;  %v16902_v38 = vsub.f32 %v4798_v62, %v16872_v20  ;;  %v16919_v47 = vsub.f32 %v4797_v61, %v16887_v3  ;;  %v4822_v62 = vld [vmem:[%s22880_s2 + $0x2e8] sm:$0xff] }
 0x247   :  { %6529 = vmatpush.msra.mxu1 %v6528_v54  ;;  %6684 = vmatpush.msra.mxu3 %v16791_v2  ;;  %v6558_v54 = vand.u32 4294901760, %v6557_v58 }
 0x248   :  { %6488 = vmatpush.msra.mxu0 %v16791_v2  ;;  %6636 = vmatpush.msra.mxu2 %v16823_v34  ;;  %v22987_v61 = vand.u32 4294901760, %v16902_v38  ;;  %v22990_v58 = vand.u32 4294901760, %v16919_v47 }
 0x249   :  { %6535 = vmatpush.msra.mxu1 %v6534_v25  ;;  %6686 = vmatpush.msra.mxu3 %v16808_v7  ;;  %v6564_v25 = vand.u32 4294901760, %v6563_v0  ;;  %v16963_v0 = vand.u32 4294901760, %v4822_v62 }
 0x24a   :  { %6490 = vmatpush.msra.mxu0 %v16808_v7  ;;  %6639 = vmatpush.msra.mxu2 %v16839_v22  ;;  %v6581_v63 = vsub.f32 %v16902_v38, %v22987_v61  ;;  %v6587_v51 = vsub.f32 %v16919_v47, %v22990_v58 }
 0x24b   :  { %6541 = vmatpush.msra.mxu1 %v6540_v60  ;;  %6688 = vmatpush.msra.mxu3 %v16815_v8  ;;  %v4821_v60 = vld [vmem:[%s22880_s2 + $0x2e0] sm:$0xff]  ;;  %v17000_v42 = vsub.f32 %v4822_v62, %v16963_v0  ;;  %v4818_v62 = vld [vmem:[%s22880_s2 + $0x2c8] sm:$0xff] }
 0x24c   :  { %6492 = vmatpush.msra.mxu0 %v16815_v8  ;;  %6642 = vmatpush.msra.mxu2 %v16845_v55  ;;  %v16984_v44 = vand.u32 4294901760, %v4821_v60  ;;  %v6582_v32 = vand.u32 4294901760, %v6581_v63  ;;  %v4817_v63 = vld [vmem:[%s22880_s2 + $0x2c0] sm:$0xff]  ;;  %v6588_v24 = vand.u32 4294901760, %v6587_v51  ;;  %v17038_v4 = vand.u32 4294901760, %v4818_v62 }
 0x24d   :  { %6547 = vmatpush.msra.mxu1 %v6546_v15  ;;  %6690 = vmatpush.msra.mxu3 %v16828_v37  ;;  %v16960_v15 = vand.u32 4294901760, %v4794_v26  ;;  %23517 = vst [vmem:[#allocation20_spill] sm:$0xff] %v17000_v42  ;;  %v23520_v51 = vand.u32 4294901760, %v16980_v10  ;;  %v17055_v49 = vand.u32 4294901760, %v4817_v63 }
 0x24e   :  { %6494 = vmatpush.msra.mxu0 %v16828_v37  ;;  %6645 = vmatpush.msra.mxu2 %v16862_v23  ;;  %v17023_v52 = vsub.f32 %v4821_v60, %v16984_v44 }
 0x24f   :  { %6553 = vmatpush.msra.mxu1 %v6552_v17  ;;  %23515 = vst [vmem:[#allocation5_spill] sm:$0xff] %v16960_v15  ;;  %6692 = vmatpush.msra.mxu3 %v16856_v9  ;;  %v6570_v17 = vand.u32 4294901760, %v6569_v1  ;;  %v4820_v1 = vld [vmem:[%s22880_s2 + $0x2d8] sm:$0xff]  ;;  %v16997_v61 = vsub.f32 %v4794_v26, %v16960_v15  ;;  %v6599_v59 = vsub.f32 %v16980_v10, %v23520_v51  ;;  %v23521_v51 = vand.u32 4294901760, %v17000_v42 }
 0x250   :  { %6496 = vmatpush.msra.mxu0 %v16856_v9  ;;  %6648 = vmatpush.msra.mxu2 %v16885_v18  ;;  %v17012_v58 = vand.u32 4294901760, %v4820_v1 }
 0x251   :  { %6559 = vmatpush.msra.mxu1 %v6558_v54  ;;  %6694 = vmatpush.msra.mxu3 %v16872_v20  ;;  %v6576_v54 = vand.u32 4294901760, %v6575_v45  ;;  %v6593_v45 = vsub.f32 %v16931_v46, %v22994_v56  ;;  %v23518_v56 = vand.u32 4294901760, %v16951_v41  ;;  %v23522_v60 = vand.u32 4294901760, %v16997_v61 }
 0x252   :  { %6498 = vmatpush.msra.mxu0 %v16872_v20  ;;  %6651 = vmatpush.msra.mxu2 %v16902_v38  ;;  %v17047_v50 = vsub.f32 %v4820_v1, %v17012_v58 }
 0x253   :  { %6565 = vmatpush.msra.mxu1 %v6564_v25  ;;  %6696 = vmatpush.msra.mxu3 %v16887_v3  ;;  %v6511_v25 = vand.u32 4294901760, %v16967_v57  ;;  %v6862_v26 = vsub.f32 %v16951_v41, %v23518_v56  ;;  %v6594_v56 = vand.u32 4294901760, %v6593_v45  ;;  %v6874_v45 = vsub.f32 %v17000_v42, %v23521_v51 }
 0x254   :  { %6500 = vmatpush.msra.mxu0 %v16887_v3  ;;  %6654 = vmatpush.msra.mxu2 %v16919_v47  ;;  %v6605_v30 = vsub.f32 %v16997_v61, %v23522_v60  ;;  %v6600_v60 = vand.u32 4294901760, %v6599_v59 }
 0x255   :  { %6571 = vmatpush.msra.mxu1 %v6570_v17  ;;  %6698 = vmatpush.msra.mxu3 %v16895_v31  ;;  %v17030_v17 = vand.u32 4294901760, %v4819_v48  ;;  %v6512_v53 = vsub.f32 %v16967_v57, %v6511_v25 }
 0x256   :  { %6502 = vmatpush.msra.mxu0 %v16895_v31  ;;  %6657 = vmatpush.msra.mxu2 %v16931_v46  ;;  %v17090_v31 = vsub.f32 %v4817_v63, %v17055_v49  ;;  %v4813_v63 = vld [vmem:[%s22880_s2 + $0x2a0] sm:$0xff] }
 0x257   :  { %6577 = vmatpush.msra.mxu1 %v6576_v54  ;;  %6700 = vmatpush.msra.mxu3 %v16942_v36  ;;  %v6868_v54 = vsub.f32 %v16973_v21, %v23519_v14  ;;  %v4816_v14 = vld [vmem:[%s22880_s2 + $0x2b8] sm:$0xff]  ;;  %v17063_v1 = vsub.f32 %v4819_v48, %v17030_v17  ;;  %v17073_v21 = vsub.f32 %v4818_v62, %v17038_v4  ;;  %v6513_v48 = vand.u32 4294901760, %v6512_v53  ;;  %v4814_v53 = vld [vmem:[%s22880_s2 + $0x2a8] sm:$0xff] }
 0x258   :  { %6504 = vmatpush.msra.mxu0 %v16942_v36  ;;  %6660 = vmatpush.msra.mxu2 %v16980_v10  ;;  %v17081_v51 = vand.u32 4294901760, %v4816_v14  ;;  %v23523_v62 = vand.u32 4294901760, %v17023_v52  ;;  %v23524_v36 = vand.u32 4294901760, %v17019_v19 }
 0x259   :  { %6583 = vmatpush.msra.mxu1 %v6582_v32  ;;  %6702 = vmatpush.msra.mxu3 %v16960_v15  ;;  %v6863_v32 = vand.u32 4294901760, %v6862_v26  ;;  %v4815_v26 = vld [vmem:[%s22880_s2 + $0x2b0] sm:$0xff]  ;;  %v23016_v59 = vand.u32 4294901760, %v17063_v1 }
 0x25a   :  { %6506 = vmatpush.msra.mxu0 %v16960_v15  ;;  %6663 = vmatpush.msra.mxu2 %v16997_v61  ;;  %v23017_v15 = vand.u32 4294901760, %v17047_v50  ;;  %v6880_v42 = vsub.f32 %v17023_v52, %v23523_v62  ;;  %v6611_v41 = vsub.f32 %v17019_v19, %v23524_v36  ;;  %v23525_v62 = vand.u32 4294901760, %v16749_v11  ;;  %v4812_v11 = vld [vmem:[%s22880_s2 + $0x298] sm:$0xff] }
 0x25b   :  { %6589 = vmatpush.msra.mxu1 %v6588_v24  ;;  %6704 = vmatpush.msra.mxu3 %v16982_v33  ;;  %v6869_v24 = vand.u32 4294901760, %v6868_v54  ;;  %v6606_v54 = vand.u32 4294901760, %v6605_v30  ;;  %v23018_v36 = vand.u32 4294901760, %v17090_v31 }
 0x25c   :  { %6508 = vmatpush.msra.mxu0 %v16982_v33  ;;  %6708 = vmatmul.f32.vlgmr.msra.gmra.mxu3 %v6511_v25  ;;  %v17097_v25 = vand.u32 4294901760, %v4815_v26  ;;  %v6881_v30 = vand.u32 4294901760, %v6880_v42  ;;  %v17128_v42 = vand.u32 4294901760, %v4813_v63 }
 0x25d   :  { %6595 = vmatpush.msra.mxu1 %v6594_v56  ;;  %6864 = vmatpush.msrb.mxu3 %v6863_v32  ;;  %v6875_v56 = vand.u32 4294901760, %v6874_v45  ;;  %v6886_v32 = vsub.f32 %v17047_v50, %v23017_v15  ;;  %v6612_v45 = vand.u32 4294901760, %v6611_v41  ;;  %v23527_v41 = vand.u32 4294901760, %v17073_v21 }
 0x25e   :  { %6666 = vmatpush.msra.mxu2 %v17019_v19  ;;  %6514 = vmatmul.f32.vlgmr.msra.gmra.mxu0 %v6513_v48  ;;  %v17111_v48 = vsub.f32 %v4816_v14, %v17081_v51  ;;  %v6892_v14 = vsub.f32 %v17063_v1, %v23016_v59 }
 0x25f   :  { %6669 = vmatmul.f32.vlgmr.msra.gmra.mxu2 %v16967_v57  ;;  %6715 = vmatpush.msrb.mxu0 %v23525_v62  ;;  %v17113_v57 = vand.u32 4294901760, %v4814_v53  ;;  %v23526_v62 = vand.u32 4294901760, %v16762_v13  ;;  %v4811_v13 = vld [vmem:[%s22880_s2 + $0x290] sm:$0xff]  ;;  %v6887_v59 = vand.u32 4294901760, %v6886_v32  ;;  %v23529_v32 = vand.u32 4294901760, %v16788_v28 }
 0x260   :  { %6819 = vmatpush.msrb.mxu2 %v16915_v27  ;;  %6870 = vmatpush.msrb.mxu3 %v6869_v24  ;;  %v17126_v24 = vsub.f32 %v4815_v26, %v17097_v25  ;;  %v23019_v26 = vand.u32 4294901760, %v17111_v48  ;;  %v23530_v28 = vand.u32 4294901760, %v16805_v43  ;;  %v23531_v43 = vand.u32 4294901760, %v16823_v34 }
 0x261   :  { %6601 = vmatpush.msra.mxu1 %v6600_v60  ;;  %6719 = vmatpush.msrb.mxu0 %v23526_v62  ;;  %v6898_v60 = vsub.f32 %v17073_v21, %v23527_v41  ;;  %v23528_v62 = vand.u32 4294901760, %v16775_v12  ;;  %v17141_v15 = vsub.f32 %v4814_v53, %v17113_v57  ;;  %v4810_v12 = vld [vmem:[%s22880_s2 + $0x288] sm:$0xff]  ;;  %v6893_v41 = vand.u32 4294901760, %v6892_v14 }
 0x262   :  { %6821 = vmatpush.msrb.mxu2 %v16936_v6  ;;  %6876 = vmatpush.msrb.mxu3 %v6875_v56  ;;  %v17143_v56 = vand.u32 4294901760, %v4812_v11  ;;  %v6915_v53 = vand.u32 4294901760, %v17126_v24 }
 0x263   :  { %6607 = vmatpush.msra.mxu1 %v6606_v54  ;;  %6723 = vmatpush.msrb.mxu0 %v23528_v62  ;;  %v6904_v54 = vsub.f32 %v17090_v31, %v23018_v36  ;;  %v17156_v62 = vsub.f32 %v4813_v63, %v17128_v42  ;;  %v4809_v36 = vld [vmem:[%s22880_s2 + $0x280] sm:$0xff]  ;;  %v6910_v63 = vsub.f32 %v17111_v48, %v23019_v26  ;;  %v6921_v14 = vand.u32 4294901760, %v17141_v15 }
 0x264   :  { %6823 = vmatpush.msrb.mxu2 %v16963_v0  ;;  %6882 = vmatpush.msrb.mxu3 %v6881_v30  ;;  %v17158_v30 = vand.u32 4294901760, %v4811_v13  ;;  %v17187_v26 = vand.u32 4294901760, %v4809_v36 }
 0x265   :  { %6613 = vmatpush.msra.mxu1 %v6612_v45  ;;  %6727 = vmatpush.msrb.mxu0 %v23529_v32  ;;  %v6899_v45 = vand.u32 4294901760, %v6898_v60  ;;  %v17172_v32 = vsub.f32 %v4812_v11, %v17143_v56  ;;  %v6905_v60 = vand.u32 4294901760, %v6904_v54  ;;  %v6911_v34 = vand.u32 4294901760, %v6910_v63 }
 0x266   :  { %6615 = vmatmul.f32.vlgmr.msra.gmra.mxu1 %v16923_v40  ;;  %6825 = vmatpush.msrb.mxu2 %v16984_v44  ;;  %v17185_v11 = vsub.f32 %v4811_v13, %v17158_v30  ;;  %v6922_v54 = vsub.f32 %v17141_v15, %v6921_v14 }
 0x267   :  { %6782 = vmatpush.msrb.mxu1 %v16728_v39  ;;  %6888 = vmatpush.msrb.mxu3 %v6887_v59  ;;  %v17174_v39 = vand.u32 4294901760, %v4810_v12  ;;  %v6916_v59 = vsub.f32 %v17126_v24, %v6915_v53 }
 0x268   :  { %6731 = vmatpush.msrb.mxu0 %v23530_v28  ;;  %6827 = vmatpush.msrb.mxu2 %v17012_v58  ;;  %v6927_v28 = vand.u32 4294901760, %v17156_v62  ;;  %v6939_v63 = vand.u32 4294901760, %v17185_v11 }
 0x269   :  { %6784 = vmatpush.msrb.mxu1 %v16738_v16  ;;  %6894 = vmatpush.msrb.mxu3 %v6893_v41  ;;  %v23532_v16 = vand.u32 4294901760, %v16839_v22  ;;  %v6933_v41 = vand.u32 4294901760, %v17172_v32  ;;  %v17198_v13 = vsub.f32 %v4810_v12, %v17174_v39  ;;  %v6917_v22 = vand.u32 4294901760, %v6916_v59  ;;  %v23534_v12 = vld [vmem:[#allocation9_spill] sm:$0xff] }
 0x26a   :  { %6735 = vmatpush.msrb.mxu0 %v23531_v43  ;;  %6829 = vmatpush.msrb.mxu2 %v17030_v17  ;;  %v17209_v43 = vsub.f32 %v4809_v36, %v17187_v26 }
 0x26b   :  { %6786 = vmatpush.msrb.mxu1 %v16751_v5  ;;  %6900 = vmatpush.msrb.mxu3 %v6899_v45  ;;  %v23533_v5 = vand.u32 4294901760, %v16845_v55  ;;  %v6928_v45 = vsub.f32 %v17156_v62, %v6927_v28  ;;  %v6923_v55 = vand.u32 4294901760, %v6922_v54  ;;  %v6945_v59 = vand.u32 4294901760, %v17198_v13 }
 0x26c   :  { %6739 = vmatpush.msrb.mxu0 %v23532_v16  ;;  %6831 = vmatpush.msrb.mxu2 %v17038_v4  ;;  %v17212_v16 = vand.u32 4294901760, %v23534_v12 }
 0x26d   :  { %6788 = vmatpush.msrb.mxu1 %v16764_v35  ;;  %6906 = vmatpush.msrb.mxu3 %v6905_v60  ;;  %v23535_v35 = vand.u32 4294901760, %v16862_v23  ;;  %v6934_v60 = vsub.f32 %v17172_v32, %v6933_v41  ;;  %v6929_v36 = vand.u32 4294901760, %v6928_v45  ;;  %v6940_v23 = vsub.f32 %v17185_v11, %v6939_v63 }
 0x26e   :  { %6743 = vmatpush.msrb.mxu0 %v23533_v5  ;;  %6833 = vmatpush.msrb.mxu2 %v17055_v49  ;;  %v17232_v54 = vsub.f32 %v23534_v12, %v17212_v16  ;;  %v6946_v5 = vsub.f32 %v17198_v13, %v6945_v59 }
 0x26f   :  { %6790 = vmatpush.msrb.mxu1 %v16778_v29  ;;  %6912 = vmatpush.msrb.mxu3 %v6911_v34  ;;  %v23536_v29 = vand.u32 4294901760, %v16885_v18  ;;  %v6951_v34 = vand.u32 4294901760, %v17209_v43  ;;  %v6935_v18 = vand.u32 4294901760, %v6934_v60 }
 0x270   :  { %6747 = vmatpush.msrb.mxu0 %v23535_v35  ;;  %6835 = vmatpush.msrb.mxu2 %v17081_v51  ;;  %v6947_v12 = vand.u32 4294901760, %v6946_v5 }
 0x271   :  { %6792 = vmatpush.msrb.mxu1 %v16791_v2  ;;  %6918 = vmatpush.msrb.mxu3 %v6917_v22  ;;  %v23537_v2 = vand.u32 4294901760, %v16902_v38  ;;  %v23538_v22 = vand.u32 4294901760, %v16919_v47  ;;  %v6952_v45 = vsub.f32 %v17209_v43, %v6951_v34  ;;  %v6852_v38 = vand.u32 4294901760, %v17232_v54 }
 0x272   :  { %6751 = vmatpush.msrb.mxu0 %v23536_v29  ;;  %6837 = vmatpush.msrb.mxu2 %v17097_v25  ;;  %v23540_v47 = vand.u32 4294901760, %v16980_v10  ;;  %v23549_v29 = vld [vmem:[#allocation5_spill] sm:$0xff] }
 0x273   :  { %6794 = vmatpush.msrb.mxu1 %v16808_v7  ;;  %6924 = vmatpush.msrb.mxu3 %v6923_v55  ;;  %v6941_v7 = vand.u32 4294901760, %v6940_v23  ;;  %v6953_v35 = vand.u32 4294901760, %v6952_v45  ;;  %v23547_v55 = vld [vmem:[#allocation30_spill] sm:$0xff] }
 0x274   :  { %6755 = vmatpush.msrb.mxu0 %v23537_v2  ;;  %6839 = vmatpush.msrb.mxu2 %v17113_v57  ;;  %v23548_v60 = vand.u32 4294901760, %v23547_v55  ;;  %v23552_v2 = vand.u32 4294901760, %v17023_v52 }
 0x275   :  { %6796 = vmatpush.msrb.mxu1 %v16815_v8  ;;  %6930 = vmatpush.msrb.mxu3 %v6929_v36  ;;  %v23539_v8 = vand.u32 4294901760, %v16931_v46  ;;  %v23541_v46 = vand.u32 4294901760, %v16997_v61  ;;  %v23544_v61 = vld [vmem:[#allocation19_spill] sm:$0xff]  ;;  %v23550_v36 = vld [vmem:[#allocation20_spill] sm:$0xff] }
 0x276   :  { %6759 = vmatpush.msrb.mxu0 %v23538_v22  ;;  %6841 = vmatpush.msrb.mxu2 %v17128_v42  ;;  %v23551_v23 = vand.u32 4294901760, %v23550_v36 }
 0x277   :  { %6798 = vmatpush.msrb.mxu1 %v16828_v37  ;;  %6936 = vmatpush.msrb.mxu3 %v6935_v18  ;;  %v6853_v37 = vsub.f32 %v17232_v54, %v6852_v38  ;;  %v23553_v18 = vand.u32 4294901760, %v17047_v50 }
 0x278   :  { %6763 = vmatpush.msrb.mxu0 %v23539_v8  ;;  %6843 = vmatpush.msrb.mxu2 %v17143_v56 }
 0x279   :  { %6800 = vmatpush.msrb.mxu1 %v16856_v9  ;;  %6942 = vmatpush.msrb.mxu3 %v6941_v7  ;;  %v23542_v9 = vand.u32 4294901760, %v17019_v19  ;;  %v6854_v10 = vand.u32 4294901760, %v6853_v37  ;;  %v23546_v19 = vld [vmem:[#allocation26_spill] sm:$0xff] }
 0x27a   :  { %6767 = vmatpush.msrb.mxu0 %v23540_v47  ;;  %6845 = vmatpush.msrb.mxu2 %v17158_v30 }
 0x27b   :  { %6802 = vmatpush.msrb.mxu1 %v16872_v20  ;;  %6948 = vmatpush.msrb.mxu3 %v6947_v12  ;;  %v23543_v20 = vld [vmem:[#allocation28_spill] sm:$0xff] }
 0x27c   :  { %6771 = vmatpush.msrb.mxu0 %v23541_v46  ;;  %6847 = vmatpush.msrb.mxu2 %v17174_v39 }
 0x27d   :  { %6804 = vmatpush.msrb.mxu1 %v16887_v3  ;;  %6954 = vmatpush.msrb.mxu3 %v6953_v35  ;;  %v23545_v3 = vand.u32 4294901760, %v23544_v61 }
 0x27e   :  { %6775 = vmatpush.msrb.mxu0 %v23542_v9  ;;  %6956 = vmatmul.f32.vlgmr.msrb.gmra.mxu3 %v17212_v16 }
 0x27f   :  { %6806 = vmatpush.msrb.mxu1 %v23543_v20  ;;  %7123 = vmatpush.msra.mxu3 %v16915_v27 }
 0x280   :  { %6849 = vmatpush.msrb.mxu2 %v17187_v26  ;;  %6777 = vmatmul.f32.vlgmr.msrb.gmra.mxu0 %v16923_v40 }
 0x281   :  { %6855 = vmatmul.f32.vlgmr.msrb.gmra.mxu2 %v6854_v10  ;;  %6962 = vmatpush.msra.mxu0 %v23544_v61  ;;  %v4828_v10 = vld [vmem:[%s22880_s2 + $0x318] sm:$0xff] }
 0x282   :  { %7056 = vmatpush.msra.mxu2 %v23545_v3  ;;  %7125 = vmatpush.msra.mxu3 %v16936_v6 }
 0x283   :  { %6808 = vmatpush.msrb.mxu1 %v23546_v19  ;;  %6965 = vmatpush.msra.mxu0 %v23547_v55 }
 0x284   :  { %7060 = vmatpush.msra.mxu2 %v23548_v60  ;;  %7127 = vmatpush.msra.mxu3 %v16963_v0 }
 0x285   :  { %6810 = vmatpush.msrb.mxu1 %v23549_v29  ;;  %6968 = vmatpush.msra.mxu0 %v23550_v36  ;;  %v4856_v29 = vld [vmem:[%s22880_s2 + $0x3f8] sm:$0xff] }
 0x286   :  { %7064 = vmatpush.msra.mxu2 %v23551_v23  ;;  %7129 = vmatpush.msra.mxu3 %v16984_v44  ;;  %v17504_v23 = vand.u32 4294901760, %v4828_v10 }
 0x287   :  { %6812 = vmatpush.msrb.mxu1 %v16982_v33  ;;  %6971 = vmatpush.msra.mxu0 %v17023_v52  ;;  %v4836_v52 = vld [vmem:[%s22880_s2 + $0x358] sm:$0xff] }
 0x288   :  { %6814 = vmatmul.f32.vlgmr.msrb.gmra.mxu1 %v16923_v40  ;;  %7068 = vmatpush.msra.mxu2 %v23552_v2  ;;  %v23556_v40 = vand.u32 4294901760, %v17090_v31  ;;  %23558 = vst [vmem:[#allocation6_spill] sm:$0xff] %v17504_v23 }
 0x289   :  { %7015 = vmatpush.msra.mxu1 %v16915_v27  ;;  %7131 = vmatpush.msra.mxu3 %v17012_v58  ;;  %v23554_v27 = vand.u32 4294901760, %v17063_v1 }
 0x28a   :  { %6974 = vmatpush.msra.mxu0 %v17047_v50  ;;  %7072 = vmatpush.msra.mxu2 %v23553_v18  ;;  %v4725_v5 = vpop.xlane.xlu0 %4724  ;;  %v23555_v50 = vand.u32 4294901760, %v17073_v21 }
 0x28b   :  { %7017 = vmatpush.msra.mxu1 %v16936_v6  ;;  %7133 = vmatpush.msra.mxu3 %v17030_v17  ;;  %v4726_v33 = vmul.f32 0.0009765625, %v4725_v5 }
 0x28c   :  { %6977 = vmatpush.msra.mxu0 %v17063_v1  ;;  %7076 = vmatpush.msra.mxu2 %v23554_v27 }
 0x28d   :  { %7019 = vmatpush.msra.mxu1 %v16963_v0  ;;  %7135 = vmatpush.msra.mxu3 %v17038_v4  ;;  %4728 = vst.msk [vmem:[%s22882_s4] sm:$0x3] %vm4727_vm2, %v4726_v33  ;;  %v4855_v33 = vld [vmem:[%s22880_s2 + $0x3f0] sm:$0xff] }
 0x28e   :  { %6980 = vmatpush.msra.mxu0 %v17073_v21  ;;  %7080 = vmatpush.msra.mxu2 %v23555_v50  ;;  %v4840_v21 = vld [vmem:[%s22880_s2 + $0x378] sm:$0xff]  ;;  %v4827_v50 = vld [vmem:[%s22880_s2 + $0x310] sm:$0xff] }
 0x28f   :  { %7021 = vmatpush.msra.mxu1 %v16984_v44  ;;  %7137 = vmatpush.msra.mxu3 %v17055_v49  ;;  %v23557_v44 = vand.u32 4294901760, %v17111_v48  ;;  %v17337_v6 = vand.u32 4294901760, %v4840_v21 }
 0x290   :  { %6983 = vmatpush.msra.mxu0 %v17090_v31  ;;  %7084 = vmatpush.msra.mxu2 %v23556_v40  ;;  %v4839_v31 = vld [vmem:[%s22880_s2 + $0x370] sm:$0xff]  ;;  %v17524_v40 = vand.u32 4294901760, %v4856_v29 }
 0x291   :  { %7023 = vmatpush.msra.mxu1 %v17012_v58  ;;  %7139 = vmatpush.msra.mxu3 %v17081_v51  ;;  %v17347_v58 = vand.u32 4294901760, %v4839_v31 }
 0x292   :  { %6986 = vmatpush.msra.mxu0 %v17111_v48  ;;  %7088 = vmatpush.msra.mxu2 %v23557_v44 }
 0x293   :  { %7025 = vmatpush.msra.mxu1 %v17030_v17  ;;  %7141 = vmatpush.msra.mxu3 %v17097_v25  ;;  %v17371_v17 = vsub.f32 %v4839_v31, %v17347_v58 }
 0x294   :  { %6989 = vmatpush.msra.mxu0 %v17126_v24  ;;  %7092 = vmatpush.msra.mxu2 %v6915_v53  ;;  %v4834_v24 = vld [vmem:[%s22880_s2 + $0x348] sm:$0xff] }
 0x295   :  { %7027 = vmatpush.msra.mxu1 %v17038_v4  ;;  %7143 = vmatpush.msra.mxu3 %v17113_v57  ;;  %v4838_v4 = vld [vmem:[%s22880_s2 + $0x368] sm:$0xff]  ;;  %v23032_v53 = vand.u32 4294901760, %v17371_v17 }
 0x296   :  { %6992 = vmatpush.msra.mxu0 %v17141_v15  ;;  %7096 = vmatpush.msra.mxu2 %v6921_v14  ;;  %v17358_v15 = vsub.f32 %v4840_v21, %v17337_v6  ;;  %v17360_v0 = vand.u32 4294901760, %v4838_v4  ;;  %v4833_v14 = vld [vmem:[%s22880_s2 + $0x340] sm:$0xff] }
 0x297   :  { %7029 = vmatpush.msra.mxu1 %v17055_v49  ;;  %7145 = vmatpush.msra.mxu3 %v17128_v42  ;;  %v4837_v49 = vld [vmem:[%s22880_s2 + $0x360] sm:$0xff] }
 0x298   :  { %6995 = vmatpush.msra.mxu0 %v17156_v62  ;;  %7100 = vmatpush.msra.mxu2 %v6927_v28  ;;  %v17373_v1 = vand.u32 4294901760, %v4837_v49  ;;  %v23033_v48 = vand.u32 4294901760, %v17358_v15 }
 0x299   :  { %7031 = vmatpush.msra.mxu1 %v17081_v51  ;;  %7147 = vmatpush.msra.mxu3 %v17143_v56  ;;  %v4835_v51 = vld [vmem:[%s22880_s2 + $0x350] sm:$0xff] }
 0x29a   :  { %6998 = vmatpush.msra.mxu0 %v17172_v32  ;;  %7104 = vmatpush.msra.mxu2 %v6933_v41  ;;  %v17400_v62 = vand.u32 4294901760, %v4835_v51  ;;  %v4832_v41 = vld [vmem:[%s22880_s2 + $0x338] sm:$0xff] }
 0x29b   :  { %7033 = vmatpush.msra.mxu1 %v17097_v25  ;;  %7149 = vmatpush.msra.mxu3 %v17158_v30  ;;  %v17384_v25 = vsub.f32 %v4838_v4, %v17360_v0  ;;  %v23559_v4 = vld [vmem:[#allocation10_spill] sm:$0xff] }
 0x29c   :  { %7001 = vmatpush.msra.mxu0 %v17185_v11  ;;  %7108 = vmatpush.msra.mxu2 %v6939_v63  ;;  %v17417_v11 = vand.u32 4294901760, %v4834_v24  ;;  %v7209_v63 = vsub.f32 %v17371_v17, %v23032_v53 }
 0x29d   :  { %7035 = vmatpush.msra.mxu1 %v17113_v57  ;;  %7151 = vmatpush.msra.mxu3 %v17174_v39  ;;  %v17387_v57 = vand.u32 4294901760, %v4836_v52  ;;  %v23031_v28 = vand.u32 4294901760, %v17384_v25 }
 0x29e   :  { %7004 = vmatpush.msra.mxu0 %v17198_v13  ;;  %7112 = vmatpush.msra.mxu2 %v6945_v59  ;;  %v17424_v13 = vand.u32 4294901760, %v4833_v14  ;;  %v17437_v59 = vand.u32 4294901760, %v4832_v41  ;;  %v17448_v7 = vsub.f32 %v4834_v24, %v17417_v11  ;;  %v7210_v12 = vand.u32 4294901760, %v7209_v63  ;;  %v4826_v24 = vld [vmem:[%s22880_s2 + $0x308] sm:$0xff] }
 0x29f   :  { %7037 = vmatpush.msra.mxu1 %v17128_v42  ;;  %7153 = vmatpush.msra.mxu3 %v17187_v26  ;;  %v17397_v42 = vsub.f32 %v4837_v49, %v17373_v1  ;;  %v17414_v32 = vsub.f32 %v4836_v52, %v17387_v57  ;;  %v7215_v22 = vsub.f32 %v17384_v25, %v23031_v28  ;;  %v17532_v49 = vand.u32 4294901760, %v23559_v4 }
 0x2a0   :  { %7007 = vmatpush.msra.mxu0 %v17209_v43  ;;  %7155 = vmatmul.f32.vlgmr.msra.gmra.mxu3 %v17212_v16  ;;  %v17432_v43 = vsub.f32 %v4835_v51, %v17400_v62  ;;  %v17454_v8 = vsub.f32 %v4833_v14, %v17424_v13  ;;  %v17471_v46 = vsub.f32 %v4832_v41, %v17437_v59  ;;  %v17545_v14 = vand.u32 4294901760, %v4855_v33 }
 0x2a1   :  { %7039 = vmatpush.msra.mxu1 %v17143_v56  ;;  %7356 = vmatpush.msrb.mxu3 %v17337_v6  ;;  %v7203_v56 = vsub.f32 %v17358_v15, %v23033_v48  ;;  %v23028_v45 = vand.u32 4294901760, %v17414_v32  ;;  %v7216_v9 = vand.u32 4294901760, %v7215_v22  ;;  %v17540_v51 = vsub.f32 %v4828_v10, %v17504_v23  ;;  %v4825_v22 = vld [vmem:[%s22880_s2 + $0x300] sm:$0xff] }
 0x2a2   :  { %7116 = vmatpush.msra.mxu2 %v6951_v34  ;;  %7010 = vmatmul.f32.vlgmr.msra.gmra.mxu0 %v17232_v54  ;;  %v4831_v34 = vld [vmem:[%s22880_s2 + $0x330] sm:$0xff]  ;;  %v23026_v35 = vand.u32 4294901760, %v17432_v43  ;;  %v23025_v54 = vand.u32 4294901760, %v17448_v7  ;;  %v23024_v61 = vand.u32 4294901760, %v17454_v8  ;;  %v23023_v36 = vand.u32 4294901760, %v17471_v46 }
 0x2a3   :  { %7118 = vmatmul.f32.vlgmr.msra.gmra.mxu2 %v17212_v16  ;;  %7160 = vmatpush.msrb.mxu0 %v17337_v6  ;;  %v23029_v16 = vand.u32 4294901760, %v17397_v42  ;;  %v17465_v37 = vand.u32 4294901760, %v4831_v34  ;;  %v7227_v20 = vsub.f32 %v17414_v32, %v23028_v45  ;;  %v17551_v63 = vand.u32 4294901760, %v4827_v50 }
 0x2a4   :  { %7303 = vmatpush.msrb.mxu2 %v17358_v15  ;;  %7358 = vmatpush.msrb.mxu3 %v17347_v58  ;;  %v7233_v19 = vsub.f32 %v17432_v43, %v23026_v35  ;;  %v7239_v18 = vsub.f32 %v17448_v7, %v23025_v54  ;;  %v7245_v27 = vsub.f32 %v17454_v8, %v23024_v61 }
 0x2a5   :  { %7041 = vmatpush.msra.mxu1 %v17158_v30  ;;  %7162 = vmatpush.msrb.mxu0 %v17347_v58  ;;  %v7204_v30 = vand.u32 4294901760, %v7203_v56  ;;  %v7221_v47 = vsub.f32 %v17397_v42, %v23029_v16  ;;  %v17494_v55 = vsub.f32 %v4831_v34, %v17465_v37  ;;  %v7228_v2 = vand.u32 4294901760, %v7227_v20  ;;  %v4854_v56 = vld [vmem:[%s22880_s2 + $0x3e8] sm:$0xff]  ;;  %23560 = vst [vmem:[#allocation21_spill] sm:$0xff] %v17551_v63 }
 0x2a6   :  { %7306 = vmatpush.msrb.mxu2 %v17371_v17  ;;  %7360 = vmatpush.msrb.mxu3 %v17360_v0  ;;  %v7234_v44 = vand.u32 4294901760, %v7233_v19  ;;  %v7251_v52 = vsub.f32 %v17471_v46, %v23023_v36  ;;  %v7240_v41 = vand.u32 4294901760, %v7239_v18  ;;  %v17572_v20 = vand.u32 4294901760, %v4854_v56 }
 0x2a7   :  { %7043 = vmatpush.msra.mxu1 %v17174_v39  ;;  %7164 = vmatpush.msrb.mxu0 %v17360_v0  ;;  %v4830_v39 = vld [vmem:[%s22880_s2 + $0x328] sm:$0xff]  ;;  %v7222_v3 = vand.u32 4294901760, %v7221_v47  ;;  %v23021_v31 = vand.u32 4294901760, %v17494_v55  ;;  %v17576_v10 = vsub.f32 %v23559_v4, %v17532_v49  ;;  %v23027_v19 = vand.u32 4294901760, %v17540_v51  ;;  %v4852_v4 = vld [vmem:[%s22880_s2 + $0x3d8] sm:$0xff] }
 0x2a8   :  { %7309 = vmatpush.msrb.mxu2 %v17384_v25  ;;  %7362 = vmatpush.msrb.mxu3 %v17373_v1  ;;  %v17589_v18 = vsub.f32 %v4827_v50, %v17551_v63 }
 0x2a9   :  { %7045 = vmatpush.msra.mxu1 %v17187_v26  ;;  %7166 = vmatpush.msrb.mxu0 %v17373_v1  ;;  %v4829_v26 = vld [vmem:[%s22880_s2 + $0x320] sm:$0xff]  ;;  %v7257_v47 = vsub.f32 %v17494_v55, %v23021_v31  ;;  %v4851_v31 = vld [vmem:[%s22880_s2 + $0x3d0] sm:$0xff] }
 0x2aa   :  { %7049 = vmatmul.f32.vlgmr.msra.gmra.mxu1 %v6852_v38  ;;  %7312 = vmatpush.msrb.mxu2 %v17397_v42  ;;  %v17481_v38 = vand.u32 4294901760, %v4830_v39  ;;  %v17496_v60 = vand.u32 4294901760, %v4829_v26  ;;  %v23035_v54 = vand.u32 4294901760, %v17589_v18 }
 0x2ab   :  { %7205 = vmatpush.msrb.mxu1 %v7204_v30  ;;  %7364 = vmatpush.msrb.mxu3 %v17387_v57  ;;  %v7246_v30 = vand.u32 4294901760, %v7245_v27  ;;  %v17591_v27 = vand.u32 4294901760, %v4825_v22 }
 0x2ac   :  { %7168 = vmatpush.msrb.mxu0 %v17387_v57  ;;  %7315 = vmatpush.msrb.mxu2 %v17414_v32  ;;  %v17511_v5 = vsub.f32 %v4830_v39, %v17481_v38  ;;  %v17528_v21 = vsub.f32 %v4829_v26, %v17496_v60  ;;  %v17560_v39 = vsub.f32 %v4856_v29, %v17524_v40  ;;  %v17569_v26 = vand.u32 4294901760, %v4826_v24 }
 0x2ad   :  { %7211 = vmatpush.msrb.mxu1 %v7210_v12  ;;  %7366 = vmatpush.msrb.mxu3 %v17400_v62  ;;  %v4853_v12 = vld [vmem:[%s22880_s2 + $0x3e0] sm:$0xff]  ;;  %v17582_v29 = vsub.f32 %v4855_v33, %v17545_v14  ;;  %v17628_v61 = vsub.f32 %v4825_v22, %v17591_v27 }
 0x2ae   :  { %7170 = vmatpush.msrb.mxu0 %v17400_v62  ;;  %7318 = vmatpush.msrb.mxu2 %v17432_v43  ;;  %v23020_v34 = vand.u32 4294901760, %v17511_v5  ;;  %23561 = vst [vmem:[#allocation32_spill] sm:$0xff] %v17560_v39  ;;  %v23030_v33 = vand.u32 4294901760, %v17560_v39  ;;  %v4849_v22 = vld [vmem:[%s22880_s2 + $0x3c0] sm:$0xff] }
 0x2af   :  { %7217 = vmatpush.msrb.mxu1 %v7216_v9  ;;  %7368 = vmatpush.msrb.mxu3 %v17417_v11  ;;  %23562 = vst [vmem:[#allocation23_spill] sm:$0xff] %v17569_v26  ;;  %v23022_v9 = vand.u32 4294901760, %v17528_v21  ;;  %v17664_v45 = vand.u32 4294901760, %v4849_v22 }
 0x2b0   :  { %7172 = vmatpush.msrb.mxu0 %v17417_v11  ;;  %7321 = vmatpush.msrb.mxu2 %v17448_v7  ;;  %23563 = vst [vmem:[#allocation35_spill] sm:$0xff] %v17582_v29 }
 0x2b1   :  { %7223 = vmatpush.msrb.mxu1 %v7222_v3  ;;  %7370 = vmatpush.msrb.mxu3 %v17424_v13  ;;  %v7252_v3 = vand.u32 4294901760, %v7251_v52  ;;  %v7258_v52 = vand.u32 4294901760, %v7257_v47  ;;  %v7269_v50 = vsub.f32 %v17528_v21, %v23022_v9  ;;  %v7275_v47 = vsub.f32 %v17540_v51, %v23027_v19 }
 0x2b2   :  { %7174 = vmatpush.msrb.mxu0 %v17424_v13  ;;  %7324 = vmatpush.msrb.mxu2 %v17454_v8  ;;  %v17621_v9 = vand.u32 4294901760, %v4852_v4  ;;  %v7544_v19 = vsub.f32 %v17560_v39, %v23030_v33 }
 0x2b3   :  { %7229 = vmatpush.msrb.mxu1 %v7228_v2  ;;  %7372 = vmatpush.msrb.mxu3 %v17437_v59  ;;  %v7263_v2 = vsub.f32 %v17511_v5, %v23020_v34  ;;  %v17609_v34 = vsub.f32 %v4854_v56, %v17572_v20  ;;  %v4850_v56 = vld [vmem:[%s22880_s2 + $0x3c8] sm:$0xff]  ;;  %v7276_v33 = vand.u32 4294901760, %v7275_v47 }
 0x2b4   :  { %7176 = vmatpush.msrb.mxu0 %v17437_v59  ;;  %7327 = vmatpush.msrb.mxu2 %v17471_v46  ;;  %v17647_v16 = vand.u32 4294901760, %v4850_v56  ;;  %v17656_v53 = vsub.f32 %v4852_v4, %v17621_v9 }
 0x2b5   :  { %7235 = vmatpush.msrb.mxu1 %v7234_v44  ;;  %7374 = vmatpush.msrb.mxu3 %v17465_v37  ;;  %v17593_v44 = vand.u32 4294901760, %v4853_v12  ;;  %23564 = vst [vmem:[#allocation24_spill] sm:$0xff] %v17609_v34  ;;  %v7264_v36 = vand.u32 4294901760, %v7263_v2  ;;  %v7270_v2 = vand.u32 4294901760, %v7269_v50  ;;  %v7281_v50 = vsub.f32 %v17589_v18, %v23035_v54 }
 0x2b6   :  { %7178 = vmatpush.msrb.mxu0 %v17465_v37  ;;  %7330 = vmatpush.msrb.mxu2 %v17494_v55 }
 0x2b7   :  { %7241 = vmatpush.msrb.mxu1 %v7240_v41  ;;  %7376 = vmatpush.msrb.mxu3 %v17481_v38  ;;  %v17606_v41 = vsub.f32 %v4826_v24, %v17569_v26  ;;  %v23034_v24 = vand.u32 4294901760, %v17582_v29  ;;  %v17632_v35 = vsub.f32 %v4853_v12, %v17593_v44  ;;  %v23039_v12 = vand.u32 4294901760, %v17609_v34 }
 0x2b8   :  { %7180 = vmatpush.msrb.mxu0 %v17481_v38  ;;  %7333 = vmatpush.msrb.mxu2 %v17511_v5 }
 0x2b9   :  { %7247 = vmatpush.msrb.mxu1 %v7246_v30  ;;  %7378 = vmatpush.msrb.mxu3 %v17496_v60  ;;  %v7193_v30 = vand.u32 4294901760, %v17576_v10  ;;  %v7556_v54 = vsub.f32 %v17609_v34, %v23039_v12  ;;  %v23565_v47 = vand.u32 4294901760, %v17606_v41 }
 0x2ba   :  { %7182 = vmatpush.msrb.mxu0 %v17496_v60  ;;  %7336 = vmatpush.msrb.mxu2 %v17528_v21 }
 0x2bb   :  { %7253 = vmatpush.msrb.mxu1 %v7252_v3  ;;  %7380 = vmatpush.msrb.mxu3 %v17504_v23  ;;  %v17639_v3 = vand.u32 4294901760, %v4851_v31  ;;  %v7194_v28 = vsub.f32 %v17576_v10, %v7193_v30  ;;  %v7287_v48 = vsub.f32 %v17606_v41, %v23565_v47  ;;  %v7282_v47 = vand.u32 4294901760, %v7281_v50 }
 0x2bc   :  { %7184 = vmatpush.msrb.mxu0 %v17504_v23  ;;  %7339 = vmatpush.msrb.mxu2 %v17540_v51  ;;  %v17699_v23 = vsub.f32 %v4849_v22, %v17664_v45  ;;  %v4845_v22 = vld [vmem:[%s22880_s2 + $0x3a0] sm:$0xff] }
 0x2bd   :  { %7259 = vmatpush.msrb.mxu1 %v7258_v52  ;;  %7382 = vmatpush.msrb.mxu3 %v17551_v63  ;;  %v7550_v52 = vsub.f32 %v17582_v29, %v23034_v24  ;;  %v4848_v24 = vld [vmem:[%s22880_s2 + $0x3b8] sm:$0xff]  ;;  %v17672_v4 = vsub.f32 %v4851_v31, %v17639_v3  ;;  %v17682_v29 = vsub.f32 %v4850_v56, %v17647_v16  ;;  %v7195_v31 = vand.u32 4294901760, %v7194_v28  ;;  %v4846_v28 = vld [vmem:[%s22880_s2 + $0x3a8] sm:$0xff] }
 0x2be   :  { %7186 = vmatpush.msrb.mxu0 %v17551_v63  ;;  %7342 = vmatpush.msrb.mxu2 %v17589_v18  ;;  %v17690_v12 = vand.u32 4294901760, %v4848_v24  ;;  %v23566_v56 = vand.u32 4294901760, %v17632_v35  ;;  %v23567_v63 = vand.u32 4294901760, %v17628_v61  ;;  %v7288_v50 = vand.u32 4294901760, %v7287_v48 }
 0x2bf   :  { %7265 = vmatpush.msrb.mxu1 %v7264_v36  ;;  %7384 = vmatpush.msrb.mxu3 %v17569_v26  ;;  %v7545_v36 = vand.u32 4294901760, %v7544_v19  ;;  %v4847_v19 = vld [vmem:[%s22880_s2 + $0x3b0] sm:$0xff] }
 0x2c0   :  { %7188 = vmatpush.msrb.mxu0 %v17569_v26  ;;  %7345 = vmatpush.msrb.mxu2 %v17606_v41  ;;  %v23047_v26 = vand.u32 4294901760, %v17656_v53  ;;  %v7562_v34 = vsub.f32 %v17632_v35, %v23566_v56  ;;  %v7293_v39 = vsub.f32 %v17628_v61, %v23567_v63  ;;  %v23568_v56 = vand.u32 4294901760, %v17358_v15  ;;  %v4844_v15 = vld [vmem:[%s22880_s2 + $0x398] sm:$0xff] }
 0x2c1   :  { %7271 = vmatpush.msrb.mxu1 %v7270_v2  ;;  %7386 = vmatpush.msrb.mxu3 %v17591_v27  ;;  %v7551_v2 = vand.u32 4294901760, %v7550_v52  ;;  %v7557_v52 = vand.u32 4294901760, %v7556_v54  ;;  %v17722_v54 = vand.u32 4294901760, %v4846_v28  ;;  %v23048_v63 = vand.u32 4294901760, %v17699_v23 }
 0x2c2   :  { %7190 = vmatpush.msrb.mxu0 %v17591_v27  ;;  %7390 = vmatmul.f32.vlgmr.msrb.gmra.mxu3 %v7193_v30  ;;  %v17706_v30 = vand.u32 4294901760, %v4847_v19  ;;  %v7563_v48 = vand.u32 4294901760, %v7562_v34  ;;  %v17737_v34 = vand.u32 4294901760, %v4845_v22 }
 0x2c3   :  { %7277 = vmatpush.msrb.mxu1 %v7276_v33  ;;  %7546 = vmatpush.msra.mxu3 %v7545_v36  ;;  %v23046_v33 = vand.u32 4294901760, %v17672_v4  ;;  %v7568_v36 = vsub.f32 %v17656_v53, %v23047_v26  ;;  %v17750_v26 = vsub.f32 %v4846_v28, %v17722_v54 }
 0x2c4   :  { %7348 = vmatpush.msrb.mxu2 %v17628_v61  ;;  %7196 = vmatmul.f32.vlgmr.msrb.gmra.mxu0 %v7195_v31  ;;  %v17720_v31 = vsub.f32 %v4848_v24, %v17690_v12 }
 0x2c5   :  { %7351 = vmatmul.f32.vlgmr.msrb.gmra.mxu2 %v17576_v10  ;;  %7397 = vmatpush.msra.mxu0 %v23568_v56  ;;  %v7294_v10 = vand.u32 4294901760, %v7293_v39  ;;  %v23569_v56 = vand.u32 4294901760, %v17371_v17  ;;  %v7574_v24 = vsub.f32 %v17672_v4, %v23046_v33  ;;  %v23570_v39 = vand.u32 4294901760, %v17682_v29  ;;  %v4843_v17 = vld [vmem:[%s22880_s2 + $0x390] sm:$0xff] }
 0x2c6   :  { %7501 = vmatpush.msra.mxu2 %v17524_v40  ;;  %7552 = vmatpush.msra.mxu3 %v7551_v2  ;;  %v17735_v2 = vsub.f32 %v4847_v19, %v17706_v30  ;;  %v7569_v33 = vand.u32 4294901760, %v7568_v36  ;;  %v23049_v19 = vand.u32 4294901760, %v17720_v31  ;;  %v23572_v36 = vand.u32 4294901760, %v17397_v42 }
 0x2c7   :  { %7283 = vmatpush.msrb.mxu1 %v7282_v47  ;;  %7401 = vmatpush.msra.mxu0 %v23569_v56  ;;  %v7580_v47 = vsub.f32 %v17682_v29, %v23570_v39  ;;  %v23571_v56 = vand.u32 4294901760, %v17384_v25  ;;  %v4842_v25 = vld [vmem:[%s22880_s2 + $0x388] sm:$0xff]  ;;  %v7575_v39 = vand.u32 4294901760, %v7574_v24  ;;  %v23573_v42 = vand.u32 4294901760, %v17414_v32 }
 0x2c8   :  { %7503 = vmatpush.msra.mxu2 %v17545_v14  ;;  %7558 = vmatpush.msra.mxu3 %v7557_v52  ;;  %v17752_v52 = vand.u32 4294901760, %v4844_v15  ;;  %v7597_v28 = vand.u32 4294901760, %v17735_v2  ;;  %v7603_v24 = vand.u32 4294901760, %v17750_v26  ;;  %v23574_v32 = vand.u32 4294901760, %v17432_v43 }
 0x2c9   :  { %7289 = vmatpush.msrb.mxu1 %v7288_v50  ;;  %7405 = vmatpush.msra.mxu0 %v23571_v56  ;;  %v7586_v50 = vsub.f32 %v17699_v23, %v23048_v63  ;;  %v17765_v56 = vsub.f32 %v4845_v22, %v17737_v34  ;;  %v4841_v63 = vld [vmem:[%s22880_s2 + $0x380] sm:$0xff]  ;;  %v7592_v22 = vsub.f32 %v17720_v31, %v23049_v19 }
 0x2ca   :  { %7505 = vmatpush.msra.mxu2 %v17572_v20  ;;  %7564 = vmatpush.msra.mxu3 %v7563_v48  ;;  %v17767_v48 = vand.u32 4294901760, %v4843_v17  ;;  %v17796_v19 = vand.u32 4294901760, %v4841_v63 }
 0x2cb   :  { %7295 = vmatpush.msrb.mxu1 %v7294_v10  ;;  %7409 = vmatpush.msra.mxu0 %v23572_v36  ;;  %v7581_v10 = vand.u32 4294901760, %v7580_v47  ;;  %v17781_v36 = vsub.f32 %v4844_v15, %v17752_v52  ;;  %v7587_v47 = vand.u32 4294901760, %v7586_v50  ;;  %v7593_v43 = vand.u32 4294901760, %v7592_v22 }
 0x2cc   :  { %7297 = vmatmul.f32.vlgmr.msrb.gmra.mxu1 %v17532_v49  ;;  %7507 = vmatpush.msra.mxu2 %v17593_v44  ;;  %v17794_v15 = vsub.f32 %v4843_v17, %v17767_v48  ;;  %v7604_v50 = vsub.f32 %v17750_v26, %v7603_v24 }
 0x2cd   :  { %7464 = vmatpush.msra.mxu1 %v17337_v6  ;;  %7570 = vmatpush.msra.mxu3 %v7569_v33  ;;  %v17783_v6 = vand.u32 4294901760, %v4842_v25  ;;  %v7598_v33 = vsub.f32 %v17735_v2, %v7597_v28 }
 0x2ce   :  { %7413 = vmatpush.msra.mxu0 %v23573_v42  ;;  %7509 = vmatpush.msra.mxu2 %v17621_v9  ;;  %v7609_v42 = vand.u32 4294901760, %v17765_v56  ;;  %v7621_v22 = vand.u32 4294901760, %v17794_v15 }
 0x2cf   :  { %7466 = vmatpush.msra.mxu1 %v17347_v58  ;;  %7576 = vmatpush.msra.mxu3 %v7575_v39  ;;  %v23575_v58 = vand.u32 4294901760, %v17448_v7  ;;  %v7615_v39 = vand.u32 4294901760, %v17781_v36  ;;  %v17807_v17 = vsub.f32 %v4842_v25, %v17783_v6  ;;  %v7599_v7 = vand.u32 4294901760, %v7598_v33  ;;  %v23577_v25 = vld [vmem:[#allocation8_spill] sm:$0xff] }
 0x2d0   :  { %7417 = vmatpush.msra.mxu0 %v23574_v32  ;;  %7511 = vmatpush.msra.mxu2 %v17639_v3  ;;  %v17818_v32 = vsub.f32 %v4841_v63, %v17796_v19 }
 0x2d1   :  { %7468 = vmatpush.msra.mxu1 %v17360_v0  ;;  %7582 = vmatpush.msra.mxu3 %v7581_v10  ;;  %v23576_v0 = vand.u32 4294901760, %v17454_v8  ;;  %v7610_v10 = vsub.f32 %v17765_v56, %v7609_v42  ;;  %v7605_v8 = vand.u32 4294901760, %v7604_v50  ;;  %v7627_v33 = vand.u32 4294901760, %v17807_v17 }
 0x2d2   :  { %7421 = vmatpush.msra.mxu0 %v23575_v58  ;;  %7513 = vmatpush.msra.mxu2 %v17647_v16  ;;  %v17821_v58 = vand.u32 4294901760, %v23577_v25 }
 0x2d3   :  { %7470 = vmatpush.msra.mxu1 %v17373_v1  ;;  %7588 = vmatpush.msra.mxu3 %v7587_v47  ;;  %v23578_v1 = vand.u32 4294901760, %v17471_v46  ;;  %v7616_v47 = vsub.f32 %v17781_v36, %v7615_v39  ;;  %v7611_v63 = vand.u32 4294901760, %v7610_v10  ;;  %v7622_v46 = vsub.f32 %v17794_v15, %v7621_v22 }
 0x2d4   :  { %7425 = vmatpush.msra.mxu0 %v23576_v0  ;;  %7515 = vmatpush.msra.mxu2 %v17664_v45  ;;  %v17841_v50 = vsub.f32 %v23577_v25, %v17821_v58  ;;  %v7628_v0 = vsub.f32 %v17807_v17, %v7627_v33 }
 0x2d5   :  { %7472 = vmatpush.msra.mxu1 %v17387_v57  ;;  %7594 = vmatpush.msra.mxu3 %v7593_v43  ;;  %v23579_v57 = vand.u32 4294901760, %v17494_v55  ;;  %v7633_v43 = vand.u32 4294901760, %v17818_v32  ;;  %v7617_v55 = vand.u32 4294901760, %v7616_v47 }
 0x2d6   :  { %7429 = vmatpush.msra.mxu0 %v23578_v1  ;;  %7517 = vmatpush.msra.mxu2 %v17690_v12  ;;  %v7629_v25 = vand.u32 4294901760, %v7628_v0 }
 0x2d7   :  { %7474 = vmatpush.msra.mxu1 %v17400_v62  ;;  %7600 = vmatpush.msra.mxu3 %v7599_v7  ;;  %v23580_v62 = vand.u32 4294901760, %v17511_v5  ;;  %v23581_v7 = vand.u32 4294901760, %v17528_v21  ;;  %v7634_v10 = vsub.f32 %v17818_v32, %v7633_v43  ;;  %v7534_v5 = vand.u32 4294901760, %v17841_v50 }
 0x2d8   :  { %7433 = vmatpush.msra.mxu0 %v23579_v57  ;;  %7519 = vmatpush.msra.mxu2 %v17706_v30  ;;  %v23583_v21 = vand.u32 4294901760, %v17589_v18  ;;  %v23592_v57 = vld [vmem:[#allocation23_spill] sm:$0xff] }
 0x2d9   :  { %7476 = vmatpush.msra.mxu1 %v17417_v11  ;;  %7606 = vmatpush.msra.mxu3 %v7605_v8  ;;  %v7623_v11 = vand.u32 4294901760, %v7622_v46  ;;  %v7635_v1 = vand.u32 4294901760, %v7634_v10  ;;  %v23590_v8 = vld [vmem:[#allocation35_spill] sm:$0xff] }
 0x2da   :  { %7437 = vmatpush.msra.mxu0 %v23580_v62  ;;  %7521 = vmatpush.msra.mxu2 %v17722_v54  ;;  %v23591_v47 = vand.u32 4294901760, %v23590_v8  ;;  %v23595_v62 = vand.u32 4294901760, %v17632_v35 }
 0x2db   :  { %7478 = vmatpush.msra.mxu1 %v17424_v13  ;;  %7612 = vmatpush.msra.mxu3 %v7611_v63  ;;  %v23582_v13 = vand.u32 4294901760, %v17540_v51  ;;  %v23584_v51 = vand.u32 4294901760, %v17606_v41  ;;  %v23587_v41 = vld [vmem:[#allocation32_spill] sm:$0xff] }
 0x2dc   :  { %7441 = vmatpush.msra.mxu0 %v23581_v7  ;;  %7523 = vmatpush.msra.mxu2 %v17737_v34  ;;  %v23593_v63 = vld [vmem:[#allocation24_spill] sm:$0xff] }
 0x2dd   :  { %7480 = vmatpush.msra.mxu1 %v17437_v59  ;;  %7618 = vmatpush.msra.mxu3 %v7617_v55  ;;  %v7535_v59 = vsub.f32 %v17841_v50, %v7534_v5  ;;  %v23594_v46 = vand.u32 4294901760, %v23593_v63  ;;  %v23596_v55 = vand.u32 4294901760, %v17656_v53 }
 0x2de   :  { %7445 = vmatpush.msra.mxu0 %v23582_v13  ;;  %7525 = vmatpush.msra.mxu2 %v17752_v52 }
 0x2df   :  { %7482 = vmatpush.msra.mxu1 %v17465_v37  ;;  %7624 = vmatpush.msra.mxu3 %v7623_v11  ;;  %v23585_v37 = vand.u32 4294901760, %v17628_v61  ;;  %v7536_v18 = vand.u32 4294901760, %v7535_v59  ;;  %v23589_v61 = vld [vmem:[#allocation21_spill] sm:$0xff] }
 0x2e0   :  { %7449 = vmatpush.msra.mxu0 %v23583_v21  ;;  %7527 = vmatpush.msra.mxu2 %v17767_v48 }
 0x2e1   :  { %7484 = vmatpush.msra.mxu1 %v17481_v38  ;;  %7630 = vmatpush.msra.mxu3 %v7629_v25  ;;  %v23586_v38 = vld [vmem:[#allocation6_spill] sm:$0xff] }
 0x2e2   :  { %7453 = vmatpush.msra.mxu0 %v23584_v51  ;;  %7529 = vmatpush.msra.mxu2 %v17783_v6 }
 0x2e3   :  { %7486 = vmatpush.msra.mxu1 %v17496_v60  ;;  %7636 = vmatpush.msra.mxu3 %v7635_v1  ;;  %v23588_v60 = vand.u32 4294901760, %v23587_v41 }
 0x2e4   :  { %7457 = vmatpush.msra.mxu0 %v23585_v37  ;;  %7638 = vmatmul.f32.vlgmr.msra.gmra.mxu3 %v17821_v58  ;;  %v4860_v37 = vld [vmem:[%s22880_s2 + $0x418] sm:$0xff] }
 0x2e5   :  { %7488 = vmatpush.msra.mxu1 %v23586_v38  ;;  %7805 = vmatpush.msrb.mxu3 %v17524_v40 }
 0x2e6   :  { %7531 = vmatpush.msra.mxu2 %v17796_v19  ;;  %7459 = vmatmul.f32.vlgmr.msra.gmra.mxu0 %v17532_v49 }
 0x2e7   :  { %7537 = vmatmul.f32.vlgmr.msra.gmra.mxu2 %v7536_v18  ;;  %7644 = vmatpush.msrb.mxu0 %v23587_v41 }
 0x2e8   :  { %7738 = vmatpush.msrb.mxu2 %v23588_v60  ;;  %7807 = vmatpush.msrb.mxu3 %v17545_v14 }
 0x2e9   :  { %7490 = vmatpush.msra.mxu1 %v23589_v61  ;;  %7647 = vmatpush.msrb.mxu0 %v23590_v8  ;;  %v4888_v8 = vld [vmem:[%s22880_s2 + $0x4f8] sm:$0xff] }
 0x2ea   :  { %7742 = vmatpush.msrb.mxu2 %v23591_v47  ;;  %7809 = vmatpush.msrb.mxu3 %v17572_v20 }
 0x2eb   :  { %7492 = vmatpush.msra.mxu1 %v23592_v57  ;;  %7650 = vmatpush.msrb.mxu0 %v23593_v63  ;;  %v18110_v57 = vand.u32 4294901760, %v4860_v37 }
 0x2ec   :  { %7746 = vmatpush.msrb.mxu2 %v23594_v46  ;;  %7811 = vmatpush.msrb.mxu3 %v17593_v44 }
 0x2ed   :  { %7494 = vmatpush.msra.mxu1 %v17591_v27  ;;  %7653 = vmatpush.msrb.mxu0 %v17632_v35  ;;  %v23598_v35 = vand.u32 4294901760, %v17682_v29  ;;  %v4868_v27 = vld [vmem:[%s22880_s2 + $0x458] sm:$0xff]  ;;  %23601 = vst [vmem:[#allocation38_spill] sm:$0xff] %v18110_v57 }
 0x2ee   :  { %7496 = vmatmul.f32.vlgmr.msra.gmra.mxu1 %v17532_v49  ;;  %7750 = vmatpush.msrb.mxu2 %v23595_v62  ;;  %v23600_v49 = vand.u32 4294901760, %v17720_v31 }
 0x2ef   :  { %7697 = vmatpush.msrb.mxu1 %v17524_v40  ;;  %7813 = vmatpush.msrb.mxu3 %v17621_v9  ;;  %v23597_v40 = vand.u32 4294901760, %v17672_v4 }
 0x2f0   :  { %7656 = vmatpush.msrb.mxu0 %v17656_v53  ;;  %7754 = vmatpush.msrb.mxu2 %v23596_v55  ;;  %v23599_v53 = vand.u32 4294901760, %v17699_v23  ;;  %v4887_v55 = vld [vmem:[%s22880_s2 + $0x4f0] sm:$0xff] }
 0x2f1   :  { %7699 = vmatpush.msrb.mxu1 %v17545_v14  ;;  %7815 = vmatpush.msrb.mxu3 %v17639_v3  ;;  %v4872_v14 = vld [vmem:[%s22880_s2 + $0x478] sm:$0xff] }
 0x2f2   :  { %7659 = vmatpush.msrb.mxu0 %v17672_v4  ;;  %7758 = vmatpush.msrb.mxu2 %v23597_v40 }
 0x2f3   :  { %7701 = vmatpush.msrb.mxu1 %v17572_v20  ;;  %7817 = vmatpush.msrb.mxu3 %v17647_v16 }
 0x2f4   :  { %7662 = vmatpush.msrb.mxu0 %v17682_v29  ;;  %7762 = vmatpush.msrb.mxu2 %v23598_v35  ;;  %v4859_v35 = vld [vmem:[%s22880_s2 + $0x410] sm:$0xff] }
 0x2f5   :  { %7703 = vmatpush.msrb.mxu1 %v17593_v44  ;;  %7819 = vmatpush.msrb.mxu3 %v17664_v45 }
 0x2f6   :  { %7665 = vmatpush.msrb.mxu0 %v17699_v23  ;;  %7766 = vmatpush.msrb.mxu2 %v23599_v53  ;;  %v4871_v23 = vld [vmem:[%s22880_s2 + $0x470] sm:$0xff]  ;;  %v18130_v53 = vand.u32 4294901760, %v4888_v8 }
 0x2f7   :  { %7705 = vmatpush.msrb.mxu1 %v17621_v9  ;;  %7821 = vmatpush.msrb.mxu3 %v17690_v12  ;;  %v17943_v9 = vand.u32 4294901760, %v4872_v14  ;;  %v17953_v20 = vand.u32 4294901760, %v4871_v23 }
 0x2f8   :  { %7668 = vmatpush.msrb.mxu0 %v17720_v31  ;;  %7770 = vmatpush.msrb.mxu2 %v23600_v49  ;;  %v17993_v31 = vand.u32 4294901760, %v4868_v27 }
 0x2f9   :  { %7707 = vmatpush.msrb.mxu1 %v17639_v3  ;;  %7823 = vmatpush.msrb.mxu3 %v17706_v30  ;;  %v17977_v44 = vsub.f32 %v4871_v23, %v17953_v20 }
 0x2fa   :  { %7671 = vmatpush.msrb.mxu0 %v17735_v2  ;;  %7774 = vmatpush.msrb.mxu2 %v7597_v28 }
 0x2fb   :  { %7709 = vmatpush.msrb.mxu1 %v17647_v16  ;;  %7825 = vmatpush.msrb.mxu3 %v17722_v54  ;;  %v4870_v16 = vld [vmem:[%s22880_s2 + $0x468] sm:$0xff] }
 0x2fc   :  { %7674 = vmatpush.msrb.mxu0 %v17750_v26  ;;  %7778 = vmatpush.msrb.mxu2 %v7603_v24  ;;  %v17964_v26 = vsub.f32 %v4872_v14, %v17943_v9  ;;  %v17966_v29 = vand.u32 4294901760, %v4870_v16  ;;  %v18020_v24 = vsub.f32 %v4868_v27, %v17993_v31 }
 0x2fd   :  { %7711 = vmatpush.msrb.mxu1 %v17664_v45  ;;  %7827 = vmatpush.msrb.mxu3 %v17737_v34  ;;  %v4869_v45 = vld [vmem:[%s22880_s2 + $0x460] sm:$0xff] }
 0x2fe   :  { %7677 = vmatpush.msrb.mxu0 %v17765_v56  ;;  %7782 = vmatpush.msrb.mxu2 %v7609_v42  ;;  %v17979_v3 = vand.u32 4294901760, %v4869_v45  ;;  %v17990_v4 = vsub.f32 %v4870_v16, %v17966_v29  ;;  %v4865_v56 = vld [vmem:[%s22880_s2 + $0x440] sm:$0xff]  ;;  %v23058_v7 = vand.u32 4294901760, %v18020_v24 }
 0x2ff   :  { %7713 = vmatpush.msrb.mxu1 %v17690_v12  ;;  %7829 = vmatpush.msrb.mxu3 %v17752_v52  ;;  %v4867_v12 = vld [vmem:[%s22880_s2 + $0x450] sm:$0xff]  ;;  %v23602_v16 = vld [vmem:[#allocation11_spill] sm:$0xff] }
 0x300   :  { %7680 = vmatpush.msrb.mxu0 %v17781_v36  ;;  %7786 = vmatpush.msrb.mxu2 %v7615_v39  ;;  %v18003_v2 = vsub.f32 %v4869_v45, %v17979_v3  ;;  %v18006_v28 = vand.u32 4294901760, %v4867_v12  ;;  %v23061_v36 = vand.u32 4294901760, %v17990_v4  ;;  %v18030_v39 = vand.u32 4294901760, %v4865_v56 }
 0x301   :  { %7715 = vmatpush.msrb.mxu1 %v17706_v30  ;;  %7831 = vmatpush.msrb.mxu3 %v17767_v48  ;;  %v23063_v30 = vand.u32 4294901760, %v17964_v26  ;;  %v7909_v51 = vsub.f32 %v18020_v24, %v23058_v7  ;;  %v18138_v45 = vand.u32 4294901760, %v23602_v16 }
 0x302   :  { %7683 = vmatpush.msrb.mxu0 %v17794_v15  ;;  %7790 = vmatpush.msrb.mxu2 %v7621_v22  ;;  %v4864_v15 = vld [vmem:[%s22880_s2 + $0x438] sm:$0xff]  ;;  %v18038_v22 = vsub.f32 %v4867_v12, %v18006_v28  ;;  %v18060_v11 = vsub.f32 %v4865_v56, %v18030_v39  ;;  %v18146_v12 = vsub.f32 %v4860_v37, %v18110_v57  ;;  %v18151_v56 = vand.u32 4294901760, %v4887_v55 }
 0x303   :  { %7717 = vmatpush.msrb.mxu1 %v17722_v54  ;;  %7833 = vmatpush.msrb.mxu3 %v17783_v6  ;;  %v4866_v54 = vld [vmem:[%s22880_s2 + $0x448] sm:$0xff]  ;;  %v7910_v63 = vand.u32 4294901760, %v7909_v51  ;;  %v18182_v37 = vsub.f32 %v23602_v16, %v18138_v45  ;;  %v4884_v16 = vld [vmem:[%s22880_s2 + $0x4d8] sm:$0xff] }
 0x304   :  { %7686 = vmatpush.msrb.mxu0 %v17807_v17  ;;  %7794 = vmatpush.msrb.mxu2 %v7627_v33  ;;  %v18023_v42 = vand.u32 4294901760, %v4866_v54  ;;  %v4863_v33 = vld [vmem:[%s22880_s2 + $0x430] sm:$0xff]  ;;  %v23056_v25 = vand.u32 4294901760, %v18038_v22  ;;  %v23054_v38 = vand.u32 4294901760, %v18060_v11 }
 0x305   :  { %7719 = vmatpush.msrb.mxu1 %v17737_v34  ;;  %7835 = vmatpush.msrb.mxu3 %v17796_v19  ;;  %v23062_v34 = vand.u32 4294901760, %v17977_v44  ;;  %v18071_v21 = vand.u32 4294901760, %v4863_v33 }
 0x306   :  { %7689 = vmatpush.msrb.mxu0 %v17818_v32  ;;  %7837 = vmatmul.f32.vlgmr.msrb.gmra.mxu3 %v17821_v58  ;;  %v23059_v32 = vand.u32 4294901760, %v18003_v2  ;;  %v18054_v0 = vsub.f32 %v4866_v54, %v18023_v42  ;;  %v7915_v41 = vsub.f32 %v18038_v22, %v23056_v25  ;;  %v7927_v40 = vsub.f32 %v18060_v11, %v23054_v38  ;;  %v4858_v54 = vld [vmem:[%s22880_s2 + $0x408] sm:$0xff] }
 0x307   :  { %7721 = vmatpush.msrb.mxu1 %v17752_v52  ;;  %8038 = vmatpush.msra.mxu3 %v17943_v9  ;;  %v7885_v52 = vsub.f32 %v17964_v26, %v23063_v30  ;;  %v7891_v17 = vsub.f32 %v17977_v44, %v23062_v34  ;;  %v18100_v60 = vsub.f32 %v4863_v33, %v18071_v21 }
 0x308   :  { %7798 = vmatpush.msrb.mxu2 %v7633_v43  ;;  %7692 = vmatmul.f32.vlgmr.msrb.gmra.mxu0 %v17841_v50  ;;  %v7897_v43 = vsub.f32 %v17990_v4, %v23061_v36  ;;  %v7903_v13 = vsub.f32 %v18003_v2, %v23059_v32  ;;  %v23055_v50 = vand.u32 4294901760, %v18054_v0  ;;  %v7916_v49 = vand.u32 4294901760, %v7915_v41 }
 0x309   :  { %7800 = vmatmul.f32.vlgmr.msrb.gmra.mxu2 %v17821_v58  ;;  %7842 = vmatpush.msra.mxu0 %v17943_v9  ;;  %v18043_v58 = vand.u32 4294901760, %v4864_v15  ;;  %v7892_v10 = vand.u32 4294901760, %v7891_v17  ;;  %v23051_v23 = vand.u32 4294901760, %v18100_v60  ;;  %v18157_v17 = vand.u32 4294901760, %v4859_v35 }
 0x30a   :  { %7985 = vmatpush.msra.mxu2 %v17964_v26  ;;  %8040 = vmatpush.msra.mxu3 %v17953_v20  ;;  %v7898_v59 = vand.u32 4294901760, %v7897_v43  ;;  %v7904_v18 = vand.u32 4294901760, %v7903_v13  ;;  %v7921_v46 = vsub.f32 %v18054_v0, %v23055_v50  ;;  %v4857_v43 = vld [vmem:[%s22880_s2 + $0x400] sm:$0xff]  ;;  %v23057_v41 = vand.u32 4294901760, %v18146_v12 }
 0x30b   :  { %7723 = vmatpush.msrb.mxu1 %v17767_v48  ;;  %7844 = vmatpush.msra.mxu0 %v17953_v20  ;;  %v7886_v48 = vand.u32 4294901760, %v7885_v52  ;;  %v18077_v1 = vsub.f32 %v4864_v15, %v18043_v58  ;;  %v4886_v52 = vld [vmem:[%s22880_s2 + $0x4e8] sm:$0xff]  ;;  %23603 = vst [vmem:[#allocation27_spill] sm:$0xff] %v18157_v17  ;;  %v7939_v13 = vsub.f32 %v18100_v60, %v23051_v23  ;;  %v4883_v23 = vld [vmem:[%s22880_s2 + $0x4d0] sm:$0xff] }
 0x30c   :  { %7988 = vmatpush.msra.mxu2 %v17977_v44  ;;  %8042 = vmatpush.msra.mxu3 %v17966_v29  ;;  %v7922_v15 = vand.u32 4294901760, %v7921_v46  ;;  %v18178_v51 = vand.u32 4294901760, %v4886_v52  ;;  %v18195_v46 = vsub.f32 %v4859_v35, %v18157_v17 }
 0x30d   :  { %7725 = vmatpush.msrb.mxu1 %v17783_v6  ;;  %7846 = vmatpush.msra.mxu0 %v17966_v29  ;;  %v4862_v6 = vld [vmem:[%s22880_s2 + $0x428] sm:$0xff]  ;;  %v23053_v47 = vand.u32 4294901760, %v18077_v1 }
 0x30e   :  { %7991 = vmatpush.msra.mxu2 %v17990_v4  ;;  %8044 = vmatpush.msra.mxu3 %v17979_v3  ;;  %v23065_v50 = vand.u32 4294901760, %v18195_v46 }
 0x30f   :  { %7727 = vmatpush.msrb.mxu1 %v17796_v19  ;;  %7848 = vmatpush.msra.mxu0 %v17979_v3  ;;  %v4861_v19 = vld [vmem:[%s22880_s2 + $0x420] sm:$0xff]  ;;  %v7933_v27 = vsub.f32 %v18077_v1, %v23053_v47 }
 0x310   :  { %7731 = vmatmul.f32.vlgmr.msrb.gmra.mxu1 %v7534_v5  ;;  %7994 = vmatpush.msra.mxu2 %v18003_v2  ;;  %v18087_v5 = vand.u32 4294901760, %v4862_v6  ;;  %v18102_v61 = vand.u32 4294901760, %v4861_v19 }
 0x311   :  { %7887 = vmatpush.msra.mxu1 %v7886_v48  ;;  %8046 = vmatpush.msra.mxu3 %v17993_v31  ;;  %v7928_v48 = vand.u32 4294901760, %v7927_v40  ;;  %v18197_v40 = vand.u32 4294901760, %v4857_v43 }
 0x312   :  { %7850 = vmatpush.msra.mxu0 %v17993_v31  ;;  %7997 = vmatpush.msra.mxu2 %v18020_v24  ;;  %v18117_v62 = vsub.f32 %v4862_v6, %v18087_v5  ;;  %v18134_v14 = vsub.f32 %v4861_v19, %v18102_v61  ;;  %v18166_v6 = vsub.f32 %v4888_v8, %v18130_v53  ;;  %v18175_v19 = vand.u32 4294901760, %v4858_v54 }
 0x313   :  { %7893 = vmatpush.msra.mxu1 %v7892_v10  ;;  %8048 = vmatpush.msra.mxu3 %v18006_v28  ;;  %v4885_v10 = vld [vmem:[%s22880_s2 + $0x4e0] sm:$0xff]  ;;  %v18188_v8 = vsub.f32 %v4887_v55, %v18151_v56  ;;  %v18234_v38 = vsub.f32 %v4857_v43, %v18197_v40 }
 0x314   :  { %7852 = vmatpush.msra.mxu0 %v18006_v28  ;;  %8000 = vmatpush.msra.mxu2 %v18038_v22  ;;  %v23050_v33 = vand.u32 4294901760, %v18117_v62  ;;  %23604 = vst [vmem:[#allocation40_spill] sm:$0xff] %v18166_v6  ;;  %v23060_v55 = vand.u32 4294901760, %v18166_v6  ;;  %v4881_v43 = vld [vmem:[%s22880_s2 + $0x4c0] sm:$0xff] }
 0x315   :  { %7899 = vmatpush.msra.mxu1 %v7898_v59  ;;  %8050 = vmatpush.msra.mxu3 %v18023_v42  ;;  %23605 = vst [vmem:[#allocation29_spill] sm:$0xff] %v18175_v19  ;;  %v23052_v59 = vand.u32 4294901760, %v18134_v14  ;;  %v18270_v7 = vand.u32 4294901760, %v4881_v43 }
 0x316   :  { %7854 = vmatpush.msra.mxu0 %v18023_v42  ;;  %8003 = vmatpush.msra.mxu2 %v18054_v0  ;;  %23606 = vst [vmem:[#allocation45_spill] sm:$0xff] %v18188_v8 }
 0x317   :  { %7905 = vmatpush.msra.mxu1 %v7904_v18  ;;  %8052 = vmatpush.msra.mxu3 %v18030_v39  ;;  %v7934_v18 = vand.u32 4294901760, %v7933_v27  ;;  %v7940_v27 = vand.u32 4294901760, %v7939_v13  ;;  %v7951_v35 = vsub.f32 %v18134_v14, %v23052_v59  ;;  %v7957_v13 = vsub.f32 %v18146_v12, %v23057_v41 }
 0x318   :  { %7856 = vmatpush.msra.mxu0 %v18030_v39  ;;  %8006 = vmatpush.msra.mxu2 %v18060_v11  ;;  %v18227_v59 = vand.u32 4294901760, %v4884_v16  ;;  %v8226_v41 = vsub.f32 %v18166_v6, %v23060_v55 }
 0x319   :  { %7911 = vmatpush.msra.mxu1 %v7910_v63  ;;  %8054 = vmatpush.msra.mxu3 %v18043_v58  ;;  %v7945_v63 = vsub.f32 %v18117_v62, %v23050_v33  ;;  %v18215_v33 = vsub.f32 %v4886_v52, %v18178_v51  ;;  %v4882_v52 = vld [vmem:[%s22880_s2 + $0x4c8] sm:$0xff]  ;;  %v7958_v55 = vand.u32 4294901760, %v7957_v13 }
 0x31a   :  { %7858 = vmatpush.msra.mxu0 %v18043_v58  ;;  %8009 = vmatpush.msra.mxu2 %v18077_v1  ;;  %v18253_v32 = vand.u32 4294901760, %v4882_v52  ;;  %v18262_v34 = vsub.f32 %v4884_v16, %v18227_v59 }
 0x31b   :  { %7917 = vmatpush.msra.mxu1 %v7916_v49  ;;  %8056 = vmatpush.msra.mxu3 %v18071_v21  ;;  %v18199_v49 = vand.u32 4294901760, %v4885_v10  ;;  %23607 = vst [vmem:[#allocation34_spill] sm:$0xff] %v18215_v33  ;;  %v7946_v47 = vand.u32 4294901760, %v7945_v63  ;;  %v7952_v63 = vand.u32 4294901760, %v7951_v35  ;;  %v7963_v35 = vsub.f32 %v18195_v46, %v23065_v50 }
 0x31c   :  { %7860 = vmatpush.msra.mxu0 %v18071_v21  ;;  %8012 = vmatpush.msra.mxu2 %v18100_v60 }
 0x31d   :  { %7923 = vmatpush.msra.mxu1 %v7922_v15  ;;  %8058 = vmatpush.msra.mxu3 %v18087_v5  ;;  %v18212_v15 = vsub.f32 %v4858_v54, %v18175_v19  ;;  %v23064_v54 = vand.u32 4294901760, %v18188_v8  ;;  %v18238_v25 = vsub.f32 %v4885_v10, %v18199_v49  ;;  %v23069_v10 = vand.u32 4294901760, %v18215_v33 }
 0x31e   :  { %7862 = vmatpush.msra.mxu0 %v18087_v5  ;;  %8015 = vmatpush.msra.mxu2 %v18117_v62 }
 0x31f   :  { %7929 = vmatpush.msra.mxu1 %v7928_v48  ;;  %8060 = vmatpush.msra.mxu3 %v18102_v61  ;;  %v7875_v48 = vand.u32 4294901760, %v18182_v37  ;;  %v8238_v50 = vsub.f32 %v18215_v33, %v23069_v10  ;;  %v23608_v13 = vand.u32 4294901760, %v18212_v15 }
 0x320   :  { %7864 = vmatpush.msra.mxu0 %v18102_v61  ;;  %8018 = vmatpush.msra.mxu2 %v18134_v14 }
 0x321   :  { %7935 = vmatpush.msra.mxu1 %v7934_v18  ;;  %8062 = vmatpush.msra.mxu3 %v18110_v57  ;;  %v18245_v18 = vand.u32 4294901760, %v4883_v23  ;;  %v7876_v36 = vsub.f32 %v18182_v37, %v7875_v48  ;;  %v7969_v30 = vsub.f32 %v18212_v15, %v23608_v13  ;;  %v7964_v13 = vand.u32 4294901760, %v7963_v35 }
 0x322   :  { %7866 = vmatpush.msra.mxu0 %v18110_v57  ;;  %8021 = vmatpush.msra.mxu2 %v18146_v12  ;;  %v18305_v57 = vsub.f32 %v4881_v43, %v18270_v7  ;;  %v4877_v43 = vld [vmem:[%s22880_s2 + $0x4a0] sm:$0xff] }
 0x323   :  { %7941 = vmatpush.msra.mxu1 %v7940_v27  ;;  %8064 = vmatpush.msra.mxu3 %v18157_v17  ;;  %v8232_v27 = vsub.f32 %v18188_v8, %v23064_v54  ;;  %v4880_v54 = vld [vmem:[%s22880_s2 + $0x4b8] sm:$0xff]  ;;  %v18278_v16 = vsub.f32 %v4883_v23, %v18245_v18  ;;  %v18288_v8 = vsub.f32 %v4882_v52, %v18253_v32  ;;  %v7877_v23 = vand.u32 4294901760, %v7876_v36  ;;  %v4878_v36 = vld [vmem:[%s22880_s2 + $0x4a8] sm:$0xff] }
 0x324   :  { %7868 = vmatpush.msra.mxu0 %v18157_v17  ;;  %8024 = vmatpush.msra.mxu2 %v18195_v46  ;;  %v18296_v10 = vand.u32 4294901760, %v4880_v54  ;;  %v23609_v52 = vand.u32 4294901760, %v18238_v25  ;;  %v23610_v17 = vand.u32 4294901760, %v18234_v38  ;;  %v7970_v35 = vand.u32 4294901760, %v7969_v30 }
 0x325   :  { %7947 = vmatpush.msra.mxu1 %v7946_v47  ;;  %8066 = vmatpush.msra.mxu3 %v18175_v19  ;;  %v8227_v47 = vand.u32 4294901760, %v8226_v41  ;;  %v4879_v41 = vld [vmem:[%s22880_s2 + $0x4b0] sm:$0xff] }
 0x326   :  { %7870 = vmatpush.msra.mxu0 %v18175_v19  ;;  %8027 = vmatpush.msra.mxu2 %v18212_v15  ;;  %v23077_v19 = vand.u32 4294901760, %v18262_v34  ;;  %v8244_v33 = vsub.f32 %v18238_v25, %v23609_v52  ;;  %v7975_v6 = vsub.f32 %v18234_v38, %v23610_v17  ;;  %v23611_v52 = vand.u32 4294901760, %v17964_v26  ;;  %v4876_v26 = vld [vmem:[%s22880_s2 + $0x498] sm:$0xff] }
 0x327   :  { %7953 = vmatpush.msra.mxu1 %v7952_v63  ;;  %8068 = vmatpush.msra.mxu3 %v18197_v40  ;;  %v8233_v63 = vand.u32 4294901760, %v8232_v27  ;;  %v8239_v27 = vand.u32 4294901760, %v8238_v50  ;;  %v18328_v50 = vand.u32 4294901760, %v4878_v36  ;;  %v23078_v17 = vand.u32 4294901760, %v18305_v57 }
 0x328   :  { %7872 = vmatpush.msra.mxu0 %v18197_v40  ;;  %8072 = vmatmul.f32.vlgmr.msra.gmra.mxu3 %v7875_v48  ;;  %v18312_v48 = vand.u32 4294901760, %v4879_v41  ;;  %v8245_v30 = vand.u32 4294901760, %v8244_v33  ;;  %v18343_v33 = vand.u32 4294901760, %v4877_v43 }
 0x329   :  { %7959 = vmatpush.msra.mxu1 %v7958_v55  ;;  %8228 = vmatpush.msrb.mxu3 %v8227_v47  ;;  %v23076_v55 = vand.u32 4294901760, %v18278_v16  ;;  %v8250_v47 = vsub.f32 %v18262_v34, %v23077_v19  ;;  %v18356_v19 = vsub.f32 %v4878_v36, %v18328_v50 }
 0x32a   :  { %8030 = vmatpush.msra.mxu2 %v18234_v38  ;;  %7878 = vmatmul.f32.vlgmr.msra.gmra.mxu0 %v7877_v23  ;;  %v18326_v23 = vsub.f32 %v4880_v54, %v18296_v10 }
 0x32b   :  { %8033 = vmatmul.f32.vlgmr.msra.gmra.mxu2 %v18182_v37  ;;  %8079 = vmatpush.msrb.mxu0 %v23611_v52  ;;  %v7976_v37 = vand.u32 4294901760, %v7975_v6  ;;  %v23612_v52 = vand.u32 4294901760, %v17977_v44  ;;  %v8256_v54 = vsub.f32 %v18278_v16, %v23076_v55  ;;  %v23613_v6 = vand.u32 4294901760, %v18288_v8  ;;  %v4875_v44 = vld [vmem:[%s22880_s2 + $0x490] sm:$0xff] }
 0x32c   :  { %8183 = vmatpush.msrb.mxu2 %v18130_v53  ;;  %8234 = vmatpush.msrb.mxu3 %v8233_v63  ;;  %v18341_v63 = vsub.f32 %v4879_v41, %v18312_v48  ;;  %v8251_v55 = vand.u32 4294901760, %v8250_v47  ;;  %v23079_v41 = vand.u32 4294901760, %v18326_v23  ;;  %v23615_v47 = vand.u32 4294901760, %v18003_v2 }
 0x32d   :  { %7965 = vmatpush.msra.mxu1 %v7964_v13  ;;  %8083 = vmatpush.msrb.mxu0 %v23612_v52  ;;  %v8262_v13 = vsub.f32 %v18288_v8, %v23613_v6  ;;  %v23614_v52 = vand.u32 4294901760, %v17990_v4  ;;  %v4874_v4 = vld [vmem:[%s22880_s2 + $0x488] sm:$0xff]  ;;  %v8257_v6 = vand.u32 4294901760, %v8256_v54  ;;  %v23616_v2 = vand.u32 4294901760, %v18020_v24 }
 0x32e   :  { %8185 = vmatpush.msrb.mxu2 %v18151_v56  ;;  %8240 = vmatpush.msrb.mxu3 %v8239_v27  ;;  %v18358_v27 = vand.u32 4294901760, %v4876_v26  ;;  %v8279_v36 = vand.u32 4294901760, %v18341_v63  ;;  %v8285_v54 = vand.u32 4294901760, %v18356_v19  ;;  %v23617_v24 = vand.u32 4294901760, %v18038_v22 }
 0x32f   :  { %7971 = vmatpush.msra.mxu1 %v7970_v35  ;;  %8087 = vmatpush.msrb.mxu0 %v23614_v52  ;;  %v8268_v35 = vsub.f32 %v18305_v57, %v23078_v17  ;;  %v18371_v52 = vsub.f32 %v4877_v43, %v18343_v33  ;;  %v4873_v17 = vld [vmem:[%s22880_s2 + $0x480] sm:$0xff]  ;;  %v8274_v43 = vsub.f32 %v18326_v23, %v23079_v41 }
 0x330   :  { %8187 = vmatpush.msrb.mxu2 %v18178_v51  ;;  %8246 = vmatpush.msrb.mxu3 %v8245_v30  ;;  %v18373_v30 = vand.u32 4294901760, %v4875_v44  ;;  %v18402_v41 = vand.u32 4294901760, %v4873_v17 }
 0x331   :  { %7977 = vmatpush.msra.mxu1 %v7976_v37  ;;  %8091 = vmatpush.msrb.mxu0 %v23615_v47  ;;  %v8263_v37 = vand.u32 4294901760, %v8262_v13  ;;  %v18387_v47 = vsub.f32 %v4876_v26, %v18358_v27  ;;  %v8269_v13 = vand.u32 4294901760, %v8268_v35  ;;  %v8275_v22 = vand.u32 4294901760, %v8274_v43 }
 0x332   :  { %7979 = vmatmul.f32.vlgmr.msra.gmra.mxu1 %v18138_v45  ;;  %8189 = vmatpush.msrb.mxu2 %v18199_v49  ;;  %v18400_v26 = vsub.f32 %v4875_v44, %v18373_v30  ;;  %v8286_v35 = vsub.f32 %v18356_v19, %v8285_v54 }
 0x333   :  { %8146 = vmatpush.msrb.mxu1 %v17943_v9  ;;  %8252 = vmatpush.msrb.mxu3 %v8251_v55  ;;  %v18389_v9 = vand.u32 4294901760, %v4874_v4  ;;  %v8280_v55 = vsub.f32 %v18341_v63, %v8279_v36 }
 0x334   :  { %8095 = vmatpush.msrb.mxu0 %v23616_v2  ;;  %8191 = vmatpush.msrb.mxu2 %v18227_v59  ;;  %v8291_v2 = vand.u32 4294901760, %v18371_v52  ;;  %v8303_v43 = vand.u32 4294901760, %v18400_v26 }
 0x335   :  { %8148 = vmatpush.msrb.mxu1 %v17953_v20  ;;  %8258 = vmatpush.msrb.mxu3 %v8257_v6  ;;  %v23618_v20 = vand.u32 4294901760, %v18054_v0  ;;  %v8297_v6 = vand.u32 4294901760, %v18387_v47  ;;  %v18413_v44 = vsub.f32 %v4874_v4, %v18389_v9  ;;  %v8281_v0 = vand.u32 4294901760, %v8280_v55  ;;  %v23620_v4 = vld [vmem:[#allocation12_spill] sm:$0xff] }
 0x336   :  { %8099 = vmatpush.msrb.mxu0 %v23617_v24  ;;  %8193 = vmatpush.msrb.mxu2 %v18245_v18  ;;  %v18424_v24 = vsub.f32 %v4873_v17, %v18402_v41 }
 0x337   :  { %8150 = vmatpush.msrb.mxu1 %v17966_v29  ;;  %8264 = vmatpush.msrb.mxu3 %v8263_v37  ;;  %v23619_v29 = vand.u32 4294901760, %v18060_v11  ;;  %v8292_v37 = vsub.f32 %v18371_v52, %v8291_v2  ;;  %v8287_v11 = vand.u32 4294901760, %v8286_v35  ;;  %v8309_v55 = vand.u32 4294901760, %v18413_v44 }
 0x338   :  { %8103 = vmatpush.msrb.mxu0 %v23618_v20  ;;  %8195 = vmatpush.msrb.mxu2 %v18253_v32  ;;  %v18427_v20 = vand.u32 4294901760, %v23620_v4 }
 0x339   :  { %8152 = vmatpush.msrb.mxu1 %v17979_v3  ;;  %8270 = vmatpush.msrb.mxu3 %v8269_v13  ;;  %v23621_v3 = vand.u32 4294901760, %v18077_v1  ;;  %v8298_v13 = vsub.f32 %v18387_v47, %v8297_v6  ;;  %v8293_v17 = vand.u32 4294901760, %v8292_v37  ;;  %v8304_v1 = vsub.f32 %v18400_v26, %v8303_v43 }
 0x33a   :  { %8107 = vmatpush.msrb.mxu0 %v23619_v29  ;;  %8197 = vmatpush.msrb.mxu2 %v18270_v7  ;;  %v18447_v35 = vsub.f32 %v23620_v4, %v18427_v20  ;;  %v8310_v29 = vsub.f32 %v18413_v44, %v8309_v55 }
 0x33b   :  { %8154 = vmatpush.msrb.mxu1 %v17993_v31  ;;  %8276 = vmatpush.msrb.mxu3 %v8275_v22  ;;  %v23622_v31 = vand.u32 4294901760, %v18100_v60  ;;  %v8315_v22 = vand.u32 4294901760, %v18424_v24  ;;  %v8299_v60 = vand.u32 4294901760, %v8298_v13 }
 0x33c   :  { %8111 = vmatpush.msrb.mxu0 %v23621_v3  ;;  %8199 = vmatpush.msrb.mxu2 %v18296_v10  ;;  %v8311_v4 = vand.u32 4294901760, %v8310_v29 }
 0x33d   :  { %8156 = vmatpush.msrb.mxu1 %v18006_v28  ;;  %8282 = vmatpush.msrb.mxu3 %v8281_v0  ;;  %v23623_v28 = vand.u32 4294901760, %v18117_v62  ;;  %v23624_v0 = vand.u32 4294901760, %v18134_v14  ;;  %v8316_v37 = vsub.f32 %v18424_v24, %v8315_v22  ;;  %v8216_v62 = vand.u32 4294901760, %v18447_v35 }
 0x33e   :  { %8115 = vmatpush.msrb.mxu0 %v23622_v31  ;;  %8201 = vmatpush.msrb.mxu2 %v18312_v48  ;;  %v23626_v14 = vand.u32 4294901760, %v18195_v46  ;;  %v23635_v31 = vld [vmem:[#allocation29_spill] sm:$0xff] }
 0x33f   :  { %8158 = vmatpush.msrb.mxu1 %v18023_v42  ;;  %8288 = vmatpush.msrb.mxu3 %v8287_v11  ;;  %v8305_v42 = vand.u32 4294901760, %v8304_v1  ;;  %v8317_v3 = vand.u32 4294901760, %v8316_v37  ;;  %v23633_v11 = vld [vmem:[#allocation45_spill] sm:$0xff] }
 0x340   :  { %8119 = vmatpush.msrb.mxu0 %v23623_v28  ;;  %8203 = vmatpush.msrb.mxu2 %v18328_v50  ;;  %v23634_v13 = vand.u32 4294901760, %v23633_v11  ;;  %v23638_v28 = vand.u32 4294901760, %v18238_v25 }
 0x341   :  { %8160 = vmatpush.msrb.mxu1 %v18030_v39  ;;  %8294 = vmatpush.msrb.mxu3 %v8293_v17  ;;  %v23625_v39 = vand.u32 4294901760, %v18146_v12  ;;  %v23627_v12 = vand.u32 4294901760, %v18212_v15  ;;  %v23630_v15 = vld [vmem:[#allocation40_spill] sm:$0xff]  ;;  %v23636_v17 = vld [vmem:[#allocation34_spill] sm:$0xff] }
 0x342   :  { %8123 = vmatpush.msrb.mxu0 %v23624_v0  ;;  %8205 = vmatpush.msrb.mxu2 %v18343_v33  ;;  %v23637_v1 = vand.u32 4294901760, %v23636_v17 }
 0x343   :  { %8162 = vmatpush.msrb.mxu1 %v18043_v58  ;;  %8300 = vmatpush.msrb.mxu3 %v8299_v60  ;;  %v8217_v58 = vsub.f32 %v18447_v35, %v8216_v62  ;;  %v23639_v60 = vand.u32 4294901760, %v18262_v34 }
 0x344   :  { %8127 = vmatpush.msrb.mxu0 %v23625_v39  ;;  %8207 = vmatpush.msrb.mxu2 %v18358_v27 }
 0x345   :  { %8164 = vmatpush.msrb.mxu1 %v18071_v21  ;;  %8306 = vmatpush.msrb.mxu3 %v8305_v42  ;;  %v23628_v21 = vand.u32 4294901760, %v18234_v38  ;;  %v8218_v46 = vand.u32 4294901760, %v8217_v58  ;;  %v23632_v38 = vld [vmem:[#allocation27_spill] sm:$0xff] }
 0x346   :  { %8131 = vmatpush.msrb.mxu0 %v23626_v14  ;;  %8209 = vmatpush.msrb.mxu2 %v18373_v30 }
 0x347   :  { %8166 = vmatpush.msrb.mxu1 %v18087_v5  ;;  %8312 = vmatpush.msrb.mxu3 %v8311_v4  ;;  %v23629_v5 = vld [vmem:[#allocation38_spill] sm:$0xff] }
 0x348   :  { %8135 = vmatpush.msrb.mxu0 %v23627_v12  ;;  %8211 = vmatpush.msrb.mxu2 %v18389_v9 }
 0x349   :  { %8168 = vmatpush.msrb.mxu1 %v18102_v61  ;;  %8318 = vmatpush.msrb.mxu3 %v8317_v3  ;;  %v23631_v61 = vand.u32 4294901760, %v23630_v15 }
 0x34a   :  { %8139 = vmatpush.msrb.mxu0 %v23628_v21  ;;  %8320 = vmatmul.f32.vlgmr.msrb.gmra.mxu3 %v18427_v20  ;;  %v4892_v21 = vld [vmem:[%s22880_s2 + $0x518] sm:$0xff] }
 0x34b   :  { %8170 = vmatpush.msrb.mxu1 %v23629_v5  ;;  %8487 = vmatpush.msra.mxu3 %v18130_v53 }
 0x34c   :  { %8213 = vmatpush.msrb.mxu2 %v18402_v41  ;;  %8141 = vmatmul.f32.vlgmr.msrb.gmra.mxu0 %v18138_v45 }
 0x34d   :  { %8219 = vmatmul.f32.vlgmr.msrb.gmra.mxu2 %v8218_v46  ;;  %8326 = vmatpush.msra.mxu0 %v23630_v15 }
 0x34e   :  { %8420 = vmatpush.msra.mxu2 %v23631_v61  ;;  %8489 = vmatpush.msra.mxu3 %v18151_v56 }
 0x34f   :  { %8172 = vmatpush.msrb.mxu1 %v23632_v38  ;;  %8329 = vmatpush.msra.mxu0 %v23633_v11  ;;  %v4920_v11 = vld [vmem:[%s22880_s2 + $0x5f8] sm:$0xff] }
 0x350   :  { %8424 = vmatpush.msra.mxu2 %v23634_v13  ;;  %8491 = vmatpush.msra.mxu3 %v18178_v51 }
 0x351   :  { %8174 = vmatpush.msrb.mxu1 %v23635_v31  ;;  %8332 = vmatpush.msra.mxu0 %v23636_v17  ;;  %v18716_v31 = vand.u32 4294901760, %v4892_v21 }
 0x352   :  { %8428 = vmatpush.msra.mxu2 %v23637_v1  ;;  %8493 = vmatpush.msra.mxu3 %v18199_v49 }
 0x353   :  { %8176 = vmatpush.msrb.mxu1 %v18197_v40  ;;  %8335 = vmatpush.msra.mxu0 %v18238_v25  ;;  %v23641_v25 = vand.u32 4294901760, %v18288_v8  ;;  %v4900_v40 = vld [vmem:[%s22880_s2 + $0x558] sm:$0xff]  ;;  %23644 = vst [vmem:[#allocation47_spill] sm:$0xff] %v18716_v31 }
 0x354   :  { %8178 = vmatmul.f32.vlgmr.msrb.gmra.mxu1 %v18138_v45  ;;  %8432 = vmatpush.msra.mxu2 %v23638_v28  ;;  %v23643_v45 = vand.u32 4294901760, %v18326_v23 }
 0x355   :  { %8379 = vmatpush.msra.mxu1 %v18130_v53  ;;  %8495 = vmatpush.msra.mxu3 %v18227_v59  ;;  %v23640_v53 = vand.u32 4294901760, %v18278_v16 }
 0x356   :  { %8338 = vmatpush.msra.mxu0 %v18262_v34  ;;  %8436 = vmatpush.msra.mxu2 %v23639_v60  ;;  %v23642_v34 = vand.u32 4294901760, %v18305_v57  ;;  %v4919_v60 = vld [vmem:[%s22880_s2 + $0x5f0] sm:$0xff] }
 0x357   :  { %8381 = vmatpush.msra.mxu1 %v18151_v56  ;;  %8497 = vmatpush.msra.mxu3 %v18245_v18  ;;  %v4904_v56 = vld [vmem:[%s22880_s2 + $0x578] sm:$0xff] }
 0x358   :  { %8341 = vmatpush.msra.mxu0 %v18278_v16  ;;  %8440 = vmatpush.msra.mxu2 %v23640_v53 }
 0x359   :  { %8383 = vmatpush.msra.mxu1 %v18178_v51  ;;  %8499 = vmatpush.msra.mxu3 %v18253_v32 }
 0x35a   :  { %8344 = vmatpush.msra.mxu0 %v18288_v8  ;;  %8444 = vmatpush.msra.mxu2 %v23641_v25  ;;  %v4891_v25 = vld [vmem:[%s22880_s2 + $0x510] sm:$0xff] }
 0x35b   :  { %8385 = vmatpush.msra.mxu1 %v18199_v49  ;;  %8501 = vmatpush.msra.mxu3 %v18270_v7 }
 0x35c   :  { %8347 = vmatpush.msra.mxu0 %v18305_v57  ;;  %8448 = vmatpush.msra.mxu2 %v23642_v34  ;;  %v4903_v57 = vld [vmem:[%s22880_s2 + $0x570] sm:$0xff]  ;;  %v18736_v34 = vand.u32 4294901760, %v4920_v11 }
 0x35d   :  { %8387 = vmatpush.msra.mxu1 %v18227_v59  ;;  %8503 = vmatpush.msra.mxu3 %v18296_v10  ;;  %v18549_v59 = vand.u32 4294901760, %v4904_v56  ;;  %v18559_v51 = vand.u32 4294901760, %v4903_v57 }
 0x35e   :  { %8350 = vmatpush.msra.mxu0 %v18326_v23  ;;  %8452 = vmatpush.msra.mxu2 %v23643_v45  ;;  %v18599_v23 = vand.u32 4294901760, %v4900_v40 }
 0x35f   :  { %8389 = vmatpush.msra.mxu1 %v18245_v18  ;;  %8505 = vmatpush.msra.mxu3 %v18312_v48  ;;  %v18583_v49 = vsub.f32 %v4903_v57, %v18559_v51 }
 0x360   :  { %8353 = vmatpush.msra.mxu0 %v18341_v63  ;;  %8456 = vmatpush.msra.mxu2 %v8279_v36 }
 0x361   :  { %8391 = vmatpush.msra.mxu1 %v18253_v32  ;;  %8507 = vmatpush.msra.mxu3 %v18328_v50  ;;  %v4902_v32 = vld [vmem:[%s22880_s2 + $0x568] sm:$0xff] }
 0x362   :  { %8356 = vmatpush.msra.mxu0 %v18356_v19  ;;  %8460 = vmatpush.msra.mxu2 %v8285_v54  ;;  %v18570_v19 = vsub.f32 %v4904_v56, %v18549_v59  ;;  %v18572_v8 = vand.u32 4294901760, %v4902_v32  ;;  %v18626_v54 = vsub.f32 %v4900_v40, %v18599_v23 }
 0x363   :  { %8393 = vmatpush.msra.mxu1 %v18270_v7  ;;  %8509 = vmatpush.msra.mxu3 %v18343_v33  ;;  %v4901_v7 = vld [vmem:[%s22880_s2 + $0x560] sm:$0xff] }
 0x364   :  { %8359 = vmatpush.msra.mxu0 %v18371_v52  ;;  %8464 = vmatpush.msra.mxu2 %v8291_v2  ;;  %v18585_v18 = vand.u32 4294901760, %v4901_v7  ;;  %v18596_v16 = vsub.f32 %v4902_v32, %v18572_v8  ;;  %v4897_v52 = vld [vmem:[%s22880_s2 + $0x540] sm:$0xff]  ;;  %v23088_v0 = vand.u32 4294901760, %v18626_v54  ;;  %v23645_v32 = vld [vmem:[#allocation13_spill] sm:$0xff] }
 0x365   :  { %8395 = vmatpush.msra.mxu1 %v18296_v10  ;;  %8511 = vmatpush.msra.mxu3 %v18358_v27  ;;  %v4899_v10 = vld [vmem:[%s22880_s2 + $0x550] sm:$0xff] }
 0x366   :  { %8362 = vmatpush.msra.mxu0 %v18387_v47  ;;  %8468 = vmatpush.msra.mxu2 %v8297_v6  ;;  %v18609_v63 = vsub.f32 %v4901_v7, %v18585_v18  ;;  %v18612_v36 = vand.u32 4294901760, %v4899_v10  ;;  %v23091_v47 = vand.u32 4294901760, %v18596_v16  ;;  %v18636_v6 = vand.u32 4294901760, %v4897_v52 }
 0x367   :  { %8397 = vmatpush.msra.mxu1 %v18312_v48  ;;  %8513 = vmatpush.msra.mxu3 %v18373_v30  ;;  %v23093_v48 = vand.u32 4294901760, %v18570_v19  ;;  %v8591_v12 = vsub.f32 %v18626_v54, %v23088_v0  ;;  %v18744_v7 = vand.u32 4294901760, %v23645_v32 }
 0x368   :  { %8365 = vmatpush.msra.mxu0 %v18400_v26  ;;  %8472 = vmatpush.msra.mxu2 %v8303_v43  ;;  %v4896_v26 = vld [vmem:[%s22880_s2 + $0x538] sm:$0xff]  ;;  %v18644_v43 = vsub.f32 %v4899_v10, %v18612_v36  ;;  %v18666_v42 = vsub.f32 %v4897_v52, %v18636_v6  ;;  %v18752_v10 = vsub.f32 %v4892_v21, %v18716_v31  ;;  %v18757_v52 = vand.u32 4294901760, %v4919_v60 }
 0x369   :  { %8399 = vmatpush.msra.mxu1 %v18328_v50  ;;  %8515 = vmatpush.msra.mxu3 %v18389_v9  ;;  %v4898_v50 = vld [vmem:[%s22880_s2 + $0x548] sm:$0xff]  ;;  %v8592_v17 = vand.u32 4294901760, %v8591_v12  ;;  %v18788_v21 = vsub.f32 %v23645_v32, %v18744_v7  ;;  %v4916_v32 = vld [vmem:[%s22880_s2 + $0x5d8] sm:$0xff] }
 0x36a   :  { %8368 = vmatpush.msra.mxu0 %v18413_v44  ;;  %8476 = vmatpush.msra.mxu2 %v8309_v55  ;;  %v18629_v2 = vand.u32 4294901760, %v4898_v50  ;;  %v4895_v55 = vld [vmem:[%s22880_s2 + $0x530] sm:$0xff]  ;;  %v23086_v4 = vand.u32 4294901760, %v18644_v43  ;;  %v23084_v5 = vand.u32 4294901760, %v18666_v42 }
 0x36b   :  { %8401 = vmatpush.msra.mxu1 %v18343_v33  ;;  %8517 = vmatpush.msra.mxu3 %v18402_v41  ;;  %v23092_v33 = vand.u32 4294901760, %v18583_v49  ;;  %v18677_v14 = vand.u32 4294901760, %v4895_v55 }
 0x36c   :  { %8371 = vmatpush.msra.mxu0 %v18424_v24  ;;  %8519 = vmatmul.f32.vlgmr.msra.gmra.mxu3 %v18427_v20  ;;  %v23089_v24 = vand.u32 4294901760, %v18609_v63  ;;  %v18660_v29 = vsub.f32 %v4898_v50, %v18629_v2  ;;  %v8597_v15 = vsub.f32 %v18644_v43, %v23086_v4  ;;  %v8609_v53 = vsub.f32 %v18666_v42, %v23084_v5  ;;  %v4890_v50 = vld [vmem:[%s22880_s2 + $0x508] sm:$0xff] }
 0x36d   :  { %8403 = vmatpush.msra.mxu1 %v18358_v27  ;;  %8720 = vmatpush.msrb.mxu3 %v18549_v59  ;;  %v8567_v27 = vsub.f32 %v18570_v19, %v23093_v48  ;;  %v8573_v44 = vsub.f32 %v18583_v49, %v23092_v33  ;;  %v18706_v61 = vsub.f32 %v4895_v55, %v18677_v14 }
 0x36e   :  { %8480 = vmatpush.msra.mxu2 %v8315_v22  ;;  %8374 = vmatmul.f32.vlgmr.msra.gmra.mxu0 %v18447_v35  ;;  %v8579_v22 = vsub.f32 %v18596_v16, %v23091_v47  ;;  %v8585_v39 = vsub.f32 %v18609_v63, %v23089_v24  ;;  %v23085_v35 = vand.u32 4294901760, %v18660_v29  ;;  %v8598_v45 = vand.u32 4294901760, %v8597_v15 }
 0x36f   :  { %8482 = vmatmul.f32.vlgmr.msra.gmra.mxu2 %v18427_v20  ;;  %8524 = vmatpush.msrb.mxu0 %v18549_v59  ;;  %v18649_v20 = vand.u32 4294901760, %v4896_v26  ;;  %v8574_v37 = vand.u32 4294901760, %v8573_v44  ;;  %v23081_v57 = vand.u32 4294901760, %v18706_v61  ;;  %v18763_v44 = vand.u32 4294901760, %v4891_v25 }
 0x370   :  { %8667 = vmatpush.msrb.mxu2 %v18570_v19  ;;  %8722 = vmatpush.msrb.mxu3 %v18559_v51  ;;  %v8580_v58 = vand.u32 4294901760, %v8579_v22  ;;  %v8586_v46 = vand.u32 4294901760, %v8585_v39  ;;  %v8603_v1 = vsub.f32 %v18660_v29, %v23085_v35  ;;  %v4889_v22 = vld [vmem:[%s22880_s2 + $0x500] sm:$0xff]  ;;  %v23087_v15 = vand.u32 4294901760, %v18752_v10 }
 0x371   :  { %8405 = vmatpush.msra.mxu1 %v18373_v30  ;;  %8526 = vmatpush.msrb.mxu0 %v18559_v51  ;;  %v8568_v30 = vand.u32 4294901760, %v8567_v27  ;;  %v18683_v3 = vsub.f32 %v4896_v26, %v18649_v20  ;;  %v4918_v27 = vld [vmem:[%s22880_s2 + $0x5e8] sm:$0xff]  ;;  %23646 = vst [vmem:[#allocation33_spill] sm:$0xff] %v18763_v44  ;;  %v8621_v39 = vsub.f32 %v18706_v61, %v23081_v57  ;;  %v4915_v57 = vld [vmem:[%s22880_s2 + $0x5d0] sm:$0xff] }
 0x372   :  { %8670 = vmatpush.msrb.mxu2 %v18583_v49  ;;  %8724 = vmatpush.msrb.mxu3 %v18572_v8  ;;  %v8604_v26 = vand.u32 4294901760, %v8603_v1  ;;  %v18784_v12 = vand.u32 4294901760, %v4918_v27  ;;  %v18801_v1 = vsub.f32 %v4891_v25, %v18763_v44 }
 0x373   :  { %8407 = vmatpush.msra.mxu1 %v18389_v9  ;;  %8528 = vmatpush.msrb.mxu0 %v18572_v8  ;;  %v4894_v9 = vld [vmem:[%s22880_s2 + $0x528] sm:$0xff]  ;;  %v23083_v13 = vand.u32 4294901760, %v18683_v3 }
 0x374   :  { %8673 = vmatpush.msrb.mxu2 %v18596_v16  ;;  %8726 = vmatpush.msrb.mxu3 %v18585_v18  ;;  %v23095_v35 = vand.u32 4294901760, %v18801_v1 }
 0x375   :  { %8409 = vmatpush.msra.mxu1 %v18402_v41  ;;  %8530 = vmatpush.msrb.mxu0 %v18585_v18  ;;  %v4893_v41 = vld [vmem:[%s22880_s2 + $0x520] sm:$0xff]  ;;  %v8615_v40 = vsub.f32 %v18683_v3, %v23083_v13 }
 0x376   :  { %8413 = vmatmul.f32.vlgmr.msra.gmra.mxu1 %v8216_v62  ;;  %8676 = vmatpush.msrb.mxu2 %v18609_v63  ;;  %v18693_v62 = vand.u32 4294901760, %v4894_v9  ;;  %v18708_v38 = vand.u32 4294901760, %v4893_v41 }
 0x377   :  { %8569 = vmatpush.msrb.mxu1 %v8568_v30  ;;  %8728 = vmatpush.msrb.mxu3 %v18599_v23  ;;  %v8610_v30 = vand.u32 4294901760, %v8609_v53  ;;  %v18803_v53 = vand.u32 4294901760, %v4889_v22 }
 0x378   :  { %8532 = vmatpush.msrb.mxu0 %v18599_v23  ;;  %8679 = vmatpush.msrb.mxu2 %v18626_v54  ;;  %v18723_v28 = vsub.f32 %v4894_v9, %v18693_v62  ;;  %v18740_v56 = vsub.f32 %v4893_v41, %v18708_v38  ;;  %v18772_v9 = vsub.f32 %v4920_v11, %v18736_v34  ;;  %v18781_v41 = vand.u32 4294901760, %v4890_v50 }
 0x379   :  { %8575 = vmatpush.msrb.mxu1 %v8574_v37  ;;  %8730 = vmatpush.msrb.mxu3 %v18612_v36  ;;  %v4917_v37 = vld [vmem:[%s22880_s2 + $0x5e0] sm:$0xff]  ;;  %v18794_v11 = vsub.f32 %v4919_v60, %v18757_v52  ;;  %v18840_v5 = vsub.f32 %v4889_v22, %v18803_v53 }
 0x37a   :  { %8534 = vmatpush.msrb.mxu0 %v18612_v36  ;;  %8682 = vmatpush.msrb.mxu2 %v18644_v43  ;;  %v23080_v55 = vand.u32 4294901760, %v18723_v28  ;;  %23647 = vst [vmem:[#allocation36_spill] sm:$0xff] %v18772_v9  ;;  %v23090_v60 = vand.u32 4294901760, %v18772_v9  ;;  %v4913_v22 = vld [vmem:[%s22880_s2 + $0x5c0] sm:$0xff] }
 0x37b   :  { %8581 = vmatpush.msrb.mxu1 %v8580_v58  ;;  %8732 = vmatpush.msrb.mxu3 %v18629_v2  ;;  %23648 = vst [vmem:[#allocation39_spill] sm:$0xff] %v18781_v41  ;;  %v23082_v58 = vand.u32 4294901760, %v18740_v56  ;;  %v18876_v0 = vand.u32 4294901760, %v4913_v22 }
 0x37c   :  { %8536 = vmatpush.msrb.mxu0 %v18629_v2  ;;  %8685 = vmatpush.msrb.mxu2 %v18660_v29  ;;  %23649 = vst [vmem:[#allocation41_spill] sm:$0xff] %v18794_v11 }
 0x37d   :  { %8587 = vmatpush.msrb.mxu1 %v8586_v46  ;;  %8734 = vmatpush.msrb.mxu3 %v18636_v6  ;;  %v8616_v46 = vand.u32 4294901760, %v8615_v40  ;;  %v8622_v40 = vand.u32 4294901760, %v8621_v39  ;;  %v8633_v25 = vsub.f32 %v18740_v56, %v23082_v58  ;;  %v8639_v39 = vsub.f32 %v18752_v10, %v23087_v15 }
 0x37e   :  { %8538 = vmatpush.msrb.mxu0 %v18636_v6  ;;  %8688 = vmatpush.msrb.mxu2 %v18666_v42  ;;  %v18833_v58 = vand.u32 4294901760, %v4916_v32  ;;  %v8908_v15 = vsub.f32 %v18772_v9, %v23090_v60 }
 0x37f   :  { %8593 = vmatpush.msrb.mxu1 %v8592_v17  ;;  %8736 = vmatpush.msrb.mxu3 %v18649_v20  ;;  %v8627_v17 = vsub.f32 %v18723_v28, %v23080_v55  ;;  %v18821_v55 = vsub.f32 %v4918_v27, %v18784_v12  ;;  %v4914_v27 = vld [vmem:[%s22880_s2 + $0x5c8] sm:$0xff]  ;;  %v8640_v60 = vand.u32 4294901760, %v8639_v39 }
 0x380   :  { %8540 = vmatpush.msrb.mxu0 %v18649_v20  ;;  %8691 = vmatpush.msrb.mxu2 %v18683_v3  ;;  %v18859_v24 = vand.u32 4294901760, %v4914_v27  ;;  %v18868_v33 = vsub.f32 %v4916_v32, %v18833_v58 }
 0x381   :  { %8599 = vmatpush.msrb.mxu1 %v8598_v45  ;;  %8738 = vmatpush.msrb.mxu3 %v18677_v14  ;;  %v18805_v45 = vand.u32 4294901760, %v4917_v37  ;;  %23650 = vst [vmem:[#allocation43_spill] sm:$0xff] %v18821_v55  ;;  %v8628_v13 = vand.u32 4294901760, %v8627_v17  ;;  %v8634_v17 = vand.u32 4294901760, %v8633_v25  ;;  %v8645_v25 = vsub.f32 %v18801_v1, %v23095_v35 }
 0x382   :  { %8542 = vmatpush.msrb.mxu0 %v18677_v14  ;;  %8694 = vmatpush.msrb.mxu2 %v18706_v61 }
 0x383   :  { %8605 = vmatpush.msrb.mxu1 %v8604_v26  ;;  %8740 = vmatpush.msrb.mxu3 %v18693_v62  ;;  %v18818_v26 = vsub.f32 %v4890_v50, %v18781_v41  ;;  %v23094_v50 = vand.u32 4294901760, %v18794_v11  ;;  %v18844_v4 = vsub.f32 %v4917_v37, %v18805_v45  ;;  %v23099_v37 = vand.u32 4294901760, %v18821_v55 }
 0x384   :  { %8544 = vmatpush.msrb.mxu0 %v18693_v62  ;;  %8697 = vmatpush.msrb.mxu2 %v18723_v28 }
 0x385   :  { %8611 = vmatpush.msrb.mxu1 %v8610_v30  ;;  %8742 = vmatpush.msrb.mxu3 %v18708_v38  ;;  %v8557_v30 = vand.u32 4294901760, %v18788_v21  ;;  %v8920_v35 = vsub.f32 %v18821_v55, %v23099_v37  ;;  %v23651_v39 = vand.u32 4294901760, %v18818_v26 }
 0x386   :  { %8546 = vmatpush.msrb.mxu0 %v18708_v38  ;;  %8700 = vmatpush.msrb.mxu2 %v18740_v56 }
 0x387   :  { %8617 = vmatpush.msrb.mxu1 %v8616_v46  ;;  %8744 = vmatpush.msrb.mxu3 %v18716_v31  ;;  %v18851_v46 = vand.u32 4294901760, %v4915_v57  ;;  %v8558_v47 = vsub.f32 %v18788_v21, %v8557_v30  ;;  %v8651_v48 = vsub.f32 %v18818_v26, %v23651_v39  ;;  %v8646_v39 = vand.u32 4294901760, %v8645_v25 }
 0x388   :  { %8548 = vmatpush.msrb.mxu0 %v18716_v31  ;;  %8703 = vmatpush.msrb.mxu2 %v18752_v10  ;;  %v18911_v31 = vsub.f32 %v4913_v22, %v18876_v0  ;;  %v4909_v22 = vld [vmem:[%s22880_s2 + $0x5a0] sm:$0xff] }
 0x389   :  { %8623 = vmatpush.msrb.mxu1 %v8622_v40  ;;  %8746 = vmatpush.msrb.mxu3 %v18763_v44  ;;  %v8914_v40 = vsub.f32 %v18794_v11, %v23094_v50  ;;  %v4912_v50 = vld [vmem:[%s22880_s2 + $0x5b8] sm:$0xff]  ;;  %v18884_v32 = vsub.f32 %v4915_v57, %v18851_v46  ;;  %v18894_v11 = vsub.f32 %v4914_v27, %v18859_v24  ;;  %v8559_v57 = vand.u32 4294901760, %v8558_v47  ;;  %v4910_v47 = vld [vmem:[%s22880_s2 + $0x5a8] sm:$0xff] }
 0x38a   :  { %8550 = vmatpush.msrb.mxu0 %v18763_v44  ;;  %8706 = vmatpush.msrb.mxu2 %v18801_v1  ;;  %v18902_v37 = vand.u32 4294901760, %v4912_v50  ;;  %v23652_v27 = vand.u32 4294901760, %v18844_v4  ;;  %v23653_v44 = vand.u32 4294901760, %v18840_v5  ;;  %v8652_v25 = vand.u32 4294901760, %v8651_v48 }
 0x38b   :  { %8629 = vmatpush.msrb.mxu1 %v8628_v13  ;;  %8748 = vmatpush.msrb.mxu3 %v18781_v41  ;;  %v8909_v13 = vand.u32 4294901760, %v8908_v15  ;;  %v4911_v15 = vld [vmem:[%s22880_s2 + $0x5b0] sm:$0xff] }
 0x38c   :  { %8552 = vmatpush.msrb.mxu0 %v18781_v41  ;;  %8709 = vmatpush.msrb.mxu2 %v18818_v26  ;;  %v23107_v41 = vand.u32 4294901760, %v18868_v33  ;;  %v8926_v55 = vsub.f32 %v18844_v4, %v23652_v27  ;;  %v8657_v9 = vsub.f32 %v18840_v5, %v23653_v44  ;;  %v23654_v27 = vand.u32 4294901760, %v18570_v19  ;;  %v4908_v19 = vld [vmem:[%s22880_s2 + $0x598] sm:$0xff] }
 0x38d   :  { %8635 = vmatpush.msrb.mxu1 %v8634_v17  ;;  %8750 = vmatpush.msrb.mxu3 %v18803_v53  ;;  %v8915_v17 = vand.u32 4294901760, %v8914_v40  ;;  %v8921_v40 = vand.u32 4294901760, %v8920_v35  ;;  %v18934_v35 = vand.u32 4294901760, %v4910_v47  ;;  %v23108_v44 = vand.u32 4294901760, %v18911_v31 }
 0x38e   :  { %8554 = vmatpush.msrb.mxu0 %v18803_v53  ;;  %8754 = vmatmul.f32.vlgmr.msrb.gmra.mxu3 %v8557_v30  ;;  %v18918_v30 = vand.u32 4294901760, %v4911_v15  ;;  %v8927_v48 = vand.u32 4294901760, %v8926_v55  ;;  %v18949_v55 = vand.u32 4294901760, %v4909_v22 }
 0x38f   :  { %8641 = vmatpush.msrb.mxu1 %v8640_v60  ;;  %8910 = vmatpush.msra.mxu3 %v8909_v13  ;;  %v23106_v60 = vand.u32 4294901760, %v18884_v32  ;;  %v8932_v13 = vsub.f32 %v18868_v33, %v23107_v41  ;;  %v18962_v41 = vsub.f32 %v4910_v47, %v18934_v35 }
 0x390   :  { %8712 = vmatpush.msrb.mxu2 %v18840_v5  ;;  %8560 = vmatmul.f32.vlgmr.msrb.gmra.mxu0 %v8559_v57  ;;  %v18932_v57 = vsub.f32 %v4912_v50, %v18902_v37 }
 0x391   :  { %8715 = vmatmul.f32.vlgmr.msrb.gmra.mxu2 %v18788_v21  ;;  %8761 = vmatpush.msra.mxu0 %v23654_v27  ;;  %v8658_v21 = vand.u32 4294901760, %v8657_v9  ;;  %v23655_v27 = vand.u32 4294901760, %v18583_v49  ;;  %v8938_v50 = vsub.f32 %v18884_v32, %v23106_v60  ;;  %v23656_v9 = vand.u32 4294901760, %v18894_v11  ;;  %v4907_v49 = vld [vmem:[%s22880_s2 + $0x590] sm:$0xff] }
 0x392   :  { %8865 = vmatpush.msra.mxu2 %v18736_v34  ;;  %8916 = vmatpush.msra.mxu3 %v8915_v17  ;;  %v18947_v17 = vsub.f32 %v4911_v15, %v18918_v30  ;;  %v8933_v60 = vand.u32 4294901760, %v8932_v13  ;;  %v23109_v15 = vand.u32 4294901760, %v18932_v57  ;;  %v23658_v13 = vand.u32 4294901760, %v18609_v63 }
 0x393   :  { %8647 = vmatpush.msrb.mxu1 %v8646_v39  ;;  %8765 = vmatpush.msra.mxu0 %v23655_v27  ;;  %v8944_v39 = vsub.f32 %v18894_v11, %v23656_v9  ;;  %v23657_v27 = vand.u32 4294901760, %v18596_v16  ;;  %v4906_v16 = vld [vmem:[%s22880_s2 + $0x588] sm:$0xff]  ;;  %v8939_v9 = vand.u32 4294901760, %v8938_v50  ;;  %v23659_v63 = vand.u32 4294901760, %v18626_v54 }
 0x394   :  { %8867 = vmatpush.msra.mxu2 %v18757_v52  ;;  %8922 = vmatpush.msra.mxu3 %v8921_v40  ;;  %v18964_v40 = vand.u32 4294901760, %v4908_v19  ;;  %v8961_v47 = vand.u32 4294901760, %v18947_v17  ;;  %v8967_v50 = vand.u32 4294901760, %v18962_v41  ;;  %v23660_v54 = vand.u32 4294901760, %v18644_v43 }
 0x395   :  { %8653 = vmatpush.msrb.mxu1 %v8652_v25  ;;  %8769 = vmatpush.msra.mxu0 %v23657_v27  ;;  %v8950_v25 = vsub.f32 %v18911_v31, %v23108_v44  ;;  %v18977_v27 = vsub.f32 %v4909_v22, %v18949_v55  ;;  %v4905_v44 = vld [vmem:[%s22880_s2 + $0x580] sm:$0xff]  ;;  %v8956_v22 = vsub.f32 %v18932_v57, %v23109_v15 }
 0x396   :  { %8869 = vmatpush.msra.mxu2 %v18784_v12  ;;  %8928 = vmatpush.msra.mxu3 %v8927_v48  ;;  %v18979_v48 = vand.u32 4294901760, %v4907_v49  ;;  %v19008_v15 = vand.u32 4294901760, %v4905_v44 }
 0x397   :  { %8659 = vmatpush.msrb.mxu1 %v8658_v21  ;;  %8773 = vmatpush.msra.mxu0 %v23658_v13  ;;  %v8945_v21 = vand.u32 4294901760, %v8944_v39  ;;  %v18993_v13 = vsub.f32 %v4908_v19, %v18964_v40  ;;  %v8951_v39 = vand.u32 4294901760, %v8950_v25  ;;  %v8957_v43 = vand.u32 4294901760, %v8956_v22 }
 0x398   :  { %8661 = vmatmul.f32.vlgmr.msrb.gmra.mxu1 %v18744_v7  ;;  %8871 = vmatpush.msra.mxu2 %v18805_v45  ;;  %v19006_v19 = vsub.f32 %v4907_v49, %v18979_v48  ;;  %v8968_v25 = vsub.f32 %v18962_v41, %v8967_v50 }
 0x399   :  { %8828 = vmatpush.msra.mxu1 %v18549_v59  ;;  %8934 = vmatpush.msra.mxu3 %v8933_v60  ;;  %v18995_v59 = vand.u32 4294901760, %v4906_v16  ;;  %v8962_v60 = vsub.f32 %v18947_v17, %v8961_v47 }
 0x39a   :  { %8777 = vmatpush.msra.mxu0 %v23659_v63  ;;  %8873 = vmatpush.msra.mxu2 %v18833_v58  ;;  %v8973_v63 = vand.u32 4294901760, %v18977_v27  ;;  %v8985_v22 = vand.u32 4294901760, %v19006_v19 }
 0x39b   :  { %8830 = vmatpush.msra.mxu1 %v18559_v51  ;;  %8940 = vmatpush.msra.mxu3 %v8939_v9  ;;  %v23661_v51 = vand.u32 4294901760, %v18660_v29  ;;  %v8979_v9 = vand.u32 4294901760, %v18993_v13  ;;  %v19019_v49 = vsub.f32 %v4906_v16, %v18995_v59  ;;  %v8963_v29 = vand.u32 4294901760, %v8962_v60  ;;  %v23663_v16 = vld [vmem:[#allocation14_spill] sm:$0xff] }
 0x39c   :  { %8781 = vmatpush.msra.mxu0 %v23660_v54  ;;  %8875 = vmatpush.msra.mxu2 %v18851_v46  ;;  %v19030_v54 = vsub.f32 %v4905_v44, %v19008_v15 }
 0x39d   :  { %8832 = vmatpush.msra.mxu1 %v18572_v8  ;;  %8946 = vmatpush.msra.mxu3 %v8945_v21  ;;  %v23662_v8 = vand.u32 4294901760, %v18666_v42  ;;  %v8974_v21 = vsub.f32 %v18977_v27, %v8973_v63  ;;  %v8969_v42 = vand.u32 4294901760, %v8968_v25  ;;  %v8991_v60 = vand.u32 4294901760, %v19019_v49 }
 0x39e   :  { %8785 = vmatpush.msra.mxu0 %v23661_v51  ;;  %8877 = vmatpush.msra.mxu2 %v18859_v24  ;;  %v19033_v51 = vand.u32 4294901760, %v23663_v16 }
 0x39f   :  { %8834 = vmatpush.msra.mxu1 %v18585_v18  ;;  %8952 = vmatpush.msra.mxu3 %v8951_v39  ;;  %v23664_v18 = vand.u32 4294901760, %v18683_v3  ;;  %v8980_v39 = vsub.f32 %v18993_v13, %v8979_v9  ;;  %v8975_v44 = vand.u32 4294901760, %v8974_v21  ;;  %v8986_v3 = vsub.f32 %v19006_v19, %v8985_v22 }
 0x3a0   :  { %8789 = vmatpush.msra.mxu0 %v23662_v8  ;;  %8879 = vmatpush.msra.mxu2 %v18876_v0  ;;  %v19053_v25 = vsub.f32 %v23663_v16, %v19033_v51  ;;  %v8992_v8 = vsub.f32 %v19019_v49, %v8991_v60 }
 0x3a1   :  { %8836 = vmatpush.msra.mxu1 %v18599_v23  ;;  %8958 = vmatpush.msra.mxu3 %v8957_v43  ;;  %v23665_v23 = vand.u32 4294901760, %v18706_v61  ;;  %v8997_v43 = vand.u32 4294901760, %v19030_v54  ;;  %v8981_v61 = vand.u32 4294901760, %v8980_v39 }
 0x3a2   :  { %8793 = vmatpush.msra.mxu0 %v23664_v18  ;;  %8881 = vmatpush.msra.mxu2 %v18902_v37  ;;  %v8993_v16 = vand.u32 4294901760, %v8992_v8 }
 0x3a3   :  { %8838 = vmatpush.msra.mxu1 %v18612_v36  ;;  %8964 = vmatpush.msra.mxu3 %v8963_v29  ;;  %v23666_v36 = vand.u32 4294901760, %v18723_v28  ;;  %v23667_v29 = vand.u32 4294901760, %v18740_v56  ;;  %v8998_v21 = vsub.f32 %v19030_v54, %v8997_v43  ;;  %v8898_v28 = vand.u32 4294901760, %v19053_v25 }
 0x3a4   :  { %8797 = vmatpush.msra.mxu0 %v23665_v23  ;;  %8883 = vmatpush.msra.mxu2 %v18918_v30  ;;  %v23669_v56 = vand.u32 4294901760, %v18801_v1  ;;  %v23678_v23 = vld [vmem:[#allocation39_spill] sm:$0xff] }
 0x3a5   :  { %8840 = vmatpush.msra.mxu1 %v18629_v2  ;;  %8970 = vmatpush.msra.mxu3 %v8969_v42  ;;  %v8987_v2 = vand.u32 4294901760, %v8986_v3  ;;  %v8999_v18 = vand.u32 4294901760, %v8998_v21  ;;  %v23676_v42 = vld [vmem:[#allocation41_spill] sm:$0xff] }
 0x3a6   :  { %8801 = vmatpush.msra.mxu0 %v23666_v36  ;;  %8885 = vmatpush.msra.mxu2 %v18934_v35  ;;  %v23677_v39 = vand.u32 4294901760, %v23676_v42  ;;  %v23681_v36 = vand.u32 4294901760, %v18844_v4 }
 0x3a7   :  { %8842 = vmatpush.msra.mxu1 %v18636_v6  ;;  %8976 = vmatpush.msra.mxu3 %v8975_v44  ;;  %v23668_v6 = vand.u32 4294901760, %v18752_v10  ;;  %v23670_v10 = vand.u32 4294901760, %v18818_v26  ;;  %v23673_v26 = vld [vmem:[#allocation36_spill] sm:$0xff]  ;;  %v23679_v44 = vld [vmem:[#allocation43_spill] sm:$0xff] }
 0x3a8   :  { %8805 = vmatpush.msra.mxu0 %v23667_v29  ;;  %8887 = vmatpush.msra.mxu2 %v18949_v55  ;;  %v23680_v3 = vand.u32 4294901760, %v23679_v44 }
 0x3a9   :  { %8844 = vmatpush.msra.mxu1 %v18649_v20  ;;  %8982 = vmatpush.msra.mxu3 %v8981_v61  ;;  %v8899_v20 = vsub.f32 %v19053_v25, %v8898_v28  ;;  %v23682_v61 = vand.u32 4294901760, %v18868_v33 }
 0x3aa   :  { %8809 = vmatpush.msra.mxu0 %v23668_v6  ;;  %8889 = vmatpush.msra.mxu2 %v18964_v40 }
 0x3ab   :  { %8846 = vmatpush.msra.mxu1 %v18677_v14  ;;  %8988 = vmatpush.msra.mxu3 %v8987_v2  ;;  %v23671_v14 = vand.u32 4294901760, %v18840_v5  ;;  %v8900_v1 = vand.u32 4294901760, %v8899_v20  ;;  %v23675_v5 = vld [vmem:[#allocation33_spill] sm:$0xff] }
 0x3ac   :  { %8813 = vmatpush.msra.mxu0 %v23669_v56  ;;  %8891 = vmatpush.msra.mxu2 %v18979_v48 }
 0x3ad   :  { %8848 = vmatpush.msra.mxu1 %v18693_v62  ;;  %8994 = vmatpush.msra.mxu3 %v8993_v16  ;;  %v23672_v62 = vld [vmem:[#allocation47_spill] sm:$0xff] }
 0x3ae   :  { %8817 = vmatpush.msra.mxu0 %v23670_v10  ;;  %8893 = vmatpush.msra.mxu2 %v18995_v59 }
 0x3af   :  { %8850 = vmatpush.msra.mxu1 %v18708_v38  ;;  %9000 = vmatpush.msra.mxu3 %v8999_v18  ;;  %v23674_v38 = vand.u32 4294901760, %v23673_v26 }
 0x3b0   :  { %8821 = vmatpush.msra.mxu0 %v23671_v14  ;;  %9002 = vmatmul.f32.vlgmr.msra.gmra.mxu3 %v19033_v51  ;;  %v4924_v14 = vld [vmem:[%s22880_s2 + $0x618] sm:$0xff] }
 0x3b1   :  { %8852 = vmatpush.msra.mxu1 %v23672_v62  ;;  %9169 = vmatpush.msrb.mxu3 %v18736_v34 }
 0x3b2   :  { %8895 = vmatpush.msra.mxu2 %v19008_v15  ;;  %8823 = vmatmul.f32.vlgmr.msra.gmra.mxu0 %v18744_v7 }
 0x3b3   :  { %8901 = vmatmul.f32.vlgmr.msra.gmra.mxu2 %v8900_v1  ;;  %9008 = vmatpush.msrb.mxu0 %v23673_v26 }
 0x3b4   :  { %9102 = vmatpush.msrb.mxu2 %v23674_v38  ;;  %9171 = vmatpush.msrb.mxu3 %v18757_v52 }
 0x3b5   :  { %8854 = vmatpush.msra.mxu1 %v23675_v5  ;;  %9011 = vmatpush.msrb.mxu0 %v23676_v42  ;;  %v4952_v42 = vld [vmem:[%s22880_s2 + $0x6f8] sm:$0xff] }
 0x3b6   :  { %9106 = vmatpush.msrb.mxu2 %v23677_v39  ;;  %9173 = vmatpush.msrb.mxu3 %v18784_v12 }
 0x3b7   :  { %8856 = vmatpush.msra.mxu1 %v23678_v23  ;;  %9014 = vmatpush.msrb.mxu0 %v23679_v44  ;;  %v19322_v23 = vand.u32 4294901760, %v4924_v14 }
 0x3b8   :  { %9110 = vmatpush.msrb.mxu2 %v23680_v3  ;;  %9175 = vmatpush.msrb.mxu3 %v18805_v45 }
 0x3b9   :  { %8858 = vmatpush.msra.mxu1 %v18803_v53  ;;  %9017 = vmatpush.msrb.mxu0 %v18844_v4  ;;  %v23684_v4 = vand.u32 4294901760, %v18894_v11  ;;  %v4932_v53 = vld [vmem:[%s22880_s2 + $0x658] sm:$0xff]  ;;  %23687 = vst [vmem:[#allocation42_spill] sm:$0xff] %v19322_v23 }
 0x3ba   :  { %8860 = vmatmul.f32.vlgmr.msra.gmra.mxu1 %v18744_v7  ;;  %9114 = vmatpush.msrb.mxu2 %v23681_v36  ;;  %v23686_v7 = vand.u32 4294901760, %v18932_v57 }
 0x3bb   :  { %9061 = vmatpush.msrb.mxu1 %v18736_v34  ;;  %9177 = vmatpush.msrb.mxu3 %v18833_v58  ;;  %v23683_v34 = vand.u32 4294901760, %v18884_v32 }
 0x3bc   :  { %9020 = vmatpush.msrb.mxu0 %v18868_v33  ;;  %9118 = vmatpush.msrb.mxu2 %v23682_v61  ;;  %v23685_v33 = vand.u32 4294901760, %v18911_v31  ;;  %v4951_v61 = vld [vmem:[%s22880_s2 + $0x6f0] sm:$0xff] }
 0x3bd   :  { %9063 = vmatpush.msrb.mxu1 %v18757_v52  ;;  %9179 = vmatpush.msrb.mxu3 %v18851_v46  ;;  %v4936_v52 = vld [vmem:[%s22880_s2 + $0x678] sm:$0xff] }
 0x3be   :  { %9023 = vmatpush.msrb.mxu0 %v18884_v32  ;;  %9122 = vmatpush.msrb.mxu2 %v23683_v34 }
 0x3bf   :  { %9065 = vmatpush.msrb.mxu1 %v18784_v12  ;;  %9181 = vmatpush.msrb.mxu3 %v18859_v24 }
 0x3c0   :  { %9026 = vmatpush.msrb.mxu0 %v18894_v11  ;;  %9126 = vmatpush.msrb.mxu2 %v23684_v4  ;;  %v4923_v4 = vld [vmem:[%s22880_s2 + $0x610] sm:$0xff] }
 0x3c1   :  { %9067 = vmatpush.msrb.mxu1 %v18805_v45  ;;  %9183 = vmatpush.msrb.mxu3 %v18876_v0 }
 0x3c2   :  { %9029 = vmatpush.msrb.mxu0 %v18911_v31  ;;  %9130 = vmatpush.msrb.mxu2 %v23685_v33  ;;  %v4935_v31 = vld [vmem:[%s22880_s2 + $0x670] sm:$0xff]  ;;  %v19342_v33 = vand.u32 4294901760, %v4952_v42 }
 0x3c3   :  { %9069 = vmatpush.msrb.mxu1 %v18833_v58  ;;  %9185 = vmatpush.msrb.mxu3 %v18902_v37  ;;  %v19155_v58 = vand.u32 4294901760, %v4936_v52  ;;  %v19165_v12 = vand.u32 4294901760, %v4935_v31 }
 0x3c4   :  { %9032 = vmatpush.msrb.mxu0 %v18932_v57  ;;  %9134 = vmatpush.msrb.mxu2 %v23686_v7  ;;  %v19205_v57 = vand.u32 4294901760, %v4932_v53 }
 0x3c5   :  { %9071 = vmatpush.msrb.mxu1 %v18851_v46  ;;  %9187 = vmatpush.msrb.mxu3 %v18918_v30  ;;  %v19189_v45 = vsub.f32 %v4935_v31, %v19165_v12 }
 0x3c6   :  { %9035 = vmatpush.msrb.mxu0 %v18947_v17  ;;  %9138 = vmatpush.msrb.mxu2 %v8961_v47 }
 0x3c7   :  { %9073 = vmatpush.msrb.mxu1 %v18859_v24  ;;  %9189 = vmatpush.msrb.mxu3 %v18934_v35  ;;  %v4934_v24 = vld [vmem:[%s22880_s2 + $0x668] sm:$0xff] }
 0x3c8   :  { %9038 = vmatpush.msrb.mxu0 %v18962_v41  ;;  %9142 = vmatpush.msrb.mxu2 %v8967_v50  ;;  %v19176_v41 = vsub.f32 %v4936_v52, %v19155_v58  ;;  %v19178_v11 = vand.u32 4294901760, %v4934_v24  ;;  %v19232_v50 = vsub.f32 %v4932_v53, %v19205_v57 }
 0x3c9   :  { %9075 = vmatpush.msrb.mxu1 %v18876_v0  ;;  %9191 = vmatpush.msrb.mxu3 %v18949_v55  ;;  %v4933_v0 = vld [vmem:[%s22880_s2 + $0x660] sm:$0xff] }
 0x3ca   :  { %9041 = vmatpush.msrb.mxu0 %v18977_v27  ;;  %9146 = vmatpush.msrb.mxu2 %v8973_v63  ;;  %v19191_v46 = vand.u32 4294901760, %v4933_v0  ;;  %v19202_v32 = vsub.f32 %v4934_v24, %v19178_v11  ;;  %v4929_v27 = vld [vmem:[%s22880_s2 + $0x640] sm:$0xff]  ;;  %v23118_v29 = vand.u32 4294901760, %v19232_v50 }
 0x3cb   :  { %9077 = vmatpush.msrb.mxu1 %v18902_v37  ;;  %9193 = vmatpush.msrb.mxu3 %v18964_v40  ;;  %v4931_v37 = vld [vmem:[%s22880_s2 + $0x650] sm:$0xff]  ;;  %v23688_v24 = vld [vmem:[#allocation15_spill] sm:$0xff] }
 0x3cc   :  { %9044 = vmatpush.msrb.mxu0 %v18993_v13  ;;  %9150 = vmatpush.msrb.mxu2 %v8979_v9  ;;  %v19215_v17 = vsub.f32 %v4933_v0, %v19191_v46  ;;  %v19218_v47 = vand.u32 4294901760, %v4931_v37  ;;  %v23121_v13 = vand.u32 4294901760, %v19202_v32  ;;  %v19242_v9 = vand.u32 4294901760, %v4929_v27 }
 0x3cd   :  { %9079 = vmatpush.msrb.mxu1 %v18918_v30  ;;  %9195 = vmatpush.msrb.mxu3 %v18979_v48  ;;  %v23123_v30 = vand.u32 4294901760, %v19176_v41  ;;  %v9273_v10 = vsub.f32 %v19232_v50, %v23118_v29  ;;  %v19350_v0 = vand.u32 4294901760, %v23688_v24 }
 0x3ce   :  { %9047 = vmatpush.msrb.mxu0 %v19006_v19  ;;  %9154 = vmatpush.msrb.mxu2 %v8985_v22  ;;  %v4928_v19 = vld [vmem:[%s22880_s2 + $0x638] sm:$0xff]  ;;  %v19250_v22 = vsub.f32 %v4931_v37, %v19218_v47  ;;  %v19272_v2 = vsub.f32 %v4929_v27, %v19242_v9  ;;  %v19358_v37 = vsub.f32 %v4924_v14, %v19322_v23  ;;  %v19363_v27 = vand.u32 4294901760, %v4951_v61 }
 0x3cf   :  { %9081 = vmatpush.msrb.mxu1 %v18934_v35  ;;  %9197 = vmatpush.msrb.mxu3 %v18995_v59  ;;  %v4930_v35 = vld [vmem:[%s22880_s2 + $0x648] sm:$0xff]  ;;  %v9274_v44 = vand.u32 4294901760, %v9273_v10  ;;  %v19394_v14 = vsub.f32 %v23688_v24, %v19350_v0  ;;  %v4948_v24 = vld [vmem:[%s22880_s2 + $0x6d8] sm:$0xff] }
 0x3d0   :  { %9050 = vmatpush.msrb.mxu0 %v19019_v49  ;;  %9158 = vmatpush.msrb.mxu2 %v8991_v60  ;;  %v19235_v63 = vand.u32 4294901760, %v4930_v35  ;;  %v4927_v60 = vld [vmem:[%s22880_s2 + $0x630] sm:$0xff]  ;;  %v23116_v16 = vand.u32 4294901760, %v19250_v22  ;;  %v23114_v62 = vand.u32 4294901760, %v19272_v2 }
 0x3d1   :  { %9083 = vmatpush.msrb.mxu1 %v18949_v55  ;;  %9199 = vmatpush.msrb.mxu3 %v19008_v15  ;;  %v23122_v55 = vand.u32 4294901760, %v19189_v45  ;;  %v19283_v56 = vand.u32 4294901760, %v4927_v60 }
 0x3d2   :  { %9053 = vmatpush.msrb.mxu0 %v19030_v54  ;;  %9201 = vmatmul.f32.vlgmr.msrb.gmra.mxu3 %v19033_v51  ;;  %v23119_v54 = vand.u32 4294901760, %v19215_v17  ;;  %v19266_v8 = vsub.f32 %v4930_v35, %v19235_v63  ;;  %v9279_v26 = vsub.f32 %v19250_v22, %v23116_v16  ;;  %v9291_v34 = vsub.f32 %v19272_v2, %v23114_v62  ;;  %v4922_v35 = vld [vmem:[%s22880_s2 + $0x608] sm:$0xff] }
 0x3d3   :  { %9085 = vmatpush.msrb.mxu1 %v18964_v40  ;;  %9402 = vmatpush.msra.mxu3 %v19155_v58  ;;  %v9249_v40 = vsub.f32 %v19176_v41, %v23123_v30  ;;  %v9255_v49 = vsub.f32 %v19189_v45, %v23122_v55  ;;  %v19312_v38 = vsub.f32 %v4927_v60, %v19283_v56 }
 0x3d4   :  { %9162 = vmatpush.msrb.mxu2 %v8997_v43  ;;  %9056 = vmatmul.f32.vlgmr.msrb.gmra.mxu0 %v19053_v25  ;;  %v9261_v43 = vsub.f32 %v19202_v32, %v23121_v13  ;;  %v9267_v6 = vsub.f32 %v19215_v17, %v23119_v54  ;;  %v23115_v25 = vand.u32 4294901760, %v19266_v8  ;;  %v9280_v7 = vand.u32 4294901760, %v9279_v26 }
 0x3d5   :  { %9164 = vmatmul.f32.vlgmr.msrb.gmra.mxu2 %v19033_v51  ;;  %9206 = vmatpush.msra.mxu0 %v19155_v58  ;;  %v19255_v51 = vand.u32 4294901760, %v4928_v19  ;;  %v9256_v21 = vand.u32 4294901760, %v9255_v49  ;;  %v23111_v31 = vand.u32 4294901760, %v19312_v38  ;;  %v19369_v49 = vand.u32 4294901760, %v4923_v4 }
 0x3d6   :  { %9349 = vmatpush.msra.mxu2 %v19176_v41  ;;  %9404 = vmatpush.msra.mxu3 %v19165_v12  ;;  %v9262_v20 = vand.u32 4294901760, %v9261_v43  ;;  %v9268_v1 = vand.u32 4294901760, %v9267_v6  ;;  %v9285_v3 = vsub.f32 %v19266_v8, %v23115_v25  ;;  %v4921_v43 = vld [vmem:[%s22880_s2 + $0x600] sm:$0xff]  ;;  %v23117_v26 = vand.u32 4294901760, %v19358_v37 }
 0x3d7   :  { %9087 = vmatpush.msrb.mxu1 %v18979_v48  ;;  %9208 = vmatpush.msra.mxu0 %v19165_v12  ;;  %v9250_v48 = vand.u32 4294901760, %v9249_v40  ;;  %v19289_v18 = vsub.f32 %v4928_v19, %v19255_v51  ;;  %v4950_v40 = vld [vmem:[%s22880_s2 + $0x6e8] sm:$0xff]  ;;  %23689 = vst [vmem:[#allocation46_spill] sm:$0xff] %v19369_v49  ;;  %v9303_v6 = vsub.f32 %v19312_v38, %v23111_v31  ;;  %v4947_v31 = vld [vmem:[%s22880_s2 + $0x6d0] sm:$0xff] }
 0x3d8   :  { %9352 = vmatpush.msra.mxu2 %v19189_v45  ;;  %9406 = vmatpush.msra.mxu3 %v19178_v11  ;;  %v9286_v19 = vand.u32 4294901760, %v9285_v3  ;;  %v19390_v10 = vand.u32 4294901760, %v4950_v40  ;;  %v19407_v3 = vsub.f32 %v4923_v4, %v19369_v49 }
 0x3d9   :  { %9089 = vmatpush.msrb.mxu1 %v18995_v59  ;;  %9210 = vmatpush.msra.mxu0 %v19178_v11  ;;  %v4926_v59 = vld [vmem:[%s22880_s2 + $0x628] sm:$0xff]  ;;  %v23113_v39 = vand.u32 4294901760, %v19289_v18 }
 0x3da   :  { %9355 = vmatpush.msra.mxu2 %v19202_v32  ;;  %9408 = vmatpush.msra.mxu3 %v19191_v46  ;;  %v23125_v25 = vand.u32 4294901760, %v19407_v3 }
 0x3db   :  { %9091 = vmatpush.msrb.mxu1 %v19008_v15  ;;  %9212 = vmatpush.msra.mxu0 %v19191_v46  ;;  %v4925_v15 = vld [vmem:[%s22880_s2 + $0x620] sm:$0xff]  ;;  %v9297_v53 = vsub.f32 %v19289_v18, %v23113_v39 }
 0x3dc   :  { %9095 = vmatmul.f32.vlgmr.msrb.gmra.mxu1 %v8898_v28  ;;  %9358 = vmatpush.msra.mxu2 %v19215_v17  ;;  %v19299_v28 = vand.u32 4294901760, %v4926_v59  ;;  %v19314_v5 = vand.u32 4294901760, %v4925_v15 }
 0x3dd   :  { %9251 = vmatpush.msra.mxu1 %v9250_v48  ;;  %9410 = vmatpush.msra.mxu3 %v19205_v57  ;;  %v9292_v48 = vand.u32 4294901760, %v9291_v34  ;;  %v19409_v34 = vand.u32 4294901760, %v4921_v43 }
 0x3de   :  { %9214 = vmatpush.msra.mxu0 %v19205_v57  ;;  %9361 = vmatpush.msra.mxu2 %v19232_v50  ;;  %v19329_v36 = vsub.f32 %v4926_v59, %v19299_v28  ;;  %v19346_v52 = vsub.f32 %v4925_v15, %v19314_v5  ;;  %v19378_v59 = vsub.f32 %v4952_v42, %v19342_v33  ;;  %v19387_v15 = vand.u32 4294901760, %v4922_v35 }
 0x3df   :  { %9257 = vmatpush.msra.mxu1 %v9256_v21  ;;  %9412 = vmatpush.msra.mxu3 %v19218_v47  ;;  %v4949_v21 = vld [vmem:[%s22880_s2 + $0x6e0] sm:$0xff]  ;;  %v19400_v42 = vsub.f32 %v4951_v61, %v19363_v27  ;;  %v19446_v62 = vsub.f32 %v4921_v43, %v19409_v34 }
 0x3e0   :  { %9216 = vmatpush.msra.mxu0 %v19218_v47  ;;  %9364 = vmatpush.msra.mxu2 %v19250_v22  ;;  %v23110_v60 = vand.u32 4294901760, %v19329_v36  ;;  %23690 = vst [vmem:[#allocation44_spill] sm:$0xff] %v19378_v59  ;;  %v23120_v61 = vand.u32 4294901760, %v19378_v59  ;;  %v4945_v43 = vld [vmem:[%s22880_s2 + $0x6c0] sm:$0xff] }
 0x3e1   :  { %9263 = vmatpush.msra.mxu1 %v9262_v20  ;;  %9414 = vmatpush.msra.mxu3 %v19235_v63  ;;  %23691 = vst [vmem:[#allocation48_spill] sm:$0xff] %v19387_v15  ;;  %v23112_v20 = vand.u32 4294901760, %v19346_v52  ;;  %v19482_v29 = vand.u32 4294901760, %v4945_v43 }
 0x3e2   :  { %9218 = vmatpush.msra.mxu0 %v19235_v63  ;;  %9367 = vmatpush.msra.mxu2 %v19266_v8  ;;  %23692 = vst [vmem:[#allocation7_spill] sm:$0xff] %v19400_v42 }
 0x3e3   :  { %9269 = vmatpush.msra.mxu1 %v9268_v1  ;;  %9416 = vmatpush.msra.mxu3 %v19242_v9  ;;  %v9298_v1 = vand.u32 4294901760, %v9297_v53  ;;  %v9304_v53 = vand.u32 4294901760, %v9303_v6  ;;  %v9315_v4 = vsub.f32 %v19346_v52, %v23112_v20  ;;  %v9321_v6 = vsub.f32 %v19358_v37, %v23117_v26 }
 0x3e4   :  { %9220 = vmatpush.msra.mxu0 %v19242_v9  ;;  %9370 = vmatpush.msra.mxu2 %v19272_v2  ;;  %v19439_v20 = vand.u32 4294901760, %v4948_v24  ;;  %v9590_v26 = vsub.f32 %v19378_v59, %v23120_v61 }
 0x3e5   :  { %9275 = vmatpush.msra.mxu1 %v9274_v44  ;;  %9418 = vmatpush.msra.mxu3 %v19255_v51  ;;  %v9309_v44 = vsub.f32 %v19329_v36, %v23110_v60  ;;  %v19427_v60 = vsub.f32 %v4950_v40, %v19390_v10  ;;  %v4946_v40 = vld [vmem:[%s22880_s2 + $0x6c8] sm:$0xff]  ;;  %v9322_v61 = vand.u32 4294901760, %v9321_v6 }
 0x3e6   :  { %9222 = vmatpush.msra.mxu0 %v19255_v51  ;;  %9373 = vmatpush.msra.mxu2 %v19289_v18  ;;  %v19465_v54 = vand.u32 4294901760, %v4946_v40  ;;  %v19474_v55 = vsub.f32 %v4948_v24, %v19439_v20 }
 0x3e7   :  { %9281 = vmatpush.msra.mxu1 %v9280_v7  ;;  %9420 = vmatpush.msra.mxu3 %v19283_v56  ;;  %v19411_v7 = vand.u32 4294901760, %v4949_v21  ;;  %23693 = vst [vmem:[#allocation9_spill] sm:$0xff] %v19427_v60  ;;  %v9310_v39 = vand.u32 4294901760, %v9309_v44  ;;  %v9316_v44 = vand.u32 4294901760, %v9315_v4  ;;  %v9327_v4 = vsub.f32 %v19407_v3, %v23125_v25 }
 0x3e8   :  { %9224 = vmatpush.msra.mxu0 %v19283_v56  ;;  %9376 = vmatpush.msra.mxu2 %v19312_v38 }
 0x3e9   :  { %9287 = vmatpush.msra.mxu1 %v9286_v19  ;;  %9422 = vmatpush.msra.mxu3 %v19299_v28  ;;  %v19424_v19 = vsub.f32 %v4922_v35, %v19387_v15  ;;  %v23124_v35 = vand.u32 4294901760, %v19400_v42  ;;  %v19450_v16 = vsub.f32 %v4949_v21, %v19411_v7  ;;  %v23129_v21 = vand.u32 4294901760, %v19427_v60 }
 0x3ea   :  { %9226 = vmatpush.msra.mxu0 %v19299_v28  ;;  %9379 = vmatpush.msra.mxu2 %v19329_v36 }
 0x3eb   :  { %9293 = vmatpush.msra.mxu1 %v9292_v48  ;;  %9424 = vmatpush.msra.mxu3 %v19314_v5  ;;  %v9239_v48 = vand.u32 4294901760, %v19394_v14  ;;  %v9602_v25 = vsub.f32 %v19427_v60, %v23129_v21  ;;  %v23694_v6 = vand.u32 4294901760, %v19424_v19 }
 0x3ec   :  { %9228 = vmatpush.msra.mxu0 %v19314_v5  ;;  %9382 = vmatpush.msra.mxu2 %v19346_v52 }
 0x3ed   :  { %9299 = vmatpush.msra.mxu1 %v9298_v1  ;;  %9426 = vmatpush.msra.mxu3 %v19322_v23  ;;  %v19457_v1 = vand.u32 4294901760, %v4947_v31  ;;  %v9240_v13 = vsub.f32 %v19394_v14, %v9239_v48  ;;  %v9333_v30 = vsub.f32 %v19424_v19, %v23694_v6  ;;  %v9328_v6 = vand.u32 4294901760, %v9327_v4 }
 0x3ee   :  { %9230 = vmatpush.msra.mxu0 %v19322_v23  ;;  %9385 = vmatpush.msra.mxu2 %v19358_v37  ;;  %v19517_v23 = vsub.f32 %v4945_v43, %v19482_v29  ;;  %v4941_v43 = vld [vmem:[%s22880_s2 + $0x6a0] sm:$0xff] }
 0x3ef   :  { %9305 = vmatpush.msra.mxu1 %v9304_v53  ;;  %9428 = vmatpush.msra.mxu3 %v19369_v49  ;;  %v9596_v53 = vsub.f32 %v19400_v42, %v23124_v35  ;;  %v4944_v35 = vld [vmem:[%s22880_s2 + $0x6b8] sm:$0xff]  ;;  %v19490_v24 = vsub.f32 %v4947_v31, %v19457_v1  ;;  %v19500_v42 = vsub.f32 %v4946_v40, %v19465_v54  ;;  %v9241_v31 = vand.u32 4294901760, %v9240_v13  ;;  %v4942_v13 = vld [vmem:[%s22880_s2 + $0x6a8] sm:$0xff] }
 0x3f0   :  { %9232 = vmatpush.msra.mxu0 %v19369_v49  ;;  %9388 = vmatpush.msra.mxu2 %v19407_v3  ;;  %v19508_v21 = vand.u32 4294901760, %v4944_v35  ;;  %v23695_v40 = vand.u32 4294901760, %v19450_v16  ;;  %v23696_v49 = vand.u32 4294901760, %v19446_v62  ;;  %v9334_v4 = vand.u32 4294901760, %v9333_v30 }
 0x3f1   :  { %9311 = vmatpush.msra.mxu1 %v9310_v39  ;;  %9430 = vmatpush.msra.mxu3 %v19387_v15  ;;  %v9591_v39 = vand.u32 4294901760, %v9590_v26  ;;  %v4943_v26 = vld [vmem:[%s22880_s2 + $0x6b0] sm:$0xff] }
 0x3f2   :  { %9234 = vmatpush.msra.mxu0 %v19387_v15  ;;  %9391 = vmatpush.msra.mxu2 %v19424_v19  ;;  %v23137_v15 = vand.u32 4294901760, %v19474_v55  ;;  %v9608_v60 = vsub.f32 %v19450_v16, %v23695_v40  ;;  %v9339_v59 = vsub.f32 %v19446_v62, %v23696_v49  ;;  %v23697_v40 = vand.u32 4294901760, %v19176_v41  ;;  %v4940_v41 = vld [vmem:[%s22880_s2 + $0x698] sm:$0xff] }
 0x3f3   :  { %9317 = vmatpush.msra.mxu1 %v9316_v44  ;;  %9432 = vmatpush.msra.mxu3 %v19409_v34  ;;  %v9597_v44 = vand.u32 4294901760, %v9596_v53  ;;  %v9603_v53 = vand.u32 4294901760, %v9602_v25  ;;  %v19540_v25 = vand.u32 4294901760, %v4942_v13  ;;  %v23138_v49 = vand.u32 4294901760, %v19517_v23 }
 0x3f4   :  { %9236 = vmatpush.msra.mxu0 %v19409_v34  ;;  %9436 = vmatmul.f32.vlgmr.msra.gmra.mxu3 %v9239_v48  ;;  %v19524_v48 = vand.u32 4294901760, %v4943_v26  ;;  %v9609_v30 = vand.u32 4294901760, %v9608_v60  ;;  %v19555_v60 = vand.u32 4294901760, %v4941_v43 }
 0x3f5   :  { %9323 = vmatpush.msra.mxu1 %v9322_v61  ;;  %9592 = vmatpush.msrb.mxu3 %v9591_v39  ;;  %v23136_v61 = vand.u32 4294901760, %v19490_v24  ;;  %v9614_v39 = vsub.f32 %v19474_v55, %v23137_v15  ;;  %v19568_v15 = vsub.f32 %v4942_v13, %v19540_v25 }
 0x3f6   :  { %9394 = vmatpush.msra.mxu2 %v19446_v62  ;;  %9242 = vmatmul.f32.vlgmr.msra.gmra.mxu0 %v9241_v31  ;;  %v19538_v31 = vsub.f32 %v4944_v35, %v19508_v21 }
 0x3f7   :  { %9397 = vmatmul.f32.vlgmr.msra.gmra.mxu2 %v19394_v14  ;;  %9443 = vmatpush.msrb.mxu0 %v23697_v40  ;;  %v9340_v14 = vand.u32 4294901760, %v9339_v59  ;;  %v23698_v40 = vand.u32 4294901760, %v19189_v45  ;;  %v9620_v35 = vsub.f32 %v19490_v24, %v23136_v61  ;;  %v23699_v59 = vand.u32 4294901760, %v19500_v42  ;;  %v4939_v45 = vld [vmem:[%s22880_s2 + $0x690] sm:$0xff] }
 0x3f8   :  { %9547 = vmatpush.msrb.mxu2 %v19342_v33  ;;  %9598 = vmatpush.msrb.mxu3 %v9597_v44  ;;  %v19553_v44 = vsub.f32 %v4943_v26, %v19524_v48  ;;  %v9615_v61 = vand.u32 4294901760, %v9614_v39  ;;  %v23139_v26 = vand.u32 4294901760, %v19538_v31  ;;  %v23701_v39 = vand.u32 4294901760, %v19215_v17 }
 0x3f9   :  { %9329 = vmatpush.msra.mxu1 %v9328_v6  ;;  %9447 = vmatpush.msrb.mxu0 %v23698_v40  ;;  %v9626_v6 = vsub.f32 %v19500_v42, %v23699_v59  ;;  %v23700_v40 = vand.u32 4294901760, %v19202_v32  ;;  %v4938_v32 = vld [vmem:[%s22880_s2 + $0x688] sm:$0xff]  ;;  %v9621_v59 = vand.u32 4294901760, %v9620_v35  ;;  %v23702_v17 = vand.u32 4294901760, %v19232_v50 }
 0x3fa   :  { %9549 = vmatpush.msrb.mxu2 %v19363_v27  ;;  %9604 = vmatpush.msrb.mxu3 %v9603_v53  ;;  %v19570_v53 = vand.u32 4294901760, %v4940_v41  ;;  %v9643_v13 = vand.u32 4294901760, %v19553_v44  ;;  %v9649_v35 = vand.u32 4294901760, %v19568_v15  ;;  %v23703_v50 = vand.u32 4294901760, %v19250_v22 }
 0x3fb   :  { %9335 = vmatpush.msra.mxu1 %v9334_v4  ;;  %9451 = vmatpush.msrb.mxu0 %v23700_v40  ;;  %v9632_v4 = vsub.f32 %v19517_v23, %v23138_v49  ;;  %v19583_v40 = vsub.f32 %v4941_v43, %v19555_v60  ;;  %v4937_v49 = vld [vmem:[%s22880_s2 + $0x680] sm:$0xff]  ;;  %v9638_v43 = vsub.f32 %v19538_v31, %v23139_v26 }
 0x3fc   :  { %9551 = vmatpush.msrb.mxu2 %v19390_v10  ;;  %9610 = vmatpush.msrb.mxu3 %v9609_v30  ;;  %v19585_v30 = vand.u32 4294901760, %v4939_v45  ;;  %v19614_v26 = vand.u32 4294901760, %v4937_v49 }
 0x3fd   :  { %9341 = vmatpush.msra.mxu1 %v9340_v14  ;;  %9455 = vmatpush.msrb.mxu0 %v23701_v39  ;;  %v9627_v14 = vand.u32 4294901760, %v9626_v6  ;;  %v19599_v39 = vsub.f32 %v4940_v41, %v19570_v53  ;;  %v9633_v6 = vand.u32 4294901760, %v9632_v4  ;;  %v9639_v22 = vand.u32 4294901760, %v9638_v43 }
 0x3fe   :  { %9343 = vmatmul.f32.vlgmr.msra.gmra.mxu1 %v19350_v0  ;;  %9553 = vmatpush.msrb.mxu2 %v19411_v7  ;;  %v19612_v41 = vsub.f32 %v4939_v45, %v19585_v30  ;;  %v9650_v4 = vsub.f32 %v19568_v15, %v9649_v35 }
 0x3ff   :  { %9510 = vmatpush.msrb.mxu1 %v19155_v58  ;;  %9616 = vmatpush.msrb.mxu3 %v9615_v61  ;;  %v19601_v58 = vand.u32 4294901760, %v4938_v32  ;;  %v9644_v61 = vsub.f32 %v19553_v44, %v9643_v13 }
 0x400   :  { %9459 = vmatpush.msrb.mxu0 %v23702_v17  ;;  %9555 = vmatpush.msrb.mxu2 %v19439_v20  ;;  %v9655_v17 = vand.u32 4294901760, %v19583_v40  ;;  %v9667_v43 = vand.u32 4294901760, %v19612_v41 }
 0x401   :  { %9512 = vmatpush.msrb.mxu1 %v19165_v12  ;;  %9622 = vmatpush.msrb.mxu3 %v9621_v59  ;;  %v23704_v12 = vand.u32 4294901760, %v19266_v8  ;;  %v9661_v59 = vand.u32 4294901760, %v19599_v39  ;;  %v19625_v45 = vsub.f32 %v4938_v32, %v19601_v58  ;;  %v9645_v8 = vand.u32 4294901760, %v9644_v61  ;;  %v23706_v32 = vld [vmem:[#allocation16_spill] sm:$0xff] }
 0x402   :  { %9463 = vmatpush.msrb.mxu0 %v23703_v50  ;;  %9557 = vmatpush.msrb.mxu2 %v19457_v1  ;;  %v19636_v50 = vsub.f32 %v4937_v49, %v19614_v26 }
 0x403   :  { %9514 = vmatpush.msrb.mxu1 %v19178_v11  ;;  %9628 = vmatpush.msrb.mxu3 %v9627_v14  ;;  %v23705_v11 = vand.u32 4294901760, %v19272_v2  ;;  %v9656_v14 = vsub.f32 %v19583_v40, %v9655_v17  ;;  %v9651_v2 = vand.u32 4294901760, %v9650_v4  ;;  %v9673_v61 = vand.u32 4294901760, %v19625_v45 }
 0x404   :  { %9467 = vmatpush.msrb.mxu0 %v23704_v12  ;;  %9559 = vmatpush.msrb.mxu2 %v19465_v54  ;;  %v19639_v12 = vand.u32 4294901760, %v23706_v32 }
 0x405   :  { %9516 = vmatpush.msrb.mxu1 %v19191_v46  ;;  %9634 = vmatpush.msrb.mxu3 %v9633_v6  ;;  %v23707_v46 = vand.u32 4294901760, %v19289_v18  ;;  %v9662_v6 = vsub.f32 %v19599_v39, %v9661_v59  ;;  %v9657_v49 = vand.u32 4294901760, %v9656_v14  ;;  %v9668_v18 = vsub.f32 %v19612_v41, %v9667_v43 }
 0x406   :  { %9471 = vmatpush.msrb.mxu0 %v23705_v11  ;;  %9561 = vmatpush.msrb.mxu2 %v19482_v29  ;;  %v19659_v4 = vsub.f32 %v23706_v32, %v19639_v12  ;;  %v9674_v11 = vsub.f32 %v19625_v45, %v9673_v61 }
 0x407   :  { %9518 = vmatpush.msrb.mxu1 %v19205_v57  ;;  %9640 = vmatpush.msrb.mxu3 %v9639_v22  ;;  %v23708_v57 = vand.u32 4294901760, %v19312_v38  ;;  %v9679_v22 = vand.u32 4294901760, %v19636_v50  ;;  %v9663_v38 = vand.u32 4294901760, %v9662_v6 }
 0x408   :  { %9475 = vmatpush.msrb.mxu0 %v23707_v46  ;;  %9563 = vmatpush.msrb.mxu2 %v19508_v21  ;;  %v9675_v32 = vand.u32 4294901760, %v9674_v11 }
 0x409   :  { %9520 = vmatpush.msrb.mxu1 %v19218_v47  ;;  %9646 = vmatpush.msrb.mxu3 %v9645_v8  ;;  %v23709_v47 = vand.u32 4294901760, %v19329_v36  ;;  %v23710_v8 = vand.u32 4294901760, %v19346_v52  ;;  %v9680_v14 = vsub.f32 %v19636_v50, %v9679_v22  ;;  %v9580_v36 = vand.u32 4294901760, %v19659_v4 }
 0x40a   :  { %9479 = vmatpush.msrb.mxu0 %v23708_v57  ;;  %9565 = vmatpush.msrb.mxu2 %v19524_v48  ;;  %v23712_v52 = vand.u32 4294901760, %v19407_v3  ;;  %v23721_v57 = vld [vmem:[#allocation48_spill] sm:$0xff] }
 0x40b   :  { %9522 = vmatpush.msrb.mxu1 %v19235_v63  ;;  %9652 = vmatpush.msrb.mxu3 %v9651_v2  ;;  %v9669_v63 = vand.u32 4294901760, %v9668_v18  ;;  %v9681_v46 = vand.u32 4294901760, %v9680_v14  ;;  %v23719_v2 = vld [vmem:[#allocation7_spill] sm:$0xff] }
 0x40c   :  { %9483 = vmatpush.msrb.mxu0 %v23709_v47  ;;  %9567 = vmatpush.msrb.mxu2 %v19540_v25  ;;  %v23720_v6 = vand.u32 4294901760, %v23719_v2  ;;  %v23724_v47 = vand.u32 4294901760, %v19450_v16 }
 0x40d   :  { %9524 = vmatpush.msrb.mxu1 %v19242_v9  ;;  %9658 = vmatpush.msrb.mxu3 %v9657_v49  ;;  %v23711_v9 = vand.u32 4294901760, %v19358_v37  ;;  %v23713_v37 = vand.u32 4294901760, %v19424_v19  ;;  %v23716_v19 = vld [vmem:[#allocation44_spill] sm:$0xff]  ;;  %v23722_v49 = vld [vmem:[#allocation9_spill] sm:$0xff] }
 0x40e   :  { %9487 = vmatpush.msrb.mxu0 %v23710_v8  ;;  %9569 = vmatpush.msrb.mxu2 %v19555_v60  ;;  %v23723_v18 = vand.u32 4294901760, %v23722_v49 }
 0x40f   :  { %9526 = vmatpush.msrb.mxu1 %v19255_v51  ;;  %9664 = vmatpush.msrb.mxu3 %v9663_v38  ;;  %v9581_v51 = vsub.f32 %v19659_v4, %v9580_v36  ;;  %v23725_v38 = vand.u32 4294901760, %v19474_v55 }
 0x410   :  { %9491 = vmatpush.msrb.mxu0 %v23711_v9  ;;  %9571 = vmatpush.msrb.mxu2 %v19570_v53 }
 0x411   :  { %9528 = vmatpush.msrb.mxu1 %v19283_v56  ;;  %9670 = vmatpush.msrb.mxu3 %v9669_v63  ;;  %v23714_v56 = vand.u32 4294901760, %v19446_v62  ;;  %v9582_v3 = vand.u32 4294901760, %v9581_v51  ;;  %v23718_v62 = vld [vmem:[#allocation46_spill] sm:$0xff] }
 0x412   :  { %9495 = vmatpush.msrb.mxu0 %v23712_v52  ;;  %9573 = vmatpush.msrb.mxu2 %v19585_v30 }
 0x413   :  { %9530 = vmatpush.msrb.mxu1 %v19299_v28  ;;  %9676 = vmatpush.msrb.mxu3 %v9675_v32  ;;  %v23715_v28 = vld [vmem:[#allocation42_spill] sm:$0xff] }
 0x414   :  { %9499 = vmatpush.msrb.mxu0 %v23713_v37  ;;  %9575 = vmatpush.msrb.mxu2 %v19601_v58 }
 0x415   :  { %9532 = vmatpush.msrb.mxu1 %v19314_v5  ;;  %9682 = vmatpush.msrb.mxu3 %v9681_v46  ;;  %v23717_v5 = vand.u32 4294901760, %v23716_v19 }
 0x416   :  { %9503 = vmatpush.msrb.mxu0 %v23714_v56  ;;  %9684 = vmatmul.f32.vlgmr.msrb.gmra.mxu3 %v19639_v12  ;;  %v4956_v56 = vld [vmem:[%s22880_s2 + $0x718] sm:$0xff] }
 0x417   :  { %9534 = vmatpush.msrb.mxu1 %v23715_v28  ;;  %9851 = vmatpush.msra.mxu3 %v19342_v33 }
 0x418   :  { %9577 = vmatpush.msrb.mxu2 %v19614_v26  ;;  %9505 = vmatmul.f32.vlgmr.msrb.gmra.mxu0 %v19350_v0 }
 0x419   :  { %9583 = vmatmul.f32.vlgmr.msrb.gmra.mxu2 %v9582_v3  ;;  %9690 = vmatpush.msra.mxu0 %v23716_v19 }
 0x41a   :  { %9784 = vmatpush.msra.mxu2 %v23717_v5  ;;  %9853 = vmatpush.msra.mxu3 %v19363_v27 }
 0x41b   :  { %9536 = vmatpush.msrb.mxu1 %v23718_v62  ;;  %9693 = vmatpush.msra.mxu0 %v23719_v2  ;;  %v4984_v2 = vld [vmem:[%s22880_s2 + $0x7f8] sm:$0xff] }
 0x41c   :  { %9788 = vmatpush.msra.mxu2 %v23720_v6  ;;  %9855 = vmatpush.msra.mxu3 %v19390_v10 }
 0x41d   :  { %9538 = vmatpush.msrb.mxu1 %v23721_v57  ;;  %9696 = vmatpush.msra.mxu0 %v23722_v49  ;;  %v19928_v57 = vand.u32 4294901760, %v4956_v56 }
 0x41e   :  { %9792 = vmatpush.msra.mxu2 %v23723_v18  ;;  %9857 = vmatpush.msra.mxu3 %v19411_v7 }
 0x41f   :  { %9540 = vmatpush.msrb.mxu1 %v19409_v34  ;;  %9699 = vmatpush.msra.mxu0 %v19450_v16  ;;  %v23727_v16 = vand.u32 4294901760, %v19500_v42  ;;  %v4964_v34 = vld [vmem:[%s22880_s2 + $0x758] sm:$0xff]  ;;  %23730 = vst [vmem:[#allocation28_spill] sm:$0xff] %v19928_v57 }
 0x420   :  { %9542 = vmatmul.f32.vlgmr.msrb.gmra.mxu1 %v19350_v0  ;;  %9796 = vmatpush.msra.mxu2 %v23724_v47  ;;  %v23729_v0 = vand.u32 4294901760, %v19538_v31 }
 0x421   :  { %9743 = vmatpush.msra.mxu1 %v19342_v33  ;;  %9859 = vmatpush.msra.mxu3 %v19439_v20  ;;  %v23726_v33 = vand.u32 4294901760, %v19490_v24 }
 0x422   :  { %9702 = vmatpush.msra.mxu0 %v19474_v55  ;;  %9800 = vmatpush.msra.mxu2 %v23725_v38  ;;  %v23728_v55 = vand.u32 4294901760, %v19517_v23  ;;  %v4983_v38 = vld [vmem:[%s22880_s2 + $0x7f0] sm:$0xff] }
 0x423   :  { %9745 = vmatpush.msra.mxu1 %v19363_v27  ;;  %9861 = vmatpush.msra.mxu3 %v19457_v1  ;;  %v4968_v27 = vld [vmem:[%s22880_s2 + $0x778] sm:$0xff] }
 0x424   :  { %9705 = vmatpush.msra.mxu0 %v19490_v24  ;;  %9804 = vmatpush.msra.mxu2 %v23726_v33 }
 0x425   :  { %9747 = vmatpush.msra.mxu1 %v19390_v10  ;;  %9863 = vmatpush.msra.mxu3 %v19465_v54 }
 0x426   :  { %9708 = vmatpush.msra.mxu0 %v19500_v42  ;;  %9808 = vmatpush.msra.mxu2 %v23727_v16  ;;  %v4955_v16 = vld [vmem:[%s22880_s2 + $0x710] sm:$0xff] }
 0x427   :  { %9749 = vmatpush.msra.mxu1 %v19411_v7  ;;  %9865 = vmatpush.msra.mxu3 %v19482_v29 }
 0x428   :  { %9711 = vmatpush.msra.mxu0 %v19517_v23  ;;  %9812 = vmatpush.msra.mxu2 %v23728_v55  ;;  %v4967_v23 = vld [vmem:[%s22880_s2 + $0x770] sm:$0xff]  ;;  %v19948_v55 = vand.u32 4294901760, %v4984_v2 }
 0x429   :  { %9751 = vmatpush.msra.mxu1 %v19439_v20  ;;  %9867 = vmatpush.msra.mxu3 %v19508_v21  ;;  %v19761_v20 = vand.u32 4294901760, %v4968_v27  ;;  %v19771_v10 = vand.u32 4294901760, %v4967_v23 }
 0x42a   :  { %9714 = vmatpush.msra.mxu0 %v19538_v31  ;;  %9816 = vmatpush.msra.mxu2 %v23729_v0  ;;  %v19811_v31 = vand.u32 4294901760, %v4964_v34 }
 0x42b   :  { %9753 = vmatpush.msra.mxu1 %v19457_v1  ;;  %9869 = vmatpush.msra.mxu3 %v19524_v48  ;;  %v19795_v7 = vsub.f32 %v4967_v23, %v19771_v10 }
 0x42c   :  { %9717 = vmatpush.msra.mxu0 %v19553_v44  ;;  %9820 = vmatpush.msra.mxu2 %v9643_v13 }
 0x42d   :  { %9755 = vmatpush.msra.mxu1 %v19465_v54  ;;  %9871 = vmatpush.msra.mxu3 %v19540_v25  ;;  %v4966_v54 = vld [vmem:[%s22880_s2 + $0x768] sm:$0xff] }
 0x42e   :  { %9720 = vmatpush.msra.mxu0 %v19568_v15  ;;  %9824 = vmatpush.msra.mxu2 %v9649_v35  ;;  %v19782_v15 = vsub.f32 %v4968_v27, %v19761_v20  ;;  %v19784_v42 = vand.u32 4294901760, %v4966_v54  ;;  %v19838_v35 = vsub.f32 %v4964_v34, %v19811_v31 }
 0x42f   :  { %9757 = vmatpush.msra.mxu1 %v19482_v29  ;;  %9873 = vmatpush.msra.mxu3 %v19555_v60  ;;  %v4965_v29 = vld [vmem:[%s22880_s2 + $0x760] sm:$0xff] }
 0x430   :  { %9723 = vmatpush.msra.mxu0 %v19583_v40  ;;  %9828 = vmatpush.msra.mxu2 %v9655_v17  ;;  %v19797_v1 = vand.u32 4294901760, %v4965_v29  ;;  %v19808_v24 = vsub.f32 %v4966_v54, %v19784_v42  ;;  %v4961_v40 = vld [vmem:[%s22880_s2 + $0x740] sm:$0xff]  ;;  %v23148_v8 = vand.u32 4294901760, %v19838_v35  ;;  %v23731_v54 = vld [vmem:[#allocation18_spill] sm:$0xff] }
 0x431   :  { %9759 = vmatpush.msra.mxu1 %v19508_v21  ;;  %9875 = vmatpush.msra.mxu3 %v19570_v53  ;;  %v4963_v21 = vld [vmem:[%s22880_s2 + $0x750] sm:$0xff] }
 0x432   :  { %9726 = vmatpush.msra.mxu0 %v19599_v39  ;;  %9832 = vmatpush.msra.mxu2 %v9661_v59  ;;  %v19821_v44 = vsub.f32 %v4965_v29, %v19797_v1  ;;  %v19824_v13 = vand.u32 4294901760, %v4963_v21  ;;  %v23151_v39 = vand.u32 4294901760, %v19808_v24  ;;  %v19848_v59 = vand.u32 4294901760, %v4961_v40 }
 0x433   :  { %9761 = vmatpush.msra.mxu1 %v19524_v48  ;;  %9877 = vmatpush.msra.mxu3 %v19585_v30  ;;  %v23153_v48 = vand.u32 4294901760, %v19782_v15  ;;  %v9955_v37 = vsub.f32 %v19838_v35, %v23148_v8  ;;  %v19956_v29 = vand.u32 4294901760, %v23731_v54 }
 0x434   :  { %9729 = vmatpush.msra.mxu0 %v19612_v41  ;;  %9836 = vmatpush.msra.mxu2 %v9667_v43  ;;  %v4960_v41 = vld [vmem:[%s22880_s2 + $0x738] sm:$0xff]  ;;  %v19856_v43 = vsub.f32 %v4963_v21, %v19824_v13  ;;  %v19878_v63 = vsub.f32 %v4961_v40, %v19848_v59  ;;  %v19964_v21 = vsub.f32 %v4956_v56, %v19928_v57  ;;  %v19969_v40 = vand.u32 4294901760, %v4983_v38 }
 0x435   :  { %9763 = vmatpush.msra.mxu1 %v19540_v25  ;;  %9879 = vmatpush.msra.mxu3 %v19601_v58  ;;  %v4962_v25 = vld [vmem:[%s22880_s2 + $0x748] sm:$0xff]  ;;  %v9956_v49 = vand.u32 4294901760, %v9955_v37  ;;  %v20000_v56 = vsub.f32 %v23731_v54, %v19956_v29  ;;  %v4980_v54 = vld [vmem:[%s22880_s2 + $0x7d8] sm:$0xff] }
 0x436   :  { %9732 = vmatpush.msra.mxu0 %v19625_v45  ;;  %9840 = vmatpush.msra.mxu2 %v9673_v61  ;;  %v19841_v17 = vand.u32 4294901760, %v4962_v25  ;;  %v4959_v61 = vld [vmem:[%s22880_s2 + $0x730] sm:$0xff]  ;;  %v23146_v32 = vand.u32 4294901760, %v19856_v43  ;;  %v23144_v28 = vand.u32 4294901760, %v19878_v63 }
 0x437   :  { %9765 = vmatpush.msra.mxu1 %v19555_v60  ;;  %9881 = vmatpush.msra.mxu3 %v19614_v26  ;;  %v23152_v60 = vand.u32 4294901760, %v19795_v7  ;;  %v19889_v52 = vand.u32 4294901760, %v4959_v61 }
 0x438   :  { %9735 = vmatpush.msra.mxu0 %v19636_v50  ;;  %9883 = vmatmul.f32.vlgmr.msra.gmra.mxu3 %v19639_v12  ;;  %v23149_v50 = vand.u32 4294901760, %v19821_v44  ;;  %v19872_v11 = vsub.f32 %v4962_v25, %v19841_v17  ;;  %v9961_v19 = vsub.f32 %v19856_v43, %v23146_v32  ;;  %v9973_v33 = vsub.f32 %v19878_v63, %v23144_v28  ;;  %v4954_v25 = vld [vmem:[%s22880_s2 + $0x708] sm:$0xff] }
 0x439   :  { %9767 = vmatpush.msra.mxu1 %v19570_v53  ;;  %10084 = vmatpush.msrb.mxu3 %v19761_v20  ;;  %v9931_v53 = vsub.f32 %v19782_v15, %v23153_v48  ;;  %v9937_v45 = vsub.f32 %v19795_v7, %v23152_v60  ;;  %v19918_v5 = vsub.f32 %v4959_v61, %v19889_v52 }
 0x43a   :  { %9844 = vmatpush.msra.mxu2 %v9679_v22  ;;  %9738 = vmatmul.f32.vlgmr.msra.gmra.mxu0 %v19659_v4  ;;  %v9943_v22 = vsub.f32 %v19808_v24, %v23151_v39  ;;  %v9949_v9 = vsub.f32 %v19821_v44, %v23149_v50  ;;  %v23145_v4 = vand.u32 4294901760, %v19872_v11  ;;  %v9962_v0 = vand.u32 4294901760, %v9961_v19 }
 0x43b   :  { %9846 = vmatmul.f32.vlgmr.msra.gmra.mxu2 %v19639_v12  ;;  %9888 = vmatpush.msrb.mxu0 %v19761_v20  ;;  %v19861_v12 = vand.u32 4294901760, %v4960_v41  ;;  %v9938_v14 = vand.u32 4294901760, %v9937_v45  ;;  %v23141_v23 = vand.u32 4294901760, %v19918_v5  ;;  %v19975_v45 = vand.u32 4294901760, %v4955_v16 }
 0x43c   :  { %10031 = vmatpush.msrb.mxu2 %v19782_v15  ;;  %10086 = vmatpush.msrb.mxu3 %v19771_v10  ;;  %v9944_v51 = vand.u32 4294901760, %v9943_v22  ;;  %v9950_v3 = vand.u32 4294901760, %v9949_v9  ;;  %v9967_v18 = vsub.f32 %v19872_v11, %v23145_v4  ;;  %v4953_v22 = vld [vmem:[%s22880_s2 + $0x700] sm:$0xff]  ;;  %v23147_v19 = vand.u32 4294901760, %v19964_v21 }
 0x43d   :  { %9769 = vmatpush.msra.mxu1 %v19585_v30  ;;  %9890 = vmatpush.msrb.mxu0 %v19771_v10  ;;  %v9932_v30 = vand.u32 4294901760, %v9931_v53  ;;  %v19895_v46 = vsub.f32 %v4960_v41, %v19861_v12  ;;  %v4982_v53 = vld [vmem:[%s22880_s2 + $0x7e8] sm:$0xff]  ;;  %23732 = vst [vmem:[#allocation19_spill] sm:$0xff] %v19975_v45  ;;  %v9985_v9 = vsub.f32 %v19918_v5, %v23141_v23  ;;  %v4979_v23 = vld [vmem:[%s22880_s2 + $0x7d0] sm:$0xff] }
 0x43e   :  { %10034 = vmatpush.msrb.mxu2 %v19795_v7  ;;  %10088 = vmatpush.msrb.mxu3 %v19784_v42  ;;  %v9968_v41 = vand.u32 4294901760, %v9967_v18  ;;  %v19996_v37 = vand.u32 4294901760, %v4982_v53  ;;  %v20013_v18 = vsub.f32 %v4955_v16, %v19975_v45 }
 0x43f   :  { %9771 = vmatpush.msra.mxu1 %v19601_v58  ;;  %9892 = vmatpush.msrb.mxu0 %v19784_v42  ;;  %v4958_v58 = vld [vmem:[%s22880_s2 + $0x728] sm:$0xff]  ;;  %v23143_v6 = vand.u32 4294901760, %v19895_v46 }
 0x440   :  { %10037 = vmatpush.msrb.mxu2 %v19808_v24  ;;  %10090 = vmatpush.msrb.mxu3 %v19797_v1  ;;  %v23155_v4 = vand.u32 4294901760, %v20013_v18 }
 0x441   :  { %9773 = vmatpush.msra.mxu1 %v19614_v26  ;;  %9894 = vmatpush.msrb.mxu0 %v19797_v1  ;;  %v4957_v26 = vld [vmem:[%s22880_s2 + $0x720] sm:$0xff]  ;;  %v9979_v34 = vsub.f32 %v19895_v46, %v23143_v6 }
 0x442   :  { %9777 = vmatmul.f32.vlgmr.msra.gmra.mxu1 %v9580_v36  ;;  %10040 = vmatpush.msrb.mxu2 %v19821_v44  ;;  %v19905_v36 = vand.u32 4294901760, %v4958_v58  ;;  %v19920_v62 = vand.u32 4294901760, %v4957_v26 }
 0x443   :  { %9933 = vmatpush.msrb.mxu1 %v9932_v30  ;;  %10092 = vmatpush.msrb.mxu3 %v19811_v31  ;;  %v9974_v30 = vand.u32 4294901760, %v9973_v33  ;;  %v20015_v33 = vand.u32 4294901760, %v4953_v22 }
 0x444   :  { %9896 = vmatpush.msrb.mxu0 %v19811_v31  ;;  %10043 = vmatpush.msrb.mxu2 %v19838_v35  ;;  %v19935_v47 = vsub.f32 %v4958_v58, %v19905_v36  ;;  %v19952_v27 = vsub.f32 %v4957_v26, %v19920_v62  ;;  %v19984_v58 = vsub.f32 %v4984_v2, %v19948_v55  ;;  %v19993_v26 = vand.u32 4294901760, %v4954_v25 }
 0x445   :  { %9939 = vmatpush.msrb.mxu1 %v9938_v14  ;;  %10094 = vmatpush.msrb.mxu3 %v19824_v13  ;;  %v4981_v14 = vld [vmem:[%s22880_s2 + $0x7e0] sm:$0xff]  ;;  %v20006_v2 = vsub.f32 %v4983_v38, %v19969_v40  ;;  %v20052_v28 = vsub.f32 %v4953_v22, %v20015_v33 }
 0x446   :  { %9898 = vmatpush.msrb.mxu0 %v19824_v13  ;;  %10046 = vmatpush.msrb.mxu2 %v19856_v43  ;;  %v23140_v61 = vand.u32 4294901760, %v19935_v47  ;;  %23733 = vst [vmem:[#allocation26_spill] sm:$0xff] %v19984_v58  ;;  %v23150_v38 = vand.u32 4294901760, %v19984_v58  ;;  %v4977_v22 = vld [vmem:[%s22880_s2 + $0x7c0] sm:$0xff] }
 0x447   :  { %9945 = vmatpush.msrb.mxu1 %v9944_v51  ;;  %10096 = vmatpush.msrb.mxu3 %v19841_v17  ;;  %23734 = vst [vmem:[#allocation30_spill] sm:$0xff] %v19993_v26  ;;  %v23142_v51 = vand.u32 4294901760, %v19952_v27  ;;  %v20088_v8 = vand.u32 4294901760, %v4977_v22 }
 0x448   :  { %9900 = vmatpush.msrb.mxu0 %v19841_v17  ;;  %10049 = vmatpush.msrb.mxu2 %v19872_v11  ;;  %23735 = vst [vmem:[#allocation5_spill] sm:$0xff] %v20006_v2 }
 0x449   :  { %9951 = vmatpush.msrb.mxu1 %v9950_v3  ;;  %10098 = vmatpush.msrb.mxu3 %v19848_v59  ;;  %v9980_v3 = vand.u32 4294901760, %v9979_v34  ;;  %v9986_v34 = vand.u32 4294901760, %v9985_v9  ;;  %v9997_v16 = vsub.f32 %v19952_v27, %v23142_v51  ;;  %v10003_v9 = vsub.f32 %v19964_v21, %v23147_v19 }
 0x44a   :  { %9902 = vmatpush.msrb.mxu0 %v19848_v59  ;;  %10052 = vmatpush.msrb.mxu2 %v19878_v63  ;;  %v20045_v51 = vand.u32 4294901760, %v4980_v54  ;;  %v10272_v19 = vsub.f32 %v19984_v58, %v23150_v38 }
 0x44b   :  { %9957 = vmatpush.msrb.mxu1 %v9956_v49  ;;  %10100 = vmatpush.msrb.mxu3 %v19861_v12  ;;  %v9991_v49 = vsub.f32 %v19935_v47, %v23140_v61  ;;  %v20033_v61 = vsub.f32 %v4982_v53, %v19996_v37  ;;  %v4978_v53 = vld [vmem:[%s22880_s2 + $0x7c8] sm:$0xff]  ;;  %v10004_v38 = vand.u32 4294901760, %v10003_v9 }
 0x44c   :  { %9904 = vmatpush.msrb.mxu0 %v19861_v12  ;;  %10055 = vmatpush.msrb.mxu2 %v19895_v46  ;;  %v20071_v50 = vand.u32 4294901760, %v4978_v53  ;;  %v20080_v60 = vsub.f32 %v4980_v54, %v20045_v51 }
 0x44d   :  { %9963 = vmatpush.msrb.mxu1 %v9962_v0  ;;  %10102 = vmatpush.msrb.mxu3 %v19889_v52  ;;  %v20017_v0 = vand.u32 4294901760, %v4981_v14  ;;  %23736 = vst [vmem:[#allocation20_spill] sm:$0xff] %v20033_v61  ;;  %v9992_v6 = vand.u32 4294901760, %v9991_v49  ;;  %v9998_v49 = vand.u32 4294901760, %v9997_v16  ;;  %v10009_v16 = vsub.f32 %v20013_v18, %v23155_v4 }
 0x44e   :  { %9906 = vmatpush.msrb.mxu0 %v19889_v52  ;;  %10058 = vmatpush.msrb.mxu2 %v19918_v5 }
 0x44f   :  { %9969 = vmatpush.msrb.mxu1 %v9968_v41  ;;  %10104 = vmatpush.msrb.mxu3 %v19905_v36  ;;  %v20030_v41 = vsub.f32 %v4954_v25, %v19993_v26  ;;  %v23154_v25 = vand.u32 4294901760, %v20006_v2  ;;  %v20056_v32 = vsub.f32 %v4981_v14, %v20017_v0  ;;  %v23159_v14 = vand.u32 4294901760, %v20033_v61 }
 0x450   :  { %9908 = vmatpush.msrb.mxu0 %v19905_v36  ;;  %10061 = vmatpush.msrb.mxu2 %v19935_v47 }
 0x451   :  { %9975 = vmatpush.msrb.mxu1 %v9974_v30  ;;  %10106 = vmatpush.msrb.mxu3 %v19920_v62  ;;  %v9921_v30 = vand.u32 4294901760, %v20000_v56  ;;  %v10284_v4 = vsub.f32 %v20033_v61, %v23159_v14  ;;  %v23737_v9 = vand.u32 4294901760, %v20030_v41 }
 0x452   :  { %9910 = vmatpush.msrb.mxu0 %v19920_v62  ;;  %10064 = vmatpush.msrb.mxu2 %v19952_v27 }
 0x453   :  { %9981 = vmatpush.msrb.mxu1 %v9980_v3  ;;  %10108 = vmatpush.msrb.mxu3 %v19928_v57  ;;  %v20063_v3 = vand.u32 4294901760, %v4979_v23  ;;  %v9922_v39 = vsub.f32 %v20000_v56, %v9921_v30  ;;  %v10015_v48 = vsub.f32 %v20030_v41, %v23737_v9  ;;  %v10010_v9 = vand.u32 4294901760, %v10009_v16 }
 0x454   :  { %9912 = vmatpush.msrb.mxu0 %v19928_v57  ;;  %10067 = vmatpush.msrb.mxu2 %v19964_v21  ;;  %v20123_v57 = vsub.f32 %v4977_v22, %v20088_v8  ;;  %v4973_v22 = vld [vmem:[%s22880_s2 + $0x7a0] sm:$0xff] }
 0x455   :  { %9987 = vmatpush.msrb.mxu1 %v9986_v34  ;;  %10110 = vmatpush.msrb.mxu3 %v19975_v45  ;;  %v10278_v34 = vsub.f32 %v20006_v2, %v23154_v25  ;;  %v4976_v25 = vld [vmem:[%s22880_s2 + $0x7b8] sm:$0xff]  ;;  %v20096_v54 = vsub.f32 %v4979_v23, %v20063_v3  ;;  %v20106_v2 = vsub.f32 %v4978_v53, %v20071_v50  ;;  %v9923_v23 = vand.u32 4294901760, %v9922_v39  ;;  %v4974_v39 = vld [vmem:[%s22880_s2 + $0x7a8] sm:$0xff] }
 0x456   :  { %9914 = vmatpush.msrb.mxu0 %v19975_v45  ;;  %10070 = vmatpush.msrb.mxu2 %v20013_v18  ;;  %v20114_v14 = vand.u32 4294901760, %v4976_v25  ;;  %v23738_v53 = vand.u32 4294901760, %v20056_v32  ;;  %v23739_v45 = vand.u32 4294901760, %v20052_v28  ;;  %v10016_v16 = vand.u32 4294901760, %v10015_v48 }
 0x457   :  { %9993 = vmatpush.msrb.mxu1 %v9992_v6  ;;  %10112 = vmatpush.msrb.mxu3 %v19993_v26  ;;  %v10273_v6 = vand.u32 4294901760, %v10272_v19  ;;  %v4975_v19 = vld [vmem:[%s22880_s2 + $0x7b0] sm:$0xff] }
 0x458   :  { %9916 = vmatpush.msrb.mxu0 %v19993_v26  ;;  %10073 = vmatpush.msrb.mxu2 %v20030_v41  ;;  %v23167_v26 = vand.u32 4294901760, %v20080_v60  ;;  %v10290_v61 = vsub.f32 %v20056_v32, %v23738_v53  ;;  %v10021_v58 = vsub.f32 %v20052_v28, %v23739_v45  ;;  %v23740_v53 = vand.u32 4294901760, %v19782_v15  ;;  %v4972_v15 = vld [vmem:[%s22880_s2 + $0x798] sm:$0xff] }
 0x459   :  { %9999 = vmatpush.msrb.mxu1 %v9998_v49  ;;  %10114 = vmatpush.msrb.mxu3 %v20015_v33  ;;  %v10279_v49 = vand.u32 4294901760, %v10278_v34  ;;  %v10285_v34 = vand.u32 4294901760, %v10284_v4  ;;  %v20146_v4 = vand.u32 4294901760, %v4974_v39  ;;  %v23168_v45 = vand.u32 4294901760, %v20123_v57 }
 0x45a   :  { %9918 = vmatpush.msrb.mxu0 %v20015_v33  ;;  %10118 = vmatmul.f32.vlgmr.msrb.gmra.mxu3 %v9921_v30  ;;  %v20130_v30 = vand.u32 4294901760, %v4975_v19  ;;  %v10291_v48 = vand.u32 4294901760, %v10290_v61  ;;  %v20161_v61 = vand.u32 4294901760, %v4973_v22 }
 0x45b   :  { %10005 = vmatpush.msrb.mxu1 %v10004_v38  ;;  %10274 = vmatpush.msra.mxu3 %v10273_v6  ;;  %v23166_v38 = vand.u32 4294901760, %v20096_v54  ;;  %v10296_v6 = vsub.f32 %v20080_v60, %v23167_v26  ;;  %v20174_v26 = vsub.f32 %v4974_v39, %v20146_v4 }
 0x45c   :  { %10076 = vmatpush.msrb.mxu2 %v20052_v28  ;;  %9924 = vmatmul.f32.vlgmr.msrb.gmra.mxu0 %v9923_v23  ;;  %v20144_v23 = vsub.f32 %v4976_v25, %v20114_v14 }
 0x45d   :  { %10079 = vmatmul.f32.vlgmr.msrb.gmra.mxu2 %v20000_v56  ;;  %10125 = vmatpush.msra.mxu0 %v23740_v53  ;;  %v10022_v56 = vand.u32 4294901760, %v10021_v58  ;;  %v23741_v53 = vand.u32 4294901760, %v19795_v7  ;;  %v10302_v25 = vsub.f32 %v20096_v54, %v23166_v38  ;;  %v23742_v58 = vand.u32 4294901760, %v20106_v2  ;;  %v4971_v7 = vld [vmem:[%s22880_s2 + $0x790] sm:$0xff] }
 0x45e   :  { %10229 = vmatpush.msra.mxu2 %v19948_v55  ;;  %10280 = vmatpush.msra.mxu3 %v10279_v49  ;;  %v20159_v49 = vsub.f32 %v4975_v19, %v20130_v30  ;;  %v10297_v38 = vand.u32 4294901760, %v10296_v6  ;;  %v23169_v19 = vand.u32 4294901760, %v20144_v23  ;;  %v23744_v6 = vand.u32 4294901760, %v19821_v44 }
 0x45f   :  { %10011 = vmatpush.msrb.mxu1 %v10010_v9  ;;  %10129 = vmatpush.msra.mxu0 %v23741_v53  ;;  %v10308_v9 = vsub.f32 %v20106_v2, %v23742_v58  ;;  %v23743_v53 = vand.u32 4294901760, %v19808_v24  ;;  %v4970_v24 = vld [vmem:[%s22880_s2 + $0x788] sm:$0xff]  ;;  %v10303_v58 = vand.u32 4294901760, %v10302_v25  ;;  %v23745_v44 = vand.u32 4294901760, %v19838_v35 }
 0x460   :  { %10231 = vmatpush.msra.mxu2 %v19969_v40  ;;  %10286 = vmatpush.msra.mxu3 %v10285_v34  ;;  %v20176_v34 = vand.u32 4294901760, %v4972_v15  ;;  %v10325_v39 = vand.u32 4294901760, %v20159_v49  ;;  %v10331_v25 = vand.u32 4294901760, %v20174_v26  ;;  %v23746_v35 = vand.u32 4294901760, %v19856_v43 }
 0x461   :  { %10017 = vmatpush.msrb.mxu1 %v10016_v16  ;;  %10133 = vmatpush.msra.mxu0 %v23743_v53  ;;  %v10314_v16 = vsub.f32 %v20123_v57, %v23168_v45  ;;  %v20189_v53 = vsub.f32 %v4973_v22, %v20161_v61  ;;  %v4969_v45 = vld [vmem:[%s22880_s2 + $0x780] sm:$0xff]  ;;  %v10320_v22 = vsub.f32 %v20144_v23, %v23169_v19 }
 0x462   :  { %10233 = vmatpush.msra.mxu2 %v19996_v37  ;;  %10292 = vmatpush.msra.mxu3 %v10291_v48  ;;  %v20191_v48 = vand.u32 4294901760, %v4971_v7  ;;  %v20220_v19 = vand.u32 4294901760, %v4969_v45 }
 0x463   :  { %10023 = vmatpush.msrb.mxu1 %v10022_v56  ;;  %10137 = vmatpush.msra.mxu0 %v23744_v6  ;;  %v10309_v56 = vand.u32 4294901760, %v10308_v9  ;;  %v20205_v6 = vsub.f32 %v4972_v15, %v20176_v34  ;;  %v10315_v9 = vand.u32 4294901760, %v10314_v16  ;;  %v10321_v43 = vand.u32 4294901760, %v10320_v22 }
 0x464   :  { %10025 = vmatmul.f32.vlgmr.msrb.gmra.mxu1 %v19956_v29  ;;  %10235 = vmatpush.msra.mxu2 %v20017_v0  ;;  %v20218_v15 = vsub.f32 %v4971_v7, %v20191_v48  ;;  %v10332_v16 = vsub.f32 %v20174_v26, %v10331_v25 }
 0x465   :  { %10192 = vmatpush.msra.mxu1 %v19761_v20  ;;  %10298 = vmatpush.msra.mxu3 %v10297_v38  ;;  %v20207_v20 = vand.u32 4294901760, %v4970_v24  ;;  %v10326_v38 = vsub.f32 %v20159_v49, %v10325_v39 }
 0x466   :  { %10141 = vmatpush.msra.mxu0 %v23745_v44  ;;  %10237 = vmatpush.msra.mxu2 %v20045_v51  ;;  %v10337_v44 = vand.u32 4294901760, %v20189_v53  ;;  %v10349_v22 = vand.u32 4294901760, %v20218_v15 }
 0x467   :  { %10194 = vmatpush.msra.mxu1 %v19771_v10  ;;  %10304 = vmatpush.msra.mxu3 %v10303_v58  ;;  %v23747_v10 = vand.u32 4294901760, %v19872_v11  ;;  %v10343_v58 = vand.u32 4294901760, %v20205_v6  ;;  %v20231_v7 = vsub.f32 %v4970_v24, %v20207_v20  ;;  %v10327_v11 = vand.u32 4294901760, %v10326_v38  ;;  %v23749_v24 = vld [vmem:[#allocation25_spill] sm:$0xff] }
 0x468   :  { %10145 = vmatpush.msra.mxu0 %v23746_v35  ;;  %10239 = vmatpush.msra.mxu2 %v20063_v3  ;;  %v20242_v35 = vsub.f32 %v4969_v45, %v20220_v19 }
 0x469   :  { %10196 = vmatpush.msra.mxu1 %v19784_v42  ;;  %10310 = vmatpush.msra.mxu3 %v10309_v56  ;;  %v23748_v42 = vand.u32 4294901760, %v19878_v63  ;;  %v10338_v56 = vsub.f32 %v20189_v53, %v10337_v44  ;;  %v10333_v63 = vand.u32 4294901760, %v10332_v16  ;;  %v10355_v38 = vand.u32 4294901760, %v20231_v7 }
 0x46a   :  { %10149 = vmatpush.msra.mxu0 %v23747_v10  ;;  %10241 = vmatpush.msra.mxu2 %v20071_v50  ;;  %v20245_v10 = vand.u32 4294901760, %v23749_v24 }
 0x46b   :  { %10198 = vmatpush.msra.mxu1 %v19797_v1  ;;  %10316 = vmatpush.msra.mxu3 %v10315_v9  ;;  %v23750_v1 = vand.u32 4294901760, %v19895_v46  ;;  %v10344_v9 = vsub.f32 %v20205_v6, %v10343_v58  ;;  %v10339_v45 = vand.u32 4294901760, %v10338_v56  ;;  %v10350_v46 = vsub.f32 %v20218_v15, %v10349_v22 }
 0x46c   :  { %10153 = vmatpush.msra.mxu0 %v23748_v42  ;;  %10243 = vmatpush.msra.mxu2 %v20088_v8  ;;  %v20265_v16 = vsub.f32 %v23749_v24, %v20245_v10  ;;  %v10356_v42 = vsub.f32 %v20231_v7, %v10355_v38 }
 0x46d   :  { %10200 = vmatpush.msra.mxu1 %v19811_v31  ;;  %10322 = vmatpush.msra.mxu3 %v10321_v43  ;;  %v23751_v31 = vand.u32 4294901760, %v19918_v5  ;;  %v10361_v43 = vand.u32 4294901760, %v20242_v35  ;;  %v10345_v5 = vand.u32 4294901760, %v10344_v9 }
 0x46e   :  { %10157 = vmatpush.msra.mxu0 %v23750_v1  ;;  %10245 = vmatpush.msra.mxu2 %v20114_v14  ;;  %v10357_v24 = vand.u32 4294901760, %v10356_v42 }
 0x46f   :  { %10202 = vmatpush.msra.mxu1 %v19824_v13  ;;  %10328 = vmatpush.msra.mxu3 %v10327_v11  ;;  %v23752_v13 = vand.u32 4294901760, %v19935_v47  ;;  %v23753_v11 = vand.u32 4294901760, %v19952_v27  ;;  %v10362_v56 = vsub.f32 %v20242_v35, %v10361_v43  ;;  %v10262_v47 = vand.u32 4294901760, %v20265_v16 }
 0x470   :  { %10161 = vmatpush.msra.mxu0 %v23751_v31  ;;  %10247 = vmatpush.msra.mxu2 %v20130_v30  ;;  %v23755_v27 = vand.u32 4294901760, %v20013_v18  ;;  %v23764_v31 = vld [vmem:[#allocation30_spill] sm:$0xff] }
 0x471   :  { %10204 = vmatpush.msra.mxu1 %v19841_v17  ;;  %10334 = vmatpush.msra.mxu3 %v10333_v63  ;;  %v10351_v17 = vand.u32 4294901760, %v10350_v46  ;;  %v10363_v1 = vand.u32 4294901760, %v10362_v56  ;;  %v23762_v63 = vld [vmem:[#allocation5_spill] sm:$0xff] }
 0x472   :  { %10165 = vmatpush.msra.mxu0 %v23752_v13  ;;  %10249 = vmatpush.msra.mxu2 %v20146_v4  ;;  %v23763_v9 = vand.u32 4294901760, %v23762_v63  ;;  %v23767_v13 = vand.u32 4294901760, %v20056_v32 }
 0x473   :  { %10206 = vmatpush.msra.mxu1 %v19848_v59  ;;  %10340 = vmatpush.msra.mxu3 %v10339_v45  ;;  %v23754_v59 = vand.u32 4294901760, %v19964_v21  ;;  %v23756_v21 = vand.u32 4294901760, %v20030_v41  ;;  %v23759_v41 = vld [vmem:[#allocation26_spill] sm:$0xff]  ;;  %v23765_v45 = vld [vmem:[#allocation20_spill] sm:$0xff] }
 0x474   :  { %10169 = vmatpush.msra.mxu0 %v23753_v11  ;;  %10251 = vmatpush.msra.mxu2 %v20161_v61  ;;  %v23766_v46 = vand.u32 4294901760, %v23765_v45 }
 0x475   :  { %10208 = vmatpush.msra.mxu1 %v19861_v12  ;;  %10346 = vmatpush.msra.mxu3 %v10345_v5  ;;  %v10263_v12 = vsub.f32 %v20265_v16, %v10262_v47  ;;  %v23768_v5 = vand.u32 4294901760, %v20080_v60 }
 0x476   :  { %10173 = vmatpush.msra.mxu0 %v23754_v59  ;;  %10253 = vmatpush.msra.mxu2 %v20176_v34 }
 0x477   :  { %10210 = vmatpush.msra.mxu1 %v19889_v52  ;;  %10352 = vmatpush.msra.mxu3 %v10351_v17  ;;  %v23757_v52 = vand.u32 4294901760, %v20052_v28  ;;  %v10264_v18 = vand.u32 4294901760, %v10263_v12  ;;  %v23761_v28 = vld [vmem:[#allocation19_spill] sm:$0xff] }
 0x478   :  { %10177 = vmatpush.msra.mxu0 %v23755_v27  ;;  %10255 = vmatpush.msra.mxu2 %v20191_v48 }
 0x479   :  { %10212 = vmatpush.msra.mxu1 %v19905_v36  ;;  %10358 = vmatpush.msra.mxu3 %v10357_v24  ;;  %v23758_v36 = vld [vmem:[#allocation28_spill] sm:$0xff] }
 0x47a   :  { %10181 = vmatpush.msra.mxu0 %v23756_v21  ;;  %10257 = vmatpush.msra.mxu2 %v20207_v20 }
 0x47b   :  { %10214 = vmatpush.msra.mxu1 %v19920_v62  ;;  %10364 = vmatpush.msra.mxu3 %v10363_v1  ;;  %v23760_v62 = vand.u32 4294901760, %v23759_v41 }
 0x47c   :  { %10185 = vmatpush.msra.mxu0 %v23757_v52  ;;  %10366 = vmatmul.f32.vlgmr.msra.gmra.mxu3 %v20245_v10  ;;  %v4988_v52 = vld [vmem:[%s22880_s2 + $0x818] sm:$0xff] }
 0x47d   :  { %10216 = vmatpush.msra.mxu1 %v23758_v36  ;;  %10533 = vmatpush.msrb.mxu3 %v19948_v55 }
 0x47e   :  { %10259 = vmatpush.msra.mxu2 %v20220_v19  ;;  %10187 = vmatmul.f32.vlgmr.msra.gmra.mxu0 %v19956_v29 }
 0x47f   :  { %10265 = vmatmul.f32.vlgmr.msra.gmra.mxu2 %v10264_v18  ;;  %10372 = vmatpush.msrb.mxu0 %v23759_v41 }
 0x480   :  { %10466 = vmatpush.msrb.mxu2 %v23760_v62  ;;  %10535 = vmatpush.msrb.mxu3 %v19969_v40 }
 0x481   :  { %10218 = vmatpush.msra.mxu1 %v23761_v28  ;;  %10375 = vmatpush.msrb.mxu0 %v23762_v63  ;;  %v5016_v63 = vld [vmem:[%s22880_s2 + $0x8f8] sm:$0xff] }
 0x482   :  { %10470 = vmatpush.msrb.mxu2 %v23763_v9  ;;  %10537 = vmatpush.msrb.mxu3 %v19996_v37 }
 0x483   :  { %10220 = vmatpush.msra.mxu1 %v23764_v31  ;;  %10378 = vmatpush.msrb.mxu0 %v23765_v45  ;;  %v20534_v31 = vand.u32 4294901760, %v4988_v52 }
 0x484   :  { %10474 = vmatpush.msrb.mxu2 %v23766_v46  ;;  %10539 = vmatpush.msrb.mxu3 %v20017_v0 }
 0x485   :  { %10222 = vmatpush.msra.mxu1 %v20015_v33  ;;  %10381 = vmatpush.msrb.mxu0 %v20056_v32  ;;  %v23770_v32 = vand.u32 4294901760, %v20106_v2  ;;  %v4996_v33 = vld [vmem:[%s22880_s2 + $0x858] sm:$0xff]  ;;  %23773 = vst [vmem:[#allocation10_spill] sm:$0xff] %v20534_v31 }
 0x486   :  { %10224 = vmatmul.f32.vlgmr.msra.gmra.mxu1 %v19956_v29  ;;  %10478 = vmatpush.msrb.mxu2 %v23767_v13  ;;  %v23772_v29 = vand.u32 4294901760, %v20144_v23 }
 0x487   :  { %10425 = vmatpush.msrb.mxu1 %v19948_v55  ;;  %10541 = vmatpush.msrb.mxu3 %v20045_v51  ;;  %v23769_v55 = vand.u32 4294901760, %v20096_v54 }
 0x488   :  { %10384 = vmatpush.msrb.mxu0 %v20080_v60  ;;  %10482 = vmatpush.msrb.mxu2 %v23768_v5  ;;  %v23771_v60 = vand.u32 4294901760, %v20123_v57  ;;  %v5015_v5 = vld [vmem:[%s22880_s2 + $0x8f0] sm:$0xff] }
 0x489   :  { %10427 = vmatpush.msrb.mxu1 %v19969_v40  ;;  %10543 = vmatpush.msrb.mxu3 %v20063_v3  ;;  %v5000_v40 = vld [vmem:[%s22880_s2 + $0x878] sm:$0xff] }
 0x48a   :  { %10387 = vmatpush.msrb.mxu0 %v20096_v54  ;;  %10486 = vmatpush.msrb.mxu2 %v23769_v55 }
 0x48b   :  { %10429 = vmatpush.msrb.mxu1 %v19996_v37  ;;  %10545 = vmatpush.msrb.mxu3 %v20071_v50 }
 0x48c   :  { %10390 = vmatpush.msrb.mxu0 %v20106_v2  ;;  %10490 = vmatpush.msrb.mxu2 %v23770_v32  ;;  %v4987_v32 = vld [vmem:[%s22880_s2 + $0x810] sm:$0xff] }
 0x48d   :  { %10431 = vmatpush.msrb.mxu1 %v20017_v0  ;;  %10547 = vmatpush.msrb.mxu3 %v20088_v8 }
 0x48e   :  { %10393 = vmatpush.msrb.mxu0 %v20123_v57  ;;  %10494 = vmatpush.msrb.mxu2 %v23771_v60  ;;  %v4999_v57 = vld [vmem:[%s22880_s2 + $0x870] sm:$0xff]  ;;  %v20554_v60 = vand.u32 4294901760, %v5016_v63 }
 0x48f   :  { %10433 = vmatpush.msrb.mxu1 %v20045_v51  ;;  %10549 = vmatpush.msrb.mxu3 %v20114_v14  ;;  %v20367_v51 = vand.u32 4294901760, %v5000_v40  ;;  %v20377_v37 = vand.u32 4294901760, %v4999_v57 }
 0x490   :  { %10396 = vmatpush.msrb.mxu0 %v20144_v23  ;;  %10498 = vmatpush.msrb.mxu2 %v23772_v29  ;;  %v20417_v23 = vand.u32 4294901760, %v4996_v33 }
 0x491   :  { %10435 = vmatpush.msrb.mxu1 %v20063_v3  ;;  %10551 = vmatpush.msrb.mxu3 %v20130_v30  ;;  %v20401_v0 = vsub.f32 %v4999_v57, %v20377_v37 }
 0x492   :  { %10399 = vmatpush.msrb.mxu0 %v20159_v49  ;;  %10502 = vmatpush.msrb.mxu2 %v10325_v39 }
 0x493   :  { %10437 = vmatpush.msrb.mxu1 %v20071_v50  ;;  %10553 = vmatpush.msrb.mxu3 %v20146_v4  ;;  %v4998_v50 = vld [vmem:[%s22880_s2 + $0x868] sm:$0xff] }
 0x494   :  { %10402 = vmatpush.msrb.mxu0 %v20174_v26  ;;  %10506 = vmatpush.msrb.mxu2 %v10331_v25  ;;  %v20388_v26 = vsub.f32 %v5000_v40, %v20367_v51  ;;  %v20390_v2 = vand.u32 4294901760, %v4998_v50  ;;  %v20444_v25 = vsub.f32 %v4996_v33, %v20417_v23 }
 0x495   :  { %10439 = vmatpush.msrb.mxu1 %v20088_v8  ;;  %10555 = vmatpush.msrb.mxu3 %v20161_v61  ;;  %v4997_v8 = vld [vmem:[%s22880_s2 + $0x860] sm:$0xff] }
 0x496   :  { %10405 = vmatpush.msrb.mxu0 %v20189_v53  ;;  %10510 = vmatpush.msrb.mxu2 %v10337_v44  ;;  %v20403_v3 = vand.u32 4294901760, %v4997_v8  ;;  %v20414_v54 = vsub.f32 %v4998_v50, %v20390_v2  ;;  %v4993_v53 = vld [vmem:[%s22880_s2 + $0x840] sm:$0xff]  ;;  %v23178_v11 = vand.u32 4294901760, %v20444_v25 }
 0x497   :  { %10441 = vmatpush.msrb.mxu1 %v20114_v14  ;;  %10557 = vmatpush.msrb.mxu3 %v20176_v34  ;;  %v4995_v14 = vld [vmem:[%s22880_s2 + $0x850] sm:$0xff]  ;;  %v23774_v50 = vld [vmem:[#allocation31_spill] sm:$0xff] }
 0x498   :  { %10408 = vmatpush.msrb.mxu0 %v20205_v6  ;;  %10514 = vmatpush.msrb.mxu2 %v10343_v58  ;;  %v20427_v49 = vsub.f32 %v4997_v8, %v20403_v3  ;;  %v20430_v39 = vand.u32 4294901760, %v4995_v14  ;;  %v23181_v6 = vand.u32 4294901760, %v20414_v54  ;;  %v20454_v58 = vand.u32 4294901760, %v4993_v53 }
 0x499   :  { %10443 = vmatpush.msrb.mxu1 %v20130_v30  ;;  %10559 = vmatpush.msrb.mxu3 %v20191_v48  ;;  %v23183_v30 = vand.u32 4294901760, %v20388_v26  ;;  %v10637_v21 = vsub.f32 %v20444_v25, %v23178_v11  ;;  %v20562_v8 = vand.u32 4294901760, %v23774_v50 }
 0x49a   :  { %10411 = vmatpush.msrb.mxu0 %v20218_v15  ;;  %10518 = vmatpush.msrb.mxu2 %v10349_v22  ;;  %v4992_v15 = vld [vmem:[%s22880_s2 + $0x838] sm:$0xff]  ;;  %v20462_v22 = vsub.f32 %v4995_v14, %v20430_v39  ;;  %v20484_v17 = vsub.f32 %v4993_v53, %v20454_v58  ;;  %v20570_v14 = vsub.f32 %v4988_v52, %v20534_v31  ;;  %v20575_v53 = vand.u32 4294901760, %v5015_v5 }
 0x49b   :  { %10445 = vmatpush.msrb.mxu1 %v20146_v4  ;;  %10561 = vmatpush.msrb.mxu3 %v20207_v20  ;;  %v4994_v4 = vld [vmem:[%s22880_s2 + $0x848] sm:$0xff]  ;;  %v10638_v45 = vand.u32 4294901760, %v10637_v21  ;;  %v20606_v52 = vsub.f32 %v23774_v50, %v20562_v8  ;;  %v5012_v50 = vld [vmem:[%s22880_s2 + $0x8d8] sm:$0xff] }
 0x49c   :  { %10414 = vmatpush.msrb.mxu0 %v20231_v7  ;;  %10522 = vmatpush.msrb.mxu2 %v10355_v38  ;;  %v20447_v44 = vand.u32 4294901760, %v4994_v4  ;;  %v4991_v38 = vld [vmem:[%s22880_s2 + $0x830] sm:$0xff]  ;;  %v23176_v24 = vand.u32 4294901760, %v20462_v22  ;;  %v23174_v36 = vand.u32 4294901760, %v20484_v17 }
 0x49d   :  { %10447 = vmatpush.msrb.mxu1 %v20161_v61  ;;  %10563 = vmatpush.msrb.mxu3 %v20220_v19  ;;  %v23182_v61 = vand.u32 4294901760, %v20401_v0  ;;  %v20495_v27 = vand.u32 4294901760, %v4991_v38 }
 0x49e   :  { %10417 = vmatpush.msrb.mxu0 %v20242_v35  ;;  %10565 = vmatmul.f32.vlgmr.msrb.gmra.mxu3 %v20245_v10  ;;  %v23179_v35 = vand.u32 4294901760, %v20427_v49  ;;  %v20478_v42 = vsub.f32 %v4994_v4, %v20447_v44  ;;  %v10643_v41 = vsub.f32 %v20462_v22, %v23176_v24  ;;  %v10655_v55 = vsub.f32 %v20484_v17, %v23174_v36  ;;  %v4986_v4 = vld [vmem:[%s22880_s2 + $0x808] sm:$0xff] }
 0x49f   :  { %10449 = vmatpush.msrb.mxu1 %v20176_v34  ;;  %10766 = vmatpush.msra.mxu3 %v20367_v51  ;;  %v10613_v34 = vsub.f32 %v20388_v26, %v23183_v30  ;;  %v10619_v7 = vsub.f32 %v20401_v0, %v23182_v61  ;;  %v20524_v62 = vsub.f32 %v4991_v38, %v20495_v27 }
 0x4a0   :  { %10526 = vmatpush.msrb.mxu2 %v10361_v43  ;;  %10420 = vmatmul.f32.vlgmr.msrb.gmra.mxu0 %v20265_v16  ;;  %v10625_v43 = vsub.f32 %v20414_v54, %v23181_v6  ;;  %v10631_v59 = vsub.f32 %v20427_v49, %v23179_v35  ;;  %v23175_v16 = vand.u32 4294901760, %v20478_v42  ;;  %v10644_v29 = vand.u32 4294901760, %v10643_v41 }
 0x4a1   :  { %10528 = vmatmul.f32.vlgmr.msrb.gmra.mxu2 %v20245_v10  ;;  %10570 = vmatpush.msra.mxu0 %v20367_v51  ;;  %v20467_v10 = vand.u32 4294901760, %v4992_v15  ;;  %v10620_v56 = vand.u32 4294901760, %v10619_v7  ;;  %v23171_v57 = vand.u32 4294901760, %v20524_v62  ;;  %v20581_v7 = vand.u32 4294901760, %v4987_v32 }
 0x4a2   :  { %10713 = vmatpush.msra.mxu2 %v20388_v26  ;;  %10768 = vmatpush.msra.mxu3 %v20377_v37  ;;  %v10626_v12 = vand.u32 4294901760, %v10625_v43  ;;  %v10632_v18 = vand.u32 4294901760, %v10631_v59  ;;  %v10649_v46 = vsub.f32 %v20478_v42, %v23175_v16  ;;  %v4985_v43 = vld [vmem:[%s22880_s2 + $0x800] sm:$0xff]  ;;  %v23177_v41 = vand.u32 4294901760, %v20570_v14 }
 0x4a3   :  { %10451 = vmatpush.msrb.mxu1 %v20191_v48  ;;  %10572 = vmatpush.msra.mxu0 %v20377_v37  ;;  %v10614_v48 = vand.u32 4294901760, %v10613_v34  ;;  %v20501_v1 = vsub.f32 %v4992_v15, %v20467_v10  ;;  %v5014_v34 = vld [vmem:[%s22880_s2 + $0x8e8] sm:$0xff]  ;;  %23775 = vst [vmem:[#allocation8_spill] sm:$0xff] %v20581_v7  ;;  %v10667_v59 = vsub.f32 %v20524_v62, %v23171_v57  ;;  %v5011_v57 = vld [vmem:[%s22880_s2 + $0x8d0] sm:$0xff] }
 0x4a4   :  { %10716 = vmatpush.msra.mxu2 %v20401_v0  ;;  %10770 = vmatpush.msra.mxu3 %v20390_v2  ;;  %v10650_v15 = vand.u32 4294901760, %v10649_v46  ;;  %v20602_v21 = vand.u32 4294901760, %v5014_v34  ;;  %v20619_v46 = vsub.f32 %v4987_v32, %v20581_v7 }
 0x4a5   :  { %10453 = vmatpush.msrb.mxu1 %v20207_v20  ;;  %10574 = vmatpush.msra.mxu0 %v20390_v2  ;;  %v4990_v20 = vld [vmem:[%s22880_s2 + $0x828] sm:$0xff]  ;;  %v23173_v9 = vand.u32 4294901760, %v20501_v1 }
 0x4a6   :  { %10719 = vmatpush.msra.mxu2 %v20414_v54  ;;  %10772 = vmatpush.msra.mxu3 %v20403_v3  ;;  %v23185_v16 = vand.u32 4294901760, %v20619_v46 }
 0x4a7   :  { %10455 = vmatpush.msrb.mxu1 %v20220_v19  ;;  %10576 = vmatpush.msra.mxu0 %v20403_v3  ;;  %v4989_v19 = vld [vmem:[%s22880_s2 + $0x820] sm:$0xff]  ;;  %v10661_v33 = vsub.f32 %v20501_v1, %v23173_v9 }
 0x4a8   :  { %10459 = vmatmul.f32.vlgmr.msrb.gmra.mxu1 %v10262_v47  ;;  %10722 = vmatpush.msra.mxu2 %v20427_v49  ;;  %v20511_v47 = vand.u32 4294901760, %v4990_v20  ;;  %v20526_v28 = vand.u32 4294901760, %v4989_v19 }
 0x4a9   :  { %10615 = vmatpush.msra.mxu1 %v10614_v48  ;;  %10774 = vmatpush.msra.mxu3 %v20417_v23  ;;  %v10656_v48 = vand.u32 4294901760, %v10655_v55  ;;  %v20621_v55 = vand.u32 4294901760, %v4985_v43 }
 0x4aa   :  { %10578 = vmatpush.msra.mxu0 %v20417_v23  ;;  %10725 = vmatpush.msra.mxu2 %v20444_v25  ;;  %v20541_v13 = vsub.f32 %v4990_v20, %v20511_v47  ;;  %v20558_v40 = vsub.f32 %v4989_v19, %v20526_v28  ;;  %v20590_v20 = vsub.f32 %v5016_v63, %v20554_v60  ;;  %v20599_v19 = vand.u32 4294901760, %v4986_v4 }
 0x4ab   :  { %10621 = vmatpush.msra.mxu1 %v10620_v56  ;;  %10776 = vmatpush.msra.mxu3 %v20430_v39  ;;  %v5013_v56 = vld [vmem:[%s22880_s2 + $0x8e0] sm:$0xff]  ;;  %v20612_v63 = vsub.f32 %v5015_v5, %v20575_v53  ;;  %v20658_v36 = vsub.f32 %v4985_v43, %v20621_v55 }
 0x4ac   :  { %10580 = vmatpush.msra.mxu0 %v20430_v39  ;;  %10728 = vmatpush.msra.mxu2 %v20462_v22  ;;  %v23170_v38 = vand.u32 4294901760, %v20541_v13  ;;  %23776 = vst [vmem:[#allocation6_spill] sm:$0xff] %v20590_v20  ;;  %v23180_v5 = vand.u32 4294901760, %v20590_v20  ;;  %v5009_v43 = vld [vmem:[%s22880_s2 + $0x8c0] sm:$0xff] }
 0x4ad   :  { %10627 = vmatpush.msra.mxu1 %v10626_v12  ;;  %10778 = vmatpush.msra.mxu3 %v20447_v44  ;;  %23777 = vst [vmem:[#allocation32_spill] sm:$0xff] %v20599_v19  ;;  %v23172_v12 = vand.u32 4294901760, %v20558_v40  ;;  %v20694_v11 = vand.u32 4294901760, %v5009_v43 }
 0x4ae   :  { %10582 = vmatpush.msra.mxu0 %v20447_v44  ;;  %10731 = vmatpush.msra.mxu2 %v20478_v42  ;;  %23778 = vst [vmem:[#allocation21_spill] sm:$0xff] %v20612_v63 }
 0x4af   :  { %10633 = vmatpush.msra.mxu1 %v10632_v18  ;;  %10780 = vmatpush.msra.mxu3 %v20454_v58  ;;  %v10662_v18 = vand.u32 4294901760, %v10661_v33  ;;  %v10668_v33 = vand.u32 4294901760, %v10667_v59  ;;  %v10679_v32 = vsub.f32 %v20558_v40, %v23172_v12  ;;  %v10685_v59 = vsub.f32 %v20570_v14, %v23177_v41 }
 0x4b0   :  { %10584 = vmatpush.msra.mxu0 %v20454_v58  ;;  %10734 = vmatpush.msra.mxu2 %v20484_v17  ;;  %v20651_v12 = vand.u32 4294901760, %v5012_v50  ;;  %v10954_v41 = vsub.f32 %v20590_v20, %v23180_v5  ;;  %v23783_v20 = vand.u32 4294901760, %v20658_v36 }
 0x4b1   :  { %10639 = vmatpush.msra.mxu1 %v10638_v45  ;;  %10782 = vmatpush.msra.mxu3 %v20467_v10  ;;  %v10673_v45 = vsub.f32 %v20541_v13, %v23170_v38  ;;  %v20639_v38 = vsub.f32 %v5014_v34, %v20602_v21  ;;  %v5010_v34 = vld [vmem:[%s22880_s2 + $0x8c8] sm:$0xff]  ;;  %v10686_v5 = vand.u32 4294901760, %v10685_v59 }
 0x4b2   :  { %10586 = vmatpush.msra.mxu0 %v20467_v10  ;;  %10737 = vmatpush.msra.mxu2 %v20501_v1  ;;  %v20677_v35 = vand.u32 4294901760, %v5010_v34  ;;  %v20686_v61 = vsub.f32 %v5012_v50, %v20651_v12 }
 0x4b3   :  { %10645 = vmatpush.msra.mxu1 %v10644_v29  ;;  %10784 = vmatpush.msra.mxu3 %v20495_v27  ;;  %v20623_v29 = vand.u32 4294901760, %v5013_v56  ;;  %23779 = vst [vmem:[#allocation35_spill] sm:$0xff] %v20639_v38  ;;  %v10674_v9 = vand.u32 4294901760, %v10673_v45  ;;  %v10680_v45 = vand.u32 4294901760, %v10679_v32  ;;  %v10691_v32 = vsub.f32 %v20619_v46, %v23185_v16 }
 0x4b4   :  { %10588 = vmatpush.msra.mxu0 %v20495_v27  ;;  %10740 = vmatpush.msra.mxu2 %v20524_v62 }
 0x4b5   :  { %10651 = vmatpush.msra.mxu1 %v10650_v15  ;;  %10786 = vmatpush.msra.mxu3 %v20511_v47  ;;  %v20636_v15 = vsub.f32 %v4986_v4, %v20599_v19  ;;  %v23184_v4 = vand.u32 4294901760, %v20612_v63  ;;  %v20662_v24 = vsub.f32 %v5013_v56, %v20623_v29  ;;  %v23189_v56 = vand.u32 4294901760, %v20639_v38 }
 0x4b6   :  { %10590 = vmatpush.msra.mxu0 %v20511_v47  ;;  %10743 = vmatpush.msra.mxu2 %v20541_v13 }
 0x4b7   :  { %10657 = vmatpush.msra.mxu1 %v10656_v48  ;;  %10788 = vmatpush.msra.mxu3 %v20526_v28  ;;  %v10603_v48 = vand.u32 4294901760, %v20606_v52  ;;  %v10966_v16 = vsub.f32 %v20639_v38, %v23189_v56  ;;  %v23780_v59 = vand.u32 4294901760, %v20636_v15  ;;  %v20722_v38 = vpop.f32.mrf.mxu3 }
 0x4b8   :  { %10592 = vmatpush.msra.mxu0 %v20526_v28  ;;  %10746 = vmatpush.msra.mxu2 %v20558_v40  ;;  %23781 = vst [vmem:[#allocation23_spill] sm:$0xff] %v20722_v38  ;;  %v23785_v38 = vand.u32 4294901760, %v20388_v26  ;;  %v5004_v26 = vld [vmem:[%s22880_s2 + $0x898] sm:$0xff] }
 0x4b9   :  { %10663 = vmatpush.msra.mxu1 %v10662_v18  ;;  %10790 = vmatpush.msra.mxu3 %v20534_v31  ;;  %v20669_v18 = vand.u32 4294901760, %v5011_v57  ;;  %v10604_v6 = vsub.f32 %v20606_v52, %v10603_v48  ;;  %v10697_v30 = vsub.f32 %v20636_v15, %v23780_v59  ;;  %v23782_v59 = vand.u32 4294901760, %v20662_v24 }
 0x4ba   :  { %10594 = vmatpush.msra.mxu0 %v20534_v31  ;;  %10749 = vmatpush.msra.mxu2 %v20570_v14  ;;  %v10703_v31 = vsub.f32 %v20658_v36, %v23783_v20  ;;  %v10967_v20 = vand.u32 4294901760, %v10966_v16 }
 0x4bb   :  { %10669 = vmatpush.msra.mxu1 %v10668_v33  ;;  %10792 = vmatpush.msra.mxu3 %v20581_v7  ;;  %v10960_v33 = vsub.f32 %v20612_v63, %v23184_v4  ;;  %v5008_v4 = vld [vmem:[%s22880_s2 + $0x8b8] sm:$0xff]  ;;  %v20702_v50 = vsub.f32 %v5011_v57, %v20669_v18  ;;  %v20712_v63 = vsub.f32 %v5010_v34, %v20677_v35  ;;  %v10605_v57 = vand.u32 4294901760, %v10604_v6 }
 0x4bc   :  { %10596 = vmatpush.msra.mxu0 %v20581_v7  ;;  %10752 = vmatpush.msra.mxu2 %v20619_v46  ;;  %v20720_v56 = vand.u32 4294901760, %v5008_v4  ;;  %v10692_v34 = vand.u32 4294901760, %v10691_v32  ;;  %v10972_v7 = vsub.f32 %v20662_v24, %v23782_v59  ;;  %v20731_v6 = vsub.f32 %v5009_v43, %v20694_v11  ;;  %v20740_v32 = vpop.f32.mrf.mxu0  ;;  %v20742_v59 = vpop.f32.mrf.mxu2 }
 0x4bd   :  { %10675 = vmatpush.msra.mxu1 %v10674_v9  ;;  %10794 = vmatpush.msra.mxu3 %v20599_v19  ;;  %v10955_v9 = vand.u32 4294901760, %v10954_v41  ;;  %v5007_v41 = vld [vmem:[%s22880_s2 + $0x8b0] sm:$0xff]  ;;  %23784 = vst [vmem:[#allocation24_spill] sm:$0xff] %v20742_v59  ;;  %v10698_v43 = vand.u32 4294901760, %v10697_v30 }
 0x4be   :  { %10598 = vmatpush.msra.mxu0 %v20599_v19  ;;  %10755 = vmatpush.msra.mxu2 %v20636_v15  ;;  %v10973_v30 = vand.u32 4294901760, %v10972_v7 }
 0x4bf   :  { %10681 = vmatpush.msra.mxu1 %v10680_v45  ;;  %10796 = vmatpush.msra.mxu3 %v20621_v55  ;;  %v10961_v45 = vand.u32 4294901760, %v10960_v33  ;;  %v5006_v33 = vld [vmem:[%s22880_s2 + $0x8a8] sm:$0xff] }
 0x4c0   :  { %10600 = vmatpush.msra.mxu0 %v20621_v55  ;;  %10800 = vmatmul.f32.vlgmr.msra.gmra.mxu3 %v10603_v48  ;;  %v20738_v48 = vand.u32 4294901760, %v5007_v41  ;;  %v20758_v16 = vand.u32 4294901760, %v5006_v33 }
 0x4c1   :  { %10687 = vmatpush.msra.mxu1 %v10686_v5  ;;  %10956 = vmatpush.msrb.mxu3 %v10955_v9  ;;  %v5005_v9 = vld [vmem:[%s22880_s2 + $0x8a0] sm:$0xff]  ;;  %v23786_v5 = vand.u32 4294901760, %v20686_v61 }
 0x4c2   :  { %10758 = vmatpush.msra.mxu2 %v20658_v36  ;;  %10606 = vmatmul.f32.vlgmr.msra.gmra.mxu0 %v10605_v57  ;;  %v20756_v57 = vsub.f32 %v5008_v4, %v20720_v56  ;;  %v23788_v4 = vand.u32 4294901760, %v20702_v50  ;;  %v20773_v7 = vand.u32 4294901760, %v5005_v9  ;;  %v20786_v19 = vsub.f32 %v5006_v33, %v20758_v16 }
 0x4c3   :  { %10761 = vmatmul.f32.vlgmr.msra.gmra.mxu2 %v20606_v52  ;;  %10807 = vmatpush.msrb.mxu0 %v23785_v38  ;;  %v10978_v59 = vsub.f32 %v20686_v61, %v23786_v5  ;;  %v10704_v52 = vand.u32 4294901760, %v10703_v31  ;;  %v23787_v38 = vand.u32 4294901760, %v20401_v0  ;;  %v23789_v31 = vand.u32 4294901760, %v20712_v63  ;;  %v5003_v0 = vld [vmem:[%s22880_s2 + $0x890] sm:$0xff] }
 0x4c4   :  { %10911 = vmatpush.msrb.mxu2 %v20554_v60  ;;  %10962 = vmatpush.msrb.mxu3 %v10961_v45  ;;  %v10984_v5 = vsub.f32 %v20702_v50, %v23788_v4  ;;  %v20771_v45 = vsub.f32 %v5007_v41, %v20738_v48 }
 0x4c5   :  { %10693 = vmatpush.msra.mxu1 %v10692_v34  ;;  %10811 = vmatpush.msrb.mxu0 %v23787_v38  ;;  %v10990_v34 = vsub.f32 %v20712_v63, %v23789_v31  ;;  %v23790_v38 = vand.u32 4294901760, %v20414_v54  ;;  %v10979_v4 = vand.u32 4294901760, %v10978_v59  ;;  %v5002_v54 = vld [vmem:[%s22880_s2 + $0x888] sm:$0xff]  ;;  %v23793_v59 = vand.u32 4294901760, %v20427_v49 }
 0x4c6   :  { %10913 = vmatpush.msrb.mxu2 %v20575_v53  ;;  %10968 = vmatpush.msrb.mxu3 %v10967_v20  ;;  %v20788_v20 = vand.u32 4294901760, %v5004_v26  ;;  %v10985_v33 = vand.u32 4294901760, %v10984_v5  ;;  %v23794_v49 = vand.u32 4294901760, %v20444_v25  ;;  %v23795_v5 = vand.u32 4294901760, %v20756_v57 }
 0x4c7   :  { %10699 = vmatpush.msra.mxu1 %v10698_v43  ;;  %10815 = vmatpush.msrb.mxu0 %v23790_v38  ;;  %v23791_v43 = vand.u32 4294901760, %v20731_v6  ;;  %v20796_v38 = vpop.f32.mrf.mxu1  ;;  %v23796_v25 = vand.u32 4294901760, %v20462_v22 }
 0x4c8   :  { %10915 = vmatpush.msrb.mxu2 %v20602_v21  ;;  %10974 = vmatpush.msrb.mxu3 %v10973_v30  ;;  %23792 = vst [vmem:[#allocation11_spill] sm:$0xff] %v20796_v38  ;;  %v20803_v30 = vsub.f32 %v5005_v9, %v20773_v7  ;;  %v5001_v38 = vld [vmem:[%s22880_s2 + $0x880] sm:$0xff]  ;;  %v11002_v9 = vsub.f32 %v20756_v57, %v23795_v5 }
 0x4c9   :  { %10705 = vmatpush.msra.mxu1 %v10704_v52  ;;  %v10996_v31 = vsub.f32 %v20731_v6, %v23791_v43  ;;  %10819 = vmatpush.msrb.mxu0 %v23793_v59  ;;  %v20805_v52 = vand.u32 4294901760, %v5003_v0  ;;  %v10991_v43 = vand.u32 4294901760, %v10990_v34  ;;  %v20819_v41 = vsub.f32 %v5004_v26, %v20788_v20 }
 0x4ca   :  { %10707 = vmatmul.f32.vlgmr.msra.gmra.mxu1 %v20562_v8  ;;  %10917 = vmatpush.msrb.mxu2 %v20623_v29  ;;  %v11019_v5 = vand.u32 4294901760, %v20803_v30  ;;  %v20834_v59 = vand.u32 4294901760, %v5001_v38  ;;  %v11003_v22 = vand.u32 4294901760, %v11002_v9 }
 0x4cb   :  { %10874 = vmatpush.msrb.mxu1 %v20367_v51  ;;  %10980 = vmatpush.msrb.mxu3 %v10979_v4  ;;  %v20821_v51 = vand.u32 4294901760, %v5002_v54  ;;  %v10997_v34 = vand.u32 4294901760, %v10996_v31  ;;  %v23797_v4 = vand.u32 4294901760, %v20771_v45  ;;  %v20832_v26 = vsub.f32 %v5003_v0, %v20805_v52 }
 0x4cc   :  { %10823 = vmatpush.msrb.mxu0 %v23794_v49  ;;  %10919 = vmatpush.msrb.mxu2 %v20651_v12  ;;  %v23799_v31 = vand.u32 4294901760, %v20786_v19 }
 0x4cd   :  { %10876 = vmatpush.msrb.mxu1 %v20377_v37  ;;  %10986 = vmatpush.msrb.mxu3 %v10985_v33  ;;  %v11008_v49 = vsub.f32 %v20771_v45, %v23797_v4  ;;  %v23798_v37 = vand.u32 4294901760, %v20478_v42  ;;  %v20845_v0 = vsub.f32 %v5002_v54, %v20821_v51  ;;  %v11031_v9 = vand.u32 4294901760, %v20832_v26  ;;  %v23801_v54 = vld [vmem:[#allocation37_spill] sm:$0xff] }
 0x4ce   :  { %10827 = vmatpush.msrb.mxu0 %v23796_v25  ;;  %10921 = vmatpush.msrb.mxu2 %v20669_v18  ;;  %v11014_v33 = vsub.f32 %v20786_v19, %v23799_v31  ;;  %v11025_v25 = vand.u32 4294901760, %v20819_v41  ;;  %v20856_v4 = vsub.f32 %v5001_v38, %v20834_v59 }
 0x4cf   :  { %10878 = vmatpush.msrb.mxu1 %v20390_v2  ;;  %10992 = vmatpush.msrb.mxu3 %v10991_v43  ;;  %v23800_v2 = vand.u32 4294901760, %v20484_v17  ;;  %v11009_v42 = vand.u32 4294901760, %v11008_v49  ;;  %v11020_v43 = vsub.f32 %v20803_v30, %v11019_v5  ;;  %v11037_v49 = vand.u32 4294901760, %v20845_v0 }
 0x4d0   :  { %10831 = vmatpush.msrb.mxu0 %v23798_v37  ;;  %10923 = vmatpush.msrb.mxu2 %v20677_v35  ;;  %v20859_v37 = vand.u32 4294901760, %v23801_v54  ;;  %v11015_v17 = vand.u32 4294901760, %v11014_v33 }
 0x4d1   :  { %10880 = vmatpush.msrb.mxu1 %v20403_v3  ;;  %10998 = vmatpush.msrb.mxu3 %v10997_v34  ;;  %v23802_v3 = vand.u32 4294901760, %v20501_v1  ;;  %v11026_v34 = vsub.f32 %v20819_v41, %v11025_v25  ;;  %v11021_v38 = vand.u32 4294901760, %v11020_v43  ;;  %v11032_v1 = vsub.f32 %v20832_v26, %v11031_v9 }
 0x4d2   :  { %10835 = vmatpush.msrb.mxu0 %v23800_v2  ;;  %10925 = vmatpush.msrb.mxu2 %v20694_v11  ;;  %v20879_v31 = vsub.f32 %v23801_v54, %v20859_v37  ;;  %v11038_v33 = vsub.f32 %v20845_v0, %v11037_v49  ;;  %v23805_v2 = vand.u32 4294901760, %v20558_v40  ;;  %v23807_v40 = vand.u32 4294901760, %v20619_v46  ;;  %v20915_v46 = vpop.f32.mrf.mxu3 }
 0x4d3   :  { %10882 = vmatpush.msrb.mxu1 %v20417_v23  ;;  %11004 = vmatpush.msrb.mxu3 %v11003_v22  ;;  %v23803_v23 = vand.u32 4294901760, %v20524_v62  ;;  %v11043_v22 = vand.u32 4294901760, %v20856_v4  ;;  %v11027_v62 = vand.u32 4294901760, %v11026_v34  ;;  %v23813_v34 = vld [vmem:[#allocation8_spill] sm:$0xff] }
 0x4d4   :  { %10839 = vmatpush.msrb.mxu0 %v23802_v3  ;;  %10927 = vmatpush.msrb.mxu2 %v20720_v56  ;;  %v11039_v43 = vand.u32 4294901760, %v11038_v33  ;;  %v20941_v33 = vpop.f32.mrf.mxu1 }
 0x4d5   :  { %10884 = vmatpush.msrb.mxu1 %v20430_v39  ;;  %11010 = vmatpush.msrb.mxu3 %v11009_v42  ;;  %v23804_v39 = vand.u32 4294901760, %v20541_v13  ;;  %v11044_v42 = vsub.f32 %v20856_v4, %v11043_v22  ;;  %v10944_v13 = vand.u32 4294901760, %v20879_v31 }
 0x4d6   :  { %10843 = vmatpush.msrb.mxu0 %v23803_v23  ;;  %10929 = vmatpush.msrb.mxu2 %v20738_v48  ;;  %v23814_v23 = vld [vmem:[#allocation21_spill] sm:$0xff] }
 0x4d7   :  { %10886 = vmatpush.msrb.mxu1 %v20447_v44  ;;  %11016 = vmatpush.msrb.mxu3 %v11015_v17  ;;  %v11033_v44 = vand.u32 4294901760, %v11032_v1  ;;  %v11045_v54 = vand.u32 4294901760, %v11044_v42  ;;  %v23816_v1 = vld [vmem:[#allocation32_spill] sm:$0xff] }
 0x4d8   :  { %10847 = vmatpush.msrb.mxu0 %v23804_v39  ;;  %10931 = vmatpush.msrb.mxu2 %v20758_v16  ;;  %v23817_v39 = vld [vmem:[#allocation35_spill] sm:$0xff] }
 0x4d9   :  { %10888 = vmatpush.msrb.mxu1 %v20454_v58  ;;  %11022 = vmatpush.msrb.mxu3 %v11021_v38  ;;  %v23806_v58 = vand.u32 4294901760, %v20570_v14  ;;  %v23808_v14 = vand.u32 4294901760, %v20636_v15  ;;  %v20921_v15 = vpop.f32.mrf.mxu0  ;;  %v23815_v38 = vand.u32 4294901760, %v23814_v23 }
 0x4da   :  { %10851 = vmatpush.msrb.mxu0 %v23805_v2  ;;  %10933 = vmatpush.msrb.mxu2 %v20773_v7  ;;  %v23819_v2 = vand.u32 4294901760, %v20662_v24 }
 0x4db   :  { %10890 = vmatpush.msrb.mxu1 %v20467_v10  ;;  %11028 = vmatpush.msrb.mxu3 %v11027_v62  ;;  %v10945_v10 = vsub.f32 %v20879_v31, %v10944_v13  ;;  %v23818_v62 = vand.u32 4294901760, %v23817_v39 }
 0x4dc   :  { %10855 = vmatpush.msrb.mxu0 %v23806_v58  ;;  %10935 = vmatpush.msrb.mxu2 %v20788_v20 }
 0x4dd   :  { %10892 = vmatpush.msrb.mxu1 %v20495_v27  ;;  %11034 = vmatpush.msrb.mxu3 %v11033_v44  ;;  %v23809_v27 = vand.u32 4294901760, %v20658_v36  ;;  %v10946_v3 = vand.u32 4294901760, %v10945_v10  ;;  %v23811_v36 = vld [vmem:[#allocation6_spill] sm:$0xff]  ;;  %v23820_v44 = vand.u32 4294901760, %v20686_v61 }
 0x4de   :  { %10859 = vmatpush.msrb.mxu0 %v23807_v40  ;;  %10937 = vmatpush.msrb.mxu2 %v20805_v52  ;;  %v23812_v17 = vand.u32 4294901760, %v23811_v36  ;;  %v5023_v10 = vld [vmem:[%s22880_s2 + $0x930] sm:$0xff] }
 0x4df   :  { %10894 = vmatpush.msrb.mxu1 %v20511_v47  ;;  %11040 = vmatpush.msrb.mxu3 %v11039_v43  ;;  %v23810_v47 = vld [vmem:[#allocation10_spill] sm:$0xff] }
 0x4e0   :  { %10863 = vmatpush.msrb.mxu0 %v23808_v14  ;;  %10939 = vmatpush.msrb.mxu2 %v20821_v51 }
 0x4e1   :  { %10896 = vmatpush.msrb.mxu1 %v20526_v28  ;;  %11046 = vmatpush.msrb.mxu3 %v11045_v54  ;;  %v20923_v28 = vpop.f32.mrf.mxu2 }
 0x4e2   :  { %10867 = vmatpush.msrb.mxu0 %v23809_v27  ;;  %11048 = vmatmul.f32.vlgmr.msrb.gmra.mxu3 %v20859_v37 }
 0x4e3   :  { %10898 = vmatpush.msrb.mxu1 %v23810_v47  ;;  %11215 = vmatpush.msra.mxu3 %v20554_v60 }
 0x4e4   :  { %10941 = vmatpush.msrb.mxu2 %v20834_v59  ;;  %10869 = vmatmul.f32.vlgmr.msrb.gmra.mxu0 %v20562_v8 }
 0x4e5   :  { %10947 = vmatmul.f32.vlgmr.msrb.gmra.mxu2 %v10946_v3  ;;  %11054 = vmatpush.msra.mxu0 %v23811_v36 }
 0x4e6   :  { %11148 = vmatpush.msra.mxu2 %v23812_v17  ;;  %11217 = vmatpush.msra.mxu3 %v20575_v53 }
 0x4e7   :  { %10900 = vmatpush.msrb.mxu1 %v23813_v34  ;;  %11057 = vmatpush.msra.mxu0 %v23814_v23  ;;  %v21123_v23 = vand.u32 4294901760, %v5023_v10 }
 0x4e8   :  { %11152 = vmatpush.msra.mxu2 %v23815_v38  ;;  %11219 = vmatpush.msra.mxu3 %v20602_v21  ;;  %v21125_v38 = vpop.f32.mrf.mxu1 }
 0x4e9   :  { %10902 = vmatpush.msrb.mxu1 %v23816_v1  ;;  %11060 = vmatpush.msra.mxu0 %v23817_v39  ;;  %23827 = vst [vmem:[#allocation12_spill] sm:$0xff] %v21123_v23 }
 0x4ea   :  { %11156 = vmatpush.msra.mxu2 %v23818_v62  ;;  %11221 = vmatpush.msra.mxu3 %v20623_v29 }
 0x4eb   :  { %10904 = vmatpush.msrb.mxu1 %v20621_v55  ;;  %11063 = vmatpush.msra.mxu0 %v20662_v24  ;;  %v23822_v24 = vand.u32 4294901760, %v20712_v63 }
 0x4ec   :  { %10906 = vmatmul.f32.vlgmr.msrb.gmra.mxu1 %v20562_v8  ;;  %11160 = vmatpush.msra.mxu2 %v23819_v2  ;;  %v23824_v8 = vand.u32 4294901760, %v20756_v57  ;;  %v5020_v2 = vld [vmem:[%s22880_s2 + $0x918] sm:$0xff] }
 0x4ed   :  { %11107 = vmatpush.msra.mxu1 %v20554_v60  ;;  %11223 = vmatpush.msra.mxu3 %v20651_v12  ;;  %v23821_v60 = vand.u32 4294901760, %v20702_v50 }
 0x4ee   :  { %11066 = vmatpush.msra.mxu0 %v20686_v61  ;;  %11164 = vmatpush.msra.mxu2 %v23820_v44  ;;  %v23823_v61 = vand.u32 4294901760, %v20731_v6 }
 0x4ef   :  { %11109 = vmatpush.msra.mxu1 %v20575_v53  ;;  %11225 = vmatpush.msra.mxu3 %v20669_v18  ;;  %v5032_v53 = vld [vmem:[%s22880_s2 + $0x978] sm:$0xff] }
 0x4f0   :  { %11069 = vmatpush.msra.mxu0 %v20702_v50  ;;  %11168 = vmatpush.msra.mxu2 %v23821_v60  ;;  %v20989_v55 = vand.u32 4294901760, %v5032_v53 }
 0x4f1   :  { %11111 = vmatpush.msra.mxu1 %v20602_v21  ;;  %11227 = vmatpush.msra.mxu3 %v20677_v35  ;;  %v5031_v21 = vld [vmem:[%s22880_s2 + $0x970] sm:$0xff] }
 0x4f2   :  { %11072 = vmatpush.msra.mxu0 %v20712_v63  ;;  %11172 = vmatpush.msra.mxu2 %v23822_v24  ;;  %v23826_v63 = vand.u32 4294901760, %v20786_v19 }
 0x4f3   :  { %11113 = vmatpush.msra.mxu1 %v20623_v29  ;;  %11229 = vmatpush.msra.mxu3 %v20694_v11  ;;  %v20999_v29 = vand.u32 4294901760, %v5031_v21 }
 0x4f4   :  { %11075 = vmatpush.msra.mxu0 %v20731_v6  ;;  %11176 = vmatpush.msra.mxu2 %v23823_v61  ;;  %v21154_v61 = vsub.f32 %v5023_v10, %v21123_v23 }
 0x4f5   :  { %11115 = vmatpush.msra.mxu1 %v20651_v12  ;;  %11231 = vmatpush.msra.mxu3 %v20720_v56  ;;  %v23825_v12 = vand.u32 4294901760, %v20771_v45  ;;  %v21023_v50 = vsub.f32 %v5031_v21, %v20999_v29 }
 0x4f6   :  { %11078 = vmatpush.msra.mxu0 %v20756_v57  ;;  %11180 = vmatpush.msra.mxu2 %v23824_v8 }
 0x4f7   :  { %11117 = vmatpush.msra.mxu1 %v20669_v18  ;;  %11233 = vmatpush.msra.mxu3 %v20738_v48 }
 0x4f8   :  { %11081 = vmatpush.msra.mxu0 %v20771_v45  ;;  %11184 = vmatpush.msra.mxu2 %v23825_v12  ;;  %v23830_v12 = vld [vmem:[#allocation11_spill] sm:$0xff] }
 0x4f9   :  { %11119 = vmatpush.msra.mxu1 %v20677_v35  ;;  %11235 = vmatpush.msra.mxu3 %v20758_v16  ;;  %v5030_v35 = vld [vmem:[%s22880_s2 + $0x968] sm:$0xff]  ;;  %v5253_v21 = vadd.f32 %v23830_v12, %v20740_v32  ;;  %v5047_v32 = vld [vmem:[%s22880_s2 + $0x9f0] sm:$0xff] }
 0x4fa   :  { %11084 = vmatpush.msra.mxu0 %v20786_v19  ;;  %11188 = vmatpush.msra.mxu2 %v23826_v63  ;;  %v21010_v19 = vsub.f32 %v5032_v53, %v20989_v55  ;;  %v21012_v18 = vand.u32 4294901760, %v5030_v35  ;;  %v5048_v53 = vld [vmem:[%s22880_s2 + $0x9f8] sm:$0xff] }
 0x4fb   :  { %11121 = vmatpush.msra.mxu1 %v20694_v11  ;;  %11237 = vmatpush.msra.mxu3 %v20773_v7  ;;  %v5029_v11 = vld [vmem:[%s22880_s2 + $0x960] sm:$0xff] }
 0x4fc   :  { %11087 = vmatpush.msra.mxu0 %v20803_v30  ;;  %11192 = vmatpush.msra.mxu2 %v11019_v5  ;;  %v21025_v6 = vand.u32 4294901760, %v5029_v11  ;;  %v21036_v57 = vsub.f32 %v5030_v35, %v21012_v18  ;;  %v21046_v30 = vpop.f32.mrf.mxu3  ;;  %v23205_v5 = vand.u32 4294901760, %v21023_v50  ;;  %v21166_v35 = vand.u32 4294901760, %v5020_v2 }
 0x4fd   :  { %11123 = vmatpush.msra.mxu1 %v20720_v56  ;;  %11239 = vmatpush.msra.mxu3 %v20788_v20  ;;  %v5028_v56 = vld [vmem:[%s22880_s2 + $0x958] sm:$0xff] }
 0x4fe   :  { %11090 = vmatpush.msra.mxu0 %v20819_v41  ;;  %11196 = vmatpush.msra.mxu2 %v11025_v25  ;;  %v21039_v45 = vand.u32 4294901760, %v5028_v56  ;;  %v5026_v41 = vld [vmem:[%s22880_s2 + $0x948] sm:$0xff]  ;;  %v5025_v25 = vld [vmem:[%s22880_s2 + $0x940] sm:$0xff]  ;;  %v23203_v42 = vand.u32 4294901760, %v21036_v57  ;;  %23831 = vst [vmem:[#allocation27_spill] sm:$0xff] %v21166_v35 }
 0x4ff   :  { %11125 = vmatpush.msra.mxu1 %v20738_v48  ;;  %11241 = vmatpush.msra.mxu3 %v20805_v52  ;;  %v5027_v48 = vld [vmem:[%s22880_s2 + $0x950] sm:$0xff]  ;;  %v21075_v58 = vand.u32 4294901760, %v5026_v41 }
 0x500   :  { %11093 = vmatpush.msra.mxu0 %v20832_v26  ;;  %11200 = vmatpush.msra.mxu2 %v11031_v9  ;;  %v21054_v26 = vand.u32 4294901760, %v5027_v48  ;;  %v21064_v9 = vpop.f32.mrf.mxu2  ;;  %v11307_v14 = vsub.f32 %v21036_v57, %v23203_v42 }
 0x501   :  { %11127 = vmatpush.msra.mxu1 %v20758_v16  ;;  %11243 = vmatpush.msra.mxu3 %v20821_v51  ;;  %v23206_v16 = vand.u32 4294901760, %v21010_v19  ;;  %v21106_v27 = vsub.f32 %v5026_v41, %v21075_v58  ;;  %v23832_v41 = vld [vmem:[#allocation49_spill] sm:$0xff] }
 0x502   :  { %11096 = vmatpush.msra.mxu0 %v20845_v0  ;;  %11204 = vmatpush.msra.mxu2 %v11037_v49  ;;  %v21062_v0 = vpop.f32.mrf.mxu0  ;;  %v21072_v49 = vsub.f32 %v5028_v56, %v21039_v45  ;;  %v21090_v43 = vsub.f32 %v5027_v48, %v21054_v26  ;;  %v11308_v39 = vand.u32 4294901760, %v11307_v14  ;;  %v23202_v14 = vand.u32 4294901760, %v21154_v61 }
 0x503   :  { %11129 = vmatpush.msra.mxu1 %v20773_v7  ;;  %11245 = vmatpush.msra.mxu3 %v20834_v59  ;;  %v21051_v7 = vsub.f32 %v5029_v11, %v21025_v6 }
 0x504   :  { %11099 = vmatpush.msra.mxu0 %v20856_v4  ;;  %11247 = vmatmul.f32.vlgmr.msra.gmra.mxu3 %v20859_v37  ;;  %v5024_v4 = vld [vmem:[%s22880_s2 + $0x938] sm:$0xff]  ;;  %v23200_v47 = vand.u32 4294901760, %v21072_v49  ;;  %v23199_v34 = vand.u32 4294901760, %v21090_v43 }
 0x505   :  { %11131 = vmatpush.msra.mxu1 %v20788_v20  ;;  %11448 = vmatpush.msrb.mxu3 %v20989_v55  ;;  %v11295_v20 = vsub.f32 %v21010_v19, %v23206_v16  ;;  %v23201_v40 = vand.u32 4294901760, %v21051_v7  ;;  %v21095_v54 = vand.u32 4294901760, %v5024_v4 }
 0x506   :  { %11208 = vmatpush.msra.mxu2 %v11043_v22  ;;  %11102 = vmatmul.f32.vlgmr.msra.gmra.mxu0 %v20879_v31  ;;  %v11301_v22 = vsub.f32 %v21023_v50, %v23205_v5  ;;  %v11319_v62 = vsub.f32 %v21072_v49, %v23200_v47  ;;  %v23198_v31 = vand.u32 4294901760, %v21106_v27  ;;  %v11325_v24 = vsub.f32 %v21090_v43, %v23199_v34  ;;  %v23838_v34 = vld [vmem:[#allocation23_spill] sm:$0xff] }
 0x507   :  { %11210 = vmatmul.f32.vlgmr.msra.gmra.mxu2 %v20859_v37  ;;  %11252 = vmatpush.msrb.mxu0 %v20989_v55  ;;  %v21082_v37 = vand.u32 4294901760, %v5025_v25  ;;  %v11313_v17 = vsub.f32 %v21051_v7, %v23201_v40  ;;  %v21131_v1 = vsub.f32 %v5024_v4, %v21095_v54  ;;  %v5019_v4 = vld [vmem:[%s22880_s2 + $0x910] sm:$0xff] }
 0x508   :  { %11395 = vmatpush.msrb.mxu2 %v21010_v19  ;;  %11450 = vmatpush.msrb.mxu3 %v20999_v29  ;;  %v11302_v36 = vand.u32 4294901760, %v11301_v22  ;;  %v11320_v11 = vand.u32 4294901760, %v11319_v62  ;;  %v11331_v56 = vsub.f32 %v21106_v27, %v23198_v31  ;;  %v21189_v22 = vand.u32 4294901760, %v5048_v53 }
 0x509   :  { %11133 = vmatpush.msra.mxu1 %v20805_v52  ;;  %11254 = vmatpush.msrb.mxu0 %v20999_v29  ;;  %v11296_v52 = vand.u32 4294901760, %v11295_v20  ;;  %v21112_v3 = vsub.f32 %v5025_v25, %v21082_v37  ;;  %v11314_v60 = vand.u32 4294901760, %v11313_v17  ;;  %v23196_v63 = vand.u32 4294901760, %v21131_v1 }
 0x50a   :  { %11398 = vmatpush.msrb.mxu2 %v21023_v50  ;;  %11452 = vmatpush.msrb.mxu3 %v21012_v18  ;;  %v21179_v25 = vand.u32 4294901760, %v23832_v41  ;;  %23833 = vst [vmem:[#allocation45_spill] sm:$0xff] %v21189_v22  ;;  %v11326_v10 = vand.u32 4294901760, %v11325_v24  ;;  %v21208_v62 = vand.u32 4294901760, %v5047_v32  ;;  %v11332_v24 = vand.u32 4294901760, %v11331_v56  ;;  %v5045_v56 = vld [vmem:[%s22880_s2 + $0x9e0] sm:$0xff] }
 0x50b   :  { %11135 = vmatpush.msra.mxu1 %v20821_v51  ;;  %11256 = vmatpush.msrb.mxu0 %v21012_v18  ;;  %v5022_v51 = vld [vmem:[%s22880_s2 + $0x928] sm:$0xff]  ;;  %v23197_v44 = vand.u32 4294901760, %v21112_v3  ;;  %v11343_v17 = vsub.f32 %v21131_v1, %v23196_v63  ;;  %v21214_v12 = vand.u32 4294901760, %v5019_v4  ;;  %v21227_v63 = vsub.f32 %v5048_v53, %v21189_v22 }
 0x50c   :  { %11401 = vmatpush.msrb.mxu2 %v21036_v57  ;;  %11454 = vmatpush.msrb.mxu3 %v21025_v6  ;;  %v21246_v40 = vsub.f32 %v5047_v32, %v21208_v62 }
 0x50d   :  { %11137 = vmatpush.msra.mxu1 %v20834_v59  ;;  %11258 = vmatpush.msrb.mxu0 %v21025_v6  ;;  %v5021_v59 = vld [vmem:[%s22880_s2 + $0x920] sm:$0xff]  ;;  %v11337_v20 = vsub.f32 %v21112_v3, %v23197_v44  ;;  %23835 = vst [vmem:[#allocation29_spill] sm:$0xff] %v21214_v12  ;;  %v11344_v47 = vand.u32 4294901760, %v11343_v17  ;;  %v21253_v42 = vsub.f32 %v5019_v4, %v21214_v12  ;;  %v5044_v17 = vld [vmem:[%s22880_s2 + $0x9d8] sm:$0xff] }
 0x50e   :  { %11141 = vmatmul.f32.vlgmr.msra.gmra.mxu1 %v10944_v13  ;;  %11404 = vmatpush.msrb.mxu2 %v21051_v7  ;;  %v21141_v13 = vand.u32 4294901760, %v5022_v51  ;;  %v21156_v8 = vand.u32 4294901760, %v5021_v59  ;;  %23836 = vst [vmem:[#allocation34_spill] sm:$0xff] %v21227_v63 }
 0x50f   :  { %11297 = vmatpush.msrb.mxu1 %v11296_v52  ;;  %11456 = vmatpush.msrb.mxu3 %v21039_v45  ;;  %23839 = vst [vmem:[#allocation14_spill] sm:$0xff] %v21246_v40 }
 0x510   :  { %23828 = vst [vmem:[#allocation38_spill] sm:$0xff] %v21141_v13  ;;  %11260 = vmatpush.msrb.mxu0 %v21039_v45  ;;  %11407 = vmatpush.msrb.mxu2 %v21072_v49  ;;  %v21173_v48 = vsub.f32 %v5022_v51, %v21141_v13  ;;  %v21193_v52 = vsub.f32 %v5021_v59, %v21156_v8  ;;  %v23834_v51 = vld [vmem:[#allocation24_spill] sm:$0xff] }
 0x511   :  { %11303 = vmatpush.msrb.mxu1 %v11302_v36  ;;  %23829 = vst [vmem:[#allocation40_spill] sm:$0xff] %v21156_v8  ;;  %11458 = vmatpush.msrb.mxu3 %v21054_v26  ;;  %v5307_v36 = vadd.f32 %v23834_v51, %v5253_v21  ;;  %v5018_v59 = vld [vmem:[%s22880_s2 + $0x908] sm:$0xff]  ;;  %v11338_v51 = vand.u32 4294901760, %v11337_v20 }
 0x512   :  { %11262 = vmatpush.msrb.mxu0 %v21054_v26  ;;  %11410 = vmatpush.msrb.mxu2 %v21090_v43  ;;  %v23204_v21 = vand.u32 4294901760, %v21173_v48  ;;  %v21236_v44 = vand.u32 4294901760, %v5018_v59  ;;  %v23207_v20 = vand.u32 4294901760, %v21193_v52 }
 0x513   :  { %11309 = vmatpush.msrb.mxu1 %v11308_v39  ;;  %11460 = vmatpush.msrb.mxu3 %v21075_v58  ;;  %v21203_v39 = vsub.f32 %v5020_v2, %v21166_v35  ;;  %v21219_v2 = vsub.f32 %v23832_v41, %v21179_v25  ;;  %v11349_v41 = vsub.f32 %v21154_v61, %v23202_v14 }
 0x514   :  { %11264 = vmatpush.msrb.mxu0 %v21075_v58  ;;  %11413 = vmatpush.msrb.mxu2 %v21106_v27  ;;  %23837 = vst [vmem:[#allocation13_spill] sm:$0xff] %v21236_v44  ;;  %v5346_v53 = vadd.f32 %v23838_v34, %v5307_v36  ;;  %v11355_v14 = vsub.f32 %v21173_v48, %v23204_v21  ;;  %v21257_v36 = vand.u32 4294901760, %v5045_v56 }
 0x515   :  { %11315 = vmatpush.msrb.mxu1 %v11314_v60  ;;  %11462 = vmatpush.msrb.mxu3 %v21082_v37  ;;  %v5046_v60 = vld [vmem:[%s22880_s2 + $0x9e8] sm:$0xff]  ;;  %v11350_v4 = vand.u32 4294901760, %v11349_v41  ;;  %v11361_v5 = vsub.f32 %v21193_v52, %v23207_v20  ;;  %v21272_v16 = vsub.f32 %v5018_v59, %v21236_v44  ;;  %v21287_v41 = vand.u32 4294901760, %v5044_v17 }
 0x516   :  { %11266 = vmatpush.msrb.mxu0 %v21082_v37  ;;  %11416 = vmatpush.msrb.mxu2 %v21112_v3  ;;  %v21239_v31 = vand.u32 4294901760, %v5046_v60  ;;  %v5415_v32 = vadd.f32 %v20921_v15, %v5346_v53  ;;  %v5043_v53 = vld [vmem:[%s22880_s2 + $0x9d0] sm:$0xff]  ;;  %v21298_v21 = vsub.f32 %v5045_v56, %v21257_v36 }
 0x517   :  { %11321 = vmatpush.msrb.mxu1 %v11320_v11  ;;  %11464 = vmatpush.msrb.mxu3 %v21095_v54  ;;  %v5017_v11 = vld [vmem:[%s22880_s2 + $0x900] sm:$0xff]  ;;  %23841 = vst [vmem:[#allocation36_spill] sm:$0xff] %v21272_v16  ;;  %v11362_v56 = vand.u32 4294901760, %v11361_v5  ;;  %v23847_v5 = vand.u32 4294901760, %v21253_v42 }
 0x518   :  { %11268 = vmatpush.msrb.mxu0 %v21095_v54  ;;  %11419 = vmatpush.msrb.mxu2 %v21131_v1  ;;  %v21255_v34 = vand.u32 4294901760, %v5017_v11  ;;  %v21275_v15 = vsub.f32 %v5046_v60, %v21239_v31  ;;  %v5042_v60 = vld [vmem:[%s22880_s2 + $0x9c8] sm:$0xff]  ;;  %23843 = vst [vmem:[#allocation41_spill] sm:$0xff] %v21298_v21 }
 0x519   :  { %11327 = vmatpush.msrb.mxu1 %v11326_v10  ;;  %11466 = vmatpush.msrb.mxu3 %v21123_v23  ;;  %v23208_v10 = vand.u32 4294901760, %v21203_v39 }
 0x51a   :  { %11270 = vmatpush.msrb.mxu0 %v21123_v23  ;;  %11422 = vmatpush.msrb.mxu2 %v21154_v61  ;;  %23840 = vst [vmem:[#allocation47_spill] sm:$0xff] %v21255_v34  ;;  %v21325_v23 = vsub.f32 %v5044_v17, %v21287_v41 }
 0x51b   :  { %11333 = vmatpush.msrb.mxu1 %v11332_v24  ;;  %11468 = vmatpush.msrb.mxu3 %v21141_v13  ;;  %23842 = vst [vmem:[#allocation33_spill] sm:$0xff] %v21275_v15  ;;  %v5452_v24 = vadd.f32 %v20941_v33, %v5415_v32  ;;  %v11356_v33 = vand.u32 4294901760, %v11355_v14  ;;  %v21294_v32 = vsub.f32 %v5017_v11, %v21255_v34  ;;  %v5041_v11 = vld [vmem:[%s22880_s2 + $0x9c0] sm:$0xff] }
 0x51c   :  { %11272 = vmatpush.msrb.mxu0 %v21141_v13  ;;  %11425 = vmatpush.msrb.mxu2 %v21173_v48  ;;  %v21316_v13 = vand.u32 4294901760, %v5042_v60  ;;  %v21333_v20 = vand.u32 4294901760, %v5041_v11 }
 0x51d   :  { %11339 = vmatpush.msrb.mxu1 %v11338_v51  ;;  %11470 = vmatpush.msrb.mxu3 %v21156_v8  ;;  %v11367_v51 = vsub.f32 %v21203_v39, %v23208_v10  ;;  %v23844_v10 = vand.u32 4294901760, %v21227_v63 }
 0x51e   :  { %11274 = vmatpush.msrb.mxu0 %v21156_v8  ;;  %11428 = vmatpush.msrb.mxu2 %v21193_v52  ;;  %v21308_v8 = vand.u32 4294901760, %v5043_v53 }
 0x51f   :  { %11345 = vmatpush.msrb.mxu1 %v11344_v47  ;;  %11472 = vmatpush.msrb.mxu3 %v21166_v35  ;;  %v11636_v59 = vsub.f32 %v21227_v63, %v23844_v10  ;;  %v23845_v47 = vand.u32 4294901760, %v21219_v2  ;;  %v5493_v10 = vadd.f32 %v20923_v28, %v5452_v24  ;;  %v23846_v63 = vand.u32 4294901760, %v21246_v40 }
 0x520   :  { %11276 = vmatpush.msrb.mxu0 %v21166_v35  ;;  %11431 = vmatpush.msrb.mxu2 %v21203_v39  ;;  %v11373_v35 = vsub.f32 %v21253_v42, %v23847_v5  ;;  %v23848_v5 = vand.u32 4294901760, %v21275_v15  ;;  %v23849_v28 = vand.u32 4294901760, %v21272_v16 }
 0x521   :  { %v11286_v14 = vsub.f32 %v21219_v2, %v23845_v47  ;;  %11351 = vmatpush.msrb.mxu1 %v11350_v4  ;;  %11474 = vmatpush.msrb.mxu3 %v21214_v12  ;;  %v11368_v47 = vand.u32 4294901760, %v11367_v51  ;;  %v11642_v4 = vsub.f32 %v21246_v40, %v23846_v63  ;;  %v5040_v63 = vld [vmem:[%s22880_s2 + $0x9b8] sm:$0xff]  ;;  %v11637_v17 = vand.u32 4294901760, %v11636_v59 }
 0x522   :  { %11278 = vmatpush.msrb.mxu0 %v21214_v12  ;;  %11434 = vmatpush.msrb.mxu2 %v21253_v42  ;;  %v21341_v51 = vsub.f32 %v5043_v53, %v21308_v8  ;;  %v11648_v24 = vsub.f32 %v21275_v15, %v23848_v5  ;;  %v11379_v40 = vsub.f32 %v21272_v16, %v23849_v28  ;;  %v5039_v53 = vld [vmem:[%s22880_s2 + $0x9b0] sm:$0xff]  ;;  %v21360_v5 = vand.u32 4294901760, %v5040_v63  ;;  %v21362_v15 = vpop.f32.mrf.mxu3 }
 0x523   :  { %11357 = vmatpush.msrb.mxu1 %v11356_v33  ;;  %11476 = vmatpush.msrb.mxu3 %v21236_v44  ;;  %v11287_v33 = vand.u32 4294901760, %v11286_v14  ;;  %v21351_v12 = vsub.f32 %v5042_v60, %v21316_v13  ;;  %v5594_v59 = vadd.f32 %v20915_v46, %v5493_v10  ;;  %v11643_v14 = vand.u32 4294901760, %v11642_v4 }
 0x524   :  { %11280 = vmatpush.msrb.mxu0 %v21236_v44  ;;  %11437 = vmatpush.msrb.mxu2 %v21272_v16  ;;  %v23850_v60 = vand.u32 4294901760, %v21219_v2  ;;  %v11374_v28 = vand.u32 4294901760, %v11373_v35  ;;  %v23851_v44 = vand.u32 4294901760, %v21298_v21  ;;  %v23852_v10 = vand.u32 4294901760, %v21294_v32 }
 0x525   :  { %11363 = vmatpush.msrb.mxu1 %v11362_v56  ;;  %11478 = vmatpush.msrb.mxu3 %v21255_v34  ;;  %v21373_v4 = vsub.f32 %v5041_v11, %v21333_v20  ;;  %v5038_v56 = vld [vmem:[%s22880_s2 + $0x9a8] sm:$0xff]  ;;  %v11649_v11 = vand.u32 4294901760, %v11648_v24  ;;  %v23853_v35 = vand.u32 4294901760, %v21010_v19 }
 0x526   :  { %11282 = vmatpush.msrb.mxu0 %v21255_v34  ;;  %11482 = vmatmul.f32.vlgmr.msrb.gmra.mxu3 %v23850_v60  ;;  %v11654_v46 = vsub.f32 %v21298_v21, %v23851_v44  ;;  %v11385_v34 = vsub.f32 %v21294_v32, %v23852_v10  ;;  %v5648_v44 = vadd.f32 %v21062_v0, %v5594_v59  ;;  %v21383_v60 = vpop.f32.mrf.mxu0  ;;  %v21385_v21 = vpop.f32.mrf.mxu2  ;;  %v11380_v10 = vand.u32 4294901760, %v11379_v40 }
 0x527   :  { %11369 = vmatpush.msrb.mxu1 %v11368_v47  ;;  %11638 = vmatpush.msra.mxu3 %v11637_v17  ;;  %v21380_v47 = vand.u32 4294901760, %v5039_v53  ;;  %v5037_v17 = vld [vmem:[%s22880_s2 + $0x9a0] sm:$0xff]  ;;  %v23854_v0 = vand.u32 4294901760, %v21325_v23  ;;  %v23228_v19 = vand.u32 4294901760, %v21373_v4 }
 0x528   :  { %11440 = vmatpush.msrb.mxu2 %v21294_v32  ;;  %11288 = vmatmul.f32.vlgmr.msrb.gmra.mxu0 %v11287_v33  ;;  %v21399_v33 = vsub.f32 %v5040_v63, %v21360_v5  ;;  %v5687_v40 = vadd.f32 %v21125_v38, %v5648_v44  ;;  %v11655_v24 = vand.u32 4294901760, %v11654_v46  ;;  %v11386_v16 = vand.u32 4294901760, %v11385_v34 }
 0x529   :  { %11443 = vmatmul.f32.vlgmr.msrb.gmra.mxu2 %v21219_v2  ;;  %11489 = vmatpush.msra.mxu0 %v23853_v35  ;;  %v11660_v59 = vsub.f32 %v21325_v23, %v23854_v0  ;;  %v21401_v2 = vand.u32 4294901760, %v5038_v56  ;;  %v5036_v35 = vld [vmem:[%s22880_s2 + $0x998] sm:$0xff]  ;;  %v23856_v63 = vand.u32 4294901760, %v21341_v51  ;;  %v21415_v38 = vsub.f32 %v5039_v53, %v21380_v47 }
 0x52a   :  { %11593 = vmatpush.msra.mxu2 %v21189_v22  ;;  %11644 = vmatpush.msra.mxu3 %v11643_v14  ;;  %v23855_v22 = vand.u32 4294901760, %v21023_v50  ;;  %v21417_v14 = vand.u32 4294901760, %v5037_v17  ;;  %v23857_v34 = vand.u32 4294901760, %v21351_v12  ;;  %v5035_v50 = vld [vmem:[%s22880_s2 + $0x990] sm:$0xff]  ;;  %v23227_v53 = vand.u32 4294901760, %v21399_v33 }
 0x52b   :  { %11375 = vmatpush.msrb.mxu1 %v11374_v28  ;;  %v11666_v0 = vsub.f32 %v21341_v51, %v23856_v63  ;;  %v11661_v46 = vand.u32 4294901760, %v11660_v59  ;;  %v21430_v44 = vsub.f32 %v5038_v56, %v21401_v2  ;;  %v11678_v63 = vsub.f32 %v21373_v4, %v23228_v19  ;;  %v5934_v59 = vpop.f32.mrf.mxu1 }
 0x52c   :  { %11493 = vmatpush.msra.mxu0 %v23855_v22  ;;  %11595 = vmatpush.msra.mxu2 %v21208_v62  ;;  %v11672_v28 = vsub.f32 %v21351_v12, %v23857_v34  ;;  %v23858_v22 = vand.u32 4294901760, %v21036_v57  ;;  %v5034_v57 = vld [vmem:[%s22880_s2 + $0x988] sm:$0xff]  ;;  %v23859_v56 = vand.u32 4294901760, %v21051_v7  ;;  %v23860_v7 = vand.u32 4294901760, %v21072_v49 }
 0x52d   :  { %11650 = vmatpush.msra.mxu3 %v11649_v11  ;;  %11381 = vmatpush.msrb.mxu1 %v11380_v10  ;;  %v21432_v11 = vand.u32 4294901760, %v5036_v35  ;;  %v5756_v10 = vadd.f32 %v21064_v9, %v5687_v40  ;;  %v11667_v34 = vand.u32 4294901760, %v11666_v0  ;;  %v21446_v9 = vsub.f32 %v5037_v17, %v21417_v14 }
 0x52e   :  { %11497 = vmatpush.msra.mxu0 %v23858_v22  ;;  %11597 = vmatpush.msra.mxu2 %v21239_v31  ;;  %v11689_v22 = vand.u32 4294901760, %v21415_v38  ;;  %v11673_v40 = vand.u32 4294901760, %v11672_v28  ;;  %v11684_v17 = vsub.f32 %v21399_v33, %v23227_v53  ;;  %v11695_v0 = vand.u32 4294901760, %v21430_v44 }
 0x52f   :  { %11656 = vmatpush.msra.mxu3 %v11655_v24  ;;  %11387 = vmatpush.msrb.mxu1 %v11386_v16  ;;  %v21448_v16 = vand.u32 4294901760, %v5035_v50  ;;  %v5033_v24 = vld [vmem:[%s22880_s2 + $0x980] sm:$0xff]  ;;  %v5793_v28 = vadd.f32 %v21046_v30, %v5756_v10  ;;  %v23861_v49 = vand.u32 4294901760, %v21090_v43  ;;  %v23862_v30 = vand.u32 4294901760, %v21106_v27 }
 0x530   :  { %11389 = vmatmul.f32.vlgmr.msrb.gmra.mxu1 %v21179_v25  ;;  %11501 = vmatpush.msra.mxu0 %v23859_v56  ;;  %v21462_v56 = vsub.f32 %v5036_v35, %v21432_v11  ;;  %v11701_v35 = vand.u32 4294901760, %v21446_v9  ;;  %v21478_v19 = vand.u32 4294901760, %v5033_v24  ;;  %v11685_v43 = vand.u32 4294901760, %v11684_v17 }
 0x531   :  { %11556 = vmatpush.msra.mxu1 %v20989_v55  ;;  %11599 = vmatpush.msra.mxu2 %v21257_v36  ;;  %v21464_v55 = vand.u32 4294901760, %v5034_v57  ;;  %v21476_v53 = vsub.f32 %v5035_v50, %v21448_v16  ;;  %v11696_v10 = vsub.f32 %v21430_v44, %v11695_v0 }
 0x532   :  { %11662 = vmatpush.msra.mxu3 %v11661_v46  ;;  %11505 = vmatpush.msra.mxu0 %v23860_v7  ;;  %v11679_v46 = vand.u32 4294901760, %v11678_v63  ;;  %v11690_v7 = vsub.f32 %v21415_v38, %v11689_v22  ;;  %v11707_v50 = vand.u32 4294901760, %v21462_v56  ;;  %v21501_v17 = vsub.f32 %v5033_v24, %v21478_v19 }
 0x533   :  { %11558 = vmatpush.msra.mxu1 %v20999_v29  ;;  %11601 = vmatpush.msra.mxu2 %v21287_v41  ;;  %v5834_v29 = vadd.f32 %v21383_v60, %v5793_v28  ;;  %v21490_v63 = vsub.f32 %v5034_v57, %v21464_v55  ;;  %v11702_v60 = vsub.f32 %v21446_v9, %v11701_v35  ;;  %v23864_v57 = vld [vmem:[#allocation50_spill] sm:$0xff] }
 0x534   :  { %11668 = vmatpush.msra.mxu3 %v11667_v34  ;;  %11509 = vmatpush.msra.mxu0 %v23861_v49  ;;  %v11691_v27 = vand.u32 4294901760, %v11690_v7  ;;  %v11708_v28 = vsub.f32 %v21462_v56, %v11707_v50  ;;  %v11725_v7 = vand.u32 4294901760, %v21501_v17 }
 0x535   :  { %11560 = vmatpush.msra.mxu1 %v21012_v18  ;;  %11603 = vmatpush.msra.mxu2 %v21308_v8  ;;  %v5935_v34 = vadd.f32 %v5934_v59, %v5834_v29  ;;  %v23863_v18 = vand.u32 4294901760, %v21112_v3  ;;  %v21504_v59 = vand.u32 4294901760, %v23864_v57  ;;  %v11697_v3 = vand.u32 4294901760, %v11696_v10 }
 0x536   :  { %11674 = vmatpush.msra.mxu3 %v11673_v40  ;;  %11513 = vmatpush.msra.mxu0 %v23862_v30  ;;  %v11713_v40 = vand.u32 4294901760, %v21476_v53  ;;  %v11703_v49 = vand.u32 4294901760, %v11702_v60  ;;  %v6096_v30 = vpop.f32.mrf.mxu0 }
 0x537   :  { %11562 = vmatpush.msra.mxu1 %v21025_v6  ;;  %11605 = vmatpush.msra.mxu2 %v21316_v13  ;;  %v23865_v6 = vand.u32 4294901760, %v21131_v1  ;;  %v5989_v24 = vadd.f32 %v21385_v21, %v5935_v34  ;;  %v21525_v29 = vsub.f32 %v23864_v57, %v21504_v59  ;;  %v23871_v57 = vand.u32 4294901760, %v21253_v42 }
 0x538   :  { %11680 = vmatpush.msra.mxu3 %v11679_v46  ;;  %11517 = vmatpush.msra.mxu0 %v23863_v18  ;;  %v11719_v46 = vand.u32 4294901760, %v21490_v63  ;;  %v11714_v1 = vsub.f32 %v21476_v53, %v11713_v40  ;;  %v6133_v18 = vpop.f32.mrf.mxu1 }
 0x539   :  { %11564 = vmatpush.msra.mxu1 %v21039_v45  ;;  %11607 = vmatpush.msra.mxu2 %v21333_v20  ;;  %v23866_v45 = vand.u32 4294901760, %v21154_v61  ;;  %v11709_v61 = vand.u32 4294901760, %v11708_v28  ;;  %v11626_v34 = vand.u32 4294901760, %v21525_v29 }
 0x53a   :  { %11686 = vmatpush.msra.mxu3 %v11685_v43  ;;  %11521 = vmatpush.msra.mxu0 %v23865_v6  ;;  %v11720_v21 = vsub.f32 %v21490_v63, %v11719_v46  ;;  %v6028_v43 = vadd.f32 %v21362_v15, %v5989_v24  ;;  %v11715_v10 = vand.u32 4294901760, %v11714_v1  ;;  %v23869_v15 = vand.u32 4294901760, %v21203_v39  ;;  %v23873_v39 = vld [vmem:[#allocation36_spill] sm:$0xff]  ;;  %v6174_v24 = vpop.f32.mrf.mxu2  ;;  %v6275_v1 = vpop.f32.mrf.mxu3 }
 0x53b   :  { %11566 = vmatpush.msra.mxu1 %v21054_v26  ;;  %11609 = vmatpush.msra.mxu2 %v21360_v5  ;;  %v23867_v26 = vand.u32 4294901760, %v21173_v48  ;;  %v11726_v48 = vsub.f32 %v21501_v17, %v11725_v7  ;;  %v23874_v28 = vand.u32 4294901760, %v23873_v39 }
 0x53c   :  { %11692 = vmatpush.msra.mxu3 %v11691_v27  ;;  %11525 = vmatpush.msra.mxu0 %v23866_v45  ;;  %v11721_v27 = vand.u32 4294901760, %v11720_v21  ;;  %v23875_v45 = vld [vmem:[#allocation40_spill] sm:$0xff]  ;;  %v23878_v21 = vld [vmem:[#allocation45_spill] sm:$0xff] }
 0x53d   :  { %11568 = vmatpush.msra.mxu1 %v21075_v58  ;;  %11611 = vmatpush.msra.mxu2 %v21380_v47  ;;  %v23868_v58 = vand.u32 4294901760, %v21193_v52  ;;  %v23870_v52 = vld [vmem:[#allocation12_spill] sm:$0xff]  ;;  %v11727_v6 = vand.u32 4294901760, %v11726_v48  ;;  %v23881_v48 = vld [vmem:[#allocation29_spill] sm:$0xff] }
 0x53e   :  { %11698 = vmatpush.msra.mxu3 %v11697_v3  ;;  %11529 = vmatpush.msra.mxu0 %v23867_v26  ;;  %v23872_v3 = vld [vmem:[#allocation38_spill] sm:$0xff]  ;;  %v23877_v26 = vld [vmem:[#allocation27_spill] sm:$0xff] }
 0x53f   :  { %11570 = vmatpush.msra.mxu1 %v21082_v37  ;;  %11613 = vmatpush.msra.mxu2 %v21401_v2  ;;  %v6097_v37 = vadd.f32 %v6096_v30, %v6028_v43  ;;  %v6329_v30 = vpop.f32.mrf.mxu0 }
 0x540   :  { %11704 = vmatpush.msra.mxu3 %v11703_v49  ;;  %11533 = vmatpush.msra.mxu0 %v23868_v58  ;;  %v23876_v49 = vand.u32 4294901760, %v21294_v32  ;;  %v23879_v58 = vld [vmem:[#allocation34_spill] sm:$0xff] }
 0x541   :  { %11572 = vmatpush.msra.mxu1 %v21095_v54  ;;  %11615 = vmatpush.msra.mxu2 %v21417_v14  ;;  %v6134_v60 = vadd.f32 %v6133_v18, %v6097_v37  ;;  %v11627_v54 = vsub.f32 %v21525_v29, %v11626_v34  ;;  %v23880_v32 = vand.u32 4294901760, %v23879_v58  ;;  %v23882_v37 = vld [vmem:[#allocation14_spill] sm:$0xff] }
 0x542   :  { %11710 = vmatpush.msra.mxu3 %v11709_v61  ;;  %11537 = vmatpush.msra.mxu0 %v23869_v15  ;;  %v23883_v15 = vand.u32 4294901760, %v23882_v37 }
 0x543   :  { %11574 = vmatpush.msra.mxu1 %v23870_v52  ;;  %11617 = vmatpush.msra.mxu2 %v21432_v11  ;;  %v6175_v42 = vadd.f32 %v6174_v24, %v6134_v60  ;;  %v11628_v61 = vand.u32 4294901760, %v11627_v54  ;;  %v23885_v60 = vld [vmem:[#allocation33_spill] sm:$0xff]  ;;  %v6437_v54 = vpop.f32.mrf.mxu2  ;;  %v23890_v24 = vand.u32 4294901760, %v21325_v23 }
 0x544   :  { %11716 = vmatpush.msra.mxu3 %v11715_v10  ;;  %11541 = vmatpush.msra.mxu0 %v23871_v57  ;;  %v6368_v10 = vpop.f32.mrf.mxu1  ;;  %v23886_v57 = vand.u32 4294901760, %v23885_v60 }
 0x545   :  { %11576 = vmatpush.msra.mxu1 %v23872_v3  ;;  %11619 = vmatpush.msra.mxu2 %v21448_v16  ;;  %v6276_v43 = vadd.f32 %v6275_v1, %v6175_v42  ;;  %v23888_v3 = vld [vmem:[#allocation41_spill] sm:$0xff]  ;;  %v23891_v42 = vand.u32 4294901760, %v21341_v51 }
 0x546   :  { %11722 = vmatpush.msra.mxu3 %v11721_v27  ;;  %11545 = vmatpush.msra.mxu0 %v23874_v28  ;;  %v23884_v27 = vld [vmem:[#allocation13_spill] sm:$0xff]  ;;  %v23889_v39 = vand.u32 4294901760, %v23888_v3 }
 0x547   :  { %11578 = vmatpush.msra.mxu1 %v23875_v45  ;;  %11621 = vmatpush.msra.mxu2 %v21464_v55  ;;  %v6330_v18 = vadd.f32 %v6329_v30, %v6276_v43  ;;  %v6515_v45 = vpop.f32.mrf.mxu0  ;;  %v5058_v30 = vld [vmem:[%s22880_s2 + $0xa48] sm:$0xff] }
 0x548   :  { %11728 = vmatpush.msra.mxu3 %v11727_v6  ;;  %11549 = vmatpush.msra.mxu0 %v23876_v49  ;;  %v23887_v6 = vld [vmem:[#allocation47_spill] sm:$0xff] }
 0x549   :  { %11730 = vmatmul.f32.vlgmr.msra.gmra.mxu3 %v21504_v59  ;;  %11580 = vmatpush.msra.mxu1 %v23877_v26  ;;  %v6369_v52 = vadd.f32 %v6368_v10, %v6330_v18  ;;  %v21708_v18 = vand.u32 4294901760, %v5058_v30 }
 0x54a   :  { %11897 = vmatpush.msrb.mxu3 %v23878_v21  ;;  %11623 = vmatpush.msra.mxu2 %v21478_v19 }
 0x54b   :  { %11551 = vmatmul.f32.vlgmr.msra.gmra.mxu0 %v21179_v25  ;;  %11629 = vmatmul.f32.vlgmr.msra.gmra.mxu2 %v11628_v61  ;;  %v6438_v28 = vadd.f32 %v6437_v54, %v6369_v52  ;;  %v5060_v61 = vld [vmem:[%s22880_s2 + $0xa58] sm:$0xff] }
 0x54c   :  { %11736 = vmatpush.msrb.mxu0 %v23879_v58  ;;  %11830 = vmatpush.msrb.mxu2 %v23880_v32  ;;  %v5057_v58 = vld [vmem:[%s22880_s2 + $0xa40] sm:$0xff] }
 0x54d   :  { %11899 = vmatpush.msrb.mxu3 %v21208_v62  ;;  %11582 = vmatpush.msra.mxu1 %v23881_v48 }
 0x54e   :  { %11739 = vmatpush.msrb.mxu0 %v23882_v37  ;;  %11834 = vmatpush.msrb.mxu2 %v23883_v15 }
 0x54f   :  { %11901 = vmatpush.msrb.mxu3 %v21239_v31  ;;  %11584 = vmatpush.msra.mxu1 %v23884_v27 }
 0x550   :  { %11742 = vmatpush.msrb.mxu0 %v23885_v60  ;;  %11838 = vmatpush.msrb.mxu2 %v23886_v57 }
 0x551   :  { %11903 = vmatpush.msrb.mxu3 %v21257_v36  ;;  %11586 = vmatpush.msra.mxu1 %v23887_v6 }
 0x552   :  { %11588 = vmatmul.f32.vlgmr.msra.gmra.mxu1 %v21179_v25  ;;  %11745 = vmatpush.msrb.mxu0 %v23888_v3  ;;  %v6474_v25 = vpop.f32.mrf.mxu3 }
 0x553   :  { %11789 = vmatpush.msrb.mxu1 %v23878_v21  ;;  %11842 = vmatpush.msrb.mxu2 %v23889_v39  ;;  %v6475_v49 = vadd.f32 %v6474_v25, %v6438_v28  ;;  %v5059_v21 = vld [vmem:[%s22880_s2 + $0xa50] sm:$0xff]  ;;  %v21739_v39 = vsub.f32 %v5058_v30, %v21708_v18  ;;  %v23896_v30 = vld [vmem:[#allocation51_spill] sm:$0xff] }
 0x554   :  { %11905 = vmatpush.msrb.mxu3 %v21287_v41  ;;  %11748 = vmatpush.msrb.mxu0 %v21325_v23  ;;  %v23892_v23 = vand.u32 4294901760, %v21351_v12 }
 0x555   :  { %11791 = vmatpush.msrb.mxu1 %v21208_v62  ;;  %11846 = vmatpush.msrb.mxu2 %v23890_v24  ;;  %v6616_v62 = vpop.f32.mrf.mxu1  ;;  %v6516_v1 = vadd.f32 %v6515_v45, %v6475_v49 }
 0x556   :  { %11907 = vmatpush.msrb.mxu3 %v21308_v8  ;;  %11751 = vmatpush.msrb.mxu0 %v21341_v51 }
 0x557   :  { %11793 = vmatpush.msrb.mxu1 %v21239_v31  ;;  %11850 = vmatpush.msrb.mxu2 %v23891_v42  ;;  %v23893_v31 = vand.u32 4294901760, %v21373_v4  ;;  %v6617_v51 = vadd.f32 %v6616_v62, %v6516_v1 }
 0x558   :  { %11909 = vmatpush.msrb.mxu3 %v21316_v13  ;;  %11754 = vmatpush.msrb.mxu0 %v21351_v12  ;;  %v23894_v12 = vand.u32 4294901760, %v21399_v33 }
 0x559   :  { %11795 = vmatpush.msrb.mxu1 %v21257_v36  ;;  %11854 = vmatpush.msrb.mxu2 %v23892_v23  ;;  %v5064_v36 = vld [vmem:[%s22880_s2 + $0xa78] sm:$0xff] }
 0x55a   :  { %11911 = vmatpush.msrb.mxu3 %v21333_v20  ;;  %11757 = vmatpush.msrb.mxu0 %v21373_v4 }
 0x55b   :  { %11797 = vmatpush.msrb.mxu1 %v21287_v41  ;;  %11858 = vmatpush.msrb.mxu2 %v23893_v31  ;;  %v6670_v41 = vpop.f32.mrf.mxu2 }
 0x55c   :  { %11913 = vmatpush.msrb.mxu3 %v21360_v5  ;;  %11760 = vmatpush.msrb.mxu0 %v21399_v33  ;;  %v6671_v4 = vadd.f32 %v6670_v41, %v6617_v51  ;;  %v21628_v33 = vand.u32 4294901760, %v5064_v36 }
 0x55d   :  { %11799 = vmatpush.msrb.mxu1 %v21308_v8  ;;  %11862 = vmatpush.msrb.mxu2 %v23894_v12  ;;  %v5063_v8 = vld [vmem:[%s22880_s2 + $0xa70] sm:$0xff]  ;;  %v6815_v26 = vpop.f32.mrf.mxu1  ;;  %v5052_v12 = vld [vmem:[%s22880_s2 + $0xa18] sm:$0xff] }
 0x55e   :  { %11915 = vmatpush.msrb.mxu3 %v21380_v47  ;;  %11763 = vmatpush.msrb.mxu0 %v21415_v38  ;;  %v6709_v38 = vpop.f32.mrf.mxu3 }
 0x55f   :  { %11801 = vmatpush.msrb.mxu1 %v21316_v13  ;;  %11866 = vmatpush.msrb.mxu2 %v11689_v22  ;;  %v5062_v13 = vld [vmem:[%s22880_s2 + $0xa68] sm:$0xff]  ;;  %v6778_v22 = vpop.f32.mrf.mxu0 }
 0x560   :  { %11917 = vmatpush.msrb.mxu3 %v21401_v2  ;;  %11766 = vmatpush.msrb.mxu0 %v21430_v44  ;;  %v6710_v44 = vadd.f32 %v6709_v38, %v6671_v4 }
 0x561   :  { %11803 = vmatpush.msrb.mxu1 %v21333_v20  ;;  %11870 = vmatpush.msrb.mxu2 %v11695_v0  ;;  %v21638_v20 = vand.u32 4294901760, %v5063_v8  ;;  %v5061_v0 = vld [vmem:[%s22880_s2 + $0xa60] sm:$0xff] }
 0x562   :  { %11919 = vmatpush.msrb.mxu3 %v21417_v14  ;;  %11769 = vmatpush.msrb.mxu0 %v21446_v9  ;;  %v21651_v9 = vand.u32 4294901760, %v5062_v13 }
 0x563   :  { %11805 = vmatpush.msrb.mxu1 %v21360_v5  ;;  %11874 = vmatpush.msrb.mxu2 %v11701_v35  ;;  %v21649_v5 = vsub.f32 %v5064_v36, %v21628_v33  ;;  %v6779_v35 = vadd.f32 %v6778_v22, %v6710_v44  ;;  %v6856_v43 = vpop.f32.mrf.mxu2  ;;  %v5080_v22 = vld [vmem:[%s22880_s2 + $0xaf8] sm:$0xff] }
 0x564   :  { %11921 = vmatpush.msrb.mxu3 %v21432_v11  ;;  %11772 = vmatpush.msrb.mxu0 %v21462_v56  ;;  %v21664_v56 = vand.u32 4294901760, %v5061_v0 }
 0x565   :  { %11807 = vmatpush.msrb.mxu1 %v21380_v47  ;;  %11878 = vmatpush.msrb.mxu2 %v11707_v50  ;;  %v21662_v47 = vsub.f32 %v5063_v8, %v21638_v20  ;;  %v6816_v50 = vadd.f32 %v6815_v26, %v6779_v35  ;;  %v7050_v6 = vpop.f32.mrf.mxu1  ;;  %v21795_v26 = vand.u32 4294901760, %v5052_v12 }
 0x566   :  { %11923 = vmatpush.msrb.mxu3 %v21448_v16  ;;  %11775 = vmatpush.msrb.mxu0 %v21476_v53  ;;  %v23242_v53 = vand.u32 4294901760, %v21649_v5 }
 0x567   :  { %11809 = vmatpush.msrb.mxu1 %v21401_v2  ;;  %11882 = vmatpush.msrb.mxu2 %v11713_v40  ;;  %v21675_v2 = vsub.f32 %v5062_v13, %v21651_v9  ;;  %v21678_v40 = vand.u32 4294901760, %v5060_v61  ;;  %v6857_v32 = vadd.f32 %v6856_v43, %v6816_v50  ;;  %v7011_v37 = vpop.f32.mrf.mxu0  ;;  %23895 = vst [vmem:[#allocation39_spill] sm:$0xff] %v21795_v26  ;;  %v21808_v43 = vand.u32 4294901760, %v23896_v30 }
 0x568   :  { %11925 = vmatpush.msrb.mxu3 %v21464_v55  ;;  %11778 = vmatpush.msrb.mxu0 %v21490_v63  ;;  %v23240_v63 = vand.u32 4294901760, %v21662_v47 }
 0x569   :  { %11811 = vmatpush.msrb.mxu1 %v21417_v14  ;;  %11886 = vmatpush.msrb.mxu2 %v11719_v46  ;;  %v21688_v14 = vsub.f32 %v5061_v0, %v21664_v56  ;;  %v21691_v46 = vand.u32 4294901760, %v5059_v21  ;;  %v21705_v10 = vsub.f32 %v5060_v61, %v21678_v40  ;;  %v23239_v48 = vand.u32 4294901760, %v21675_v2 }
 0x56a   :  { %11927 = vmatpush.msrb.mxu3 %v21478_v19  ;;  %11781 = vmatpush.msrb.mxu0 %v21501_v17  ;;  %v5056_v17 = vld [vmem:[%s22880_s2 + $0xa38] sm:$0xff]  ;;  %v11983_v15 = vsub.f32 %v21662_v47, %v23240_v63 }
 0x56b   :  { %11929 = vmatmul.f32.vlgmr.msrb.gmra.mxu3 %v21504_v59  ;;  %11813 = vmatpush.msrb.mxu1 %v21432_v11  ;;  %v11977_v11 = vsub.f32 %v21649_v5, %v23242_v53  ;;  %v21723_v27 = vsub.f32 %v5059_v21, %v21691_v46  ;;  %v23238_v52 = vand.u32 4294901760, %v21688_v14  ;;  %v21728_v57 = vand.u32 4294901760, %v5056_v17  ;;  %v7119_v41 = vpop.f32.mrf.mxu2  ;;  %v5079_v21 = vld [vmem:[%s22880_s2 + $0xaf0] sm:$0xff] }
 0x56c   :  { %12130 = vmatpush.msra.mxu3 %v21628_v33  ;;  %11890 = vmatpush.msrb.mxu2 %v11725_v7  ;;  %v6957_v7 = vpop.f32.mrf.mxu3  ;;  %v11989_v54 = vsub.f32 %v21675_v2, %v23239_v48  ;;  %v23236_v28 = vand.u32 4294901760, %v21705_v10  ;;  %v11984_v45 = vand.u32 4294901760, %v11983_v15 }
 0x56d   :  { %11784 = vmatmul.f32.vlgmr.msrb.gmra.mxu0 %v21525_v29  ;;  %11892 = vmatmul.f32.vlgmr.msrb.gmra.mxu2 %v21504_v59  ;;  %v21715_v59 = vand.u32 4294901760, %v5057_v58  ;;  %v6958_v60 = vadd.f32 %v6957_v7, %v6857_v32  ;;  %v11978_v3 = vand.u32 4294901760, %v11977_v11  ;;  %v11995_v42 = vsub.f32 %v21688_v14, %v23238_v52  ;;  %v5051_v32 = vld [vmem:[%s22880_s2 + $0xa10] sm:$0xff] }
 0x56e   :  { %11934 = vmatpush.msra.mxu0 %v21628_v33  ;;  %12077 = vmatpush.msra.mxu2 %v21649_v5  ;;  %v23234_v49 = vand.u32 4294901760, %v21723_v27  ;;  %v21762_v1 = vsub.f32 %v5056_v17, %v21728_v57  ;;  %v11990_v31 = vand.u32 4294901760, %v11989_v54  ;;  %v12001_v51 = vsub.f32 %v21705_v10, %v23236_v28  ;;  %v5050_v54 = vld [vmem:[%s22880_s2 + $0xa08] sm:$0xff] }
 0x56f   :  { %12132 = vmatpush.msra.mxu3 %v21638_v20  ;;  %11815 = vmatpush.msrb.mxu1 %v21448_v16  ;;  %v5055_v16 = vld [vmem:[%s22880_s2 + $0xa30] sm:$0xff]  ;;  %v7012_v24 = vadd.f32 %v7011_v37, %v6958_v60  ;;  %v21745_v25 = vsub.f32 %v5057_v58, %v21715_v59  ;;  %v23233_v29 = vand.u32 4294901760, %v21739_v39  ;;  %v11996_v4 = vand.u32 4294901760, %v11995_v42  ;;  %v7197_v7 = vpop.f32.mrf.mxu0 }
 0x570   :  { %11936 = vmatpush.msra.mxu0 %v21638_v20  ;;  %12080 = vmatpush.msra.mxu2 %v21662_v47  ;;  %v21756_v62 = vand.u32 4294901760, %v5055_v16  ;;  %v12007_v8 = vsub.f32 %v21723_v27, %v23234_v49  ;;  %v23231_v0 = vand.u32 4294901760, %v21762_v1  ;;  %v12002_v35 = vand.u32 4294901760, %v12001_v51 }
 0x571   :  { %12134 = vmatpush.msra.mxu3 %v21651_v9  ;;  %11817 = vmatpush.msrb.mxu1 %v21464_v55  ;;  %v5054_v55 = vld [vmem:[%s22880_s2 + $0xa28] sm:$0xff]  ;;  %v7051_v23 = vadd.f32 %v7050_v6, %v7012_v24  ;;  %v23232_v36 = vand.u32 4294901760, %v21745_v25  ;;  %v12013_v61 = vsub.f32 %v21739_v39, %v23233_v29  ;;  %v21818_v11 = vand.u32 4294901760, %v5080_v22  ;;  %v5075_v29 = vld [vmem:[%s22880_s2 + $0xad0] sm:$0xff] }
 0x572   :  { %11938 = vmatpush.msra.mxu0 %v21651_v9  ;;  %12083 = vmatpush.msra.mxu2 %v21675_v2  ;;  %v21785_v13 = vsub.f32 %v5055_v16, %v21756_v62  ;;  %v12008_v37 = vand.u32 4294901760, %v12007_v8  ;;  %v12025_v6 = vsub.f32 %v21762_v1, %v23231_v0  ;;  %v21836_v24 = vand.u32 4294901760, %v5079_v21  ;;  %v5077_v8 = vld [vmem:[%s22880_s2 + $0xae0] sm:$0xff] }
 0x573   :  { %12136 = vmatpush.msra.mxu3 %v21664_v56  ;;  %11819 = vmatpush.msrb.mxu1 %v21478_v19  ;;  %v5053_v19 = vld [vmem:[%s22880_s2 + $0xa20] sm:$0xff]  ;;  %v7120_v44 = vadd.f32 %v7119_v41, %v7051_v23  ;;  %v12019_v58 = vsub.f32 %v21745_v25, %v23232_v36  ;;  %v12014_v42 = vand.u32 4294901760, %v12013_v61  ;;  %v21842_v23 = vand.u32 4294901760, %v5051_v32 }
 0x574   :  { %11823 = vmatmul.f32.vlgmr.msrb.gmra.mxu1 %v11626_v34  ;;  %11940 = vmatpush.msra.mxu0 %v21664_v56  ;;  %v21772_v34 = vand.u32 4294901760, %v5054_v55  ;;  %v21787_v38 = vand.u32 4294901760, %v5053_v19  ;;  %v7156_v17 = vpop.f32.mrf.mxu3  ;;  %v23230_v60 = vand.u32 4294901760, %v21785_v13  ;;  %v5049_v41 = vld [vmem:[%s22880_s2 + $0xa00] sm:$0xff] }
 0x575   :  { %11979 = vmatpush.msra.mxu1 %v11978_v3  ;;  %12086 = vmatpush.msra.mxu2 %v21688_v14  ;;  %v7157_v16 = vadd.f32 %v7156_v17, %v7120_v44  ;;  %v21831_v3 = vsub.f32 %v5052_v12, %v21795_v26  ;;  %23897 = vst [vmem:[#allocation43_spill] sm:$0xff] %v21842_v23  ;;  %v12020_v12 = vand.u32 4294901760, %v12019_v58 }
 0x576   :  { %12138 = vmatpush.msra.mxu3 %v21678_v40  ;;  %11942 = vmatpush.msra.mxu0 %v21678_v40  ;;  %v21802_v50 = vsub.f32 %v5054_v55, %v21772_v34  ;;  %v21822_v15 = vsub.f32 %v5053_v19, %v21787_v38  ;;  %v5078_v55 = vld [vmem:[%s22880_s2 + $0xae8] sm:$0xff]  ;;  %v12031_v44 = vsub.f32 %v21785_v13, %v23230_v60 }
 0x577   :  { %11985 = vmatpush.msra.mxu1 %v11984_v45  ;;  %12089 = vmatpush.msra.mxu2 %v21705_v10  ;;  %v7298_v45 = vpop.f32.mrf.mxu1  ;;  %v7198_v51 = vadd.f32 %v7197_v7, %v7157_v16  ;;  %v23237_v17 = vand.u32 4294901760, %v21831_v3  ;;  %v21873_v7 = vsub.f32 %v5079_v21, %v21836_v24  ;;  %v21880_v16 = vsub.f32 %v5051_v32, %v21842_v23  ;;  %v7460_v52 = vpop.f32.mrf.mxu0 }
 0x578   :  { %12140 = vmatpush.msra.mxu3 %v21691_v46  ;;  %11944 = vmatpush.msra.mxu0 %v21691_v46  ;;  %v23229_v19 = vand.u32 4294901760, %v21802_v50  ;;  %v23235_v61 = vand.u32 4294901760, %v21822_v15  ;;  %v12032_v32 = vand.u32 4294901760, %v12031_v44 }
 0x579   :  { %11991 = vmatpush.msra.mxu1 %v11990_v31  ;;  %12092 = vmatpush.msra.mxu2 %v21723_v27  ;;  %v21847_v31 = vsub.f32 %v23896_v30, %v21808_v43  ;;  %v21867_v30 = vand.u32 4294901760, %v5078_v55  ;;  %v7299_v58 = vadd.f32 %v7298_v45, %v7198_v51  ;;  %23900 = vst [vmem:[#allocation42_spill] sm:$0xff] %v21873_v7  ;;  %v21882_v45 = vand.u32 4294901760, %v5049_v41 }
 0x57a   :  { %12142 = vmatpush.msra.mxu3 %v21708_v18  ;;  %11946 = vmatpush.msra.mxu0 %v21708_v18  ;;  %v21884_v51 = vand.u32 4294901760, %v5077_v8  ;;  %v12043_v60 = vsub.f32 %v21822_v15, %v23235_v61  ;;  %v23246_v44 = vand.u32 4294901760, %v21873_v7 }
 0x57b   :  { %11997 = vmatpush.msra.mxu1 %v11996_v4  ;;  %12095 = vmatpush.msra.mxu2 %v21739_v39  ;;  %v21855_v4 = vsub.f32 %v5080_v22, %v21818_v11  ;;  %v12026_v22 = vand.u32 4294901760, %v12025_v6  ;;  %23901 = vst [vmem:[#allocation44_spill] sm:$0xff] %v21882_v45  ;;  %v5076_v6 = vld [vmem:[%s22880_s2 + $0xad8] sm:$0xff]  ;;  %v23243_v21 = vand.u32 4294901760, %v21847_v31  ;;  %v21901_v36 = vsub.f32 %v5078_v55, %v21867_v30  ;;  %v5074_v55 = vld [vmem:[%s22880_s2 + $0xac8] sm:$0xff] }
 0x57c   :  { %12144 = vmatpush.msra.mxu3 %v21715_v59  ;;  %11948 = vmatpush.msra.mxu0 %v21715_v59  ;;  %v21923_v28 = vsub.f32 %v5077_v8, %v21884_v51  ;;  %v7391_v8 = vpop.f32.mrf.mxu3  ;;  %v12044_v48 = vand.u32 4294901760, %v12043_v60  ;;  %v21941_v53 = vand.u32 4294901760, %v5074_v55 }
 0x57d   :  { %12003 = vmatpush.msra.mxu1 %v12002_v35  ;;  %12098 = vmatpush.msra.mxu2 %v21745_v25  ;;  %23898 = vst [vmem:[#allocation15_spill] sm:$0xff] %v21855_v4  ;;  %v21864_v35 = vand.u32 4294901760, %v5050_v54  ;;  %v23905_v63 = vand.u32 4294901760, %v21901_v36 }
 0x57e   :  { %12146 = vmatpush.msra.mxu3 %v21728_v57  ;;  %11950 = vmatpush.msra.mxu0 %v21728_v57  ;;  %23902 = vst [vmem:[#allocation46_spill] sm:$0xff] %v21901_v36 }
 0x57f   :  { %12009 = vmatpush.msra.mxu1 %v12008_v37  ;;  %12101 = vmatpush.msra.mxu2 %v21762_v1  ;;  %23899 = vst [vmem:[#allocation16_spill] sm:$0xff] %v21864_v35  ;;  %v12037_v37 = vsub.f32 %v21802_v50, %v23229_v19  ;;  %v7352_v19 = vpop.f32.mrf.mxu2  ;;  %v21898_v0 = vsub.f32 %v5050_v54, %v21864_v35  ;;  %v21912_v54 = vand.u32 4294901760, %v5076_v6  ;;  %v7497_v60 = vpop.f32.mrf.mxu1 }
 0x580   :  { %12148 = vmatpush.msra.mxu3 %v21756_v62  ;;  %11952 = vmatpush.msra.mxu0 %v21756_v62  ;;  %v7353_v49 = vadd.f32 %v7352_v19, %v7299_v58  ;;  %v21919_v58 = vsub.f32 %v5049_v41, %v21882_v45  ;;  %23903 = vst [vmem:[#allocation7_spill] sm:$0xff] %v21923_v28  ;;  %v5073_v41 = vld [vmem:[%s22880_s2 + $0xac0] sm:$0xff] }
 0x581   :  { %12015 = vmatpush.msra.mxu1 %v12014_v42  ;;  %12104 = vmatpush.msra.mxu2 %v21785_v13  ;;  %v23241_v42 = vand.u32 4294901760, %v21855_v4  ;;  %v12038_v19 = vand.u32 4294901760, %v12037_v37  ;;  %v21933_v37 = vand.u32 4294901760, %v5075_v29 }
 0x582   :  { %12150 = vmatpush.msra.mxu3 %v21772_v34  ;;  %11954 = vmatpush.msra.mxu0 %v21772_v34  ;;  %v7392_v61 = vadd.f32 %v7391_v8, %v7353_v49  ;;  %v12330_v8 = vsub.f32 %v21901_v36, %v23905_v63  ;;  %v23908_v36 = vand.u32 4294901760, %v21847_v31 }
 0x583   :  { %12021 = vmatpush.msra.mxu1 %v12020_v12  ;;  %12107 = vmatpush.msra.mxu2 %v21802_v50  ;;  %v12049_v12 = vsub.f32 %v21831_v3, %v23237_v17  ;;  %v12318_v17 = vsub.f32 %v21855_v4, %v23241_v42  ;;  %v12324_v4 = vsub.f32 %v21873_v7, %v23246_v44  ;;  %v23904_v42 = vand.u32 4294901760, %v21880_v16  ;;  %v5072_v44 = vld [vmem:[%s22880_s2 + $0xab8] sm:$0xff] }
 0x584   :  { %12152 = vmatpush.msra.mxu3 %v21787_v38  ;;  %11956 = vmatpush.msra.mxu0 %v21787_v38  ;;  %v21965_v7 = vsub.f32 %v5075_v29, %v21933_v37  ;;  %v5071_v29 = vld [vmem:[%s22880_s2 + $0xab0] sm:$0xff]  ;;  %v21983_v63 = vand.u32 4294901760, %v5072_v44 }
 0x585   :  { %12027 = vmatpush.msra.mxu1 %v12026_v22  ;;  %12110 = vmatpush.msra.mxu2 %v21822_v15  ;;  %v11968_v22 = vsub.f32 %v21847_v31, %v23243_v21  ;;  %v12050_v21 = vand.u32 4294901760, %v12049_v12  ;;  %v12055_v49 = vsub.f32 %v21880_v16, %v23904_v42  ;;  %v21957_v12 = vand.u32 4294901760, %v5073_v41 }
 0x586   :  { %12154 = vmatpush.msra.mxu3 %v21795_v26  ;;  %11958 = vmatpush.msra.mxu0 %v21795_v26 }
 0x587   :  { %12033 = vmatpush.msra.mxu1 %v12032_v32  ;;  %12113 = vmatpush.msra.mxu2 %v21831_v3  ;;  %v21949_v32 = vsub.f32 %v5076_v6, %v21912_v54  ;;  %v7461_v6 = vadd.f32 %v7460_v52, %v7392_v61  ;;  %v11969_v42 = vand.u32 4294901760, %v11968_v22  ;;  %v21975_v61 = vsub.f32 %v5074_v55, %v21941_v53  ;;  %v7538_v22 = vpop.f32.mrf.mxu2 }
 0x588   :  { %12156 = vmatpush.msra.mxu3 %v21842_v23  ;;  %11960 = vmatpush.msra.mxu0 %v21842_v23  ;;  %v23906_v23 = vand.u32 4294901760, %v21898_v0  ;;  %v23909_v55 = vand.u32 4294901760, %v21923_v28 }
 0x589   :  { %12039 = vmatpush.msra.mxu1 %v12038_v19  ;;  %12116 = vmatpush.msra.mxu2 %v21880_v16  ;;  %v12319_v19 = vand.u32 4294901760, %v12318_v17  ;;  %23907 = vst [vmem:[#allocation48_spill] sm:$0xff] %v21975_v61  ;;  %v7498_v17 = vadd.f32 %v7497_v60, %v7461_v6  ;;  %v23910_v60 = vand.u32 4294901760, %v21919_v58 }
 0x58a   :  { %12158 = vmatpush.msra.mxu3 %v21864_v35  ;;  %11962 = vmatpush.msra.mxu0 %v21864_v35  ;;  %v12061_v52 = vsub.f32 %v21898_v0, %v23906_v23  ;;  %v12056_v23 = vand.u32 4294901760, %v12055_v49  ;;  %v12336_v35 = vsub.f32 %v21923_v28, %v23909_v55  ;;  %v12331_v49 = vand.u32 4294901760, %v12330_v8 }
 0x58b   :  { %12045 = vmatpush.msra.mxu1 %v12044_v48  ;;  %12119 = vmatpush.msra.mxu2 %v21898_v0  ;;  %v12325_v48 = vand.u32 4294901760, %v12324_v4  ;;  %v12067_v6 = vsub.f32 %v21919_v58, %v23910_v60  ;;  %v5070_v4 = vld [vmem:[%s22880_s2 + $0xaa8] sm:$0xff] }
 0x58c   :  { %12160 = vmatpush.msra.mxu3 %v21882_v45  ;;  %11964 = vmatpush.msra.mxu0 %v21882_v45  ;;  %v21994_v45 = vsub.f32 %v5073_v41, %v21957_v12  ;;  %v12062_v55 = vand.u32 4294901760, %v12061_v52  ;;  %v5069_v41 = vld [vmem:[%s22880_s2 + $0xaa0] sm:$0xff]  ;;  %v22017_v8 = vand.u32 4294901760, %v5070_v4  ;;  %v7539_v52 = vadd.f32 %v7538_v22, %v7498_v17 }
 0x58d   :  { %12164 = vmatmul.f32.vlgmr.msra.gmra.mxu3 %v23908_v36  ;;  %12051 = vmatpush.msra.mxu1 %v12050_v21  ;;  %v22001_v21 = vand.u32 4294901760, %v5071_v29  ;;  %v23912_v36 = vand.u32 4294901760, %v21949_v32  ;;  %v12337_v60 = vand.u32 4294901760, %v12336_v35  ;;  %v12068_v28 = vand.u32 4294901760, %v12067_v6  ;;  %v7693_v6 = vpop.f32.mrf.mxu0 }
 0x58e   :  { %12320 = vmatpush.msrb.mxu3 %v12319_v19  ;;  %12122 = vmatpush.msra.mxu2 %v21919_v58  ;;  %v23911_v19 = vand.u32 4294901760, %v21649_v5  ;;  %v23259_v26 = vand.u32 4294901760, %v21994_v45  ;;  %v5068_v5 = vld [vmem:[%s22880_s2 + $0xa98] sm:$0xff]  ;;  %v22032_v35 = vand.u32 4294901760, %v5069_v41 }
 0x58f   :  { %11970 = vmatmul.f32.vlgmr.msra.gmra.mxu0 %v11969_v42  ;;  %12125 = vmatmul.f32.vlgmr.msra.gmra.mxu2 %v21847_v31  ;;  %v12342_v42 = vsub.f32 %v21949_v32, %v23912_v36  ;;  %v22015_v31 = vsub.f32 %v5072_v44, %v21983_v63  ;;  %v23914_v44 = vand.u32 4294901760, %v21965_v7  ;;  %v22030_v17 = vsub.f32 %v5071_v29, %v22001_v21 }
 0x590   :  { %12171 = vmatpush.msrb.mxu0 %v23911_v19  ;;  %12275 = vmatpush.msrb.mxu2 %v21818_v11  ;;  %v23913_v19 = vand.u32 4294901760, %v21662_v47  ;;  %v5067_v47 = vld [vmem:[%s22880_s2 + $0xa90] sm:$0xff] }
 0x591   :  { %12326 = vmatpush.msrb.mxu3 %v12325_v48  ;;  %12057 = vmatpush.msra.mxu1 %v12056_v23  ;;  %v12348_v36 = vsub.f32 %v21965_v7, %v23914_v44  ;;  %v23915_v48 = vand.u32 4294901760, %v21975_v61  ;;  %v7639_v23 = vpop.f32.mrf.mxu3  ;;  %v12343_v29 = vand.u32 4294901760, %v12342_v42  ;;  %v23917_v42 = vand.u32 4294901760, %v21688_v14 }
 0x592   :  { %12175 = vmatpush.msrb.mxu0 %v23913_v19  ;;  %12277 = vmatpush.msrb.mxu2 %v21836_v24  ;;  %v23916_v19 = vand.u32 4294901760, %v21675_v2  ;;  %v5066_v2 = vld [vmem:[%s22880_s2 + $0xa88] sm:$0xff]  ;;  %v12371_v44 = vand.u32 4294901760, %v22030_v17  ;;  %v23918_v14 = vand.u32 4294901760, %v21705_v10  ;;  %v23920_v10 = vand.u32 4294901760, %v21723_v27 }
 0x593   :  { %12332 = vmatpush.msrb.mxu3 %v12331_v49  ;;  %12063 = vmatpush.msra.mxu1 %v12062_v55  ;;  %v12354_v22 = vsub.f32 %v21975_v61, %v23915_v48  ;;  %v22045_v49 = vsub.f32 %v5070_v4, %v22017_v8  ;;  %v22047_v55 = vand.u32 4294901760, %v5068_v5  ;;  %v7640_v48 = vadd.f32 %v7639_v23, %v7539_v52 }
 0x594   :  { %12179 = vmatpush.msrb.mxu0 %v23916_v19  ;;  %12279 = vmatpush.msrb.mxu2 %v21867_v30  ;;  %v12360_v61 = vsub.f32 %v21994_v45, %v23259_v26  ;;  %v7732_v19 = vpop.f32.mrf.mxu1  ;;  %v12349_v4 = vand.u32 4294901760, %v12348_v36  ;;  %v5065_v26 = vld [vmem:[%s22880_s2 + $0xa80] sm:$0xff]  ;;  %v23919_v36 = vand.u32 4294901760, %v22015_v31  ;;  %v23921_v27 = vand.u32 4294901760, %v21739_v39 }
 0x595   :  { %12338 = vmatpush.msrb.mxu3 %v12337_v60  ;;  %12069 = vmatpush.msra.mxu1 %v12068_v28  ;;  %v22060_v60 = vsub.f32 %v5069_v41, %v22032_v35  ;;  %v22062_v28 = vand.u32 4294901760, %v5067_v47  ;;  %v7694_v52 = vadd.f32 %v7693_v6, %v7640_v48  ;;  %v12355_v23 = vand.u32 4294901760, %v12354_v22 }
 0x596   :  { %12071 = vmatmul.f32.vlgmr.msra.gmra.mxu1 %v21808_v43  ;;  %12183 = vmatpush.msrb.mxu0 %v23917_v42  ;;  %v12366_v41 = vsub.f32 %v22015_v31, %v23919_v36  ;;  %v12377_v42 = vand.u32 4294901760, %v22045_v49  ;;  %v22076_v6 = vsub.f32 %v5068_v5, %v22047_v55  ;;  %v12372_v48 = vsub.f32 %v22030_v17, %v12371_v44 }
 0x597   :  { %12238 = vmatpush.msrb.mxu1 %v21628_v33  ;;  %12281 = vmatpush.msrb.mxu2 %v21884_v51  ;;  %v22078_v33 = vand.u32 4294901760, %v5066_v2  ;;  %v7733_v22 = vadd.f32 %v7732_v19, %v7694_v52  ;;  %v22089_v5 = vsub.f32 %v5067_v47, %v22062_v28  ;;  %v22091_v36 = vand.u32 4294901760, %v5065_v26 }
 0x598   :  { %12344 = vmatpush.msrb.mxu3 %v12343_v29  ;;  %12187 = vmatpush.msrb.mxu0 %v23918_v14  ;;  %v12361_v29 = vand.u32 4294901760, %v12360_v61  ;;  %v12383_v14 = vand.u32 4294901760, %v22060_v60  ;;  %v12367_v61 = vand.u32 4294901760, %v12366_v41  ;;  %v12378_v19 = vsub.f32 %v22045_v49, %v12377_v42 }
 0x599   :  { %12240 = vmatpush.msrb.mxu1 %v21638_v20  ;;  %12283 = vmatpush.msrb.mxu2 %v21912_v54  ;;  %v7801_v20 = vpop.f32.mrf.mxu2  ;;  %v22102_v47 = vsub.f32 %v5066_v2, %v22078_v33  ;;  %v12373_v39 = vand.u32 4294901760, %v12372_v48  ;;  %v12395_v41 = vand.u32 4294901760, %v22089_v5  ;;  %v23923_v2 = vld [vmem:[#allocation52_spill] sm:$0xff] }
 0x59a   :  { %12350 = vmatpush.msrb.mxu3 %v12349_v4  ;;  %12191 = vmatpush.msrb.mxu0 %v23920_v10  ;;  %v12389_v4 = vand.u32 4294901760, %v22076_v6  ;;  %v7802_v52 = vadd.f32 %v7801_v20, %v7733_v22  ;;  %v22113_v10 = vsub.f32 %v5065_v26, %v22091_v36  ;;  %v22116_v22 = vand.u32 4294901760, %v23923_v2  ;;  %v7838_v26 = vpop.f32.mrf.mxu3  ;;  %v7879_v20 = vpop.f32.mrf.mxu0 }
 0x59b   :  { %12242 = vmatpush.msrb.mxu1 %v21651_v9  ;;  %12285 = vmatpush.msrb.mxu2 %v21933_v37  ;;  %v23922_v9 = vand.u32 4294901760, %v21745_v25  ;;  %v12379_v25 = vand.u32 4294901760, %v12378_v19  ;;  %v12401_v48 = vand.u32 4294901760, %v22102_v47 }
 0x59c   :  { %12356 = vmatpush.msrb.mxu3 %v12355_v23  ;;  %12195 = vmatpush.msrb.mxu0 %v23921_v27  ;;  %v12384_v23 = vsub.f32 %v22060_v60, %v12383_v14  ;;  %v23925_v27 = vand.u32 4294901760, %v21785_v13  ;;  %v12407_v19 = vand.u32 4294901760, %v22113_v10  ;;  %v23926_v13 = vand.u32 4294901760, %v21802_v50 }
 0x59d   :  { %12244 = vmatpush.msrb.mxu1 %v21664_v56  ;;  %12287 = vmatpush.msrb.mxu2 %v21941_v53  ;;  %v23924_v56 = vand.u32 4294901760, %v21762_v1 }
 0x59e   :  { %12362 = vmatpush.msrb.mxu3 %v12361_v29  ;;  %12199 = vmatpush.msrb.mxu0 %v23922_v9  ;;  %v12390_v29 = vsub.f32 %v22076_v6, %v12389_v4  ;;  %v12385_v1 = vand.u32 4294901760, %v12384_v23  ;;  %v22136_v9 = vsub.f32 %v23923_v2, %v22116_v22  ;;  %v12408_v50 = vsub.f32 %v22113_v10, %v12407_v19 }
 0x59f   :  { %12246 = vmatpush.msrb.mxu1 %v21678_v40  ;;  %12289 = vmatpush.msrb.mxu2 %v21957_v12  ;;  %v7839_v40 = vadd.f32 %v7838_v26, %v7802_v52 }
 0x5a0   :  { %12368 = vmatpush.msrb.mxu3 %v12367_v61  ;;  %12203 = vmatpush.msrb.mxu0 %v23924_v56  ;;  %v12396_v61 = vsub.f32 %v22089_v5, %v12395_v41  ;;  %v7980_v56 = vpop.f32.mrf.mxu1  ;;  %v12391_v52 = vand.u32 4294901760, %v12390_v29 }
 0x5a1   :  { %12248 = vmatpush.msrb.mxu1 %v21691_v46  ;;  %12291 = vmatpush.msrb.mxu2 %v21983_v63  ;;  %v7880_v46 = vadd.f32 %v7879_v20, %v7839_v40  ;;  %v8034_v26 = vpop.f32.mrf.mxu2  ;;  %v23929_v20 = vand.u32 4294901760, %v21880_v16  ;;  %v12409_v40 = vand.u32 4294901760, %v12408_v50  ;;  %v23939_v50 = vld [vmem:[#allocation46_spill] sm:$0xff] }
 0x5a2   :  { %12374 = vmatpush.msrb.mxu3 %v12373_v39  ;;  %12207 = vmatpush.msrb.mxu0 %v23925_v27  ;;  %v12402_v39 = vsub.f32 %v22102_v47, %v12401_v48  ;;  %v12397_v2 = vand.u32 4294901760, %v12396_v61  ;;  %v8142_v27 = vpop.f32.mrf.mxu0  ;;  %v23932_v61 = vld [vmem:[#allocation39_spill] sm:$0xff] }
 0x5a3   :  { %12250 = vmatpush.msrb.mxu1 %v21708_v18  ;;  %12293 = vmatpush.msrb.mxu2 %v22001_v21  ;;  %v7981_v23 = vadd.f32 %v7980_v56, %v7880_v46  ;;  %v23927_v18 = vand.u32 4294901760, %v21822_v15 }
 0x5a4   :  { %12380 = vmatpush.msrb.mxu3 %v12379_v25  ;;  %12211 = vmatpush.msrb.mxu0 %v23926_v13  ;;  %v12308_v25 = vand.u32 4294901760, %v22136_v9  ;;  %v12403_v29 = vand.u32 4294901760, %v12402_v39  ;;  %v23935_v13 = vld [vmem:[#allocation43_spill] sm:$0xff] }
 0x5a5   :  { %12252 = vmatpush.msrb.mxu1 %v21715_v59  ;;  %12295 = vmatpush.msrb.mxu2 %v22017_v8  ;;  %v23928_v59 = vand.u32 4294901760, %v21831_v3  ;;  %v8035_v15 = vadd.f32 %v8034_v26, %v7981_v23  ;;  %v23930_v3 = vand.u32 4294901760, %v21898_v0  ;;  %v23933_v0 = vld [vmem:[#allocation15_spill] sm:$0xff] }
 0x5a6   :  { %12386 = vmatpush.msrb.mxu3 %v12385_v1  ;;  %12215 = vmatpush.msrb.mxu0 %v23927_v18  ;;  %v23938_v18 = vld [vmem:[#allocation16_spill] sm:$0xff]  ;;  %v23942_v26 = vld [vmem:[#allocation7_spill] sm:$0xff] }
 0x5a7   :  { %12254 = vmatpush.msrb.mxu1 %v21728_v57  ;;  %12297 = vmatpush.msrb.mxu2 %v22032_v35  ;;  %v12309_v57 = vsub.f32 %v22136_v9, %v12308_v25 }
 0x5a8   :  { %12392 = vmatpush.msrb.mxu3 %v12391_v52  ;;  %12219 = vmatpush.msrb.mxu0 %v23928_v59  ;;  %v8179_v1 = vpop.f32.mrf.mxu1  ;;  %v23936_v52 = vld [vmem:[#allocation42_spill] sm:$0xff]  ;;  %v23940_v59 = vand.u32 4294901760, %v23939_v50 }
 0x5a9   :  { %12256 = vmatpush.msrb.mxu1 %v21756_v62  ;;  %12299 = vmatpush.msrb.mxu2 %v22047_v55  ;;  %v8073_v62 = vpop.f32.mrf.mxu3  ;;  %v12310_v56 = vand.u32 4294901760, %v12309_v57  ;;  %v23937_v39 = vand.u32 4294901760, %v23936_v52  ;;  %v8220_v23 = vpop.f32.mrf.mxu2 }
 0x5aa   :  { %12398 = vmatpush.msrb.mxu3 %v12397_v2  ;;  %12223 = vmatpush.msrb.mxu0 %v23929_v20  ;;  %v8074_v16 = vadd.f32 %v8073_v62, %v8035_v15  ;;  %v8375_v20 = vpop.f32.mrf.mxu0  ;;  %v23944_v62 = vand.u32 4294901760, %v21949_v32 }
 0x5ab   :  { %12258 = vmatpush.msrb.mxu1 %v21772_v34  ;;  %12301 = vmatpush.msrb.mxu2 %v22062_v28  ;;  %v23931_v34 = vand.u32 4294901760, %v21919_v58  ;;  %v23934_v58 = vand.u32 4294901760, %v23933_v0 }
 0x5ac   :  { %12404 = vmatpush.msrb.mxu3 %v12403_v29  ;;  %12227 = vmatpush.msrb.mxu0 %v23930_v3  ;;  %v8143_v46 = vadd.f32 %v8142_v27, %v8074_v16  ;;  %v23941_v29 = vld [vmem:[#allocation44_spill] sm:$0xff] }
 0x5ad   :  { %12260 = vmatpush.msrb.mxu1 %v21787_v38  ;;  %12303 = vmatpush.msrb.mxu2 %v22078_v33  ;;  %v23946_v16 = vld [vmem:[#allocation48_spill] sm:$0xff] }
 0x5ae   :  { %12410 = vmatpush.msrb.mxu3 %v12409_v40  ;;  %12231 = vmatpush.msrb.mxu0 %v23931_v34  ;;  %v8180_v38 = vadd.f32 %v8179_v1, %v8143_v46  ;;  %v23943_v40 = vand.u32 4294901760, %v23942_v26  ;;  %v5090_v46 = vld [vmem:[%s22880_s2 + $0xb48] sm:$0xff] }
 0x5af   :  { %12412 = vmatmul.f32.vlgmr.msrb.gmra.mxu3 %v22116_v22  ;;  %12262 = vmatpush.msrb.mxu1 %v23932_v61 }
 0x5b0   :  { %12579 = vmatpush.msra.mxu3 %v21818_v11  ;;  %12305 = vmatpush.msrb.mxu2 %v22091_v36  ;;  %v8221_v2 = vadd.f32 %v8220_v23, %v8180_v38  ;;  %v8414_v3 = vpop.f32.mrf.mxu1 }
 0x5b1   :  { %12233 = vmatmul.f32.vlgmr.msrb.gmra.mxu0 %v21808_v43  ;;  %12311 = vmatmul.f32.vlgmr.msrb.gmra.mxu2 %v12310_v56  ;;  %v8321_v15 = vpop.f32.mrf.mxu3  ;;  %v5091_v56 = vld [vmem:[%s22880_s2 + $0xb50] sm:$0xff] }
 0x5b2   :  { %12418 = vmatpush.msra.mxu0 %v23933_v0  ;;  %12512 = vmatpush.msra.mxu2 %v23934_v58  ;;  %v8322_v57 = vadd.f32 %v8321_v15, %v8221_v2  ;;  %v8561_v34 = vpop.f32.mrf.mxu0  ;;  %v22301_v0 = vand.u32 4294901760, %v5091_v56  ;;  %v5089_v58 = vld [vmem:[%s22880_s2 + $0xb40] sm:$0xff] }
 0x5b3   :  { %12581 = vmatpush.msra.mxu3 %v21836_v24  ;;  %12264 = vmatpush.msrb.mxu1 %v23935_v13 }
 0x5b4   :  { %12421 = vmatpush.msra.mxu0 %v23936_v52  ;;  %12516 = vmatpush.msra.mxu2 %v23937_v39 }
 0x5b5   :  { %12583 = vmatpush.msra.mxu3 %v21867_v30  ;;  %12266 = vmatpush.msrb.mxu1 %v23938_v18  ;;  %v22318_v18 = vand.u32 4294901760, %v5090_v46 }
 0x5b6   :  { %12424 = vmatpush.msra.mxu0 %v23939_v50  ;;  %12520 = vmatpush.msra.mxu2 %v23940_v59  ;;  %v22333_v50 = vsub.f32 %v5091_v56, %v22301_v0 }
 0x5b7   :  { %12585 = vmatpush.msra.mxu3 %v21884_v51  ;;  %12268 = vmatpush.msrb.mxu1 %v23941_v29 }
 0x5b8   :  { %12270 = vmatmul.f32.vlgmr.msrb.gmra.mxu1 %v21808_v43  ;;  %12427 = vmatpush.msra.mxu0 %v23942_v26  ;;  %v8376_v43 = vadd.f32 %v8375_v20, %v8322_v57 }
 0x5b9   :  { %12471 = vmatpush.msra.mxu1 %v21818_v11  ;;  %12524 = vmatpush.msra.mxu2 %v23943_v40  ;;  %v23945_v11 = vand.u32 4294901760, %v21965_v7  ;;  %v22349_v40 = vsub.f32 %v5090_v46, %v22318_v18 }
 0x5ba   :  { %12587 = vmatpush.msra.mxu3 %v21912_v54  ;;  %12430 = vmatpush.msra.mxu0 %v21949_v32  ;;  %v8415_v27 = vadd.f32 %v8414_v3, %v8376_v43  ;;  %v8483_v32 = vpop.f32.mrf.mxu2 }
 0x5bb   :  { %12473 = vmatpush.msra.mxu1 %v21836_v24  ;;  %12528 = vmatpush.msra.mxu2 %v23944_v62  ;;  %v23947_v24 = vand.u32 4294901760, %v23946_v16 }
 0x5bc   :  { %12589 = vmatpush.msra.mxu3 %v21933_v37  ;;  %12433 = vmatpush.msra.mxu0 %v21965_v7  ;;  %v8484_v7 = vadd.f32 %v8483_v32, %v8415_v27  ;;  %v23265_v27 = vand.u32 4294901760, %v22333_v50 }
 0x5bd   :  { %12475 = vmatpush.msra.mxu1 %v21867_v30  ;;  %12532 = vmatpush.msra.mxu2 %v23945_v11  ;;  %v23948_v30 = vand.u32 4294901760, %v21994_v45 }
 0x5be   :  { %12591 = vmatpush.msra.mxu3 %v21941_v53  ;;  %12436 = vmatpush.msra.mxu0 %v23946_v16 }
 0x5bf   :  { %12477 = vmatpush.msra.mxu1 %v21884_v51  ;;  %12536 = vmatpush.msra.mxu2 %v23947_v24  ;;  %v23949_v51 = vand.u32 4294901760, %v22015_v31 }
 0x5c0   :  { %12593 = vmatpush.msra.mxu3 %v21957_v12  ;;  %12439 = vmatpush.msra.mxu0 %v21994_v45  ;;  %v8520_v45 = vpop.f32.mrf.mxu3 }
 0x5c1   :  { %12479 = vmatpush.msra.mxu1 %v21912_v54  ;;  %12540 = vmatpush.msra.mxu2 %v23948_v30  ;;  %v5096_v54 = vld [vmem:[%s22880_s2 + $0xb78] sm:$0xff]  ;;  %v8521_v1 = vadd.f32 %v8520_v45, %v8484_v7 }
 0x5c2   :  { %12595 = vmatpush.msra.mxu3 %v21983_v63  ;;  %12442 = vmatpush.msra.mxu0 %v22015_v31  ;;  %v8662_v31 = vpop.f32.mrf.mxu1  ;;  %v22238_v61 = vand.u32 4294901760, %v5096_v54 }
 0x5c3   :  { %12481 = vmatpush.msra.mxu1 %v21933_v37  ;;  %12544 = vmatpush.msra.mxu2 %v23949_v51  ;;  %v5095_v37 = vld [vmem:[%s22880_s2 + $0xb70] sm:$0xff]  ;;  %v5084_v51 = vld [vmem:[%s22880_s2 + $0xb18] sm:$0xff] }
 0x5c4   :  { %12597 = vmatpush.msra.mxu3 %v22001_v21  ;;  %12445 = vmatpush.msra.mxu0 %v22030_v17  ;;  %v5094_v17 = vld [vmem:[%s22880_s2 + $0xb68] sm:$0xff] }
 0x5c5   :  { %12483 = vmatpush.msra.mxu1 %v21941_v53  ;;  %12548 = vmatpush.msra.mxu2 %v12371_v44  ;;  %v8562_v53 = vadd.f32 %v8561_v34, %v8521_v1 }
 0x5c6   :  { %12599 = vmatpush.msra.mxu3 %v22017_v8  ;;  %12448 = vmatpush.msra.mxu0 %v22045_v49  ;;  %v5093_v49 = vld [vmem:[%s22880_s2 + $0xb60] sm:$0xff] }
 0x5c7   :  { %12485 = vmatpush.msra.mxu1 %v21957_v12  ;;  %12552 = vmatpush.msra.mxu2 %v12377_v42  ;;  %v22248_v12 = vand.u32 4294901760, %v5095_v37  ;;  %v8663_v44 = vadd.f32 %v8662_v31, %v8562_v53  ;;  %v5092_v42 = vld [vmem:[%s22880_s2 + $0xb58] sm:$0xff] }
 0x5c8   :  { %12601 = vmatpush.msra.mxu3 %v22032_v35  ;;  %12451 = vmatpush.msra.mxu0 %v22060_v60  ;;  %v22261_v60 = vand.u32 4294901760, %v5094_v17  ;;  %v8755_v38 = vpop.f32.mrf.mxu3 }
 0x5c9   :  { %12487 = vmatpush.msra.mxu1 %v21983_v63  ;;  %12556 = vmatpush.msra.mxu2 %v12383_v14  ;;  %v22259_v63 = vsub.f32 %v5096_v54, %v22238_v61  ;;  %v8716_v14 = vpop.f32.mrf.mxu2 }
 0x5ca   :  { %12603 = vmatpush.msra.mxu3 %v22047_v55  ;;  %12454 = vmatpush.msra.mxu0 %v22076_v6  ;;  %v22274_v6 = vand.u32 4294901760, %v5093_v49  ;;  %v8861_v52 = vpop.f32.mrf.mxu1 }
 0x5cb   :  { %12489 = vmatpush.msra.mxu1 %v22001_v21  ;;  %12560 = vmatpush.msra.mxu2 %v12389_v4  ;;  %v22272_v21 = vsub.f32 %v5095_v37, %v22248_v12  ;;  %v8717_v4 = vadd.f32 %v8716_v14, %v8663_v44  ;;  %v12689_v37 = vsub.f32 %v22333_v50, %v23265_v27  ;;  %v5107_v27 = vld [vmem:[%s22880_s2 + $0xbd0] sm:$0xff] }
 0x5cc   :  { %12605 = vmatpush.msra.mxu3 %v22062_v28  ;;  %12457 = vmatpush.msra.mxu0 %v22089_v5  ;;  %v23272_v5 = vand.u32 4294901760, %v22259_v63 }
 0x5cd   :  { %12491 = vmatpush.msra.mxu1 %v22017_v8  ;;  %12564 = vmatpush.msra.mxu2 %v12395_v41  ;;  %v22285_v8 = vsub.f32 %v5094_v17, %v22261_v60  ;;  %v22288_v41 = vand.u32 4294901760, %v5092_v42  ;;  %v8756_v13 = vadd.f32 %v8755_v38, %v8717_v4  ;;  %v5112_v17 = vld [vmem:[%s22880_s2 + $0xbf8] sm:$0xff]  ;;  %v5111_v38 = vld [vmem:[%s22880_s2 + $0xbf0] sm:$0xff] }
 0x5ce   :  { %12607 = vmatpush.msra.mxu3 %v22078_v33  ;;  %12460 = vmatpush.msra.mxu0 %v22102_v47  ;;  %v22298_v47 = vsub.f32 %v5093_v49, %v22274_v6 }
 0x5cf   :  { %12493 = vmatpush.msra.mxu1 %v22032_v35  ;;  %12568 = vmatpush.msra.mxu2 %v12401_v48  ;;  %v8824_v35 = vpop.f32.mrf.mxu0  ;;  %v23271_v48 = vand.u32 4294901760, %v22272_v21  ;;  %v22315_v39 = vsub.f32 %v5092_v42, %v22288_v41  ;;  %v23270_v23 = vand.u32 4294901760, %v22285_v8  ;;  %v22405_v42 = vand.u32 4294901760, %v5084_v51 }
 0x5d0   :  { %12609 = vmatpush.msra.mxu3 %v22091_v36  ;;  %12463 = vmatpush.msra.mxu0 %v22113_v10  ;;  %v5088_v10 = vld [vmem:[%s22880_s2 + $0xb38] sm:$0xff]  ;;  %v23268_v59 = vand.u32 4294901760, %v22298_v47  ;;  %v9003_v45 = vpop.f32.mrf.mxu3 }
 0x5d1   :  { %12611 = vmatmul.f32.vlgmr.msra.gmra.mxu3 %v22116_v22  ;;  %12495 = vmatpush.msra.mxu1 %v22047_v55  ;;  %v12659_v55 = vsub.f32 %v22259_v63, %v23272_v5  ;;  %v12665_v2 = vsub.f32 %v22272_v21, %v23271_v48  ;;  %v22338_v26 = vand.u32 4294901760, %v5088_v10  ;;  %v12671_v20 = vsub.f32 %v22285_v8, %v23270_v23  ;;  %v8902_v62 = vpop.f32.mrf.mxu2 }
 0x5d2   :  { %12812 = vmatpush.msrb.mxu3 %v22238_v61  ;;  %12572 = vmatpush.msra.mxu2 %v12407_v19  ;;  %v8825_v19 = vadd.f32 %v8824_v35, %v8756_v13  ;;  %v23266_v57 = vand.u32 4294901760, %v22315_v39  ;;  %v12677_v11 = vsub.f32 %v22298_v47, %v23268_v59  ;;  %23950 = vst [vmem:[#allocation9_spill] sm:$0xff] %v22405_v42  ;;  %v9096_v14 = vpop.f32.mrf.mxu1  ;;  %v23951_v35 = vld [vmem:[#allocation22_spill] sm:$0xff] }
 0x5d3   :  { %12466 = vmatmul.f32.vlgmr.msra.gmra.mxu0 %v22136_v9  ;;  %12574 = vmatmul.f32.vlgmr.msra.gmra.mxu2 %v22116_v22  ;;  %v22325_v22 = vand.u32 4294901760, %v5089_v58  ;;  %v12660_v15 = vand.u32 4294901760, %v12659_v55  ;;  %v12666_v43 = vand.u32 4294901760, %v12665_v2  ;;  %v22372_v32 = vsub.f32 %v5088_v10, %v22338_v26  ;;  %v5083_v55 = vld [vmem:[%s22880_s2 + $0xb10] sm:$0xff] }
 0x5d4   :  { %12616 = vmatpush.msrb.mxu0 %v22238_v61  ;;  %12759 = vmatpush.msrb.mxu2 %v22259_v63  ;;  %v8862_v29 = vadd.f32 %v8861_v52, %v8825_v19  ;;  %v12672_v30 = vand.u32 4294901760, %v12671_v20  ;;  %v12683_v7 = vsub.f32 %v22315_v39, %v23266_v57  ;;  %v23264_v9 = vand.u32 4294901760, %v22349_v40 }
 0x5d5   :  { %12814 = vmatpush.msrb.mxu3 %v22248_v12  ;;  %12497 = vmatpush.msra.mxu1 %v22062_v28  ;;  %v5087_v28 = vld [vmem:[%s22880_s2 + $0xb30] sm:$0xff]  ;;  %v22355_v3 = vsub.f32 %v5089_v58, %v22325_v22  ;;  %v12678_v1 = vand.u32 4294901760, %v12677_v11  ;;  %v23262_v49 = vand.u32 4294901760, %v22372_v32  ;;  %v22418_v58 = vand.u32 4294901760, %v23951_v35 }
 0x5d6   :  { %12618 = vmatpush.msrb.mxu0 %v22248_v12  ;;  %12762 = vmatpush.msrb.mxu2 %v22272_v21  ;;  %v22366_v16 = vand.u32 4294901760, %v5087_v28  ;;  %v8903_v24 = vadd.f32 %v8902_v62, %v8862_v29  ;;  %v12684_v4 = vand.u32 4294901760, %v12683_v7  ;;  %v12695_v56 = vsub.f32 %v22349_v40, %v23264_v9 }
 0x5d7   :  { %12816 = vmatpush.msrb.mxu3 %v22261_v60  ;;  %12499 = vmatpush.msra.mxu1 %v22078_v33  ;;  %v5086_v33 = vld [vmem:[%s22880_s2 + $0xb28] sm:$0xff]  ;;  %v23263_v54 = vand.u32 4294901760, %v22355_v3  ;;  %v9057_v34 = vpop.f32.mrf.mxu0  ;;  %v22428_v10 = vand.u32 4294901760, %v5112_v17  ;;  %v12690_v19 = vand.u32 4294901760, %v12689_v37  ;;  %v22441_v20 = vsub.f32 %v5084_v51, %v22405_v42  ;;  %v5081_v51 = vld [vmem:[%s22880_s2 + $0xb00] sm:$0xff] }
 0x5d8   :  { %12620 = vmatpush.msrb.mxu0 %v22261_v60  ;;  %12765 = vmatpush.msrb.mxu2 %v22285_v8  ;;  %v22395_v31 = vsub.f32 %v5087_v28, %v22366_v16  ;;  %v9004_v44 = vadd.f32 %v9003_v45, %v8903_v24  ;;  %v22446_v62 = vand.u32 4294901760, %v5111_v38  ;;  %v12696_v11 = vand.u32 4294901760, %v12695_v56 }
 0x5d9   :  { %12818 = vmatpush.msrb.mxu3 %v22274_v6  ;;  %12501 = vmatpush.msra.mxu1 %v22091_v36  ;;  %v5085_v36 = vld [vmem:[%s22880_s2 + $0xb20] sm:$0xff]  ;;  %v12701_v52 = vsub.f32 %v22355_v3, %v23263_v54  ;;  %23952 = vst [vmem:[#allocation18_spill] sm:$0xff] %v22428_v10  ;;  %v22452_v24 = vand.u32 4294901760, %v5083_v55  ;;  %v22465_v45 = vsub.f32 %v5112_v17, %v22428_v10 }
 0x5da   :  { %12505 = vmatmul.f32.vlgmr.msra.gmra.mxu1 %v12308_v25  ;;  %12622 = vmatpush.msrb.mxu0 %v22274_v6  ;;  %v22382_v25 = vand.u32 4294901760, %v5086_v33  ;;  %v22397_v53 = vand.u32 4294901760, %v5085_v36  ;;  %v9058_v13 = vadd.f32 %v9057_v34, %v9004_v44  ;;  %v23261_v29 = vand.u32 4294901760, %v22395_v31  ;;  %v5109_v34 = vld [vmem:[%s22880_s2 + $0xbe0] sm:$0xff] }
 0x5db   :  { %12661 = vmatpush.msrb.mxu1 %v12660_v15  ;;  %12768 = vmatpush.msrb.mxu2 %v22298_v47  ;;  %v12707_v15 = vsub.f32 %v22372_v32, %v23262_v49  ;;  %23953 = vst [vmem:[#allocation25_spill] sm:$0xff] %v22452_v24  ;;  %v12702_v7 = vand.u32 4294901760, %v12701_v52 }
 0x5dc   :  { %12820 = vmatpush.msrb.mxu3 %v22288_v41  ;;  %12624 = vmatpush.msrb.mxu0 %v22288_v41  ;;  %v22412_v46 = vsub.f32 %v5086_v33, %v22382_v25  ;;  %v22432_v2 = vsub.f32 %v5085_v36, %v22397_v53  ;;  %v9097_v28 = vadd.f32 %v9096_v14, %v9058_v13  ;;  %v5082_v33 = vld [vmem:[%s22880_s2 + $0xb08] sm:$0xff] }
 0x5dd   :  { %12667 = vmatpush.msrb.mxu1 %v12666_v43  ;;  %12771 = vmatpush.msrb.mxu2 %v22315_v39  ;;  %v5110_v43 = vld [vmem:[%s22880_s2 + $0xbe8] sm:$0xff]  ;;  %23954 = vst [vmem:[#allocation28_spill] sm:$0xff] %v22465_v45  ;;  %v12713_v37 = vsub.f32 %v22395_v31, %v23261_v29  ;;  %v22474_v44 = vand.u32 4294901760, %v5082_v33  ;;  %v12708_v56 = vand.u32 4294901760, %v12707_v15  ;;  %v22483_v13 = vsub.f32 %v5111_v38, %v22446_v62  ;;  %v5108_v15 = vld [vmem:[%s22880_s2 + $0xbd8] sm:$0xff] }
 0x5de   :  { %12822 = vmatpush.msrb.mxu3 %v22301_v0  ;;  %12626 = vmatpush.msrb.mxu0 %v22301_v0  ;;  %v23260_v36 = vand.u32 4294901760, %v22412_v46  ;;  %v23267_v14 = vand.u32 4294901760, %v22432_v2 }
 0x5df   :  { %12673 = vmatpush.msrb.mxu1 %v12672_v30  ;;  %12774 = vmatpush.msrb.mxu2 %v22333_v50  ;;  %v22457_v30 = vsub.f32 %v23951_v35, %v22418_v58  ;;  %23955 = vst [vmem:[#allocation26_spill] sm:$0xff] %v22474_v44  ;;  %v23269_v35 = vand.u32 4294901760, %v22441_v20  ;;  %v9243_v29 = vpop.f32.mrf.mxu0  ;;  %v22508_v54 = vsub.f32 %v5082_v33, %v22474_v44  ;;  %v22522_v33 = vand.u32 4294901760, %v5108_v15 }
 0x5e0   :  { %12824 = vmatpush.msrb.mxu3 %v22318_v18  ;;  %12628 = vmatpush.msrb.mxu0 %v22318_v18  ;;  %23956 = vst [vmem:[#allocation19_spill] sm:$0xff] %v22483_v13  ;;  %v12719_v52 = vsub.f32 %v22412_v46, %v23260_v36  ;;  %v9202_v36 = vpop.f32.mrf.mxu3  ;;  %v12725_v49 = vsub.f32 %v22432_v2, %v23267_v14  ;;  %v9344_v14 = vpop.f32.mrf.mxu1 }
 0x5e1   :  { %12679 = vmatpush.msrb.mxu1 %v12678_v1  ;;  %12777 = vmatpush.msrb.mxu2 %v22349_v40  ;;  %v9165_v1 = vpop.f32.mrf.mxu2  ;;  %v23274_v38 = vand.u32 4294901760, %v22457_v30 }
 0x5e2   :  { %12826 = vmatpush.msrb.mxu3 %v22325_v22  ;;  %12630 = vmatpush.msrb.mxu0 %v22325_v22  ;;  %v9166_v17 = vadd.f32 %v9165_v1, %v9097_v28  ;;  %v22492_v28 = vand.u32 4294901760, %v5081_v51  ;;  %v22494_v1 = vand.u32 4294901760, %v5109_v34 }
 0x5e3   :  { %12685 = vmatpush.msrb.mxu1 %v12684_v4  ;;  %12780 = vmatpush.msrb.mxu2 %v22355_v3  ;;  %v22477_v4 = vand.u32 4294901760, %v5110_v43 }
 0x5e4   :  { %12828 = vmatpush.msrb.mxu3 %v22338_v26  ;;  %12632 = vmatpush.msrb.mxu0 %v22338_v26  ;;  %23957 = vst [vmem:[#allocation5_spill] sm:$0xff] %v22492_v28  ;;  %v9203_v57 = vadd.f32 %v9202_v36, %v9166_v17  ;;  %v12720_v36 = vand.u32 4294901760, %v12719_v52  ;;  %v22529_v17 = vsub.f32 %v5081_v51, %v22492_v28  ;;  %v22543_v51 = vand.u32 4294901760, %v5107_v27 }
 0x5e5   :  { %12691 = vmatpush.msrb.mxu1 %v12690_v19  ;;  %12783 = vmatpush.msrb.mxu2 %v22372_v32  ;;  %v22490_v19 = vsub.f32 %v5083_v55, %v22452_v24  ;;  %v12714_v55 = vand.u32 4294901760, %v12713_v37  ;;  %v22511_v9 = vsub.f32 %v5110_v43, %v22477_v4  ;;  %v23275_v37 = vand.u32 4294901760, %v22483_v13  ;;  %v5106_v43 = vld [vmem:[%s22880_s2 + $0xbc8] sm:$0xff] }
 0x5e6   :  { %12830 = vmatpush.msrb.mxu3 %v22366_v16  ;;  %12634 = vmatpush.msrb.mxu0 %v22366_v16  ;;  %23959 = vst [vmem:[#allocation20_spill] sm:$0xff] %v22529_v17  ;;  %v9244_v23 = vadd.f32 %v9243_v29, %v9203_v57  ;;  %v12650_v52 = vsub.f32 %v22457_v30, %v23274_v38  ;;  %v12726_v57 = vand.u32 4294901760, %v12725_v49  ;;  %v22551_v5 = vand.u32 4294901760, %v5106_v43 }
 0x5e7   :  { %12697 = vmatpush.msrb.mxu1 %v12696_v11  ;;  %12786 = vmatpush.msrb.mxu2 %v22395_v31  ;;  %v23273_v11 = vand.u32 4294901760, %v22465_v45  ;;  %23958 = vst [vmem:[#allocation30_spill] sm:$0xff] %v22511_v9  ;;  %v13006_v59 = vsub.f32 %v22483_v13, %v23275_v37  ;;  %v23961_v49 = vand.u32 4294901760, %v22490_v19  ;;  %v23963_v13 = vand.u32 4294901760, %v22508_v54 }
 0x5e8   :  { %12832 = vmatpush.msrb.mxu3 %v22382_v25  ;;  %12636 = vmatpush.msrb.mxu0 %v22382_v25 }
 0x5e9   :  { %12703 = vmatpush.msrb.mxu1 %v12702_v7  ;;  %12789 = vmatpush.msrb.mxu2 %v22412_v46  ;;  %v12731_v7 = vsub.f32 %v22441_v20, %v23269_v35  ;;  %v22533_v35 = vsub.f32 %v5109_v34, %v22494_v1  ;;  %v5105_v34 = vld [vmem:[%s22880_s2 + $0xbc0] sm:$0xff]  ;;  %v12737_v48 = vsub.f32 %v22490_v19, %v23961_v49  ;;  %v9398_v37 = vpop.f32.mrf.mxu2  ;;  %v12651_v49 = vand.u32 4294901760, %v12650_v52 }
 0x5ea   :  { %12834 = vmatpush.msrb.mxu3 %v22397_v53  ;;  %12638 = vmatpush.msrb.mxu0 %v22397_v53  ;;  %v22567_v29 = vand.u32 4294901760, %v5105_v34  ;;  %v13007_v52 = vand.u32 4294901760, %v13006_v59  ;;  %v5102_v59 = vld [vmem:[%s22880_s2 + $0xba8] sm:$0xff] }
 0x5eb   :  { %12709 = vmatpush.msrb.mxu1 %v12708_v56  ;;  %12792 = vmatpush.msrb.mxu2 %v22432_v2  ;;  %23960 = vst [vmem:[#allocation31_spill] sm:$0xff] %v22533_v35  ;;  %v13000_v56 = vsub.f32 %v22465_v45, %v23273_v11  ;;  %v9345_v11 = vadd.f32 %v9344_v14, %v9244_v23  ;;  %v12732_v38 = vand.u32 4294901760, %v12731_v7  ;;  %v5104_v7 = vld [vmem:[%s22880_s2 + $0xbb8] sm:$0xff]  ;;  %v23962_v14 = vand.u32 4294901760, %v22511_v9 }
 0x5ec   :  { %12836 = vmatpush.msrb.mxu3 %v22405_v42  ;;  %12640 = vmatpush.msrb.mxu0 %v22405_v42  ;;  %v22585_v45 = vsub.f32 %v5106_v43, %v22551_v5  ;;  %v23965_v43 = vand.u32 4294901760, %v22533_v35 }
 0x5ed   :  { %12715 = vmatpush.msrb.mxu1 %v12714_v55  ;;  %12795 = vmatpush.msrb.mxu2 %v22441_v20  ;;  %v22559_v55 = vsub.f32 %v5108_v15, %v22522_v33  ;;  %v13001_v15 = vand.u32 4294901760, %v13000_v56  ;;  %v13012_v23 = vsub.f32 %v22511_v9, %v23962_v14  ;;  %v9399_v56 = vadd.f32 %v9398_v37, %v9345_v11 }
 0x5ee   :  { %12838 = vmatpush.msrb.mxu3 %v22452_v24  ;;  %12642 = vmatpush.msrb.mxu0 %v22452_v24  ;;  %v12743_v24 = vsub.f32 %v22508_v54, %v23963_v13  ;;  %v22593_v14 = vand.u32 4294901760, %v5104_v7  ;;  %v23964_v9 = vand.u32 4294901760, %v22457_v30  ;;  %v12738_v13 = vand.u32 4294901760, %v12737_v48 }
 0x5ef   :  { %12721 = vmatpush.msrb.mxu1 %v12720_v36  ;;  %12798 = vmatpush.msrb.mxu2 %v22490_v19  ;;  %v22575_v36 = vsub.f32 %v5107_v27, %v22543_v51  ;;  %v5103_v27 = vld [vmem:[%s22880_s2 + $0xbb0] sm:$0xff]  ;;  %v23966_v11 = vand.u32 4294901760, %v22529_v17  ;;  %v23968_v48 = vand.u32 4294901760, %v22559_v55 }
 0x5f0   :  { %12840 = vmatpush.msrb.mxu3 %v22474_v44  ;;  %12644 = vmatpush.msrb.mxu0 %v22474_v44  ;;  %v13018_v44 = vsub.f32 %v22533_v35, %v23965_v43  ;;  %v12744_v43 = vand.u32 4294901760, %v12743_v24  ;;  %v9506_v35 = vpop.f32.mrf.mxu0  ;;  %v22627_v24 = vand.u32 4294901760, %v5102_v59 }
 0x5f1   :  { %12727 = vmatpush.msrb.mxu1 %v12726_v57  ;;  %12801 = vmatpush.msrb.mxu2 %v22508_v54  ;;  %v12749_v37 = vsub.f32 %v22529_v17, %v23966_v11  ;;  %v9437_v57 = vpop.f32.mrf.mxu3 }
 0x5f2   :  { %12842 = vmatpush.msrb.mxu3 %v22492_v28  ;;  %12646 = vmatpush.msrb.mxu0 %v22492_v28  ;;  %v22604_v28 = vsub.f32 %v5105_v34, %v22567_v29  ;;  %v5101_v34 = vld [vmem:[%s22880_s2 + $0xba0] sm:$0xff]  ;;  %v13019_v11 = vand.u32 4294901760, %v13018_v44 }
 0x5f3   :  { %12846 = vmatmul.f32.vlgmr.msrb.gmra.mxu3 %v23964_v9  ;;  %12733 = vmatpush.msrb.mxu1 %v12732_v38  ;;  %v22611_v9 = vand.u32 4294901760, %v5103_v27  ;;  %v13013_v38 = vand.u32 4294901760, %v13012_v23  ;;  %v9438_v23 = vadd.f32 %v9437_v57, %v9399_v56  ;;  %v12750_v42 = vand.u32 4294901760, %v12749_v37 }
 0x5f4   :  { %13002 = vmatpush.msra.mxu3 %v13001_v15  ;;  %12804 = vmatpush.msrb.mxu2 %v22529_v17  ;;  %v23967_v15 = vand.u32 4294901760, %v22259_v63  ;;  %v13041_v17 = vand.u32 4294901760, %v22604_v28  ;;  %v5100_v63 = vld [vmem:[%s22880_s2 + $0xb98] sm:$0xff]  ;;  %v22642_v44 = vand.u32 4294901760, %v5101_v34 }
 0x5f5   :  { %12652 = vmatmul.f32.vlgmr.msrb.gmra.mxu0 %v12651_v49  ;;  %12807 = vmatmul.f32.vlgmr.msrb.gmra.mxu2 %v22457_v30  ;;  %v13024_v49 = vsub.f32 %v22559_v55, %v23968_v48  ;;  %v22625_v30 = vsub.f32 %v5104_v7, %v22593_v14  ;;  %v23970_v7 = vand.u32 4294901760, %v22575_v36  ;;  %v9507_v57 = vadd.f32 %v9506_v35, %v9438_v23 }
 0x5f6   :  { %12853 = vmatpush.msra.mxu0 %v23967_v15  ;;  %12957 = vmatpush.msra.mxu2 %v22428_v10  ;;  %v9543_v15 = vpop.f32.mrf.mxu1  ;;  %v23969_v10 = vand.u32 4294901760, %v22272_v21  ;;  %v5099_v21 = vld [vmem:[%s22880_s2 + $0xb90] sm:$0xff]  ;;  %v22655_v35 = vsub.f32 %v5102_v59, %v22627_v24  ;;  %v13042_v23 = vsub.f32 %v22604_v28, %v13041_v17 }
 0x5f7   :  { %13008 = vmatpush.msra.mxu3 %v13007_v52  ;;  %12739 = vmatpush.msrb.mxu1 %v12738_v13  ;;  %v13030_v56 = vsub.f32 %v22575_v36, %v23970_v7  ;;  %v22640_v52 = vsub.f32 %v5103_v27, %v22611_v9  ;;  %v23971_v13 = vand.u32 4294901760, %v22585_v45  ;;  %v13025_v27 = vand.u32 4294901760, %v13024_v49 }
 0x5f8   :  { %12857 = vmatpush.msra.mxu0 %v23969_v10  ;;  %12959 = vmatpush.msra.mxu2 %v22446_v62  ;;  %v23972_v10 = vand.u32 4294901760, %v22285_v8  ;;  %v23291_v48 = vand.u32 4294901760, %v22625_v30  ;;  %v5098_v8 = vld [vmem:[%s22880_s2 + $0xb88] sm:$0xff]  ;;  %v23973_v49 = vand.u32 4294901760, %v22298_v47  ;;  %v23974_v47 = vand.u32 4294901760, %v22315_v39 }
 0x5f9   :  { %13014 = vmatpush.msra.mxu3 %v13013_v38  ;;  %12745 = vmatpush.msrb.mxu1 %v12744_v43  ;;  %v13036_v37 = vsub.f32 %v22585_v45, %v23971_v13  ;;  %v22657_v38 = vand.u32 4294901760, %v5100_v63  ;;  %v9544_v43 = vadd.f32 %v9543_v15, %v9507_v57  ;;  %v13031_v59 = vand.u32 4294901760, %v13030_v56  ;;  %v5097_v57 = vld [vmem:[%s22880_s2 + $0xb80] sm:$0xff]  ;;  %v9584_v13 = vpop.f32.mrf.mxu2  ;;  %s13347_s2 = smov [#allocation2]  }
 0x5fa   :  { %12861 = vmatpush.msra.mxu0 %v23972_v10  ;;  %12961 = vmatpush.msra.mxu2 %v22477_v4  ;;  %v13053_v7 = vand.u32 4294901760, %v22640_v52  ;;  %v22670_v15 = vsub.f32 %v5101_v34, %v22642_v44  ;;  %v13048_v34 = vsub.f32 %v22625_v30, %v23291_v48  ;;  %v13059_v56 = vand.u32 4294901760, %v22655_v35  ;;  %s13307_s11 = sshll.u32 %s13347_s2, 4  ;;  %s13308_s11 = int_to_ptr.vmem [resolvable:$true] %s13307_s11 }
 0x5fb   :  { %13020 = vmatpush.msra.mxu3 %v13019_v11  ;;  %12751 = vmatpush.msrb.mxu1 %v12750_v42  ;;  %v22672_v42 = vand.u32 4294901760, %v5099_v21  ;;  %v13037_v11 = vand.u32 4294901760, %v13036_v37  ;;  %v22688_v10 = vand.u32 4294901760, %v5098_v8  ;;  %v9585_v37 = vadd.f32 %v9584_v13, %v9544_v43 }
 0x5fc   :  { %12753 = vmatmul.f32.vlgmr.msrb.gmra.mxu1 %v22418_v58  ;;  %12865 = vmatpush.msra.mxu0 %v23973_v49  ;;  %v23975_v39 = vand.u32 4294901760, %v22333_v50  ;;  %v13054_v49 = vsub.f32 %v22640_v52, %v13053_v7  ;;  %v22701_v48 = vand.u32 4294901760, %v5097_v57  ;;  %v23976_v50 = vand.u32 4294901760, %v22349_v40 }
 0x5fd   :  { %12920 = vmatpush.msra.mxu1 %v22238_v61  ;;  %12963 = vmatpush.msra.mxu2 %v22494_v1  ;;  %v22686_v61 = vsub.f32 %v5100_v63, %v22657_v38  ;;  %v22699_v63 = vsub.f32 %v5099_v21, %v22672_v42  ;;  %v13049_v43 = vand.u32 4294901760, %v13048_v34  ;;  %v22712_v21 = vsub.f32 %v5098_v8, %v22688_v10 }
 0x5fe   :  { %13026 = vmatpush.msra.mxu3 %v13025_v27  ;;  %12869 = vmatpush.msra.mxu0 %v23974_v47  ;;  %v13043_v27 = vand.u32 4294901760, %v13042_v23  ;;  %v13065_v47 = vand.u32 4294901760, %v22670_v15  ;;  %v13060_v23 = vsub.f32 %v22655_v35, %v13059_v56  ;;  %v13055_v40 = vand.u32 4294901760, %v13054_v49 }
 0x5ff   :  { %12922 = vmatpush.msra.mxu1 %v22248_v12  ;;  %12965 = vmatpush.msra.mxu2 %v22522_v33  ;;  %v9685_v12 = vpop.f32.mrf.mxu3  ;;  %v13077_v34 = vand.u32 4294901760, %v22699_v63  ;;  %v22723_v8 = vsub.f32 %v5097_v57, %v22701_v48  ;;  %v13083_v57 = vand.u32 4294901760, %v22712_v21 }
 0x600   :  { %13032 = vmatpush.msra.mxu3 %v13031_v59  ;;  %12873 = vmatpush.msra.mxu0 %v23975_v39  ;;  %v13071_v59 = vand.u32 4294901760, %v22686_v61  ;;  %v9686_v13 = vadd.f32 %v9685_v12, %v9585_v37  ;;  %v9739_v39 = vpop.f32.mrf.mxu0  ;;  %v23978_v37 = vld [vmem:[#allocation17_spill] sm:$0xff]  ;;  %v13061_v49 = vand.u32 4294901760, %v13060_v23 }
 0x601   :  { %12924 = vmatpush.msra.mxu1 %v22261_v60  ;;  %12967 = vmatpush.msra.mxu2 %v22543_v51  ;;  %v23977_v60 = vand.u32 4294901760, %v22355_v3  ;;  %v22726_v12 = vand.u32 4294901760, %v23978_v37  ;;  %v13089_v23 = vand.u32 4294901760, %v22723_v8 }
 0x602   :  { %13038 = vmatpush.msra.mxu3 %v13037_v11  ;;  %12877 = vmatpush.msra.mxu0 %v23976_v50  ;;  %v13066_v11 = vsub.f32 %v22670_v15, %v13065_v47  ;;  %v9740_v3 = vadd.f32 %v9739_v39, %v9686_v13  ;;  %v13072_v50 = vsub.f32 %v22686_v61, %v13071_v59 }
 0x603   :  { %12926 = vmatpush.msra.mxu1 %v22274_v6  ;;  %12969 = vmatpush.msra.mxu2 %v22551_v5  ;;  %v9778_v6 = vpop.f32.mrf.mxu1  ;;  %v22746_v13 = vsub.f32 %v23978_v37, %v22726_v12  ;;  %v13084_v39 = vsub.f32 %v22712_v21, %v13083_v57 }
 0x604   :  { %13044 = vmatpush.msra.mxu3 %v13043_v27  ;;  %12881 = vmatpush.msra.mxu0 %v23977_v60  ;;  %v23979_v27 = vand.u32 4294901760, %v22372_v32  ;;  %v9779_v60 = vadd.f32 %v9778_v6, %v9740_v3  ;;  %v13078_v32 = vsub.f32 %v22699_v63, %v13077_v34 }
 0x605   :  { %12928 = vmatpush.msra.mxu1 %v22288_v41  ;;  %12971 = vmatpush.msra.mxu2 %v22567_v29  ;;  %v23980_v41 = vand.u32 4294901760, %v22395_v31  ;;  %v13073_v31 = vand.u32 4294901760, %v13072_v50  ;;  %v12990_v6 = vand.u32 4294901760, %v22746_v13  ;;  %v13085_v3 = vand.u32 4294901760, %v13084_v39  ;;  %v23990_v39 = vld [vmem:[#allocation28_spill] sm:$0xff] }
 0x606   :  { %13050 = vmatpush.msra.mxu3 %v13049_v43  ;;  %12885 = vmatpush.msra.mxu0 %v23979_v27  ;;  %v13067_v43 = vand.u32 4294901760, %v13066_v11  ;;  %v13079_v37 = vand.u32 4294901760, %v13078_v32  ;;  %v23984_v50 = vand.u32 4294901760, %v22490_v19 }
 0x607   :  { %12930 = vmatpush.msra.mxu1 %v22301_v0  ;;  %12973 = vmatpush.msra.mxu2 %v22593_v14  ;;  %v23981_v0 = vand.u32 4294901760, %v22412_v46  ;;  %v13090_v46 = vsub.f32 %v22723_v8, %v13089_v23  ;;  %v9884_v27 = vpop.f32.mrf.mxu3 }
 0x608   :  { %13056 = vmatpush.msra.mxu3 %v13055_v40  ;;  %12889 = vmatpush.msra.mxu0 %v23980_v41  ;;  %v9847_v40 = vpop.f32.mrf.mxu2 }
 0x609   :  { %12932 = vmatpush.msra.mxu1 %v22318_v18  ;;  %12975 = vmatpush.msra.mxu2 %v22611_v9  ;;  %v9848_v11 = vadd.f32 %v9847_v40, %v9779_v60  ;;  %v23982_v18 = vand.u32 4294901760, %v22432_v2  ;;  %v13091_v60 = vand.u32 4294901760, %v13090_v46  ;;  %v23991_v40 = vand.u32 4294901760, %v23990_v39 }
 0x60a   :  { %13062 = vmatpush.msra.mxu3 %v13061_v49  ;;  %12893 = vmatpush.msra.mxu0 %v23981_v0  ;;  %v9925_v49 = vpop.f32.mrf.mxu0 }
 0x60b   :  { %12934 = vmatpush.msra.mxu1 %v22325_v22  ;;  %12977 = vmatpush.msra.mxu2 %v22627_v24  ;;  %v23983_v22 = vand.u32 4294901760, %v22441_v20  ;;  %v9885_v2 = vadd.f32 %v9884_v27, %v9848_v11  ;;  %v12991_v20 = vsub.f32 %v22746_v13, %v12990_v6  ;;  %v23992_v11 = vld [vmem:[#allocation25_spill] sm:$0xff] }
 0x60c   :  { %13068 = vmatpush.msra.mxu3 %v13067_v43  ;;  %12897 = vmatpush.msra.mxu0 %v23982_v18  ;;  %v23986_v43 = vld [vmem:[#allocation20_spill] sm:$0xff]  ;;  %v23993_v18 = vld [vmem:[#allocation19_spill] sm:$0xff] }
 0x60d   :  { %12936 = vmatpush.msra.mxu1 %v22338_v26  ;;  %12979 = vmatpush.msra.mxu2 %v22642_v44  ;;  %v10026_v26 = vpop.f32.mrf.mxu1  ;;  %v9926_v41 = vadd.f32 %v9925_v49, %v9885_v2  ;;  %v23987_v32 = vand.u32 4294901760, %v23986_v43  ;;  %v12992_v0 = vand.u32 4294901760, %v12991_v20  ;;  %v23996_v49 = vld [vmem:[#allocation30_spill] sm:$0xff]  ;;  %v23999_v20 = vld [vmem:[#allocation31_spill] sm:$0xff]  ;;  %v24002_v43 = vand.u32 4294901760, %v22575_v36 }
 0x60e   :  { %13074 = vmatpush.msra.mxu3 %v13073_v31  ;;  %12901 = vmatpush.msra.mxu0 %v23983_v22  ;;  %v23989_v31 = vld [vmem:[#allocation18_spill] sm:$0xff]  ;;  %v23997_v2 = vand.u32 4294901760, %v23996_v49 }
 0x60f   :  { %12938 = vmatpush.msra.mxu1 %v22366_v16  ;;  %12981 = vmatpush.msra.mxu2 %v22657_v38  ;;  %v23985_v16 = vand.u32 4294901760, %v22508_v54  ;;  %v10027_v19 = vadd.f32 %v10026_v26, %v9926_v41  ;;  %v10119_v46 = vpop.f32.mrf.mxu3  ;;  %v24000_v41 = vand.u32 4294901760, %v23999_v20 }
 0x610   :  { %13080 = vmatpush.msra.mxu3 %v13079_v37  ;;  %12905 = vmatpush.msra.mxu0 %v23984_v50  ;;  %v10080_v54 = vpop.f32.mrf.mxu2  ;;  %v23994_v37 = vand.u32 4294901760, %v23993_v18 }
 0x611   :  { %12940 = vmatpush.msra.mxu1 %v22382_v25  ;;  %12983 = vmatpush.msra.mxu2 %v22672_v42  ;;  %v23988_v25 = vld [vmem:[#allocation9_spill] sm:$0xff] }
 0x612   :  { %13086 = vmatpush.msra.mxu3 %v13085_v3  ;;  %12909 = vmatpush.msra.mxu0 %v23985_v16  ;;  %v10188_v22 = vpop.f32.mrf.mxu0  ;;  %v23995_v3 = vld [vmem:[#allocation26_spill] sm:$0xff] }
 0x613   :  { %12942 = vmatpush.msra.mxu1 %v22397_v53  ;;  %12985 = vmatpush.msra.mxu2 %v22688_v10  ;;  %v10081_v53 = vadd.f32 %v10080_v54, %v10027_v19  ;;  %v24001_v19 = vand.u32 4294901760, %v22559_v55 }
 0x614   :  { %13092 = vmatpush.msra.mxu3 %v13091_v60  ;;  %12913 = vmatpush.msra.mxu0 %v23987_v32  ;;  %v23998_v60 = vld [vmem:[#allocation5_spill] sm:$0xff] }
 0x615   :  { %13094 = vmatmul.f32.vlgmr.msra.gmra.mxu3 %v22726_v12  ;;  %12944 = vmatpush.msra.mxu1 %v23988_v25  ;;  %v10120_v27 = vadd.f32 %v10119_v46, %v10081_v53  ;;  %v10225_v50 = vpop.f32.mrf.mxu1 }
 0x616   :  { %13261 = vmatpush.msrb.mxu3 %v23989_v31  ;;  %12987 = vmatpush.msra.mxu2 %v22701_v48 }
 0x617   :  { %12915 = vmatmul.f32.vlgmr.msra.gmra.mxu0 %v22418_v58  ;;  %12993 = vmatmul.f32.vlgmr.msra.gmra.mxu2 %v12992_v0  ;;  %v10189_v26 = vadd.f32 %v10188_v22, %v10120_v27 }
 0x618   :  { %13100 = vmatpush.msrb.mxu0 %v23990_v39  ;;  %13194 = vmatpush.msrb.mxu2 %v23991_v40 }
 0x619   :  { %13263 = vmatpush.msrb.mxu3 %v22446_v62  ;;  %12946 = vmatpush.msra.mxu1 %v23992_v11  ;;  %v10226_v16 = vadd.f32 %v10225_v50, %v10189_v26 }
 0x61a   :  { %13103 = vmatpush.msrb.mxu0 %v23993_v18  ;;  %13198 = vmatpush.msrb.mxu2 %v23994_v37  ;;  %v10421_v25 = vpop.f32.mrf.mxu0 }
 0x61b   :  { %13265 = vmatpush.msrb.mxu3 %v22477_v4  ;;  %12948 = vmatpush.msra.mxu1 %v23995_v3 }
 0x61c   :  { %13106 = vmatpush.msrb.mxu0 %v23996_v49  ;;  %13202 = vmatpush.msrb.mxu2 %v23997_v2 }
 0x61d   :  { %13267 = vmatpush.msrb.mxu3 %v22494_v1  ;;  %12950 = vmatpush.msra.mxu1 %v23998_v60 }
 0x61e   :  { %12952 = vmatmul.f32.vlgmr.msra.gmra.mxu1 %v22418_v58  ;;  %13109 = vmatpush.msrb.mxu0 %v23999_v20  ;;  %v10266_v58 = vpop.f32.mrf.mxu2 }
 0x61f   :  { %13153 = vmatpush.msrb.mxu1 %v23989_v31  ;;  %13206 = vmatpush.msrb.mxu2 %v24000_v41  ;;  %v10267_v32 = vadd.f32 %v10266_v58, %v10226_v16 }
 0x620   :  { %13269 = vmatpush.msrb.mxu3 %v22522_v33  ;;  %13112 = vmatpush.msrb.mxu0 %v22559_v55  ;;  %v10367_v55 = vpop.f32.mrf.mxu3 }
 0x621   :  { %13155 = vmatpush.msrb.mxu1 %v22446_v62  ;;  %13210 = vmatpush.msrb.mxu2 %v24001_v19  ;;  %v24003_v62 = vand.u32 4294901760, %v22585_v45 }
 0x622   :  { %13271 = vmatpush.msrb.mxu3 %v22543_v51  ;;  %13115 = vmatpush.msrb.mxu0 %v22575_v36 }
 0x623   :  { %13157 = vmatpush.msrb.mxu1 %v22477_v4  ;;  %13214 = vmatpush.msrb.mxu2 %v24002_v43  ;;  %v10368_v4 = vadd.f32 %v10367_v55, %v10267_v32 }
 0x624   :  { %13273 = vmatpush.msrb.mxu3 %v22551_v5  ;;  %13118 = vmatpush.msrb.mxu0 %v22585_v45  ;;  %v24004_v45 = vand.u32 4294901760, %v22625_v30 }
 0x625   :  { %13159 = vmatpush.msrb.mxu1 %v22494_v1  ;;  %13218 = vmatpush.msrb.mxu2 %v24003_v62  ;;  %v10460_v1 = vpop.f32.mrf.mxu1  ;;  %v10422_v36 = vadd.f32 %v10421_v25, %v10368_v4 }
 0x626   :  { %13275 = vmatpush.msrb.mxu3 %v22567_v29  ;;  %13121 = vmatpush.msrb.mxu0 %v22604_v28 }
 0x627   :  { %13161 = vmatpush.msrb.mxu1 %v22522_v33  ;;  %13222 = vmatpush.msrb.mxu2 %v13041_v17  ;;  %v10461_v28 = vadd.f32 %v10460_v1, %v10422_v36  ;;  %v10529_v33 = vpop.f32.mrf.mxu2 }
 0x628   :  { %13277 = vmatpush.msrb.mxu3 %v22593_v14  ;;  %13124 = vmatpush.msrb.mxu0 %v22625_v30  ;;  %v10566_v17 = vpop.f32.mrf.mxu3 }
 0x629   :  { %13163 = vmatpush.msrb.mxu1 %v22543_v51  ;;  %13226 = vmatpush.msrb.mxu2 %v24004_v45  ;;  %v10607_v51 = vpop.f32.mrf.mxu0 }
 0x62a   :  { %13279 = vmatpush.msrb.mxu3 %v22611_v9  ;;  %13127 = vmatpush.msrb.mxu0 %v22640_v52 }
 0x62b   :  { %13165 = vmatpush.msrb.mxu1 %v22551_v5  ;;  %13230 = vmatpush.msrb.mxu2 %v13053_v7  ;;  %v10530_v5 = vadd.f32 %v10529_v33, %v10461_v28 }
 0x62c   :  { %13281 = vmatpush.msrb.mxu3 %v22627_v24  ;;  %13130 = vmatpush.msrb.mxu0 %v22655_v35 }
 0x62d   :  { %13167 = vmatpush.msrb.mxu1 %v22567_v29  ;;  %13234 = vmatpush.msrb.mxu2 %v13059_v56  ;;  %v10567_v29 = vadd.f32 %v10566_v17, %v10530_v5 }
 0x62e   :  { %13283 = vmatpush.msrb.mxu3 %v22642_v44  ;;  %13133 = vmatpush.msrb.mxu0 %v22670_v15 }
 0x62f   :  { %13169 = vmatpush.msrb.mxu1 %v22593_v14  ;;  %13238 = vmatpush.msrb.mxu2 %v13065_v47  ;;  %v10708_v14 = vpop.f32.mrf.mxu1 }
 0x630   :  { %13285 = vmatpush.msrb.mxu3 %v22657_v38  ;;  %13136 = vmatpush.msrb.mxu0 %v22686_v61 }
 0x631   :  { %13171 = vmatpush.msrb.mxu1 %v22611_v9  ;;  %13242 = vmatpush.msrb.mxu2 %v13071_v59  ;;  %v10608_v9 = vadd.f32 %v10607_v51, %v10567_v29  ;;  %v10870_v35 = vpop.f32.mrf.mxu0 }
 0x632   :  { %13287 = vmatpush.msrb.mxu3 %v22672_v42  ;;  %13139 = vmatpush.msrb.mxu0 %v22699_v63 }
 0x633   :  { %13173 = vmatpush.msrb.mxu1 %v22627_v24  ;;  %13246 = vmatpush.msrb.mxu2 %v13077_v34  ;;  %v10709_v30 = vadd.f32 %v10708_v14, %v10608_v9  ;;  %v10762_v24 = vpop.f32.mrf.mxu2 }
 0x634   :  { %13289 = vmatpush.msrb.mxu3 %v22688_v10  ;;  %13142 = vmatpush.msrb.mxu0 %v22712_v21 }
 0x635   :  { %13175 = vmatpush.msrb.mxu1 %v22642_v44  ;;  %13250 = vmatpush.msrb.mxu2 %v13083_v57  ;;  %v10763_v52 = vadd.f32 %v10762_v24, %v10709_v30  ;;  %v10801_v44 = vpop.f32.mrf.mxu3 }
 0x636   :  { %13291 = vmatpush.msrb.mxu3 %v22701_v48  ;;  %13145 = vmatpush.msrb.mxu0 %v22723_v8 }
 0x637   :  { %13293 = vmatmul.f32.vlgmr.msrb.gmra.mxu3 %v22726_v12  ;;  %13177 = vmatpush.msrb.mxu1 %v22657_v38  ;;  %v10802_v38 = vadd.f32 %v10801_v44, %v10763_v52  ;;  %v10907_v7 = vpop.f32.mrf.mxu1 }
 0x638   :  { %13254 = vmatpush.msrb.mxu2 %v13089_v23  ;;  %13148 = vmatmul.f32.vlgmr.msrb.gmra.mxu0 %v22746_v13 }
 0x639   :  { %13256 = vmatmul.f32.vlgmr.msrb.gmra.mxu2 %v22726_v12  ;;  %13179 = vmatpush.msrb.mxu1 %v22672_v42  ;;  %v10871_v15 = vadd.f32 %v10870_v35, %v10802_v38  ;;  %v11103_v59 = vpop.f32.mrf.mxu0 }
 0x63b   :  { %13181 = vmatpush.msrb.mxu1 %v22688_v10  ;;  %v10908_v56 = vadd.f32 %v10907_v7, %v10871_v15  ;;  %v10948_v61 = vpop.f32.mrf.mxu2 }
 0x63d   :  { %13183 = vmatpush.msrb.mxu1 %v22701_v48  ;;  %v10949_v47 = vadd.f32 %v10948_v61, %v10908_v56  ;;  %v11049_v63 = vpop.f32.mrf.mxu3 }
 0x63e   :  { %13187 = vmatmul.f32.vlgmr.msrb.gmra.mxu1 %v12990_v6 }
 0x63f   :  { %v11050_v42 = vadd.f32 %v11049_v63, %v10949_v47  ;;  %v11142_v21 = vpop.f32.mrf.mxu1 }
 0x641   :  { %v11104_v34 = vadd.f32 %v11103_v59, %v11050_v42  ;;  %v11289_v57 = vpop.f32.mrf.mxu0 }
 0x643   :  { %v11143_v10 = vadd.f32 %v11142_v21, %v11104_v34  ;;  %v11211_v8 = vpop.f32.mrf.mxu2 }
 0x645   :  { %v11212_v12 = vadd.f32 %v11211_v8, %v11143_v10  ;;  %v11248_v48 = vpop.f32.mrf.mxu3 }
 0x647   :  { %v11249_v23 = vadd.f32 %v11248_v48, %v11212_v12  ;;  %v11390_v13 = vpop.f32.mrf.mxu1 }
 0x649   :  { %v11290_v6 = vadd.f32 %v11289_v57, %v11249_v23  ;;  %v11552_v39 = vpop.f32.mrf.mxu0 }
 0x64b   :  { %v11391_v0 = vadd.f32 %v11390_v13, %v11290_v6  ;;  %v11444_v31 = vpop.f32.mrf.mxu2 }
 0x64d   :  { %v11445_v54 = vadd.f32 %v11444_v31, %v11391_v0  ;;  %v11483_v53 = vpop.f32.mrf.mxu3 }
 0x64f   :  { %v11484_v40 = vadd.f32 %v11483_v53, %v11445_v54  ;;  %v11589_v11 = vpop.f32.mrf.mxu1 }
 0x651   :  { %v11553_v18 = vadd.f32 %v11552_v39, %v11484_v40  ;;  %v11785_v27 = vpop.f32.mrf.mxu0 }
 0x653   :  { %v11590_v37 = vadd.f32 %v11589_v11, %v11553_v18  ;;  %v11630_v46 = vpop.f32.mrf.mxu2 }
 0x655   :  { %v11631_v22 = vadd.f32 %v11630_v46, %v11590_v37  ;;  %v11731_v3 = vpop.f32.mrf.mxu3 }
 0x657   :  { %v11732_v49 = vadd.f32 %v11731_v3, %v11631_v22  ;;  %v11824_v2 = vpop.f32.mrf.mxu1 }
 0x659   :  { %v11786_v50 = vadd.f32 %v11785_v27, %v11732_v49  ;;  %v11971_v16 = vpop.f32.mrf.mxu0 }
 0x65b   :  { %v11825_v60 = vadd.f32 %v11824_v2, %v11786_v50  ;;  %v11893_v26 = vpop.f32.mrf.mxu2 }
 0x65d   :  { %v11894_v20 = vadd.f32 %v11893_v26, %v11825_v60  ;;  %v11930_v41 = vpop.f32.mrf.mxu3 }
 0x65f   :  { %v11931_v19 = vadd.f32 %v11930_v41, %v11894_v20  ;;  %v12072_v58 = vpop.f32.mrf.mxu1 }
 0x661   :  { %v11972_v43 = vadd.f32 %v11971_v16, %v11931_v19  ;;  %v12234_v4 = vpop.f32.mrf.mxu0 }
 0x663   :  { %v12073_v32 = vadd.f32 %v12072_v58, %v11972_v43  ;;  %v12126_v62 = vpop.f32.mrf.mxu2 }
 0x665   :  { %v12127_v55 = vadd.f32 %v12126_v62, %v12073_v32  ;;  %v12165_v25 = vpop.f32.mrf.mxu3 }
 0x667   :  { %v12166_v1 = vadd.f32 %v12165_v25, %v12127_v55  ;;  %v12271_v45 = vpop.f32.mrf.mxu1 }
 0x669   :  { %v12235_v36 = vadd.f32 %v12234_v4, %v12166_v1  ;;  %v12467_v51 = vpop.f32.mrf.mxu0 }
 0x66b   :  { %v12272_v28 = vadd.f32 %v12271_v45, %v12235_v36  ;;  %v12312_v33 = vpop.f32.mrf.mxu2 }
 0x66d   :  { %v12313_v5 = vadd.f32 %v12312_v33, %v12272_v28  ;;  %v12413_v17 = vpop.f32.mrf.mxu3 }
 0x66f   :  { %v12414_v29 = vadd.f32 %v12413_v17, %v12313_v5  ;;  %v12506_v14 = vpop.f32.mrf.mxu1 }
 0x671   :  { %v12468_v9 = vadd.f32 %v12467_v51, %v12414_v29 }
 0x672   :  { %v12653_v35 = vpop.f32.mrf.mxu0 }
 0x673   :  { %v12507_v30 = vadd.f32 %v12506_v14, %v12468_v9  ;;  %v12575_v24 = vpop.f32.mrf.mxu2 }
 0x675   :  { %v12576_v52 = vadd.f32 %v12575_v24, %v12507_v30  ;;  %v12612_v44 = vpop.f32.mrf.mxu3 }
 0x677   :  { %v12613_v38 = vadd.f32 %v12612_v44, %v12576_v52 }
 0x679   :  { %v12754_v7 = vpop.f32.mrf.mxu1  ;;  %v12654_v15 = vadd.f32 %v12653_v35, %v12613_v38 }
 0x67b   :  { %v12755_v56 = vadd.f32 %v12754_v7, %v12654_v15  ;;  %v12808_v61 = vpop.f32.mrf.mxu2 }
 0x67d   :  { %v12809_v47 = vadd.f32 %v12808_v61, %v12755_v56  ;;  %v12847_v63 = vpop.f32.mrf.mxu3 }
 0x67f   :  { %v12848_v42 = vadd.f32 %v12847_v63, %v12809_v47 }
 0x694   :  { %v12916_v59 = vpop.f32.mrf.mxu0 }
 0x695   :  { %v12917_v34 = vadd.f32 %v12916_v59, %v12848_v42 }
 0x698   :  { %v13095_v48 = vpop.f32.mrf.mxu3 }
 0x69a   :  { %v12994_v8 = vpop.f32.mrf.mxu2 }
 0x69b   :  { %v12953_v21 = vpop.f32.mrf.mxu1 }
 0x69c   :  { %v12954_v10 = vadd.f32 %v12953_v21, %v12917_v34 }
 0x69e   :  { %v12995_v12 = vadd.f32 %v12994_v8, %v12954_v10 }
 0x6a0   :  { %v13096_v23 = vadd.f32 %v13095_v48, %v12995_v12 }
 0x6b5   :  { %v13149_v57 = vpop.f32.mrf.mxu0 }
 0x6b6   :  { %v13150_v13 = vadd.f32 %v13149_v57, %v13096_v23 }
 0x6ba   :  { %v13294_v53 = vpop.f32.mrf.mxu3 }
 0x6bb   :  { %v13188_v6 = vpop.f32.mrf.mxu1 }
 0x6bc   :  { %v13189_v0 = vadd.f32 %v13188_v6, %v13150_v13  ;;  %v13257_v31 = vpop.f32.mrf.mxu2 }
 0x6be   :  { %v13258_v54 = vadd.f32 %v13257_v31, %v13189_v0 }
 0x6c0   :  { %v13295_v39 = vadd.f32 %v13294_v53, %v13258_v54 }
 0x6c2   :  { %v13297_v40 = vmul.f32 0.001953125, %v13295_v39 }
 0x6c4   :  { %13299 = vst.msk [vmem:[#allocation2] sm:$0x3] %vm13298_vm3, %v13297_v40 }
 0x6c5   :  { %13312 = dma.vmem_to_hbm [thread:$0]  %s13308_s11, 32, %s13310_s1, [#allocation3]  }
 0x6c6   :  { %13345 = dma.done.wait [#allocation3], 32  }
 0x6c7   :  { %13346 = vsyncadd [#allocation3], 4294967264 }
 0x6c8   :  { %13319 = vsyncpa [#allocation3], 1 }

</bundles_post_ra>
